<compile_context>
chip_gen: v7x
topology: tpu7x:2x2x1
jax: 0.10.0
libtpu: 0.0.40
codegen_flags: <defaults>
</compile_context>

<pallas_src>
import functools

import jax
import jax.numpy as jnp
from jax.experimental import pallas as pl
from jax.experimental.pallas import tpu as pltpu

FEAT_DIM = 6 + 24 + 9  # 39


def _cdiv(a, b):
    return -(-a // b)


def _round_up(x, m):
    return ((x + m - 1) // m) * m


def _choose_tile(M, tm_desired):
    """Pick (tm_s, m_pad, grid) for a ~tm_desired-group lane-dense tile.

    tm_s is the tile's sublane extent (tile = tm_s * 128 groups).  Multi-step
    grids use 8-aligned tm_s (f32 sublane tile) with minimal padding and are
    made even when that is ~free (v7x has 2 TensorCores).  Single-step grids
    use the exact padded sublane count (block == full array dim), so padding
    is at most 127 groups there.
    """
    m128 = _round_up(max(M, 1), 128)
    s = m128 // 128                      # groups in units of 128 lanes
    u = _cdiv(s, 8)                      # groups in units of 1024 (8 sublanes)
    units_desired = max(1, tm_desired // 1024)
    tm_units = _cdiv(u, _cdiv(u, units_desired))
    g = _cdiv(u, tm_units)
    if g > 1 and g % 2 == 1:
        alt = _cdiv(u, g + 1)            # even grid only if it adds no padding
        if (g + 1) * alt <= g * tm_units:
            g, tm_units = g + 1, alt
    tm_s = s if g == 1 else 8 * tm_units
    return tm_s, tm_s * 128 * g, g


def _jacobi_eigh_3x3(g, n_sweeps=4):
    """Vectorized Jacobi eigendecomposition of symmetric 3x3 matrices.

    g[(i, j)] for i <= j are lane-dense (cs, 128) f32 arrays.  Returns
    (eigvals [l0, l1, l2] unsorted, V) with eigenvectors in the columns of V.
    4 cyclic sweeps converge far below 1e-6 for 3x3.
    """
    A = [[g[(min(i, j), max(i, j))] for j in range(3)] for i in range(3)]
    one = jnp.ones_like(A[0][0])
    zero = jnp.zeros_like(A[0][0])
    V = [[one if i == j else zero for j in range(3)] for i in range(3)]
    for _ in range(n_sweeps):
        for (p, q) in ((0, 1), (0, 2), (1, 2)):
            apq = A[p][q]
            app = A[p][p]
            aqq = A[q][q]
            d = aqq - app
            sgn_d = jnp.where(d >= 0.0, 1.0, -1.0)
            denom = jnp.abs(d) + jnp.sqrt(d * d + 4.0 * apq * apq)
            # Exact division (no approx reciprocal): the rotation feeds the
            # eigenvector-derived features, which are sensitive when two
            # eigenvalues nearly coincide.
            t = (2.0 * apq * sgn_d) / (denom + 1e-30)
            c = 1.0 / jnp.sqrt(t * t + 1.0)
            s = t * c
            t_apq = t * apq
            r = 3 - p - q  # remaining index
            arp = A[r][p]
            arq = A[r][q]
            new_arp = c * arp - s * arq
            new_arq = s * arp + c * arq
            A[p][p] = app - t_apq
            A[q][q] = aqq + t_apq
            A[p][q] = zero
            A[q][p] = zero
            A[r][p] = new_arp
            A[p][r] = new_arp
            A[r][q] = new_arq
            A[q][r] = new_arq
            for i in range(3):
                vip = V[i][p]
                viq = V[i][q]
                V[i][p] = c * vip - s * viq
                V[i][q] = s * vip + c * viq
    return [A[0][0], A[1][1], A[2][2]], V


def _sort3_desc(lams, V):
    """Sort eigen pairs descending; returns (lams, cols) with cols[j] = eigvec j."""
    cols = [[V[0][j], V[1][j], V[2][j]] for j in range(3)]
    lams = list(lams)
    for (i, j) in ((0, 1), (0, 2), (1, 2)):
        swap = lams[i] < lams[j]
        li = jnp.where(swap, lams[j], lams[i])
        lj = jnp.where(swap, lams[i], lams[j])
        ci = [jnp.where(swap, b, a) for a, b in zip(cols[i], cols[j])]
        cj = [jnp.where(swap, a, b) for a, b in zip(cols[i], cols[j])]
        lams[i], lams[j] = li, lj
        cols[i], cols[j] = ci, cj
    return lams, cols


def _pointhop_kernel(x_ref, c_ref, o_ref, *, K):
    # x_ref: (3, K, tm_s, 128)  grouped points, coordinate/K-major, groups on lanes
    # c_ref: (3, tm_s, 128)     group centers (new_xyz)
    # o_ref: (39, tm_s, 128)    features, one lane-dense row per feature
    tm_s = o_ref.shape[1]
    inv_k = 1.0 / float(K)
    inv_km1 = 1.0 / float(max(K - 1, 1))  # K == 1: torch.std -> nan, we emit 0

    # Process 8 sublanes (1024 groups) at a time so every accumulator is a
    # single (8, 128) f32 vreg.  K and the chunk count are small and static,
    # so the loops are fully unrolled for the LLO scheduler.
    for c0 in range(0, tm_s, 8):
        cs = min(8, tm_s - c0)
        sl = pl.ds(c0, cs)
        zero = jnp.zeros((cs, 128), jnp.float32)

        # ---- Stream over the K neighbours with register-resident accumulators.
        sums = [zero, zero, zero]                       # sum_k of x, y, z
        gram = {(i, j): zero for i in range(3) for j in range(i, 3)}
        msum = [[zero] * 7 for _ in range(3)]           # subset sums per coord
        mcnt = [zero] * 7                               # subset counts
        # subset order: x, y, z, xy, xz, yz, xyz (P = coordinate > 0)
        for k in range(K):
            a = [x_ref[i, k, sl, :].astype(jnp.float32) for i in range(3)]
            for i in range(3):
                sums[i] = sums[i] + a[i]
            for i in range(3):
                for j in range(i, 3):
                    gram[(i, j)] = gram[(i, j)] + a[i] * a[j]
            fx = jnp.where(a[0] > 0.0, 1.0, 0.0)
            fy = jnp.where(a[1] > 0.0, 1.0, 0.0)
            fz = jnp.where(a[2] > 0.0, 1.0, 0.0)
            fxy = fx * fy
            fxz = fx * fz
            fyz = fy * fz
            fxyz = fxy * fz
            masks = (fx, fy, fz, fxy, fxz, fyz, fxyz)
            for m in range(7):
                mcnt[m] = mcnt[m] + masks[m]
                for i in range(3):
                    msum[i][m] = msum[i][m] + a[i] * masks[m]

        # rows 0:3 -- unbiased std over K (torch.std default) from the Gram diag
        for i in range(3):
            var = (gram[(i, i)] - sums[i] * sums[i] * inv_k) * inv_km1
            o_ref[i, sl, :] = jnp.sqrt(jnp.maximum(var, 0.0))

        # rows 3:6 -- group centers
        for i in range(3):
            o_ref[3 + i, sl, :] = c_ref[i, sl, :].astype(jnp.float32)

        # rows 6:30 -- octant scatter_mean via inclusion-exclusion over the
        # subset sums (octant index = 4*(x>0) + 2*(y>0) + (z>0); empty -> 0).
        def octants(v, total):
            # v = [Sx, Sy, Sz, Sxy, Sxz, Syz, Sxyz]; total = sum over all K.
            o111 = v[6]
            o110 = v[3] - o111
            o101 = v[4] - o111
            o011 = v[5] - o111
            o100 = v[0] - v[3] - v[4] + o111
            o010 = v[1] - v[3] - v[5] + o111
            o001 = v[2] - v[4] - v[5] + o111
            o000 = total - v[0] - v[1] - v[2] + v[3] + v[4] + v[5] - o111
            return [o000, o001, o010, o011, o100, o101, o110, o111]

        cnts = octants(mcnt, jnp.full((cs, 128), float(K), jnp.float32))
        csums = [octants(msum[i], sums[i]) for i in range(3)]
        for o in range(8):
            inv_cnt = 1.0 / jnp.maximum(cnts[o], 1.0)   # exact; empty octant -> 0
            for i in range(3):
                o_ref[6 + 3 * o + i, sl, :] = csums[i][o] * inv_cnt

        # rows 30:39 -- SVD of each (K, 3) point set via the 3x3 Gram matrix.
        lams, V = _jacobi_eigh_3x3(gram, n_sweeps=4)
        lams, cols = _sort3_desc(lams, V)               # descending, like torch
        s1 = jnp.sqrt(jnp.maximum(lams[0], 0.0))
        s2 = jnp.sqrt(jnp.maximum(lams[1], 0.0))
        s3 = jnp.sqrt(jnp.maximum(lams[2], 0.0))
        v1, v2, v3 = cols                               # right singular vectors

        inv_d1 = 1.0 / (s1 + 1e-10)                     # exact division
        o_ref[30, sl, :] = (s1 - s2) * inv_d1           # Linearity
        o_ref[31, sl, :] = (s2 - s3) * inv_d1           # Planarity
        o_ref[32, sl, :] = s3 * inv_d1                  # Scattering

        # direction: u_j = sum_i s_i * |j-th component of i-th right sing. vec|
        for j in range(3):
            o_ref[33 + j, sl, :] = (s1 * jnp.abs(v1[j]) + s2 * jnp.abs(v2[j])
                                    + s3 * jnp.abs(v3[j]))

        # norm = Vh[:, :, 0] = x-components of the three right singular vectors.
        # TODO(synk): SVD sign convention is ambiguous; may flip sign vs torch.
        o_ref[36, sl, :] = v1[0]
        o_ref[37, sl, :] = v2[0]
        o_ref[38, sl, :] = v3[0]


def pointhop_forward(group_xyz, new_xyz, *, tm=2048):
    """Pallas implementation of PointHop.forward.

    group_xyz: (B, N, K, 3), new_xyz: (B, N, 3) -> features (B, N, 39).
    Inputs keep their incoming dtype through HBM; the kernel casts to f32.
    """
    B, N, K, C = group_xyz.shape
    assert C == 3, "PointHop expects xyz coordinates"
    M = B * N
    tm_s, m_pad, g = _choose_tile(M, tm)
    ms = m_pad // 128

    # TODO(synk): have the upstream grouping op emit this coordinate/K-major
    # layout (and the consumer take the (39, M) feature-major output) so these
    # relayouts do not round-trip HBM.
    x = group_xyz.reshape(M, K, 3)
    c = new_xyz.reshape(M, 3)
    if m_pad != M:
        x = jnp.pad(x, ((0, m_pad - M), (0, 0), (0, 0)))
        c = jnp.pad(c, ((0, m_pad - M), (0, 0)))
    x = jnp.transpose(x, (2, 1, 0)).reshape(3, K, ms, 128)
    c = jnp.transpose(c, (1, 0)).reshape(3, ms, 128)

    kernel = functools.partial(_pointhop_kernel, K=K)
    out = pl.pallas_call(
        kernel,
        out_shape=jax.ShapeDtypeStruct((FEAT_DIM, ms, 128), jnp.float32),
        grid_spec=pltpu.PrefetchScalarGridSpec(
            num_scalar_prefetch=0,
            grid=(g,),
            in_specs=[
                pl.BlockSpec((3, K, tm_s, 128), lambda i: (0, 0, i, 0)),
                pl.BlockSpec((3, tm_s, 128), lambda i: (0, i, 0)),
            ],
            out_specs=pl.BlockSpec((FEAT_DIM, tm_s, 128), lambda i: (0, i, 0)),
        ),
        compiler_params=pltpu.CompilerParams(
            dimension_semantics=("parallel",),
            vmem_limit_bytes=32 * 1024 * 1024),
    )(x, c)
    feat = out.reshape(FEAT_DIM, m_pad).T[:M]
    return feat.reshape(B, N, FEAT_DIM)


def _reference(group_xyz, new_xyz):
    """Pure-JAX reference: cols 0:36, |norm| for cols 36:39, singular values."""
    B, N, K, _ = group_xyz.shape
    M = B * N
    X = group_xyz.reshape(M, K, 3).astype(jnp.float32)
    std_xyz = jnp.std(X, axis=1, ddof=1)
    center = new_xyz.reshape(M, 3).astype(jnp.float32)
    idx = ((X[:, :, 0] > 0).astype(jnp.int32) * 4
           + (X[:, :, 1] > 0).astype(jnp.int32) * 2
           + (X[:, :, 2] > 0).astype(jnp.int32))
    oh = jax.nn.one_hot(idx, 8, dtype=jnp.float32)              # (M, K, 8)
    sums = jnp.einsum('mko,mkc->moc', oh, X)                    # (M, 8, 3)
    cnts = jnp.maximum(jnp.sum(oh, axis=1), 1.0)[:, :, None]
    octf = (sums / cnts).reshape(M, 24)
    _, s, vh = jnp.linalg.svd(X, full_matrices=False)
    a1, a2, a3 = s[:, 0], s[:, 1], s[:, 2]
    lin = ((a1 - a2) / (a1 + 1e-10))[:, None]
    plan = ((a2 - a3) / (a1 + 1e-10))[:, None]
    scat = (a3 / (a1 + 1e-10))[:, None]
    direction = jnp.einsum('mi,mij->mj', s, jnp.abs(vh))        # sign-invariant
    ref36 = jnp.concatenate([std_xyz, center, octf, lin, plan, scat, direction],
                            axis=-1)
    norm_abs = jnp.abs(vh[:, :, 0])
    return ref36, norm_abs, s


if __name__ == "__main__":
    key = jax.random.PRNGKey(0)
    B, N, K = 2, 16, 16
    k1, k2 = jax.random.split(key)
    group_xyz = jax.random.normal(k1, (B, N, K, 3), dtype=jnp.float32)
    new_xyz = jax.random.normal(k2, (B, N, 3), dtype=jnp.float32)

    feats = jax.block_until_ready(pointhop_forward(group_xyz, new_xyz))
    assert feats.shape == (B, N, FEAT_DIM), feats.shape
    assert bool(jnp.all(jnp.isfinite(feats)))

    ref36, norm_abs, s_ref = _reference(group_xyz, new_xyz)
    f = feats.reshape(B * N, FEAT_DIM)

    # std / center / octant means: plain element-wise statistics -> tight match.
    err_stats = float(jnp.max(jnp.abs(f[:, :30] - ref36[:, :30])))
    assert err_stats < 1e-3, f"cols 0:30 error vs reference: {err_stats}"

    # Linearity / Planarity / Scattering depend only on the singular values.
    err_shape = float(jnp.max(jnp.abs(f[:, 30:33] - ref36[:, 30:33])))
    assert err_shape < 2e-3, f"cols 30:33 error vs reference: {err_shape}"

    # direction / norm depend on singular *vectors*, which are intrinsically
    # ill-conditioned (for any SVD implementation) when two singular values
    # nearly coincide; compare on well-separated groups (nearly all of them).
    a1, a2, a3 = s_ref[:, 0], s_ref[:, 1], s_ref[:, 2]
    rel_gap = jnp.minimum(a1 - a2, a2 - a3) / (a1 + 1e-10)
    well = rel_gap > 0.02
    n_well = int(jnp.sum(well))
    assert n_well >= (B * N) // 2, f"too many near-degenerate groups: {n_well}"
    w = jnp.where(well[:, None], 1.0, 0.0)
    err_dir = float(jnp.max(jnp.abs(f[:, 33:36] - ref36[:, 33:36]) * w))
    err_nrm = float(jnp.max(jnp.abs(jnp.abs(f[:, 36:39]) - norm_abs) * w))
    assert err_dir < 5e-3, f"direction cols 33:36 error vs reference: {err_dir}"
    assert err_nrm < 5e-3, f"|norm| cols 36:39 error vs reference: {err_nrm}"

    print("KERNEL_OK")
</pallas_src>

<mosaic_0001>
module attributes {stable_mosaic.version = 11 : i64} {
  func.func @_pointhop_kernel(%arg0: i32, %arg1: memref<3x16x1x128xf32, #tpu.memory_space<vmem>>, %arg2: memref<3x1x128xf32, #tpu.memory_space<vmem>>, %arg3: memref<39x1x128xf32, #tpu.memory_space<vmem>>) attributes {dimension_semantics = [#tpu.dimension_semantics<parallel>], iteration_bounds = array<i64: 1>, scalar_prefetch = 0 : i64, scratch_operands = 0 : i64, tpu.core_type = #tpu.core_type<tc>, window_params = [{transform_indices = @transform_0, window_bounds = array<i64: 3, 16, 1, 128>}, {transform_indices = @transform_1, window_bounds = array<i64: 3, 1, 128>}, {transform_indices = @transform_2, window_bounds = array<i64: 39, 1, 128>}]} {
    %cst = arith.constant 0.000000e+00 : f32
    %0 = vector.broadcast %cst : f32 to vector<1x128xf32>
    %c0 = arith.constant 0 : index
    %c0_0 = arith.constant 0 : index
    %c0_1 = arith.constant 0 : index
    %c0_2 = arith.constant 0 : index
    %1 = vector.load %arg1[%c0, %c0_0, %c0_1, %c0_2] : memref<3x16x1x128xf32, #tpu.memory_space<vmem>>, vector<1x1x1x128xf32>
    %2 = vector.shape_cast %1 : vector<1x1x1x128xf32> to vector<1x128xf32>
    %c1 = arith.constant 1 : index
    %c0_3 = arith.constant 0 : index
    %c0_4 = arith.constant 0 : index
    %c0_5 = arith.constant 0 : index
    %3 = vector.load %arg1[%c1, %c0_3, %c0_4, %c0_5] : memref<3x16x1x128xf32, #tpu.memory_space<vmem>>, vector<1x1x1x128xf32>
    %4 = vector.shape_cast %3 : vector<1x1x1x128xf32> to vector<1x128xf32>
    %c2 = arith.constant 2 : index
    %c0_6 = arith.constant 0 : index
    %c0_7 = arith.constant 0 : index
    %c0_8 = arith.constant 0 : index
    %5 = vector.load %arg1[%c2, %c0_6, %c0_7, %c0_8] : memref<3x16x1x128xf32, #tpu.memory_space<vmem>>, vector<1x1x1x128xf32>
    %6 = vector.shape_cast %5 : vector<1x1x1x128xf32> to vector<1x128xf32>
    %7 = arith.addf %0, %2 : vector<1x128xf32>
    %8 = arith.addf %0, %4 : vector<1x128xf32>
    %9 = arith.addf %0, %6 : vector<1x128xf32>
    %10 = arith.mulf %2, %2 : vector<1x128xf32>
    %11 = arith.addf %0, %10 : vector<1x128xf32>
    %12 = arith.mulf %2, %4 : vector<1x128xf32>
    %13 = arith.addf %0, %12 : vector<1x128xf32>
    %14 = arith.mulf %2, %6 : vector<1x128xf32>
    %15 = arith.addf %0, %14 : vector<1x128xf32>
    %16 = arith.mulf %4, %4 : vector<1x128xf32>
    %17 = arith.addf %0, %16 : vector<1x128xf32>
    %18 = arith.mulf %4, %6 : vector<1x128xf32>
    %19 = arith.addf %0, %18 : vector<1x128xf32>
    %20 = arith.mulf %6, %6 : vector<1x128xf32>
    %21 = arith.addf %0, %20 : vector<1x128xf32>
    %cst_9 = arith.constant 0.000000e+00 : f32
    %22 = vector.broadcast %cst_9 : f32 to vector<1x128xf32>
    %23 = arith.cmpf ogt, %2, %22 : vector<1x128xf32>
    %cst_10 = arith.constant 1.000000e+00 : f32
    %cst_11 = arith.constant 0.000000e+00 : f32
    %24 = vector.broadcast %cst_10 : f32 to vector<1x128xf32>
    %25 = vector.broadcast %cst_11 : f32 to vector<1x128xf32>
    %26 = arith.select %23, %24, %25 : vector<1x128xi1>, vector<1x128xf32>
    %cst_12 = arith.constant 0.000000e+00 : f32
    %27 = vector.broadcast %cst_12 : f32 to vector<1x128xf32>
    %28 = arith.cmpf ogt, %4, %27 : vector<1x128xf32>
    %cst_13 = arith.constant 1.000000e+00 : f32
    %cst_14 = arith.constant 0.000000e+00 : f32
    %29 = vector.broadcast %cst_13 : f32 to vector<1x128xf32>
    %30 = vector.broadcast %cst_14 : f32 to vector<1x128xf32>
    %31 = arith.select %28, %29, %30 : vector<1x128xi1>, vector<1x128xf32>
    %cst_15 = arith.constant 0.000000e+00 : f32
    %32 = vector.broadcast %cst_15 : f32 to vector<1x128xf32>
    %33 = arith.cmpf ogt, %6, %32 : vector<1x128xf32>
    %cst_16 = arith.constant 1.000000e+00 : f32
    %cst_17 = arith.constant 0.000000e+00 : f32
    %34 = vector.broadcast %cst_16 : f32 to vector<1x128xf32>
    %35 = vector.broadcast %cst_17 : f32 to vector<1x128xf32>
    %36 = arith.select %33, %34, %35 : vector<1x128xi1>, vector<1x128xf32>
    %37 = arith.mulf %26, %31 : vector<1x128xf32>
    %38 = arith.mulf %26, %36 : vector<1x128xf32>
    %39 = arith.mulf %31, %36 : vector<1x128xf32>
    %40 = arith.mulf %37, %36 : vector<1x128xf32>
    %41 = arith.addf %0, %26 : vector<1x128xf32>
    %42 = arith.mulf %2, %26 : vector<1x128xf32>
    %43 = arith.addf %0, %42 : vector<1x128xf32>
    %44 = arith.mulf %4, %26 : vector<1x128xf32>
    %45 = arith.addf %0, %44 : vector<1x128xf32>
    %46 = arith.mulf %6, %26 : vector<1x128xf32>
    %47 = arith.addf %0, %46 : vector<1x128xf32>
    %48 = arith.addf %0, %31 : vector<1x128xf32>
    %49 = arith.mulf %2, %31 : vector<1x128xf32>
    %50 = arith.addf %0, %49 : vector<1x128xf32>
    %51 = arith.mulf %4, %31 : vector<1x128xf32>
    %52 = arith.addf %0, %51 : vector<1x128xf32>
    %53 = arith.mulf %6, %31 : vector<1x128xf32>
    %54 = arith.addf %0, %53 : vector<1x128xf32>
    %55 = arith.addf %0, %36 : vector<1x128xf32>
    %56 = arith.mulf %2, %36 : vector<1x128xf32>
    %57 = arith.addf %0, %56 : vector<1x128xf32>
    %58 = arith.mulf %4, %36 : vector<1x128xf32>
    %59 = arith.addf %0, %58 : vector<1x128xf32>
    %60 = arith.mulf %6, %36 : vector<1x128xf32>
    %61 = arith.addf %0, %60 : vector<1x128xf32>
    %62 = arith.addf %0, %37 : vector<1x128xf32>
    %63 = arith.mulf %2, %37 : vector<1x128xf32>
    %64 = arith.addf %0, %63 : vector<1x128xf32>
    %65 = arith.mulf %4, %37 : vector<1x128xf32>
    %66 = arith.addf %0, %65 : vector<1x128xf32>
    %67 = arith.mulf %6, %37 : vector<1x128xf32>
    %68 = arith.addf %0, %67 : vector<1x128xf32>
    %69 = arith.addf %0, %38 : vector<1x128xf32>
    %70 = arith.mulf %2, %38 : vector<1x128xf32>
    %71 = arith.addf %0, %70 : vector<1x128xf32>
    %72 = arith.mulf %4, %38 : vector<1x128xf32>
    %73 = arith.addf %0, %72 : vector<1x128xf32>
    %74 = arith.mulf %6, %38 : vector<1x128xf32>
    %75 = arith.addf %0, %74 : vector<1x128xf32>
    %76 = arith.addf %0, %39 : vector<1x128xf32>
    %77 = arith.mulf %2, %39 : vector<1x128xf32>
    %78 = arith.addf %0, %77 : vector<1x128xf32>
    %79 = arith.mulf %4, %39 : vector<1x128xf32>
    %80 = arith.addf %0, %79 : vector<1x128xf32>
    %81 = arith.mulf %6, %39 : vector<1x128xf32>
    %82 = arith.addf %0, %81 : vector<1x128xf32>
    %83 = arith.addf %0, %40 : vector<1x128xf32>
    %84 = arith.mulf %2, %40 : vector<1x128xf32>
    %85 = arith.addf %0, %84 : vector<1x128xf32>
    %86 = arith.mulf %4, %40 : vector<1x128xf32>
    %87 = arith.addf %0, %86 : vector<1x128xf32>
    %88 = arith.mulf %6, %40 : vector<1x128xf32>
    %89 = arith.addf %0, %88 : vector<1x128xf32>
    %c0_18 = arith.constant 0 : index
    %c1_19 = arith.constant 1 : index
    %c0_20 = arith.constant 0 : index
    %c0_21 = arith.constant 0 : index
    %90 = vector.load %arg1[%c0_18, %c1_19, %c0_20, %c0_21] : memref<3x16x1x128xf32, #tpu.memory_space<vmem>>, vector<1x1x1x128xf32>
    %91 = vector.shape_cast %90 : vector<1x1x1x128xf32> to vector<1x128xf32>
    %c1_22 = arith.constant 1 : index
    %c1_23 = arith.constant 1 : index
    %c0_24 = arith.constant 0 : index
    %c0_25 = arith.constant 0 : index
    %92 = vector.load %arg1[%c1_22, %c1_23, %c0_24, %c0_25] : memref<3x16x1x128xf32, #tpu.memory_space<vmem>>, vector<1x1x1x128xf32>
    %93 = vector.shape_cast %92 : vector<1x1x1x128xf32> to vector<1x128xf32>
    %c2_26 = arith.constant 2 : index
    %c1_27 = arith.constant 1 : index
    %c0_28 = arith.constant 0 : index
    %c0_29 = arith.constant 0 : index
    %94 = vector.load %arg1[%c2_26, %c1_27, %c0_28, %c0_29] : memref<3x16x1x128xf32, #tpu.memory_space<vmem>>, vector<1x1x1x128xf32>
    %95 = vector.shape_cast %94 : vector<1x1x1x128xf32> to vector<1x128xf32>
    %96 = arith.addf %7, %91 : vector<1x128xf32>
    %97 = arith.addf %8, %93 : vector<1x128xf32>
    %98 = arith.addf %9, %95 : vector<1x128xf32>
    %99 = arith.mulf %91, %91 : vector<1x128xf32>
    %100 = arith.addf %11, %99 : vector<1x128xf32>
    %101 = arith.mulf %91, %93 : vector<1x128xf32>
    %102 = arith.addf %13, %101 : vector<1x128xf32>
    %103 = arith.mulf %91, %95 : vector<1x128xf32>
    %104 = arith.addf %15, %103 : vector<1x128xf32>
    %105 = arith.mulf %93, %93 : vector<1x128xf32>
    %106 = arith.addf %17, %105 : vector<1x128xf32>
    %107 = arith.mulf %93, %95 : vector<1x128xf32>
    %108 = arith.addf %19, %107 : vector<1x128xf32>
    %109 = arith.mulf %95, %95 : vector<1x128xf32>
    %110 = arith.addf %21, %109 : vector<1x128xf32>
    %cst_30 = arith.constant 0.000000e+00 : f32
    %111 = vector.broadcast %cst_30 : f32 to vector<1x128xf32>
    %112 = arith.cmpf ogt, %91, %111 : vector<1x128xf32>
    %cst_31 = arith.constant 1.000000e+00 : f32
    %cst_32 = arith.constant 0.000000e+00 : f32
    %113 = vector.broadcast %cst_31 : f32 to vector<1x128xf32>
    %114 = vector.broadcast %cst_32 : f32 to vector<1x128xf32>
    %115 = arith.select %112, %113, %114 : vector<1x128xi1>, vector<1x128xf32>
    %cst_33 = arith.constant 0.000000e+00 : f32
    %116 = vector.broadcast %cst_33 : f32 to vector<1x128xf32>
    %117 = arith.cmpf ogt, %93, %116 : vector<1x128xf32>
    %cst_34 = arith.constant 1.000000e+00 : f32
    %cst_35 = arith.constant 0.000000e+00 : f32
    %118 = vector.broadcast %cst_34 : f32 to vector<1x128xf32>
    %119 = vector.broadcast %cst_35 : f32 to vector<1x128xf32>
    %120 = arith.select %117, %118, %119 : vector<1x128xi1>, vector<1x128xf32>
    %cst_36 = arith.constant 0.000000e+00 : f32
    %121 = vector.broadcast %cst_36 : f32 to vector<1x128xf32>
    %122 = arith.cmpf ogt, %95, %121 : vector<1x128xf32>
    %cst_37 = arith.constant 1.000000e+00 : f32
    %cst_38 = arith.constant 0.000000e+00 : f32
    %123 = vector.broadcast %cst_37 : f32 to vector<1x128xf32>
    %124 = vector.broadcast %cst_38 : f32 to vector<1x128xf32>
    %125 = arith.select %122, %123, %124 : vector<1x128xi1>, vector<1x128xf32>
    %126 = arith.mulf %115, %120 : vector<1x128xf32>
    %127 = arith.mulf %115, %125 : vector<1x128xf32>
    %128 = arith.mulf %120, %125 : vector<1x128xf32>
    %129 = arith.mulf %126, %125 : vector<1x128xf32>
    %130 = arith.addf %41, %115 : vector<1x128xf32>
    %131 = arith.mulf %91, %115 : vector<1x128xf32>
    %132 = arith.addf %43, %131 : vector<1x128xf32>
    %133 = arith.mulf %93, %115 : vector<1x128xf32>
    %134 = arith.addf %45, %133 : vector<1x128xf32>
    %135 = arith.mulf %95, %115 : vector<1x128xf32>
    %136 = arith.addf %47, %135 : vector<1x128xf32>
    %137 = arith.addf %48, %120 : vector<1x128xf32>
    %138 = arith.mulf %91, %120 : vector<1x128xf32>
    %139 = arith.addf %50, %138 : vector<1x128xf32>
    %140 = arith.mulf %93, %120 : vector<1x128xf32>
    %141 = arith.addf %52, %140 : vector<1x128xf32>
    %142 = arith.mulf %95, %120 : vector<1x128xf32>
    %143 = arith.addf %54, %142 : vector<1x128xf32>
    %144 = arith.addf %55, %125 : vector<1x128xf32>
    %145 = arith.mulf %91, %125 : vector<1x128xf32>
    %146 = arith.addf %57, %145 : vector<1x128xf32>
    %147 = arith.mulf %93, %125 : vector<1x128xf32>
    %148 = arith.addf %59, %147 : vector<1x128xf32>
    %149 = arith.mulf %95, %125 : vector<1x128xf32>
    %150 = arith.addf %61, %149 : vector<1x128xf32>
    %151 = arith.addf %62, %126 : vector<1x128xf32>
    %152 = arith.mulf %91, %126 : vector<1x128xf32>
    %153 = arith.addf %64, %152 : vector<1x128xf32>
    %154 = arith.mulf %93, %126 : vector<1x128xf32>
    %155 = arith.addf %66, %154 : vector<1x128xf32>
    %156 = arith.mulf %95, %126 : vector<1x128xf32>
    %157 = arith.addf %68, %156 : vector<1x128xf32>
    %158 = arith.addf %69, %127 : vector<1x128xf32>
    %159 = arith.mulf %91, %127 : vector<1x128xf32>
    %160 = arith.addf %71, %159 : vector<1x128xf32>
    %161 = arith.mulf %93, %127 : vector<1x128xf32>
    %162 = arith.addf %73, %161 : vector<1x128xf32>
    %163 = arith.mulf %95, %127 : vector<1x128xf32>
    %164 = arith.addf %75, %163 : vector<1x128xf32>
    %165 = arith.addf %76, %128 : vector<1x128xf32>
    %166 = arith.mulf %91, %128 : vector<1x128xf32>
    %167 = arith.addf %78, %166 : vector<1x128xf32>
    %168 = arith.mulf %93, %128 : vector<1x128xf32>
    %169 = arith.addf %80, %168 : vector<1x128xf32>
    %170 = arith.mulf %95, %128 : vector<1x128xf32>
    %171 = arith.addf %82, %170 : vector<1x128xf32>
    %172 = arith.addf %83, %129 : vector<1x128xf32>
    %173 = arith.mulf %91, %129 : vector<1x128xf32>
    %174 = arith.addf %85, %173 : vector<1x128xf32>
    %175 = arith.mulf %93, %129 : vector<1x128xf32>
    %176 = arith.addf %87, %175 : vector<1x128xf32>
    %177 = arith.mulf %95, %129 : vector<1x128xf32>
    %178 = arith.addf %89, %177 : vector<1x128xf32>
    %c0_39 = arith.constant 0 : index
    %c2_40 = arith.constant 2 : index
    %c0_41 = arith.constant 0 : index
    %c0_42 = arith.constant 0 : index
    %179 = vector.load %arg1[%c0_39, %c2_40, %c0_41, %c0_42] : memref<3x16x1x128xf32, #tpu.memory_space<vmem>>, vector<1x1x1x128xf32>
    %180 = vector.shape_cast %179 : vector<1x1x1x128xf32> to vector<1x128xf32>
    %c1_43 = arith.constant 1 : index
    %c2_44 = arith.constant 2 : index
    %c0_45 = arith.constant 0 : index
    %c0_46 = arith.constant 0 : index
    %181 = vector.load %arg1[%c1_43, %c2_44, %c0_45, %c0_46] : memref<3x16x1x128xf32, #tpu.memory_space<vmem>>, vector<1x1x1x128xf32>
    %182 = vector.shape_cast %181 : vector<1x1x1x128xf32> to vector<1x128xf32>
    %c2_47 = arith.constant 2 : index
    %c2_48 = arith.constant 2 : index
    %c0_49 = arith.constant 0 : index
    %c0_50 = arith.constant 0 : index
    %183 = vector.load %arg1[%c2_47, %c2_48, %c0_49, %c0_50] : memref<3x16x1x128xf32, #tpu.memory_space<vmem>>, vector<1x1x1x128xf32>
    %184 = vector.shape_cast %183 : vector<1x1x1x128xf32> to vector<1x128xf32>
    %185 = arith.addf %96, %180 : vector<1x128xf32>
    %186 = arith.addf %97, %182 : vector<1x128xf32>
    %187 = arith.addf %98, %184 : vector<1x128xf32>
    %188 = arith.mulf %180, %180 : vector<1x128xf32>
    %189 = arith.addf %100, %188 : vector<1x128xf32>
    %190 = arith.mulf %180, %182 : vector<1x128xf32>
    %191 = arith.addf %102, %190 : vector<1x128xf32>
    %192 = arith.mulf %180, %184 : vector<1x128xf32>
    %193 = arith.addf %104, %192 : vector<1x128xf32>
    %194 = arith.mulf %182, %182 : vector<1x128xf32>
    %195 = arith.addf %106, %194 : vector<1x128xf32>
    %196 = arith.mulf %182, %184 : vector<1x128xf32>
    %197 = arith.addf %108, %196 : vector<1x128xf32>
    %198 = arith.mulf %184, %184 : vector<1x128xf32>
    %199 = arith.addf %110, %198 : vector<1x128xf32>
    %cst_51 = arith.constant 0.000000e+00 : f32
    %200 = vector.broadcast %cst_51 : f32 to vector<1x128xf32>
    %201 = arith.cmpf ogt, %180, %200 : vector<1x128xf32>
    %cst_52 = arith.constant 1.000000e+00 : f32
    %cst_53 = arith.constant 0.000000e+00 : f32
    %202 = vector.broadcast %cst_52 : f32 to vector<1x128xf32>
    %203 = vector.broadcast %cst_53 : f32 to vector<1x128xf32>
    %204 = arith.select %201, %202, %203 : vector<1x128xi1>, vector<1x128xf32>
    %cst_54 = arith.constant 0.000000e+00 : f32
    %205 = vector.broadcast %cst_54 : f32 to vector<1x128xf32>
    %206 = arith.cmpf ogt, %182, %205 : vector<1x128xf32>
    %cst_55 = arith.constant 1.000000e+00 : f32
    %cst_56 = arith.constant 0.000000e+00 : f32
    %207 = vector.broadcast %cst_55 : f32 to vector<1x128xf32>
    %208 = vector.broadcast %cst_56 : f32 to vector<1x128xf32>
    %209 = arith.select %206, %207, %208 : vector<1x128xi1>, vector<1x128xf32>
    %cst_57 = arith.constant 0.000000e+00 : f32
    %210 = vector.broadcast %cst_57 : f32 to vector<1x128xf32>
    %211 = arith.cmpf ogt, %184, %210 : vector<1x128xf32>
    %cst_58 = arith.constant 1.000000e+00 : f32
    %cst_59 = arith.constant 0.000000e+00 : f32
    %212 = vector.broadcast %cst_58 : f32 to vector<1x128xf32>
    %213 = vector.broadcast %cst_59 : f32 to vector<1x128xf32>
    %214 = arith.select %211, %212, %213 : vector<1x128xi1>, vector<1x128xf32>
    %215 = arith.mulf %204, %209 : vector<1x128xf32>
    %216 = arith.mulf %204, %214 : vector<1x128xf32>
    %217 = arith.mulf %209, %214 : vector<1x128xf32>
    %218 = arith.mulf %215, %214 : vector<1x128xf32>
    %219 = arith.addf %130, %204 : vector<1x128xf32>
    %220 = arith.mulf %180, %204 : vector<1x128xf32>
    %221 = arith.addf %132, %220 : vector<1x128xf32>
    %222 = arith.mulf %182, %204 : vector<1x128xf32>
    %223 = arith.addf %134, %222 : vector<1x128xf32>
    %224 = arith.mulf %184, %204 : vector<1x128xf32>
    %225 = arith.addf %136, %224 : vector<1x128xf32>
    %226 = arith.addf %137, %209 : vector<1x128xf32>
    %227 = arith.mulf %180, %209 : vector<1x128xf32>
    %228 = arith.addf %139, %227 : vector<1x128xf32>
    %229 = arith.mulf %182, %209 : vector<1x128xf32>
    %230 = arith.addf %141, %229 : vector<1x128xf32>
    %231 = arith.mulf %184, %209 : vector<1x128xf32>
    %232 = arith.addf %143, %231 : vector<1x128xf32>
    %233 = arith.addf %144, %214 : vector<1x128xf32>
    %234 = arith.mulf %180, %214 : vector<1x128xf32>
    %235 = arith.addf %146, %234 : vector<1x128xf32>
    %236 = arith.mulf %182, %214 : vector<1x128xf32>
    %237 = arith.addf %148, %236 : vector<1x128xf32>
    %238 = arith.mulf %184, %214 : vector<1x128xf32>
    %239 = arith.addf %150, %238 : vector<1x128xf32>
    %240 = arith.addf %151, %215 : vector<1x128xf32>
    %241 = arith.mulf %180, %215 : vector<1x128xf32>
    %242 = arith.addf %153, %241 : vector<1x128xf32>
    %243 = arith.mulf %182, %215 : vector<1x128xf32>
    %244 = arith.addf %155, %243 : vector<1x128xf32>
    %245 = arith.mulf %184, %215 : vector<1x128xf32>
    %246 = arith.addf %157, %245 : vector<1x128xf32>
    %247 = arith.addf %158, %216 : vector<1x128xf32>
    %248 = arith.mulf %180, %216 : vector<1x128xf32>
    %249 = arith.addf %160, %248 : vector<1x128xf32>
    %250 = arith.mulf %182, %216 : vector<1x128xf32>
    %251 = arith.addf %162, %250 : vector<1x128xf32>
    %252 = arith.mulf %184, %216 : vector<1x128xf32>
    %253 = arith.addf %164, %252 : vector<1x128xf32>
    %254 = arith.addf %165, %217 : vector<1x128xf32>
    %255 = arith.mulf %180, %217 : vector<1x128xf32>
    %256 = arith.addf %167, %255 : vector<1x128xf32>
    %257 = arith.mulf %182, %217 : vector<1x128xf32>
    %258 = arith.addf %169, %257 : vector<1x128xf32>
    %259 = arith.mulf %184, %217 : vector<1x128xf32>
    %260 = arith.addf %171, %259 : vector<1x128xf32>
    %261 = arith.addf %172, %218 : vector<1x128xf32>
    %262 = arith.mulf %180, %218 : vector<1x128xf32>
    %263 = arith.addf %174, %262 : vector<1x128xf32>
    %264 = arith.mulf %182, %218 : vector<1x128xf32>
    %265 = arith.addf %176, %264 : vector<1x128xf32>
    %266 = arith.mulf %184, %218 : vector<1x128xf32>
    %267 = arith.addf %178, %266 : vector<1x128xf32>
    %c0_60 = arith.constant 0 : index
    %c3 = arith.constant 3 : index
    %c0_61 = arith.constant 0 : index
    %c0_62 = arith.constant 0 : index
    %268 = vector.load %arg1[%c0_60, %c3, %c0_61, %c0_62] : memref<3x16x1x128xf32, #tpu.memory_space<vmem>>, vector<1x1x1x128xf32>
    %269 = vector.shape_cast %268 : vector<1x1x1x128xf32> to vector<1x128xf32>
    %c1_63 = arith.constant 1 : index
    %c3_64 = arith.constant 3 : index
    %c0_65 = arith.constant 0 : index
    %c0_66 = arith.constant 0 : index
    %270 = vector.load %arg1[%c1_63, %c3_64, %c0_65, %c0_66] : memref<3x16x1x128xf32, #tpu.memory_space<vmem>>, vector<1x1x1x128xf32>
    %271 = vector.shape_cast %270 : vector<1x1x1x128xf32> to vector<1x128xf32>
    %c2_67 = arith.constant 2 : index
    %c3_68 = arith.constant 3 : index
    %c0_69 = arith.constant 0 : index
    %c0_70 = arith.constant 0 : index
    %272 = vector.load %arg1[%c2_67, %c3_68, %c0_69, %c0_70] : memref<3x16x1x128xf32, #tpu.memory_space<vmem>>, vector<1x1x1x128xf32>
    %273 = vector.shape_cast %272 : vector<1x1x1x128xf32> to vector<1x128xf32>
    %274 = arith.addf %185, %269 : vector<1x128xf32>
    %275 = arith.addf %186, %271 : vector<1x128xf32>
    %276 = arith.addf %187, %273 : vector<1x128xf32>
    %277 = arith.mulf %269, %269 : vector<1x128xf32>
    %278 = arith.addf %189, %277 : vector<1x128xf32>
    %279 = arith.mulf %269, %271 : vector<1x128xf32>
    %280 = arith.addf %191, %279 : vector<1x128xf32>
    %281 = arith.mulf %269, %273 : vector<1x128xf32>
    %282 = arith.addf %193, %281 : vector<1x128xf32>
    %283 = arith.mulf %271, %271 : vector<1x128xf32>
    %284 = arith.addf %195, %283 : vector<1x128xf32>
    %285 = arith.mulf %271, %273 : vector<1x128xf32>
    %286 = arith.addf %197, %285 : vector<1x128xf32>
    %287 = arith.mulf %273, %273 : vector<1x128xf32>
    %288 = arith.addf %199, %287 : vector<1x128xf32>
    %cst_71 = arith.constant 0.000000e+00 : f32
    %289 = vector.broadcast %cst_71 : f32 to vector<1x128xf32>
    %290 = arith.cmpf ogt, %269, %289 : vector<1x128xf32>
    %cst_72 = arith.constant 1.000000e+00 : f32
    %cst_73 = arith.constant 0.000000e+00 : f32
    %291 = vector.broadcast %cst_72 : f32 to vector<1x128xf32>
    %292 = vector.broadcast %cst_73 : f32 to vector<1x128xf32>
    %293 = arith.select %290, %291, %292 : vector<1x128xi1>, vector<1x128xf32>
    %cst_74 = arith.constant 0.000000e+00 : f32
    %294 = vector.broadcast %cst_74 : f32 to vector<1x128xf32>
    %295 = arith.cmpf ogt, %271, %294 : vector<1x128xf32>
    %cst_75 = arith.constant 1.000000e+00 : f32
    %cst_76 = arith.constant 0.000000e+00 : f32
    %296 = vector.broadcast %cst_75 : f32 to vector<1x128xf32>
    %297 = vector.broadcast %cst_76 : f32 to vector<1x128xf32>
    %298 = arith.select %295, %296, %297 : vector<1x128xi1>, vector<1x128xf32>
    %cst_77 = arith.constant 0.000000e+00 : f32
    %299 = vector.broadcast %cst_77 : f32 to vector<1x128xf32>
    %300 = arith.cmpf ogt, %273, %299 : vector<1x128xf32>
    %cst_78 = arith.constant 1.000000e+00 : f32
    %cst_79 = arith.constant 0.000000e+00 : f32
    %301 = vector.broadcast %cst_78 : f32 to vector<1x128xf32>
    %302 = vector.broadcast %cst_79 : f32 to vector<1x128xf32>
    %303 = arith.select %300, %301, %302 : vector<1x128xi1>, vector<1x128xf32>
    %304 = arith.mulf %293, %298 : vector<1x128xf32>
    %305 = arith.mulf %293, %303 : vector<1x128xf32>
    %306 = arith.mulf %298, %303 : vector<1x128xf32>
    %307 = arith.mulf %304, %303 : vector<1x128xf32>
    %308 = arith.addf %219, %293 : vector<1x128xf32>
    %309 = arith.mulf %269, %293 : vector<1x128xf32>
    %310 = arith.addf %221, %309 : vector<1x128xf32>
    %311 = arith.mulf %271, %293 : vector<1x128xf32>
    %312 = arith.addf %223, %311 : vector<1x128xf32>
    %313 = arith.mulf %273, %293 : vector<1x128xf32>
    %314 = arith.addf %225, %313 : vector<1x128xf32>
    %315 = arith.addf %226, %298 : vector<1x128xf32>
    %316 = arith.mulf %269, %298 : vector<1x128xf32>
    %317 = arith.addf %228, %316 : vector<1x128xf32>
    %318 = arith.mulf %271, %298 : vector<1x128xf32>
    %319 = arith.addf %230, %318 : vector<1x128xf32>
    %320 = arith.mulf %273, %298 : vector<1x128xf32>
    %321 = arith.addf %232, %320 : vector<1x128xf32>
    %322 = arith.addf %233, %303 : vector<1x128xf32>
    %323 = arith.mulf %269, %303 : vector<1x128xf32>
    %324 = arith.addf %235, %323 : vector<1x128xf32>
    %325 = arith.mulf %271, %303 : vector<1x128xf32>
    %326 = arith.addf %237, %325 : vector<1x128xf32>
    %327 = arith.mulf %273, %303 : vector<1x128xf32>
    %328 = arith.addf %239, %327 : vector<1x128xf32>
    %329 = arith.addf %240, %304 : vector<1x128xf32>
    %330 = arith.mulf %269, %304 : vector<1x128xf32>
    %331 = arith.addf %242, %330 : vector<1x128xf32>
    %332 = arith.mulf %271, %304 : vector<1x128xf32>
    %333 = arith.addf %244, %332 : vector<1x128xf32>
    %334 = arith.mulf %273, %304 : vector<1x128xf32>
    %335 = arith.addf %246, %334 : vector<1x128xf32>
    %336 = arith.addf %247, %305 : vector<1x128xf32>
    %337 = arith.mulf %269, %305 : vector<1x128xf32>
    %338 = arith.addf %249, %337 : vector<1x128xf32>
    %339 = arith.mulf %271, %305 : vector<1x128xf32>
    %340 = arith.addf %251, %339 : vector<1x128xf32>
    %341 = arith.mulf %273, %305 : vector<1x128xf32>
    %342 = arith.addf %253, %341 : vector<1x128xf32>
    %343 = arith.addf %254, %306 : vector<1x128xf32>
    %344 = arith.mulf %269, %306 : vector<1x128xf32>
    %345 = arith.addf %256, %344 : vector<1x128xf32>
    %346 = arith.mulf %271, %306 : vector<1x128xf32>
    %347 = arith.addf %258, %346 : vector<1x128xf32>
    %348 = arith.mulf %273, %306 : vector<1x128xf32>
    %349 = arith.addf %260, %348 : vector<1x128xf32>
    %350 = arith.addf %261, %307 : vector<1x128xf32>
    %351 = arith.mulf %269, %307 : vector<1x128xf32>
    %352 = arith.addf %263, %351 : vector<1x128xf32>
    %353 = arith.mulf %271, %307 : vector<1x128xf32>
    %354 = arith.addf %265, %353 : vector<1x128xf32>
    %355 = arith.mulf %273, %307 : vector<1x128xf32>
    %356 = arith.addf %267, %355 : vector<1x128xf32>
    %c0_80 = arith.constant 0 : index
    %c4 = arith.constant 4 : index
    %c0_81 = arith.constant 0 : index
    %c0_82 = arith.constant 0 : index
    %357 = vector.load %arg1[%c0_80, %c4, %c0_81, %c0_82] : memref<3x16x1x128xf32, #tpu.memory_space<vmem>>, vector<1x1x1x128xf32>
    %358 = vector.shape_cast %357 : vector<1x1x1x128xf32> to vector<1x128xf32>
    %c1_83 = arith.constant 1 : index
    %c4_84 = arith.constant 4 : index
    %c0_85 = arith.constant 0 : index
    %c0_86 = arith.constant 0 : index
    %359 = vector.load %arg1[%c1_83, %c4_84, %c0_85, %c0_86] : memref<3x16x1x128xf32, #tpu.memory_space<vmem>>, vector<1x1x1x128xf32>
    %360 = vector.shape_cast %359 : vector<1x1x1x128xf32> to vector<1x128xf32>
    %c2_87 = arith.constant 2 : index
    %c4_88 = arith.constant 4 : index
    %c0_89 = arith.constant 0 : index
    %c0_90 = arith.constant 0 : index
    %361 = vector.load %arg1[%c2_87, %c4_88, %c0_89, %c0_90] : memref<3x16x1x128xf32, #tpu.memory_space<vmem>>, vector<1x1x1x128xf32>
    %362 = vector.shape_cast %361 : vector<1x1x1x128xf32> to vector<1x128xf32>
    %363 = arith.addf %274, %358 : vector<1x128xf32>
    %364 = arith.addf %275, %360 : vector<1x128xf32>
    %365 = arith.addf %276, %362 : vector<1x128xf32>
    %366 = arith.mulf %358, %358 : vector<1x128xf32>
    %367 = arith.addf %278, %366 : vector<1x128xf32>
    %368 = arith.mulf %358, %360 : vector<1x128xf32>
    %369 = arith.addf %280, %368 : vector<1x128xf32>
    %370 = arith.mulf %358, %362 : vector<1x128xf32>
    %371 = arith.addf %282, %370 : vector<1x128xf32>
    %372 = arith.mulf %360, %360 : vector<1x128xf32>
    %373 = arith.addf %284, %372 : vector<1x128xf32>
    %374 = arith.mulf %360, %362 : vector<1x128xf32>
    %375 = arith.addf %286, %374 : vector<1x128xf32>
    %376 = arith.mulf %362, %362 : vector<1x128xf32>
    %377 = arith.addf %288, %376 : vector<1x128xf32>
    %cst_91 = arith.constant 0.000000e+00 : f32
    %378 = vector.broadcast %cst_91 : f32 to vector<1x128xf32>
    %379 = arith.cmpf ogt, %358, %378 : vector<1x128xf32>
    %cst_92 = arith.constant 1.000000e+00 : f32
    %cst_93 = arith.constant 0.000000e+00 : f32
    %380 = vector.broadcast %cst_92 : f32 to vector<1x128xf32>
    %381 = vector.broadcast %cst_93 : f32 to vector<1x128xf32>
    %382 = arith.select %379, %380, %381 : vector<1x128xi1>, vector<1x128xf32>
    %cst_94 = arith.constant 0.000000e+00 : f32
    %383 = vector.broadcast %cst_94 : f32 to vector<1x128xf32>
    %384 = arith.cmpf ogt, %360, %383 : vector<1x128xf32>
    %cst_95 = arith.constant 1.000000e+00 : f32
    %cst_96 = arith.constant 0.000000e+00 : f32
    %385 = vector.broadcast %cst_95 : f32 to vector<1x128xf32>
    %386 = vector.broadcast %cst_96 : f32 to vector<1x128xf32>
    %387 = arith.select %384, %385, %386 : vector<1x128xi1>, vector<1x128xf32>
    %cst_97 = arith.constant 0.000000e+00 : f32
    %388 = vector.broadcast %cst_97 : f32 to vector<1x128xf32>
    %389 = arith.cmpf ogt, %362, %388 : vector<1x128xf32>
    %cst_98 = arith.constant 1.000000e+00 : f32
    %cst_99 = arith.constant 0.000000e+00 : f32
    %390 = vector.broadcast %cst_98 : f32 to vector<1x128xf32>
    %391 = vector.broadcast %cst_99 : f32 to vector<1x128xf32>
    %392 = arith.select %389, %390, %391 : vector<1x128xi1>, vector<1x128xf32>
    %393 = arith.mulf %382, %387 : vector<1x128xf32>
    %394 = arith.mulf %382, %392 : vector<1x128xf32>
    %395 = arith.mulf %387, %392 : vector<1x128xf32>
    %396 = arith.mulf %393, %392 : vector<1x128xf32>
    %397 = arith.addf %308, %382 : vector<1x128xf32>
    %398 = arith.mulf %358, %382 : vector<1x128xf32>
    %399 = arith.addf %310, %398 : vector<1x128xf32>
    %400 = arith.mulf %360, %382 : vector<1x128xf32>
    %401 = arith.addf %312, %400 : vector<1x128xf32>
    %402 = arith.mulf %362, %382 : vector<1x128xf32>
    %403 = arith.addf %314, %402 : vector<1x128xf32>
    %404 = arith.addf %315, %387 : vector<1x128xf32>
    %405 = arith.mulf %358, %387 : vector<1x128xf32>
    %406 = arith.addf %317, %405 : vector<1x128xf32>
    %407 = arith.mulf %360, %387 : vector<1x128xf32>
    %408 = arith.addf %319, %407 : vector<1x128xf32>
    %409 = arith.mulf %362, %387 : vector<1x128xf32>
    %410 = arith.addf %321, %409 : vector<1x128xf32>
    %411 = arith.addf %322, %392 : vector<1x128xf32>
    %412 = arith.mulf %358, %392 : vector<1x128xf32>
    %413 = arith.addf %324, %412 : vector<1x128xf32>
    %414 = arith.mulf %360, %392 : vector<1x128xf32>
    %415 = arith.addf %326, %414 : vector<1x128xf32>
    %416 = arith.mulf %362, %392 : vector<1x128xf32>
    %417 = arith.addf %328, %416 : vector<1x128xf32>
    %418 = arith.addf %329, %393 : vector<1x128xf32>
    %419 = arith.mulf %358, %393 : vector<1x128xf32>
    %420 = arith.addf %331, %419 : vector<1x128xf32>
    %421 = arith.mulf %360, %393 : vector<1x128xf32>
    %422 = arith.addf %333, %421 : vector<1x128xf32>
    %423 = arith.mulf %362, %393 : vector<1x128xf32>
    %424 = arith.addf %335, %423 : vector<1x128xf32>
    %425 = arith.addf %336, %394 : vector<1x128xf32>
    %426 = arith.mulf %358, %394 : vector<1x128xf32>
    %427 = arith.addf %338, %426 : vector<1x128xf32>
    %428 = arith.mulf %360, %394 : vector<1x128xf32>
    %429 = arith.addf %340, %428 : vector<1x128xf32>
    %430 = arith.mulf %362, %394 : vector<1x128xf32>
    %431 = arith.addf %342, %430 : vector<1x128xf32>
    %432 = arith.addf %343, %395 : vector<1x128xf32>
    %433 = arith.mulf %358, %395 : vector<1x128xf32>
    %434 = arith.addf %345, %433 : vector<1x128xf32>
    %435 = arith.mulf %360, %395 : vector<1x128xf32>
    %436 = arith.addf %347, %435 : vector<1x128xf32>
    %437 = arith.mulf %362, %395 : vector<1x128xf32>
    %438 = arith.addf %349, %437 : vector<1x128xf32>
    %439 = arith.addf %350, %396 : vector<1x128xf32>
    %440 = arith.mulf %358, %396 : vector<1x128xf32>
    %441 = arith.addf %352, %440 : vector<1x128xf32>
    %442 = arith.mulf %360, %396 : vector<1x128xf32>
    %443 = arith.addf %354, %442 : vector<1x128xf32>
    %444 = arith.mulf %362, %396 : vector<1x128xf32>
    %445 = arith.addf %356, %444 : vector<1x128xf32>
    %c0_100 = arith.constant 0 : index
    %c5 = arith.constant 5 : index
    %c0_101 = arith.constant 0 : index
    %c0_102 = arith.constant 0 : index
    %446 = vector.load %arg1[%c0_100, %c5, %c0_101, %c0_102] : memref<3x16x1x128xf32, #tpu.memory_space<vmem>>, vector<1x1x1x128xf32>
    %447 = vector.shape_cast %446 : vector<1x1x1x128xf32> to vector<1x128xf32>
    %c1_103 = arith.constant 1 : index
    %c5_104 = arith.constant 5 : index
    %c0_105 = arith.constant 0 : index
    %c0_106 = arith.constant 0 : index
    %448 = vector.load %arg1[%c1_103, %c5_104, %c0_105, %c0_106] : memref<3x16x1x128xf32, #tpu.memory_space<vmem>>, vector<1x1x1x128xf32>
    %449 = vector.shape_cast %448 : vector<1x1x1x128xf32> to vector<1x128xf32>
    %c2_107 = arith.constant 2 : index
    %c5_108 = arith.constant 5 : index
    %c0_109 = arith.constant 0 : index
    %c0_110 = arith.constant 0 : index
    %450 = vector.load %arg1[%c2_107, %c5_108, %c0_109, %c0_110] : memref<3x16x1x128xf32, #tpu.memory_space<vmem>>, vector<1x1x1x128xf32>
    %451 = vector.shape_cast %450 : vector<1x1x1x128xf32> to vector<1x128xf32>
    %452 = arith.addf %363, %447 : vector<1x128xf32>
    %453 = arith.addf %364, %449 : vector<1x128xf32>
    %454 = arith.addf %365, %451 : vector<1x128xf32>
    %455 = arith.mulf %447, %447 : vector<1x128xf32>
    %456 = arith.addf %367, %455 : vector<1x128xf32>
    %457 = arith.mulf %447, %449 : vector<1x128xf32>
    %458 = arith.addf %369, %457 : vector<1x128xf32>
    %459 = arith.mulf %447, %451 : vector<1x128xf32>
    %460 = arith.addf %371, %459 : vector<1x128xf32>
    %461 = arith.mulf %449, %449 : vector<1x128xf32>
    %462 = arith.addf %373, %461 : vector<1x128xf32>
    %463 = arith.mulf %449, %451 : vector<1x128xf32>
    %464 = arith.addf %375, %463 : vector<1x128xf32>
    %465 = arith.mulf %451, %451 : vector<1x128xf32>
    %466 = arith.addf %377, %465 : vector<1x128xf32>
    %cst_111 = arith.constant 0.000000e+00 : f32
    %467 = vector.broadcast %cst_111 : f32 to vector<1x128xf32>
    %468 = arith.cmpf ogt, %447, %467 : vector<1x128xf32>
    %cst_112 = arith.constant 1.000000e+00 : f32
    %cst_113 = arith.constant 0.000000e+00 : f32
    %469 = vector.broadcast %cst_112 : f32 to vector<1x128xf32>
    %470 = vector.broadcast %cst_113 : f32 to vector<1x128xf32>
    %471 = arith.select %468, %469, %470 : vector<1x128xi1>, vector<1x128xf32>
    %cst_114 = arith.constant 0.000000e+00 : f32
    %472 = vector.broadcast %cst_114 : f32 to vector<1x128xf32>
    %473 = arith.cmpf ogt, %449, %472 : vector<1x128xf32>
    %cst_115 = arith.constant 1.000000e+00 : f32
    %cst_116 = arith.constant 0.000000e+00 : f32
    %474 = vector.broadcast %cst_115 : f32 to vector<1x128xf32>
    %475 = vector.broadcast %cst_116 : f32 to vector<1x128xf32>
    %476 = arith.select %473, %474, %475 : vector<1x128xi1>, vector<1x128xf32>
    %cst_117 = arith.constant 0.000000e+00 : f32
    %477 = vector.broadcast %cst_117 : f32 to vector<1x128xf32>
    %478 = arith.cmpf ogt, %451, %477 : vector<1x128xf32>
    %cst_118 = arith.constant 1.000000e+00 : f32
    %cst_119 = arith.constant 0.000000e+00 : f32
    %479 = vector.broadcast %cst_118 : f32 to vector<1x128xf32>
    %480 = vector.broadcast %cst_119 : f32 to vector<1x128xf32>
    %481 = arith.select %478, %479, %480 : vector<1x128xi1>, vector<1x128xf32>
    %482 = arith.mulf %471, %476 : vector<1x128xf32>
    %483 = arith.mulf %471, %481 : vector<1x128xf32>
    %484 = arith.mulf %476, %481 : vector<1x128xf32>
    %485 = arith.mulf %482, %481 : vector<1x128xf32>
    %486 = arith.addf %397, %471 : vector<1x128xf32>
    %487 = arith.mulf %447, %471 : vector<1x128xf32>
    %488 = arith.addf %399, %487 : vector<1x128xf32>
    %489 = arith.mulf %449, %471 : vector<1x128xf32>
    %490 = arith.addf %401, %489 : vector<1x128xf32>
    %491 = arith.mulf %451, %471 : vector<1x128xf32>
    %492 = arith.addf %403, %491 : vector<1x128xf32>
    %493 = arith.addf %404, %476 : vector<1x128xf32>
    %494 = arith.mulf %447, %476 : vector<1x128xf32>
    %495 = arith.addf %406, %494 : vector<1x128xf32>
    %496 = arith.mulf %449, %476 : vector<1x128xf32>
    %497 = arith.addf %408, %496 : vector<1x128xf32>
    %498 = arith.mulf %451, %476 : vector<1x128xf32>
    %499 = arith.addf %410, %498 : vector<1x128xf32>
    %500 = arith.addf %411, %481 : vector<1x128xf32>
    %501 = arith.mulf %447, %481 : vector<1x128xf32>
    %502 = arith.addf %413, %501 : vector<1x128xf32>
    %503 = arith.mulf %449, %481 : vector<1x128xf32>
    %504 = arith.addf %415, %503 : vector<1x128xf32>
    %505 = arith.mulf %451, %481 : vector<1x128xf32>
    %506 = arith.addf %417, %505 : vector<1x128xf32>
    %507 = arith.addf %418, %482 : vector<1x128xf32>
    %508 = arith.mulf %447, %482 : vector<1x128xf32>
    %509 = arith.addf %420, %508 : vector<1x128xf32>
    %510 = arith.mulf %449, %482 : vector<1x128xf32>
    %511 = arith.addf %422, %510 : vector<1x128xf32>
    %512 = arith.mulf %451, %482 : vector<1x128xf32>
    %513 = arith.addf %424, %512 : vector<1x128xf32>
    %514 = arith.addf %425, %483 : vector<1x128xf32>
    %515 = arith.mulf %447, %483 : vector<1x128xf32>
    %516 = arith.addf %427, %515 : vector<1x128xf32>
    %517 = arith.mulf %449, %483 : vector<1x128xf32>
    %518 = arith.addf %429, %517 : vector<1x128xf32>
    %519 = arith.mulf %451, %483 : vector<1x128xf32>
    %520 = arith.addf %431, %519 : vector<1x128xf32>
    %521 = arith.addf %432, %484 : vector<1x128xf32>
    %522 = arith.mulf %447, %484 : vector<1x128xf32>
    %523 = arith.addf %434, %522 : vector<1x128xf32>
    %524 = arith.mulf %449, %484 : vector<1x128xf32>
    %525 = arith.addf %436, %524 : vector<1x128xf32>
    %526 = arith.mulf %451, %484 : vector<1x128xf32>
    %527 = arith.addf %438, %526 : vector<1x128xf32>
    %528 = arith.addf %439, %485 : vector<1x128xf32>
    %529 = arith.mulf %447, %485 : vector<1x128xf32>
    %530 = arith.addf %441, %529 : vector<1x128xf32>
    %531 = arith.mulf %449, %485 : vector<1x128xf32>
    %532 = arith.addf %443, %531 : vector<1x128xf32>
    %533 = arith.mulf %451, %485 : vector<1x128xf32>
    %534 = arith.addf %445, %533 : vector<1x128xf32>
    %c0_120 = arith.constant 0 : index
    %c6 = arith.constant 6 : index
    %c0_121 = arith.constant 0 : index
    %c0_122 = arith.constant 0 : index
    %535 = vector.load %arg1[%c0_120, %c6, %c0_121, %c0_122] : memref<3x16x1x128xf32, #tpu.memory_space<vmem>>, vector<1x1x1x128xf32>
    %536 = vector.shape_cast %535 : vector<1x1x1x128xf32> to vector<1x128xf32>
    %c1_123 = arith.constant 1 : index
    %c6_124 = arith.constant 6 : index
    %c0_125 = arith.constant 0 : index
    %c0_126 = arith.constant 0 : index
    %537 = vector.load %arg1[%c1_123, %c6_124, %c0_125, %c0_126] : memref<3x16x1x128xf32, #tpu.memory_space<vmem>>, vector<1x1x1x128xf32>
    %538 = vector.shape_cast %537 : vector<1x1x1x128xf32> to vector<1x128xf32>
    %c2_127 = arith.constant 2 : index
    %c6_128 = arith.constant 6 : index
    %c0_129 = arith.constant 0 : index
    %c0_130 = arith.constant 0 : index
    %539 = vector.load %arg1[%c2_127, %c6_128, %c0_129, %c0_130] : memref<3x16x1x128xf32, #tpu.memory_space<vmem>>, vector<1x1x1x128xf32>
    %540 = vector.shape_cast %539 : vector<1x1x1x128xf32> to vector<1x128xf32>
    %541 = arith.addf %452, %536 : vector<1x128xf32>
    %542 = arith.addf %453, %538 : vector<1x128xf32>
    %543 = arith.addf %454, %540 : vector<1x128xf32>
    %544 = arith.mulf %536, %536 : vector<1x128xf32>
    %545 = arith.addf %456, %544 : vector<1x128xf32>
    %546 = arith.mulf %536, %538 : vector<1x128xf32>
    %547 = arith.addf %458, %546 : vector<1x128xf32>
    %548 = arith.mulf %536, %540 : vector<1x128xf32>
    %549 = arith.addf %460, %548 : vector<1x128xf32>
    %550 = arith.mulf %538, %538 : vector<1x128xf32>
    %551 = arith.addf %462, %550 : vector<1x128xf32>
    %552 = arith.mulf %538, %540 : vector<1x128xf32>
    %553 = arith.addf %464, %552 : vector<1x128xf32>
    %554 = arith.mulf %540, %540 : vector<1x128xf32>
    %555 = arith.addf %466, %554 : vector<1x128xf32>
    %cst_131 = arith.constant 0.000000e+00 : f32
    %556 = vector.broadcast %cst_131 : f32 to vector<1x128xf32>
    %557 = arith.cmpf ogt, %536, %556 : vector<1x128xf32>
    %cst_132 = arith.constant 1.000000e+00 : f32
    %cst_133 = arith.constant 0.000000e+00 : f32
    %558 = vector.broadcast %cst_132 : f32 to vector<1x128xf32>
    %559 = vector.broadcast %cst_133 : f32 to vector<1x128xf32>
    %560 = arith.select %557, %558, %559 : vector<1x128xi1>, vector<1x128xf32>
    %cst_134 = arith.constant 0.000000e+00 : f32
    %561 = vector.broadcast %cst_134 : f32 to vector<1x128xf32>
    %562 = arith.cmpf ogt, %538, %561 : vector<1x128xf32>
    %cst_135 = arith.constant 1.000000e+00 : f32
    %cst_136 = arith.constant 0.000000e+00 : f32
    %563 = vector.broadcast %cst_135 : f32 to vector<1x128xf32>
    %564 = vector.broadcast %cst_136 : f32 to vector<1x128xf32>
    %565 = arith.select %562, %563, %564 : vector<1x128xi1>, vector<1x128xf32>
    %cst_137 = arith.constant 0.000000e+00 : f32
    %566 = vector.broadcast %cst_137 : f32 to vector<1x128xf32>
    %567 = arith.cmpf ogt, %540, %566 : vector<1x128xf32>
    %cst_138 = arith.constant 1.000000e+00 : f32
    %cst_139 = arith.constant 0.000000e+00 : f32
    %568 = vector.broadcast %cst_138 : f32 to vector<1x128xf32>
    %569 = vector.broadcast %cst_139 : f32 to vector<1x128xf32>
    %570 = arith.select %567, %568, %569 : vector<1x128xi1>, vector<1x128xf32>
    %571 = arith.mulf %560, %565 : vector<1x128xf32>
    %572 = arith.mulf %560, %570 : vector<1x128xf32>
    %573 = arith.mulf %565, %570 : vector<1x128xf32>
    %574 = arith.mulf %571, %570 : vector<1x128xf32>
    %575 = arith.addf %486, %560 : vector<1x128xf32>
    %576 = arith.mulf %536, %560 : vector<1x128xf32>
    %577 = arith.addf %488, %576 : vector<1x128xf32>
    %578 = arith.mulf %538, %560 : vector<1x128xf32>
    %579 = arith.addf %490, %578 : vector<1x128xf32>
    %580 = arith.mulf %540, %560 : vector<1x128xf32>
    %581 = arith.addf %492, %580 : vector<1x128xf32>
    %582 = arith.addf %493, %565 : vector<1x128xf32>
    %583 = arith.mulf %536, %565 : vector<1x128xf32>
    %584 = arith.addf %495, %583 : vector<1x128xf32>
    %585 = arith.mulf %538, %565 : vector<1x128xf32>
    %586 = arith.addf %497, %585 : vector<1x128xf32>
    %587 = arith.mulf %540, %565 : vector<1x128xf32>
    %588 = arith.addf %499, %587 : vector<1x128xf32>
    %589 = arith.addf %500, %570 : vector<1x128xf32>
    %590 = arith.mulf %536, %570 : vector<1x128xf32>
    %591 = arith.addf %502, %590 : vector<1x128xf32>
    %592 = arith.mulf %538, %570 : vector<1x128xf32>
    %593 = arith.addf %504, %592 : vector<1x128xf32>
    %594 = arith.mulf %540, %570 : vector<1x128xf32>
    %595 = arith.addf %506, %594 : vector<1x128xf32>
    %596 = arith.addf %507, %571 : vector<1x128xf32>
    %597 = arith.mulf %536, %571 : vector<1x128xf32>
    %598 = arith.addf %509, %597 : vector<1x128xf32>
    %599 = arith.mulf %538, %571 : vector<1x128xf32>
    %600 = arith.addf %511, %599 : vector<1x128xf32>
    %601 = arith.mulf %540, %571 : vector<1x128xf32>
    %602 = arith.addf %513, %601 : vector<1x128xf32>
    %603 = arith.addf %514, %572 : vector<1x128xf32>
    %604 = arith.mulf %536, %572 : vector<1x128xf32>
    %605 = arith.addf %516, %604 : vector<1x128xf32>
    %606 = arith.mulf %538, %572 : vector<1x128xf32>
    %607 = arith.addf %518, %606 : vector<1x128xf32>
    %608 = arith.mulf %540, %572 : vector<1x128xf32>
    %609 = arith.addf %520, %608 : vector<1x128xf32>
    %610 = arith.addf %521, %573 : vector<1x128xf32>
    %611 = arith.mulf %536, %573 : vector<1x128xf32>
    %612 = arith.addf %523, %611 : vector<1x128xf32>
    %613 = arith.mulf %538, %573 : vector<1x128xf32>
    %614 = arith.addf %525, %613 : vector<1x128xf32>
    %615 = arith.mulf %540, %573 : vector<1x128xf32>
    %616 = arith.addf %527, %615 : vector<1x128xf32>
    %617 = arith.addf %528, %574 : vector<1x128xf32>
    %618 = arith.mulf %536, %574 : vector<1x128xf32>
    %619 = arith.addf %530, %618 : vector<1x128xf32>
    %620 = arith.mulf %538, %574 : vector<1x128xf32>
    %621 = arith.addf %532, %620 : vector<1x128xf32>
    %622 = arith.mulf %540, %574 : vector<1x128xf32>
    %623 = arith.addf %534, %622 : vector<1x128xf32>
    %c0_140 = arith.constant 0 : index
    %c7 = arith.constant 7 : index
    %c0_141 = arith.constant 0 : index
    %c0_142 = arith.constant 0 : index
    %624 = vector.load %arg1[%c0_140, %c7, %c0_141, %c0_142] : memref<3x16x1x128xf32, #tpu.memory_space<vmem>>, vector<1x1x1x128xf32>
    %625 = vector.shape_cast %624 : vector<1x1x1x128xf32> to vector<1x128xf32>
    %c1_143 = arith.constant 1 : index
    %c7_144 = arith.constant 7 : index
    %c0_145 = arith.constant 0 : index
    %c0_146 = arith.constant 0 : index
    %626 = vector.load %arg1[%c1_143, %c7_144, %c0_145, %c0_146] : memref<3x16x1x128xf32, #tpu.memory_space<vmem>>, vector<1x1x1x128xf32>
    %627 = vector.shape_cast %626 : vector<1x1x1x128xf32> to vector<1x128xf32>
    %c2_147 = arith.constant 2 : index
    %c7_148 = arith.constant 7 : index
    %c0_149 = arith.constant 0 : index
    %c0_150 = arith.constant 0 : index
    %628 = vector.load %arg1[%c2_147, %c7_148, %c0_149, %c0_150] : memref<3x16x1x128xf32, #tpu.memory_space<vmem>>, vector<1x1x1x128xf32>
    %629 = vector.shape_cast %628 : vector<1x1x1x128xf32> to vector<1x128xf32>
    %630 = arith.addf %541, %625 : vector<1x128xf32>
    %631 = arith.addf %542, %627 : vector<1x128xf32>
    %632 = arith.addf %543, %629 : vector<1x128xf32>
    %633 = arith.mulf %625, %625 : vector<1x128xf32>
    %634 = arith.addf %545, %633 : vector<1x128xf32>
    %635 = arith.mulf %625, %627 : vector<1x128xf32>
    %636 = arith.addf %547, %635 : vector<1x128xf32>
    %637 = arith.mulf %625, %629 : vector<1x128xf32>
    %638 = arith.addf %549, %637 : vector<1x128xf32>
    %639 = arith.mulf %627, %627 : vector<1x128xf32>
    %640 = arith.addf %551, %639 : vector<1x128xf32>
    %641 = arith.mulf %627, %629 : vector<1x128xf32>
    %642 = arith.addf %553, %641 : vector<1x128xf32>
    %643 = arith.mulf %629, %629 : vector<1x128xf32>
    %644 = arith.addf %555, %643 : vector<1x128xf32>
    %cst_151 = arith.constant 0.000000e+00 : f32
    %645 = vector.broadcast %cst_151 : f32 to vector<1x128xf32>
    %646 = arith.cmpf ogt, %625, %645 : vector<1x128xf32>
    %cst_152 = arith.constant 1.000000e+00 : f32
    %cst_153 = arith.constant 0.000000e+00 : f32
    %647 = vector.broadcast %cst_152 : f32 to vector<1x128xf32>
    %648 = vector.broadcast %cst_153 : f32 to vector<1x128xf32>
    %649 = arith.select %646, %647, %648 : vector<1x128xi1>, vector<1x128xf32>
    %cst_154 = arith.constant 0.000000e+00 : f32
    %650 = vector.broadcast %cst_154 : f32 to vector<1x128xf32>
    %651 = arith.cmpf ogt, %627, %650 : vector<1x128xf32>
    %cst_155 = arith.constant 1.000000e+00 : f32
    %cst_156 = arith.constant 0.000000e+00 : f32
    %652 = vector.broadcast %cst_155 : f32 to vector<1x128xf32>
    %653 = vector.broadcast %cst_156 : f32 to vector<1x128xf32>
    %654 = arith.select %651, %652, %653 : vector<1x128xi1>, vector<1x128xf32>
    %cst_157 = arith.constant 0.000000e+00 : f32
    %655 = vector.broadcast %cst_157 : f32 to vector<1x128xf32>
    %656 = arith.cmpf ogt, %629, %655 : vector<1x128xf32>
    %cst_158 = arith.constant 1.000000e+00 : f32
    %cst_159 = arith.constant 0.000000e+00 : f32
    %657 = vector.broadcast %cst_158 : f32 to vector<1x128xf32>
    %658 = vector.broadcast %cst_159 : f32 to vector<1x128xf32>
    %659 = arith.select %656, %657, %658 : vector<1x128xi1>, vector<1x128xf32>
    %660 = arith.mulf %649, %654 : vector<1x128xf32>
    %661 = arith.mulf %649, %659 : vector<1x128xf32>
    %662 = arith.mulf %654, %659 : vector<1x128xf32>
    %663 = arith.mulf %660, %659 : vector<1x128xf32>
    %664 = arith.addf %575, %649 : vector<1x128xf32>
    %665 = arith.mulf %625, %649 : vector<1x128xf32>
    %666 = arith.addf %577, %665 : vector<1x128xf32>
    %667 = arith.mulf %627, %649 : vector<1x128xf32>
    %668 = arith.addf %579, %667 : vector<1x128xf32>
    %669 = arith.mulf %629, %649 : vector<1x128xf32>
    %670 = arith.addf %581, %669 : vector<1x128xf32>
    %671 = arith.addf %582, %654 : vector<1x128xf32>
    %672 = arith.mulf %625, %654 : vector<1x128xf32>
    %673 = arith.addf %584, %672 : vector<1x128xf32>
    %674 = arith.mulf %627, %654 : vector<1x128xf32>
    %675 = arith.addf %586, %674 : vector<1x128xf32>
    %676 = arith.mulf %629, %654 : vector<1x128xf32>
    %677 = arith.addf %588, %676 : vector<1x128xf32>
    %678 = arith.addf %589, %659 : vector<1x128xf32>
    %679 = arith.mulf %625, %659 : vector<1x128xf32>
    %680 = arith.addf %591, %679 : vector<1x128xf32>
    %681 = arith.mulf %627, %659 : vector<1x128xf32>
    %682 = arith.addf %593, %681 : vector<1x128xf32>
    %683 = arith.mulf %629, %659 : vector<1x128xf32>
    %684 = arith.addf %595, %683 : vector<1x128xf32>
    %685 = arith.addf %596, %660 : vector<1x128xf32>
    %686 = arith.mulf %625, %660 : vector<1x128xf32>
    %687 = arith.addf %598, %686 : vector<1x128xf32>
    %688 = arith.mulf %627, %660 : vector<1x128xf32>
    %689 = arith.addf %600, %688 : vector<1x128xf32>
    %690 = arith.mulf %629, %660 : vector<1x128xf32>
    %691 = arith.addf %602, %690 : vector<1x128xf32>
    %692 = arith.addf %603, %661 : vector<1x128xf32>
    %693 = arith.mulf %625, %661 : vector<1x128xf32>
    %694 = arith.addf %605, %693 : vector<1x128xf32>
    %695 = arith.mulf %627, %661 : vector<1x128xf32>
    %696 = arith.addf %607, %695 : vector<1x128xf32>
    %697 = arith.mulf %629, %661 : vector<1x128xf32>
    %698 = arith.addf %609, %697 : vector<1x128xf32>
    %699 = arith.addf %610, %662 : vector<1x128xf32>
    %700 = arith.mulf %625, %662 : vector<1x128xf32>
    %701 = arith.addf %612, %700 : vector<1x128xf32>
    %702 = arith.mulf %627, %662 : vector<1x128xf32>
    %703 = arith.addf %614, %702 : vector<1x128xf32>
    %704 = arith.mulf %629, %662 : vector<1x128xf32>
    %705 = arith.addf %616, %704 : vector<1x128xf32>
    %706 = arith.addf %617, %663 : vector<1x128xf32>
    %707 = arith.mulf %625, %663 : vector<1x128xf32>
    %708 = arith.addf %619, %707 : vector<1x128xf32>
    %709 = arith.mulf %627, %663 : vector<1x128xf32>
    %710 = arith.addf %621, %709 : vector<1x128xf32>
    %711 = arith.mulf %629, %663 : vector<1x128xf32>
    %712 = arith.addf %623, %711 : vector<1x128xf32>
    %c0_160 = arith.constant 0 : index
    %c8 = arith.constant 8 : index
    %c0_161 = arith.constant 0 : index
    %c0_162 = arith.constant 0 : index
    %713 = vector.load %arg1[%c0_160, %c8, %c0_161, %c0_162] : memref<3x16x1x128xf32, #tpu.memory_space<vmem>>, vector<1x1x1x128xf32>
    %714 = vector.shape_cast %713 : vector<1x1x1x128xf32> to vector<1x128xf32>
    %c1_163 = arith.constant 1 : index
    %c8_164 = arith.constant 8 : index
    %c0_165 = arith.constant 0 : index
    %c0_166 = arith.constant 0 : index
    %715 = vector.load %arg1[%c1_163, %c8_164, %c0_165, %c0_166] : memref<3x16x1x128xf32, #tpu.memory_space<vmem>>, vector<1x1x1x128xf32>
    %716 = vector.shape_cast %715 : vector<1x1x1x128xf32> to vector<1x128xf32>
    %c2_167 = arith.constant 2 : index
    %c8_168 = arith.constant 8 : index
    %c0_169 = arith.constant 0 : index
    %c0_170 = arith.constant 0 : index
    %717 = vector.load %arg1[%c2_167, %c8_168, %c0_169, %c0_170] : memref<3x16x1x128xf32, #tpu.memory_space<vmem>>, vector<1x1x1x128xf32>
    %718 = vector.shape_cast %717 : vector<1x1x1x128xf32> to vector<1x128xf32>
    %719 = arith.addf %630, %714 : vector<1x128xf32>
    %720 = arith.addf %631, %716 : vector<1x128xf32>
    %721 = arith.addf %632, %718 : vector<1x128xf32>
    %722 = arith.mulf %714, %714 : vector<1x128xf32>
    %723 = arith.addf %634, %722 : vector<1x128xf32>
    %724 = arith.mulf %714, %716 : vector<1x128xf32>
    %725 = arith.addf %636, %724 : vector<1x128xf32>
    %726 = arith.mulf %714, %718 : vector<1x128xf32>
    %727 = arith.addf %638, %726 : vector<1x128xf32>
    %728 = arith.mulf %716, %716 : vector<1x128xf32>
    %729 = arith.addf %640, %728 : vector<1x128xf32>
    %730 = arith.mulf %716, %718 : vector<1x128xf32>
    %731 = arith.addf %642, %730 : vector<1x128xf32>
    %732 = arith.mulf %718, %718 : vector<1x128xf32>
    %733 = arith.addf %644, %732 : vector<1x128xf32>
    %cst_171 = arith.constant 0.000000e+00 : f32
    %734 = vector.broadcast %cst_171 : f32 to vector<1x128xf32>
    %735 = arith.cmpf ogt, %714, %734 : vector<1x128xf32>
    %cst_172 = arith.constant 1.000000e+00 : f32
    %cst_173 = arith.constant 0.000000e+00 : f32
    %736 = vector.broadcast %cst_172 : f32 to vector<1x128xf32>
    %737 = vector.broadcast %cst_173 : f32 to vector<1x128xf32>
    %738 = arith.select %735, %736, %737 : vector<1x128xi1>, vector<1x128xf32>
    %cst_174 = arith.constant 0.000000e+00 : f32
    %739 = vector.broadcast %cst_174 : f32 to vector<1x128xf32>
    %740 = arith.cmpf ogt, %716, %739 : vector<1x128xf32>
    %cst_175 = arith.constant 1.000000e+00 : f32
    %cst_176 = arith.constant 0.000000e+00 : f32
    %741 = vector.broadcast %cst_175 : f32 to vector<1x128xf32>
    %742 = vector.broadcast %cst_176 : f32 to vector<1x128xf32>
    %743 = arith.select %740, %741, %742 : vector<1x128xi1>, vector<1x128xf32>
    %cst_177 = arith.constant 0.000000e+00 : f32
    %744 = vector.broadcast %cst_177 : f32 to vector<1x128xf32>
    %745 = arith.cmpf ogt, %718, %744 : vector<1x128xf32>
    %cst_178 = arith.constant 1.000000e+00 : f32
    %cst_179 = arith.constant 0.000000e+00 : f32
    %746 = vector.broadcast %cst_178 : f32 to vector<1x128xf32>
    %747 = vector.broadcast %cst_179 : f32 to vector<1x128xf32>
    %748 = arith.select %745, %746, %747 : vector<1x128xi1>, vector<1x128xf32>
    %749 = arith.mulf %738, %743 : vector<1x128xf32>
    %750 = arith.mulf %738, %748 : vector<1x128xf32>
    %751 = arith.mulf %743, %748 : vector<1x128xf32>
    %752 = arith.mulf %749, %748 : vector<1x128xf32>
    %753 = arith.addf %664, %738 : vector<1x128xf32>
    %754 = arith.mulf %714, %738 : vector<1x128xf32>
    %755 = arith.addf %666, %754 : vector<1x128xf32>
    %756 = arith.mulf %716, %738 : vector<1x128xf32>
    %757 = arith.addf %668, %756 : vector<1x128xf32>
    %758 = arith.mulf %718, %738 : vector<1x128xf32>
    %759 = arith.addf %670, %758 : vector<1x128xf32>
    %760 = arith.addf %671, %743 : vector<1x128xf32>
    %761 = arith.mulf %714, %743 : vector<1x128xf32>
    %762 = arith.addf %673, %761 : vector<1x128xf32>
    %763 = arith.mulf %716, %743 : vector<1x128xf32>
    %764 = arith.addf %675, %763 : vector<1x128xf32>
    %765 = arith.mulf %718, %743 : vector<1x128xf32>
    %766 = arith.addf %677, %765 : vector<1x128xf32>
    %767 = arith.addf %678, %748 : vector<1x128xf32>
    %768 = arith.mulf %714, %748 : vector<1x128xf32>
    %769 = arith.addf %680, %768 : vector<1x128xf32>
    %770 = arith.mulf %716, %748 : vector<1x128xf32>
    %771 = arith.addf %682, %770 : vector<1x128xf32>
    %772 = arith.mulf %718, %748 : vector<1x128xf32>
    %773 = arith.addf %684, %772 : vector<1x128xf32>
    %774 = arith.addf %685, %749 : vector<1x128xf32>
    %775 = arith.mulf %714, %749 : vector<1x128xf32>
    %776 = arith.addf %687, %775 : vector<1x128xf32>
    %777 = arith.mulf %716, %749 : vector<1x128xf32>
    %778 = arith.addf %689, %777 : vector<1x128xf32>
    %779 = arith.mulf %718, %749 : vector<1x128xf32>
    %780 = arith.addf %691, %779 : vector<1x128xf32>
    %781 = arith.addf %692, %750 : vector<1x128xf32>
    %782 = arith.mulf %714, %750 : vector<1x128xf32>
    %783 = arith.addf %694, %782 : vector<1x128xf32>
    %784 = arith.mulf %716, %750 : vector<1x128xf32>
    %785 = arith.addf %696, %784 : vector<1x128xf32>
    %786 = arith.mulf %718, %750 : vector<1x128xf32>
    %787 = arith.addf %698, %786 : vector<1x128xf32>
    %788 = arith.addf %699, %751 : vector<1x128xf32>
    %789 = arith.mulf %714, %751 : vector<1x128xf32>
    %790 = arith.addf %701, %789 : vector<1x128xf32>
    %791 = arith.mulf %716, %751 : vector<1x128xf32>
    %792 = arith.addf %703, %791 : vector<1x128xf32>
    %793 = arith.mulf %718, %751 : vector<1x128xf32>
    %794 = arith.addf %705, %793 : vector<1x128xf32>
    %795 = arith.addf %706, %752 : vector<1x128xf32>
    %796 = arith.mulf %714, %752 : vector<1x128xf32>
    %797 = arith.addf %708, %796 : vector<1x128xf32>
    %798 = arith.mulf %716, %752 : vector<1x128xf32>
    %799 = arith.addf %710, %798 : vector<1x128xf32>
    %800 = arith.mulf %718, %752 : vector<1x128xf32>
    %801 = arith.addf %712, %800 : vector<1x128xf32>
    %c0_180 = arith.constant 0 : index
    %c9 = arith.constant 9 : index
    %c0_181 = arith.constant 0 : index
    %c0_182 = arith.constant 0 : index
    %802 = vector.load %arg1[%c0_180, %c9, %c0_181, %c0_182] : memref<3x16x1x128xf32, #tpu.memory_space<vmem>>, vector<1x1x1x128xf32>
    %803 = vector.shape_cast %802 : vector<1x1x1x128xf32> to vector<1x128xf32>
    %c1_183 = arith.constant 1 : index
    %c9_184 = arith.constant 9 : index
    %c0_185 = arith.constant 0 : index
    %c0_186 = arith.constant 0 : index
    %804 = vector.load %arg1[%c1_183, %c9_184, %c0_185, %c0_186] : memref<3x16x1x128xf32, #tpu.memory_space<vmem>>, vector<1x1x1x128xf32>
    %805 = vector.shape_cast %804 : vector<1x1x1x128xf32> to vector<1x128xf32>
    %c2_187 = arith.constant 2 : index
    %c9_188 = arith.constant 9 : index
    %c0_189 = arith.constant 0 : index
    %c0_190 = arith.constant 0 : index
    %806 = vector.load %arg1[%c2_187, %c9_188, %c0_189, %c0_190] : memref<3x16x1x128xf32, #tpu.memory_space<vmem>>, vector<1x1x1x128xf32>
    %807 = vector.shape_cast %806 : vector<1x1x1x128xf32> to vector<1x128xf32>
    %808 = arith.addf %719, %803 : vector<1x128xf32>
    %809 = arith.addf %720, %805 : vector<1x128xf32>
    %810 = arith.addf %721, %807 : vector<1x128xf32>
    %811 = arith.mulf %803, %803 : vector<1x128xf32>
    %812 = arith.addf %723, %811 : vector<1x128xf32>
    %813 = arith.mulf %803, %805 : vector<1x128xf32>
    %814 = arith.addf %725, %813 : vector<1x128xf32>
    %815 = arith.mulf %803, %807 : vector<1x128xf32>
    %816 = arith.addf %727, %815 : vector<1x128xf32>
    %817 = arith.mulf %805, %805 : vector<1x128xf32>
    %818 = arith.addf %729, %817 : vector<1x128xf32>
    %819 = arith.mulf %805, %807 : vector<1x128xf32>
    %820 = arith.addf %731, %819 : vector<1x128xf32>
    %821 = arith.mulf %807, %807 : vector<1x128xf32>
    %822 = arith.addf %733, %821 : vector<1x128xf32>
    %cst_191 = arith.constant 0.000000e+00 : f32
    %823 = vector.broadcast %cst_191 : f32 to vector<1x128xf32>
    %824 = arith.cmpf ogt, %803, %823 : vector<1x128xf32>
    %cst_192 = arith.constant 1.000000e+00 : f32
    %cst_193 = arith.constant 0.000000e+00 : f32
    %825 = vector.broadcast %cst_192 : f32 to vector<1x128xf32>
    %826 = vector.broadcast %cst_193 : f32 to vector<1x128xf32>
    %827 = arith.select %824, %825, %826 : vector<1x128xi1>, vector<1x128xf32>
    %cst_194 = arith.constant 0.000000e+00 : f32
    %828 = vector.broadcast %cst_194 : f32 to vector<1x128xf32>
    %829 = arith.cmpf ogt, %805, %828 : vector<1x128xf32>
    %cst_195 = arith.constant 1.000000e+00 : f32
    %cst_196 = arith.constant 0.000000e+00 : f32
    %830 = vector.broadcast %cst_195 : f32 to vector<1x128xf32>
    %831 = vector.broadcast %cst_196 : f32 to vector<1x128xf32>
    %832 = arith.select %829, %830, %831 : vector<1x128xi1>, vector<1x128xf32>
    %cst_197 = arith.constant 0.000000e+00 : f32
    %833 = vector.broadcast %cst_197 : f32 to vector<1x128xf32>
    %834 = arith.cmpf ogt, %807, %833 : vector<1x128xf32>
    %cst_198 = arith.constant 1.000000e+00 : f32
    %cst_199 = arith.constant 0.000000e+00 : f32
    %835 = vector.broadcast %cst_198 : f32 to vector<1x128xf32>
    %836 = vector.broadcast %cst_199 : f32 to vector<1x128xf32>
    %837 = arith.select %834, %835, %836 : vector<1x128xi1>, vector<1x128xf32>
    %838 = arith.mulf %827, %832 : vector<1x128xf32>
    %839 = arith.mulf %827, %837 : vector<1x128xf32>
    %840 = arith.mulf %832, %837 : vector<1x128xf32>
    %841 = arith.mulf %838, %837 : vector<1x128xf32>
    %842 = arith.addf %753, %827 : vector<1x128xf32>
    %843 = arith.mulf %803, %827 : vector<1x128xf32>
    %844 = arith.addf %755, %843 : vector<1x128xf32>
    %845 = arith.mulf %805, %827 : vector<1x128xf32>
    %846 = arith.addf %757, %845 : vector<1x128xf32>
    %847 = arith.mulf %807, %827 : vector<1x128xf32>
    %848 = arith.addf %759, %847 : vector<1x128xf32>
    %849 = arith.addf %760, %832 : vector<1x128xf32>
    %850 = arith.mulf %803, %832 : vector<1x128xf32>
    %851 = arith.addf %762, %850 : vector<1x128xf32>
    %852 = arith.mulf %805, %832 : vector<1x128xf32>
    %853 = arith.addf %764, %852 : vector<1x128xf32>
    %854 = arith.mulf %807, %832 : vector<1x128xf32>
    %855 = arith.addf %766, %854 : vector<1x128xf32>
    %856 = arith.addf %767, %837 : vector<1x128xf32>
    %857 = arith.mulf %803, %837 : vector<1x128xf32>
    %858 = arith.addf %769, %857 : vector<1x128xf32>
    %859 = arith.mulf %805, %837 : vector<1x128xf32>
    %860 = arith.addf %771, %859 : vector<1x128xf32>
    %861 = arith.mulf %807, %837 : vector<1x128xf32>
    %862 = arith.addf %773, %861 : vector<1x128xf32>
    %863 = arith.addf %774, %838 : vector<1x128xf32>
    %864 = arith.mulf %803, %838 : vector<1x128xf32>
    %865 = arith.addf %776, %864 : vector<1x128xf32>
    %866 = arith.mulf %805, %838 : vector<1x128xf32>
    %867 = arith.addf %778, %866 : vector<1x128xf32>
    %868 = arith.mulf %807, %838 : vector<1x128xf32>
    %869 = arith.addf %780, %868 : vector<1x128xf32>
    %870 = arith.addf %781, %839 : vector<1x128xf32>
    %871 = arith.mulf %803, %839 : vector<1x128xf32>
    %872 = arith.addf %783, %871 : vector<1x128xf32>
    %873 = arith.mulf %805, %839 : vector<1x128xf32>
    %874 = arith.addf %785, %873 : vector<1x128xf32>
    %875 = arith.mulf %807, %839 : vector<1x128xf32>
    %876 = arith.addf %787, %875 : vector<1x128xf32>
    %877 = arith.addf %788, %840 : vector<1x128xf32>
    %878 = arith.mulf %803, %840 : vector<1x128xf32>
    %879 = arith.addf %790, %878 : vector<1x128xf32>
    %880 = arith.mulf %805, %840 : vector<1x128xf32>
    %881 = arith.addf %792, %880 : vector<1x128xf32>
    %882 = arith.mulf %807, %840 : vector<1x128xf32>
    %883 = arith.addf %794, %882 : vector<1x128xf32>
    %884 = arith.addf %795, %841 : vector<1x128xf32>
    %885 = arith.mulf %803, %841 : vector<1x128xf32>
    %886 = arith.addf %797, %885 : vector<1x128xf32>
    %887 = arith.mulf %805, %841 : vector<1x128xf32>
    %888 = arith.addf %799, %887 : vector<1x128xf32>
    %889 = arith.mulf %807, %841 : vector<1x128xf32>
    %890 = arith.addf %801, %889 : vector<1x128xf32>
    %c0_200 = arith.constant 0 : index
    %c10 = arith.constant 10 : index
    %c0_201 = arith.constant 0 : index
    %c0_202 = arith.constant 0 : index
    %891 = vector.load %arg1[%c0_200, %c10, %c0_201, %c0_202] : memref<3x16x1x128xf32, #tpu.memory_space<vmem>>, vector<1x1x1x128xf32>
    %892 = vector.shape_cast %891 : vector<1x1x1x128xf32> to vector<1x128xf32>
    %c1_203 = arith.constant 1 : index
    %c10_204 = arith.constant 10 : index
    %c0_205 = arith.constant 0 : index
    %c0_206 = arith.constant 0 : index
    %893 = vector.load %arg1[%c1_203, %c10_204, %c0_205, %c0_206] : memref<3x16x1x128xf32, #tpu.memory_space<vmem>>, vector<1x1x1x128xf32>
    %894 = vector.shape_cast %893 : vector<1x1x1x128xf32> to vector<1x128xf32>
    %c2_207 = arith.constant 2 : index
    %c10_208 = arith.constant 10 : index
    %c0_209 = arith.constant 0 : index
    %c0_210 = arith.constant 0 : index
    %895 = vector.load %arg1[%c2_207, %c10_208, %c0_209, %c0_210] : memref<3x16x1x128xf32, #tpu.memory_space<vmem>>, vector<1x1x1x128xf32>
    %896 = vector.shape_cast %895 : vector<1x1x1x128xf32> to vector<1x128xf32>
    %897 = arith.addf %808, %892 : vector<1x128xf32>
    %898 = arith.addf %809, %894 : vector<1x128xf32>
    %899 = arith.addf %810, %896 : vector<1x128xf32>
    %900 = arith.mulf %892, %892 : vector<1x128xf32>
    %901 = arith.addf %812, %900 : vector<1x128xf32>
    %902 = arith.mulf %892, %894 : vector<1x128xf32>
    %903 = arith.addf %814, %902 : vector<1x128xf32>
    %904 = arith.mulf %892, %896 : vector<1x128xf32>
    %905 = arith.addf %816, %904 : vector<1x128xf32>
    %906 = arith.mulf %894, %894 : vector<1x128xf32>
    %907 = arith.addf %818, %906 : vector<1x128xf32>
    %908 = arith.mulf %894, %896 : vector<1x128xf32>
    %909 = arith.addf %820, %908 : vector<1x128xf32>
    %910 = arith.mulf %896, %896 : vector<1x128xf32>
    %911 = arith.addf %822, %910 : vector<1x128xf32>
    %cst_211 = arith.constant 0.000000e+00 : f32
    %912 = vector.broadcast %cst_211 : f32 to vector<1x128xf32>
    %913 = arith.cmpf ogt, %892, %912 : vector<1x128xf32>
    %cst_212 = arith.constant 1.000000e+00 : f32
    %cst_213 = arith.constant 0.000000e+00 : f32
    %914 = vector.broadcast %cst_212 : f32 to vector<1x128xf32>
    %915 = vector.broadcast %cst_213 : f32 to vector<1x128xf32>
    %916 = arith.select %913, %914, %915 : vector<1x128xi1>, vector<1x128xf32>
    %cst_214 = arith.constant 0.000000e+00 : f32
    %917 = vector.broadcast %cst_214 : f32 to vector<1x128xf32>
    %918 = arith.cmpf ogt, %894, %917 : vector<1x128xf32>
    %cst_215 = arith.constant 1.000000e+00 : f32
    %cst_216 = arith.constant 0.000000e+00 : f32
    %919 = vector.broadcast %cst_215 : f32 to vector<1x128xf32>
    %920 = vector.broadcast %cst_216 : f32 to vector<1x128xf32>
    %921 = arith.select %918, %919, %920 : vector<1x128xi1>, vector<1x128xf32>
    %cst_217 = arith.constant 0.000000e+00 : f32
    %922 = vector.broadcast %cst_217 : f32 to vector<1x128xf32>
    %923 = arith.cmpf ogt, %896, %922 : vector<1x128xf32>
    %cst_218 = arith.constant 1.000000e+00 : f32
    %cst_219 = arith.constant 0.000000e+00 : f32
    %924 = vector.broadcast %cst_218 : f32 to vector<1x128xf32>
    %925 = vector.broadcast %cst_219 : f32 to vector<1x128xf32>
    %926 = arith.select %923, %924, %925 : vector<1x128xi1>, vector<1x128xf32>
    %927 = arith.mulf %916, %921 : vector<1x128xf32>
    %928 = arith.mulf %916, %926 : vector<1x128xf32>
    %929 = arith.mulf %921, %926 : vector<1x128xf32>
    %930 = arith.mulf %927, %926 : vector<1x128xf32>
    %931 = arith.addf %842, %916 : vector<1x128xf32>
    %932 = arith.mulf %892, %916 : vector<1x128xf32>
    %933 = arith.addf %844, %932 : vector<1x128xf32>
    %934 = arith.mulf %894, %916 : vector<1x128xf32>
    %935 = arith.addf %846, %934 : vector<1x128xf32>
    %936 = arith.mulf %896, %916 : vector<1x128xf32>
    %937 = arith.addf %848, %936 : vector<1x128xf32>
    %938 = arith.addf %849, %921 : vector<1x128xf32>
    %939 = arith.mulf %892, %921 : vector<1x128xf32>
    %940 = arith.addf %851, %939 : vector<1x128xf32>
    %941 = arith.mulf %894, %921 : vector<1x128xf32>
    %942 = arith.addf %853, %941 : vector<1x128xf32>
    %943 = arith.mulf %896, %921 : vector<1x128xf32>
    %944 = arith.addf %855, %943 : vector<1x128xf32>
    %945 = arith.addf %856, %926 : vector<1x128xf32>
    %946 = arith.mulf %892, %926 : vector<1x128xf32>
    %947 = arith.addf %858, %946 : vector<1x128xf32>
    %948 = arith.mulf %894, %926 : vector<1x128xf32>
    %949 = arith.addf %860, %948 : vector<1x128xf32>
    %950 = arith.mulf %896, %926 : vector<1x128xf32>
    %951 = arith.addf %862, %950 : vector<1x128xf32>
    %952 = arith.addf %863, %927 : vector<1x128xf32>
    %953 = arith.mulf %892, %927 : vector<1x128xf32>
    %954 = arith.addf %865, %953 : vector<1x128xf32>
    %955 = arith.mulf %894, %927 : vector<1x128xf32>
    %956 = arith.addf %867, %955 : vector<1x128xf32>
    %957 = arith.mulf %896, %927 : vector<1x128xf32>
    %958 = arith.addf %869, %957 : vector<1x128xf32>
    %959 = arith.addf %870, %928 : vector<1x128xf32>
    %960 = arith.mulf %892, %928 : vector<1x128xf32>
    %961 = arith.addf %872, %960 : vector<1x128xf32>
    %962 = arith.mulf %894, %928 : vector<1x128xf32>
    %963 = arith.addf %874, %962 : vector<1x128xf32>
    %964 = arith.mulf %896, %928 : vector<1x128xf32>
    %965 = arith.addf %876, %964 : vector<1x128xf32>
    %966 = arith.addf %877, %929 : vector<1x128xf32>
    %967 = arith.mulf %892, %929 : vector<1x128xf32>
    %968 = arith.addf %879, %967 : vector<1x128xf32>
    %969 = arith.mulf %894, %929 : vector<1x128xf32>
    %970 = arith.addf %881, %969 : vector<1x128xf32>
    %971 = arith.mulf %896, %929 : vector<1x128xf32>
    %972 = arith.addf %883, %971 : vector<1x128xf32>
    %973 = arith.addf %884, %930 : vector<1x128xf32>
    %974 = arith.mulf %892, %930 : vector<1x128xf32>
    %975 = arith.addf %886, %974 : vector<1x128xf32>
    %976 = arith.mulf %894, %930 : vector<1x128xf32>
    %977 = arith.addf %888, %976 : vector<1x128xf32>
    %978 = arith.mulf %896, %930 : vector<1x128xf32>
    %979 = arith.addf %890, %978 : vector<1x128xf32>
    %c0_220 = arith.constant 0 : index
    %c11 = arith.constant 11 : index
    %c0_221 = arith.constant 0 : index
    %c0_222 = arith.constant 0 : index
    %980 = vector.load %arg1[%c0_220, %c11, %c0_221, %c0_222] : memref<3x16x1x128xf32, #tpu.memory_space<vmem>>, vector<1x1x1x128xf32>
    %981 = vector.shape_cast %980 : vector<1x1x1x128xf32> to vector<1x128xf32>
    %c1_223 = arith.constant 1 : index
    %c11_224 = arith.constant 11 : index
    %c0_225 = arith.constant 0 : index
    %c0_226 = arith.constant 0 : index
    %982 = vector.load %arg1[%c1_223, %c11_224, %c0_225, %c0_226] : memref<3x16x1x128xf32, #tpu.memory_space<vmem>>, vector<1x1x1x128xf32>
    %983 = vector.shape_cast %982 : vector<1x1x1x128xf32> to vector<1x128xf32>
    %c2_227 = arith.constant 2 : index
    %c11_228 = arith.constant 11 : index
    %c0_229 = arith.constant 0 : index
    %c0_230 = arith.constant 0 : index
    %984 = vector.load %arg1[%c2_227, %c11_228, %c0_229, %c0_230] : memref<3x16x1x128xf32, #tpu.memory_space<vmem>>, vector<1x1x1x128xf32>
    %985 = vector.shape_cast %984 : vector<1x1x1x128xf32> to vector<1x128xf32>
    %986 = arith.addf %897, %981 : vector<1x128xf32>
    %987 = arith.addf %898, %983 : vector<1x128xf32>
    %988 = arith.addf %899, %985 : vector<1x128xf32>
    %989 = arith.mulf %981, %981 : vector<1x128xf32>
    %990 = arith.addf %901, %989 : vector<1x128xf32>
    %991 = arith.mulf %981, %983 : vector<1x128xf32>
    %992 = arith.addf %903, %991 : vector<1x128xf32>
    %993 = arith.mulf %981, %985 : vector<1x128xf32>
    %994 = arith.addf %905, %993 : vector<1x128xf32>
    %995 = arith.mulf %983, %983 : vector<1x128xf32>
    %996 = arith.addf %907, %995 : vector<1x128xf32>
    %997 = arith.mulf %983, %985 : vector<1x128xf32>
    %998 = arith.addf %909, %997 : vector<1x128xf32>
    %999 = arith.mulf %985, %985 : vector<1x128xf32>
    %1000 = arith.addf %911, %999 : vector<1x128xf32>
    %cst_231 = arith.constant 0.000000e+00 : f32
    %1001 = vector.broadcast %cst_231 : f32 to vector<1x128xf32>
    %1002 = arith.cmpf ogt, %981, %1001 : vector<1x128xf32>
    %cst_232 = arith.constant 1.000000e+00 : f32
    %cst_233 = arith.constant 0.000000e+00 : f32
    %1003 = vector.broadcast %cst_232 : f32 to vector<1x128xf32>
    %1004 = vector.broadcast %cst_233 : f32 to vector<1x128xf32>
    %1005 = arith.select %1002, %1003, %1004 : vector<1x128xi1>, vector<1x128xf32>
    %cst_234 = arith.constant 0.000000e+00 : f32
    %1006 = vector.broadcast %cst_234 : f32 to vector<1x128xf32>
    %1007 = arith.cmpf ogt, %983, %1006 : vector<1x128xf32>
    %cst_235 = arith.constant 1.000000e+00 : f32
    %cst_236 = arith.constant 0.000000e+00 : f32
    %1008 = vector.broadcast %cst_235 : f32 to vector<1x128xf32>
    %1009 = vector.broadcast %cst_236 : f32 to vector<1x128xf32>
    %1010 = arith.select %1007, %1008, %1009 : vector<1x128xi1>, vector<1x128xf32>
    %cst_237 = arith.constant 0.000000e+00 : f32
    %1011 = vector.broadcast %cst_237 : f32 to vector<1x128xf32>
    %1012 = arith.cmpf ogt, %985, %1011 : vector<1x128xf32>
    %cst_238 = arith.constant 1.000000e+00 : f32
    %cst_239 = arith.constant 0.000000e+00 : f32
    %1013 = vector.broadcast %cst_238 : f32 to vector<1x128xf32>
    %1014 = vector.broadcast %cst_239 : f32 to vector<1x128xf32>
    %1015 = arith.select %1012, %1013, %1014 : vector<1x128xi1>, vector<1x128xf32>
    %1016 = arith.mulf %1005, %1010 : vector<1x128xf32>
    %1017 = arith.mulf %1005, %1015 : vector<1x128xf32>
    %1018 = arith.mulf %1010, %1015 : vector<1x128xf32>
    %1019 = arith.mulf %1016, %1015 : vector<1x128xf32>
    %1020 = arith.addf %931, %1005 : vector<1x128xf32>
    %1021 = arith.mulf %981, %1005 : vector<1x128xf32>
    %1022 = arith.addf %933, %1021 : vector<1x128xf32>
    %1023 = arith.mulf %983, %1005 : vector<1x128xf32>
    %1024 = arith.addf %935, %1023 : vector<1x128xf32>
    %1025 = arith.mulf %985, %1005 : vector<1x128xf32>
    %1026 = arith.addf %937, %1025 : vector<1x128xf32>
    %1027 = arith.addf %938, %1010 : vector<1x128xf32>
    %1028 = arith.mulf %981, %1010 : vector<1x128xf32>
    %1029 = arith.addf %940, %1028 : vector<1x128xf32>
    %1030 = arith.mulf %983, %1010 : vector<1x128xf32>
    %1031 = arith.addf %942, %1030 : vector<1x128xf32>
    %1032 = arith.mulf %985, %1010 : vector<1x128xf32>
    %1033 = arith.addf %944, %1032 : vector<1x128xf32>
    %1034 = arith.addf %945, %1015 : vector<1x128xf32>
    %1035 = arith.mulf %981, %1015 : vector<1x128xf32>
    %1036 = arith.addf %947, %1035 : vector<1x128xf32>
    %1037 = arith.mulf %983, %1015 : vector<1x128xf32>
    %1038 = arith.addf %949, %1037 : vector<1x128xf32>
    %1039 = arith.mulf %985, %1015 : vector<1x128xf32>
    %1040 = arith.addf %951, %1039 : vector<1x128xf32>
    %1041 = arith.addf %952, %1016 : vector<1x128xf32>
    %1042 = arith.mulf %981, %1016 : vector<1x128xf32>
    %1043 = arith.addf %954, %1042 : vector<1x128xf32>
    %1044 = arith.mulf %983, %1016 : vector<1x128xf32>
    %1045 = arith.addf %956, %1044 : vector<1x128xf32>
    %1046 = arith.mulf %985, %1016 : vector<1x128xf32>
    %1047 = arith.addf %958, %1046 : vector<1x128xf32>
    %1048 = arith.addf %959, %1017 : vector<1x128xf32>
    %1049 = arith.mulf %981, %1017 : vector<1x128xf32>
    %1050 = arith.addf %961, %1049 : vector<1x128xf32>
    %1051 = arith.mulf %983, %1017 : vector<1x128xf32>
    %1052 = arith.addf %963, %1051 : vector<1x128xf32>
    %1053 = arith.mulf %985, %1017 : vector<1x128xf32>
    %1054 = arith.addf %965, %1053 : vector<1x128xf32>
    %1055 = arith.addf %966, %1018 : vector<1x128xf32>
    %1056 = arith.mulf %981, %1018 : vector<1x128xf32>
    %1057 = arith.addf %968, %1056 : vector<1x128xf32>
    %1058 = arith.mulf %983, %1018 : vector<1x128xf32>
    %1059 = arith.addf %970, %1058 : vector<1x128xf32>
    %1060 = arith.mulf %985, %1018 : vector<1x128xf32>
    %1061 = arith.addf %972, %1060 : vector<1x128xf32>
    %1062 = arith.addf %973, %1019 : vector<1x128xf32>
    %1063 = arith.mulf %981, %1019 : vector<1x128xf32>
    %1064 = arith.addf %975, %1063 : vector<1x128xf32>
    %1065 = arith.mulf %983, %1019 : vector<1x128xf32>
    %1066 = arith.addf %977, %1065 : vector<1x128xf32>
    %1067 = arith.mulf %985, %1019 : vector<1x128xf32>
    %1068 = arith.addf %979, %1067 : vector<1x128xf32>
    %c0_240 = arith.constant 0 : index
    %c12 = arith.constant 12 : index
    %c0_241 = arith.constant 0 : index
    %c0_242 = arith.constant 0 : index
    %1069 = vector.load %arg1[%c0_240, %c12, %c0_241, %c0_242] : memref<3x16x1x128xf32, #tpu.memory_space<vmem>>, vector<1x1x1x128xf32>
    %1070 = vector.shape_cast %1069 : vector<1x1x1x128xf32> to vector<1x128xf32>
    %c1_243 = arith.constant 1 : index
    %c12_244 = arith.constant 12 : index
    %c0_245 = arith.constant 0 : index
    %c0_246 = arith.constant 0 : index
    %1071 = vector.load %arg1[%c1_243, %c12_244, %c0_245, %c0_246] : memref<3x16x1x128xf32, #tpu.memory_space<vmem>>, vector<1x1x1x128xf32>
    %1072 = vector.shape_cast %1071 : vector<1x1x1x128xf32> to vector<1x128xf32>
    %c2_247 = arith.constant 2 : index
    %c12_248 = arith.constant 12 : index
    %c0_249 = arith.constant 0 : index
    %c0_250 = arith.constant 0 : index
    %1073 = vector.load %arg1[%c2_247, %c12_248, %c0_249, %c0_250] : memref<3x16x1x128xf32, #tpu.memory_space<vmem>>, vector<1x1x1x128xf32>
    %1074 = vector.shape_cast %1073 : vector<1x1x1x128xf32> to vector<1x128xf32>
    %1075 = arith.addf %986, %1070 : vector<1x128xf32>
    %1076 = arith.addf %987, %1072 : vector<1x128xf32>
    %1077 = arith.addf %988, %1074 : vector<1x128xf32>
    %1078 = arith.mulf %1070, %1070 : vector<1x128xf32>
    %1079 = arith.addf %990, %1078 : vector<1x128xf32>
    %1080 = arith.mulf %1070, %1072 : vector<1x128xf32>
    %1081 = arith.addf %992, %1080 : vector<1x128xf32>
    %1082 = arith.mulf %1070, %1074 : vector<1x128xf32>
    %1083 = arith.addf %994, %1082 : vector<1x128xf32>
    %1084 = arith.mulf %1072, %1072 : vector<1x128xf32>
    %1085 = arith.addf %996, %1084 : vector<1x128xf32>
    %1086 = arith.mulf %1072, %1074 : vector<1x128xf32>
    %1087 = arith.addf %998, %1086 : vector<1x128xf32>
    %1088 = arith.mulf %1074, %1074 : vector<1x128xf32>
    %1089 = arith.addf %1000, %1088 : vector<1x128xf32>
    %cst_251 = arith.constant 0.000000e+00 : f32
    %1090 = vector.broadcast %cst_251 : f32 to vector<1x128xf32>
    %1091 = arith.cmpf ogt, %1070, %1090 : vector<1x128xf32>
    %cst_252 = arith.constant 1.000000e+00 : f32
    %cst_253 = arith.constant 0.000000e+00 : f32
    %1092 = vector.broadcast %cst_252 : f32 to vector<1x128xf32>
    %1093 = vector.broadcast %cst_253 : f32 to vector<1x128xf32>
    %1094 = arith.select %1091, %1092, %1093 : vector<1x128xi1>, vector<1x128xf32>
    %cst_254 = arith.constant 0.000000e+00 : f32
    %1095 = vector.broadcast %cst_254 : f32 to vector<1x128xf32>
    %1096 = arith.cmpf ogt, %1072, %1095 : vector<1x128xf32>
    %cst_255 = arith.constant 1.000000e+00 : f32
    %cst_256 = arith.constant 0.000000e+00 : f32
    %1097 = vector.broadcast %cst_255 : f32 to vector<1x128xf32>
    %1098 = vector.broadcast %cst_256 : f32 to vector<1x128xf32>
    %1099 = arith.select %1096, %1097, %1098 : vector<1x128xi1>, vector<1x128xf32>
    %cst_257 = arith.constant 0.000000e+00 : f32
    %1100 = vector.broadcast %cst_257 : f32 to vector<1x128xf32>
    %1101 = arith.cmpf ogt, %1074, %1100 : vector<1x128xf32>
    %cst_258 = arith.constant 1.000000e+00 : f32
    %cst_259 = arith.constant 0.000000e+00 : f32
    %1102 = vector.broadcast %cst_258 : f32 to vector<1x128xf32>
    %1103 = vector.broadcast %cst_259 : f32 to vector<1x128xf32>
    %1104 = arith.select %1101, %1102, %1103 : vector<1x128xi1>, vector<1x128xf32>
    %1105 = arith.mulf %1094, %1099 : vector<1x128xf32>
    %1106 = arith.mulf %1094, %1104 : vector<1x128xf32>
    %1107 = arith.mulf %1099, %1104 : vector<1x128xf32>
    %1108 = arith.mulf %1105, %1104 : vector<1x128xf32>
    %1109 = arith.addf %1020, %1094 : vector<1x128xf32>
    %1110 = arith.mulf %1070, %1094 : vector<1x128xf32>
    %1111 = arith.addf %1022, %1110 : vector<1x128xf32>
    %1112 = arith.mulf %1072, %1094 : vector<1x128xf32>
    %1113 = arith.addf %1024, %1112 : vector<1x128xf32>
    %1114 = arith.mulf %1074, %1094 : vector<1x128xf32>
    %1115 = arith.addf %1026, %1114 : vector<1x128xf32>
    %1116 = arith.addf %1027, %1099 : vector<1x128xf32>
    %1117 = arith.mulf %1070, %1099 : vector<1x128xf32>
    %1118 = arith.addf %1029, %1117 : vector<1x128xf32>
    %1119 = arith.mulf %1072, %1099 : vector<1x128xf32>
    %1120 = arith.addf %1031, %1119 : vector<1x128xf32>
    %1121 = arith.mulf %1074, %1099 : vector<1x128xf32>
    %1122 = arith.addf %1033, %1121 : vector<1x128xf32>
    %1123 = arith.addf %1034, %1104 : vector<1x128xf32>
    %1124 = arith.mulf %1070, %1104 : vector<1x128xf32>
    %1125 = arith.addf %1036, %1124 : vector<1x128xf32>
    %1126 = arith.mulf %1072, %1104 : vector<1x128xf32>
    %1127 = arith.addf %1038, %1126 : vector<1x128xf32>
    %1128 = arith.mulf %1074, %1104 : vector<1x128xf32>
    %1129 = arith.addf %1040, %1128 : vector<1x128xf32>
    %1130 = arith.addf %1041, %1105 : vector<1x128xf32>
    %1131 = arith.mulf %1070, %1105 : vector<1x128xf32>
    %1132 = arith.addf %1043, %1131 : vector<1x128xf32>
    %1133 = arith.mulf %1072, %1105 : vector<1x128xf32>
    %1134 = arith.addf %1045, %1133 : vector<1x128xf32>
    %1135 = arith.mulf %1074, %1105 : vector<1x128xf32>
    %1136 = arith.addf %1047, %1135 : vector<1x128xf32>
    %1137 = arith.addf %1048, %1106 : vector<1x128xf32>
    %1138 = arith.mulf %1070, %1106 : vector<1x128xf32>
    %1139 = arith.addf %1050, %1138 : vector<1x128xf32>
    %1140 = arith.mulf %1072, %1106 : vector<1x128xf32>
    %1141 = arith.addf %1052, %1140 : vector<1x128xf32>
    %1142 = arith.mulf %1074, %1106 : vector<1x128xf32>
    %1143 = arith.addf %1054, %1142 : vector<1x128xf32>
    %1144 = arith.addf %1055, %1107 : vector<1x128xf32>
    %1145 = arith.mulf %1070, %1107 : vector<1x128xf32>
    %1146 = arith.addf %1057, %1145 : vector<1x128xf32>
    %1147 = arith.mulf %1072, %1107 : vector<1x128xf32>
    %1148 = arith.addf %1059, %1147 : vector<1x128xf32>
    %1149 = arith.mulf %1074, %1107 : vector<1x128xf32>
    %1150 = arith.addf %1061, %1149 : vector<1x128xf32>
    %1151 = arith.addf %1062, %1108 : vector<1x128xf32>
    %1152 = arith.mulf %1070, %1108 : vector<1x128xf32>
    %1153 = arith.addf %1064, %1152 : vector<1x128xf32>
    %1154 = arith.mulf %1072, %1108 : vector<1x128xf32>
    %1155 = arith.addf %1066, %1154 : vector<1x128xf32>
    %1156 = arith.mulf %1074, %1108 : vector<1x128xf32>
    %1157 = arith.addf %1068, %1156 : vector<1x128xf32>
    %c0_260 = arith.constant 0 : index
    %c13 = arith.constant 13 : index
    %c0_261 = arith.constant 0 : index
    %c0_262 = arith.constant 0 : index
    %1158 = vector.load %arg1[%c0_260, %c13, %c0_261, %c0_262] : memref<3x16x1x128xf32, #tpu.memory_space<vmem>>, vector<1x1x1x128xf32>
    %1159 = vector.shape_cast %1158 : vector<1x1x1x128xf32> to vector<1x128xf32>
    %c1_263 = arith.constant 1 : index
    %c13_264 = arith.constant 13 : index
    %c0_265 = arith.constant 0 : index
    %c0_266 = arith.constant 0 : index
    %1160 = vector.load %arg1[%c1_263, %c13_264, %c0_265, %c0_266] : memref<3x16x1x128xf32, #tpu.memory_space<vmem>>, vector<1x1x1x128xf32>
    %1161 = vector.shape_cast %1160 : vector<1x1x1x128xf32> to vector<1x128xf32>
    %c2_267 = arith.constant 2 : index
    %c13_268 = arith.constant 13 : index
    %c0_269 = arith.constant 0 : index
    %c0_270 = arith.constant 0 : index
    %1162 = vector.load %arg1[%c2_267, %c13_268, %c0_269, %c0_270] : memref<3x16x1x128xf32, #tpu.memory_space<vmem>>, vector<1x1x1x128xf32>
    %1163 = vector.shape_cast %1162 : vector<1x1x1x128xf32> to vector<1x128xf32>
    %1164 = arith.addf %1075, %1159 : vector<1x128xf32>
    %1165 = arith.addf %1076, %1161 : vector<1x128xf32>
    %1166 = arith.addf %1077, %1163 : vector<1x128xf32>
    %1167 = arith.mulf %1159, %1159 : vector<1x128xf32>
    %1168 = arith.addf %1079, %1167 : vector<1x128xf32>
    %1169 = arith.mulf %1159, %1161 : vector<1x128xf32>
    %1170 = arith.addf %1081, %1169 : vector<1x128xf32>
    %1171 = arith.mulf %1159, %1163 : vector<1x128xf32>
    %1172 = arith.addf %1083, %1171 : vector<1x128xf32>
    %1173 = arith.mulf %1161, %1161 : vector<1x128xf32>
    %1174 = arith.addf %1085, %1173 : vector<1x128xf32>
    %1175 = arith.mulf %1161, %1163 : vector<1x128xf32>
    %1176 = arith.addf %1087, %1175 : vector<1x128xf32>
    %1177 = arith.mulf %1163, %1163 : vector<1x128xf32>
    %1178 = arith.addf %1089, %1177 : vector<1x128xf32>
    %cst_271 = arith.constant 0.000000e+00 : f32
    %1179 = vector.broadcast %cst_271 : f32 to vector<1x128xf32>
    %1180 = arith.cmpf ogt, %1159, %1179 : vector<1x128xf32>
    %cst_272 = arith.constant 1.000000e+00 : f32
    %cst_273 = arith.constant 0.000000e+00 : f32
    %1181 = vector.broadcast %cst_272 : f32 to vector<1x128xf32>
    %1182 = vector.broadcast %cst_273 : f32 to vector<1x128xf32>
    %1183 = arith.select %1180, %1181, %1182 : vector<1x128xi1>, vector<1x128xf32>
    %cst_274 = arith.constant 0.000000e+00 : f32
    %1184 = vector.broadcast %cst_274 : f32 to vector<1x128xf32>
    %1185 = arith.cmpf ogt, %1161, %1184 : vector<1x128xf32>
    %cst_275 = arith.constant 1.000000e+00 : f32
    %cst_276 = arith.constant 0.000000e+00 : f32
    %1186 = vector.broadcast %cst_275 : f32 to vector<1x128xf32>
    %1187 = vector.broadcast %cst_276 : f32 to vector<1x128xf32>
    %1188 = arith.select %1185, %1186, %1187 : vector<1x128xi1>, vector<1x128xf32>
    %cst_277 = arith.constant 0.000000e+00 : f32
    %1189 = vector.broadcast %cst_277 : f32 to vector<1x128xf32>
    %1190 = arith.cmpf ogt, %1163, %1189 : vector<1x128xf32>
    %cst_278 = arith.constant 1.000000e+00 : f32
    %cst_279 = arith.constant 0.000000e+00 : f32
    %1191 = vector.broadcast %cst_278 : f32 to vector<1x128xf32>
    %1192 = vector.broadcast %cst_279 : f32 to vector<1x128xf32>
    %1193 = arith.select %1190, %1191, %1192 : vector<1x128xi1>, vector<1x128xf32>
    %1194 = arith.mulf %1183, %1188 : vector<1x128xf32>
    %1195 = arith.mulf %1183, %1193 : vector<1x128xf32>
    %1196 = arith.mulf %1188, %1193 : vector<1x128xf32>
    %1197 = arith.mulf %1194, %1193 : vector<1x128xf32>
    %1198 = arith.addf %1109, %1183 : vector<1x128xf32>
    %1199 = arith.mulf %1159, %1183 : vector<1x128xf32>
    %1200 = arith.addf %1111, %1199 : vector<1x128xf32>
    %1201 = arith.mulf %1161, %1183 : vector<1x128xf32>
    %1202 = arith.addf %1113, %1201 : vector<1x128xf32>
    %1203 = arith.mulf %1163, %1183 : vector<1x128xf32>
    %1204 = arith.addf %1115, %1203 : vector<1x128xf32>
    %1205 = arith.addf %1116, %1188 : vector<1x128xf32>
    %1206 = arith.mulf %1159, %1188 : vector<1x128xf32>
    %1207 = arith.addf %1118, %1206 : vector<1x128xf32>
    %1208 = arith.mulf %1161, %1188 : vector<1x128xf32>
    %1209 = arith.addf %1120, %1208 : vector<1x128xf32>
    %1210 = arith.mulf %1163, %1188 : vector<1x128xf32>
    %1211 = arith.addf %1122, %1210 : vector<1x128xf32>
    %1212 = arith.addf %1123, %1193 : vector<1x128xf32>
    %1213 = arith.mulf %1159, %1193 : vector<1x128xf32>
    %1214 = arith.addf %1125, %1213 : vector<1x128xf32>
    %1215 = arith.mulf %1161, %1193 : vector<1x128xf32>
    %1216 = arith.addf %1127, %1215 : vector<1x128xf32>
    %1217 = arith.mulf %1163, %1193 : vector<1x128xf32>
    %1218 = arith.addf %1129, %1217 : vector<1x128xf32>
    %1219 = arith.addf %1130, %1194 : vector<1x128xf32>
    %1220 = arith.mulf %1159, %1194 : vector<1x128xf32>
    %1221 = arith.addf %1132, %1220 : vector<1x128xf32>
    %1222 = arith.mulf %1161, %1194 : vector<1x128xf32>
    %1223 = arith.addf %1134, %1222 : vector<1x128xf32>
    %1224 = arith.mulf %1163, %1194 : vector<1x128xf32>
    %1225 = arith.addf %1136, %1224 : vector<1x128xf32>
    %1226 = arith.addf %1137, %1195 : vector<1x128xf32>
    %1227 = arith.mulf %1159, %1195 : vector<1x128xf32>
    %1228 = arith.addf %1139, %1227 : vector<1x128xf32>
    %1229 = arith.mulf %1161, %1195 : vector<1x128xf32>
    %1230 = arith.addf %1141, %1229 : vector<1x128xf32>
    %1231 = arith.mulf %1163, %1195 : vector<1x128xf32>
    %1232 = arith.addf %1143, %1231 : vector<1x128xf32>
    %1233 = arith.addf %1144, %1196 : vector<1x128xf32>
    %1234 = arith.mulf %1159, %1196 : vector<1x128xf32>
    %1235 = arith.addf %1146, %1234 : vector<1x128xf32>
    %1236 = arith.mulf %1161, %1196 : vector<1x128xf32>
    %1237 = arith.addf %1148, %1236 : vector<1x128xf32>
    %1238 = arith.mulf %1163, %1196 : vector<1x128xf32>
    %1239 = arith.addf %1150, %1238 : vector<1x128xf32>
    %1240 = arith.addf %1151, %1197 : vector<1x128xf32>
    %1241 = arith.mulf %1159, %1197 : vector<1x128xf32>
    %1242 = arith.addf %1153, %1241 : vector<1x128xf32>
    %1243 = arith.mulf %1161, %1197 : vector<1x128xf32>
    %1244 = arith.addf %1155, %1243 : vector<1x128xf32>
    %1245 = arith.mulf %1163, %1197 : vector<1x128xf32>
    %1246 = arith.addf %1157, %1245 : vector<1x128xf32>
    %c0_280 = arith.constant 0 : index
    %c14 = arith.constant 14 : index
    %c0_281 = arith.constant 0 : index
    %c0_282 = arith.constant 0 : index
    %1247 = vector.load %arg1[%c0_280, %c14, %c0_281, %c0_282] : memref<3x16x1x128xf32, #tpu.memory_space<vmem>>, vector<1x1x1x128xf32>
    %1248 = vector.shape_cast %1247 : vector<1x1x1x128xf32> to vector<1x128xf32>
    %c1_283 = arith.constant 1 : index
    %c14_284 = arith.constant 14 : index
    %c0_285 = arith.constant 0 : index
    %c0_286 = arith.constant 0 : index
    %1249 = vector.load %arg1[%c1_283, %c14_284, %c0_285, %c0_286] : memref<3x16x1x128xf32, #tpu.memory_space<vmem>>, vector<1x1x1x128xf32>
    %1250 = vector.shape_cast %1249 : vector<1x1x1x128xf32> to vector<1x128xf32>
    %c2_287 = arith.constant 2 : index
    %c14_288 = arith.constant 14 : index
    %c0_289 = arith.constant 0 : index
    %c0_290 = arith.constant 0 : index
    %1251 = vector.load %arg1[%c2_287, %c14_288, %c0_289, %c0_290] : memref<3x16x1x128xf32, #tpu.memory_space<vmem>>, vector<1x1x1x128xf32>
    %1252 = vector.shape_cast %1251 : vector<1x1x1x128xf32> to vector<1x128xf32>
    %1253 = arith.addf %1164, %1248 : vector<1x128xf32>
    %1254 = arith.addf %1165, %1250 : vector<1x128xf32>
    %1255 = arith.addf %1166, %1252 : vector<1x128xf32>
    %1256 = arith.mulf %1248, %1248 : vector<1x128xf32>
    %1257 = arith.addf %1168, %1256 : vector<1x128xf32>
    %1258 = arith.mulf %1248, %1250 : vector<1x128xf32>
    %1259 = arith.addf %1170, %1258 : vector<1x128xf32>
    %1260 = arith.mulf %1248, %1252 : vector<1x128xf32>
    %1261 = arith.addf %1172, %1260 : vector<1x128xf32>
    %1262 = arith.mulf %1250, %1250 : vector<1x128xf32>
    %1263 = arith.addf %1174, %1262 : vector<1x128xf32>
    %1264 = arith.mulf %1250, %1252 : vector<1x128xf32>
    %1265 = arith.addf %1176, %1264 : vector<1x128xf32>
    %1266 = arith.mulf %1252, %1252 : vector<1x128xf32>
    %1267 = arith.addf %1178, %1266 : vector<1x128xf32>
    %cst_291 = arith.constant 0.000000e+00 : f32
    %1268 = vector.broadcast %cst_291 : f32 to vector<1x128xf32>
    %1269 = arith.cmpf ogt, %1248, %1268 : vector<1x128xf32>
    %cst_292 = arith.constant 1.000000e+00 : f32
    %cst_293 = arith.constant 0.000000e+00 : f32
    %1270 = vector.broadcast %cst_292 : f32 to vector<1x128xf32>
    %1271 = vector.broadcast %cst_293 : f32 to vector<1x128xf32>
    %1272 = arith.select %1269, %1270, %1271 : vector<1x128xi1>, vector<1x128xf32>
    %cst_294 = arith.constant 0.000000e+00 : f32
    %1273 = vector.broadcast %cst_294 : f32 to vector<1x128xf32>
    %1274 = arith.cmpf ogt, %1250, %1273 : vector<1x128xf32>
    %cst_295 = arith.constant 1.000000e+00 : f32
    %cst_296 = arith.constant 0.000000e+00 : f32
    %1275 = vector.broadcast %cst_295 : f32 to vector<1x128xf32>
    %1276 = vector.broadcast %cst_296 : f32 to vector<1x128xf32>
    %1277 = arith.select %1274, %1275, %1276 : vector<1x128xi1>, vector<1x128xf32>
    %cst_297 = arith.constant 0.000000e+00 : f32
    %1278 = vector.broadcast %cst_297 : f32 to vector<1x128xf32>
    %1279 = arith.cmpf ogt, %1252, %1278 : vector<1x128xf32>
    %cst_298 = arith.constant 1.000000e+00 : f32
    %cst_299 = arith.constant 0.000000e+00 : f32
    %1280 = vector.broadcast %cst_298 : f32 to vector<1x128xf32>
    %1281 = vector.broadcast %cst_299 : f32 to vector<1x128xf32>
    %1282 = arith.select %1279, %1280, %1281 : vector<1x128xi1>, vector<1x128xf32>
    %1283 = arith.mulf %1272, %1277 : vector<1x128xf32>
    %1284 = arith.mulf %1272, %1282 : vector<1x128xf32>
    %1285 = arith.mulf %1277, %1282 : vector<1x128xf32>
    %1286 = arith.mulf %1283, %1282 : vector<1x128xf32>
    %1287 = arith.addf %1198, %1272 : vector<1x128xf32>
    %1288 = arith.mulf %1248, %1272 : vector<1x128xf32>
    %1289 = arith.addf %1200, %1288 : vector<1x128xf32>
    %1290 = arith.mulf %1250, %1272 : vector<1x128xf32>
    %1291 = arith.addf %1202, %1290 : vector<1x128xf32>
    %1292 = arith.mulf %1252, %1272 : vector<1x128xf32>
    %1293 = arith.addf %1204, %1292 : vector<1x128xf32>
    %1294 = arith.addf %1205, %1277 : vector<1x128xf32>
    %1295 = arith.mulf %1248, %1277 : vector<1x128xf32>
    %1296 = arith.addf %1207, %1295 : vector<1x128xf32>
    %1297 = arith.mulf %1250, %1277 : vector<1x128xf32>
    %1298 = arith.addf %1209, %1297 : vector<1x128xf32>
    %1299 = arith.mulf %1252, %1277 : vector<1x128xf32>
    %1300 = arith.addf %1211, %1299 : vector<1x128xf32>
    %1301 = arith.addf %1212, %1282 : vector<1x128xf32>
    %1302 = arith.mulf %1248, %1282 : vector<1x128xf32>
    %1303 = arith.addf %1214, %1302 : vector<1x128xf32>
    %1304 = arith.mulf %1250, %1282 : vector<1x128xf32>
    %1305 = arith.addf %1216, %1304 : vector<1x128xf32>
    %1306 = arith.mulf %1252, %1282 : vector<1x128xf32>
    %1307 = arith.addf %1218, %1306 : vector<1x128xf32>
    %1308 = arith.addf %1219, %1283 : vector<1x128xf32>
    %1309 = arith.mulf %1248, %1283 : vector<1x128xf32>
    %1310 = arith.addf %1221, %1309 : vector<1x128xf32>
    %1311 = arith.mulf %1250, %1283 : vector<1x128xf32>
    %1312 = arith.addf %1223, %1311 : vector<1x128xf32>
    %1313 = arith.mulf %1252, %1283 : vector<1x128xf32>
    %1314 = arith.addf %1225, %1313 : vector<1x128xf32>
    %1315 = arith.addf %1226, %1284 : vector<1x128xf32>
    %1316 = arith.mulf %1248, %1284 : vector<1x128xf32>
    %1317 = arith.addf %1228, %1316 : vector<1x128xf32>
    %1318 = arith.mulf %1250, %1284 : vector<1x128xf32>
    %1319 = arith.addf %1230, %1318 : vector<1x128xf32>
    %1320 = arith.mulf %1252, %1284 : vector<1x128xf32>
    %1321 = arith.addf %1232, %1320 : vector<1x128xf32>
    %1322 = arith.addf %1233, %1285 : vector<1x128xf32>
    %1323 = arith.mulf %1248, %1285 : vector<1x128xf32>
    %1324 = arith.addf %1235, %1323 : vector<1x128xf32>
    %1325 = arith.mulf %1250, %1285 : vector<1x128xf32>
    %1326 = arith.addf %1237, %1325 : vector<1x128xf32>
    %1327 = arith.mulf %1252, %1285 : vector<1x128xf32>
    %1328 = arith.addf %1239, %1327 : vector<1x128xf32>
    %1329 = arith.addf %1240, %1286 : vector<1x128xf32>
    %1330 = arith.mulf %1248, %1286 : vector<1x128xf32>
    %1331 = arith.addf %1242, %1330 : vector<1x128xf32>
    %1332 = arith.mulf %1250, %1286 : vector<1x128xf32>
    %1333 = arith.addf %1244, %1332 : vector<1x128xf32>
    %1334 = arith.mulf %1252, %1286 : vector<1x128xf32>
    %1335 = arith.addf %1246, %1334 : vector<1x128xf32>
    %c0_300 = arith.constant 0 : index
    %c15 = arith.constant 15 : index
    %c0_301 = arith.constant 0 : index
    %c0_302 = arith.constant 0 : index
    %1336 = vector.load %arg1[%c0_300, %c15, %c0_301, %c0_302] : memref<3x16x1x128xf32, #tpu.memory_space<vmem>>, vector<1x1x1x128xf32>
    %1337 = vector.shape_cast %1336 : vector<1x1x1x128xf32> to vector<1x128xf32>
    %c1_303 = arith.constant 1 : index
    %c15_304 = arith.constant 15 : index
    %c0_305 = arith.constant 0 : index
    %c0_306 = arith.constant 0 : index
    %1338 = vector.load %arg1[%c1_303, %c15_304, %c0_305, %c0_306] : memref<3x16x1x128xf32, #tpu.memory_space<vmem>>, vector<1x1x1x128xf32>
    %1339 = vector.shape_cast %1338 : vector<1x1x1x128xf32> to vector<1x128xf32>
    %c2_307 = arith.constant 2 : index
    %c15_308 = arith.constant 15 : index
    %c0_309 = arith.constant 0 : index
    %c0_310 = arith.constant 0 : index
    %1340 = vector.load %arg1[%c2_307, %c15_308, %c0_309, %c0_310] : memref<3x16x1x128xf32, #tpu.memory_space<vmem>>, vector<1x1x1x128xf32>
    %1341 = vector.shape_cast %1340 : vector<1x1x1x128xf32> to vector<1x128xf32>
    %1342 = arith.addf %1253, %1337 : vector<1x128xf32>
    %1343 = arith.addf %1254, %1339 : vector<1x128xf32>
    %1344 = arith.addf %1255, %1341 : vector<1x128xf32>
    %1345 = arith.mulf %1337, %1337 : vector<1x128xf32>
    %1346 = arith.addf %1257, %1345 : vector<1x128xf32>
    %1347 = arith.mulf %1337, %1339 : vector<1x128xf32>
    %1348 = arith.addf %1259, %1347 : vector<1x128xf32>
    %1349 = arith.mulf %1337, %1341 : vector<1x128xf32>
    %1350 = arith.addf %1261, %1349 : vector<1x128xf32>
    %1351 = arith.mulf %1339, %1339 : vector<1x128xf32>
    %1352 = arith.addf %1263, %1351 : vector<1x128xf32>
    %1353 = arith.mulf %1339, %1341 : vector<1x128xf32>
    %1354 = arith.addf %1265, %1353 : vector<1x128xf32>
    %1355 = arith.mulf %1341, %1341 : vector<1x128xf32>
    %1356 = arith.addf %1267, %1355 : vector<1x128xf32>
    %cst_311 = arith.constant 0.000000e+00 : f32
    %1357 = vector.broadcast %cst_311 : f32 to vector<1x128xf32>
    %1358 = arith.cmpf ogt, %1337, %1357 : vector<1x128xf32>
    %cst_312 = arith.constant 1.000000e+00 : f32
    %cst_313 = arith.constant 0.000000e+00 : f32
    %1359 = vector.broadcast %cst_312 : f32 to vector<1x128xf32>
    %1360 = vector.broadcast %cst_313 : f32 to vector<1x128xf32>
    %1361 = arith.select %1358, %1359, %1360 : vector<1x128xi1>, vector<1x128xf32>
    %cst_314 = arith.constant 0.000000e+00 : f32
    %1362 = vector.broadcast %cst_314 : f32 to vector<1x128xf32>
    %1363 = arith.cmpf ogt, %1339, %1362 : vector<1x128xf32>
    %cst_315 = arith.constant 1.000000e+00 : f32
    %cst_316 = arith.constant 0.000000e+00 : f32
    %1364 = vector.broadcast %cst_315 : f32 to vector<1x128xf32>
    %1365 = vector.broadcast %cst_316 : f32 to vector<1x128xf32>
    %1366 = arith.select %1363, %1364, %1365 : vector<1x128xi1>, vector<1x128xf32>
    %cst_317 = arith.constant 0.000000e+00 : f32
    %1367 = vector.broadcast %cst_317 : f32 to vector<1x128xf32>
    %1368 = arith.cmpf ogt, %1341, %1367 : vector<1x128xf32>
    %cst_318 = arith.constant 1.000000e+00 : f32
    %cst_319 = arith.constant 0.000000e+00 : f32
    %1369 = vector.broadcast %cst_318 : f32 to vector<1x128xf32>
    %1370 = vector.broadcast %cst_319 : f32 to vector<1x128xf32>
    %1371 = arith.select %1368, %1369, %1370 : vector<1x128xi1>, vector<1x128xf32>
    %1372 = arith.mulf %1361, %1366 : vector<1x128xf32>
    %1373 = arith.mulf %1361, %1371 : vector<1x128xf32>
    %1374 = arith.mulf %1366, %1371 : vector<1x128xf32>
    %1375 = arith.mulf %1372, %1371 : vector<1x128xf32>
    %1376 = arith.addf %1287, %1361 : vector<1x128xf32>
    %1377 = arith.mulf %1337, %1361 : vector<1x128xf32>
    %1378 = arith.addf %1289, %1377 : vector<1x128xf32>
    %1379 = arith.mulf %1339, %1361 : vector<1x128xf32>
    %1380 = arith.addf %1291, %1379 : vector<1x128xf32>
    %1381 = arith.mulf %1341, %1361 : vector<1x128xf32>
    %1382 = arith.addf %1293, %1381 : vector<1x128xf32>
    %1383 = arith.addf %1294, %1366 : vector<1x128xf32>
    %1384 = arith.mulf %1337, %1366 : vector<1x128xf32>
    %1385 = arith.addf %1296, %1384 : vector<1x128xf32>
    %1386 = arith.mulf %1339, %1366 : vector<1x128xf32>
    %1387 = arith.addf %1298, %1386 : vector<1x128xf32>
    %1388 = arith.mulf %1341, %1366 : vector<1x128xf32>
    %1389 = arith.addf %1300, %1388 : vector<1x128xf32>
    %1390 = arith.addf %1301, %1371 : vector<1x128xf32>
    %1391 = arith.mulf %1337, %1371 : vector<1x128xf32>
    %1392 = arith.addf %1303, %1391 : vector<1x128xf32>
    %1393 = arith.mulf %1339, %1371 : vector<1x128xf32>
    %1394 = arith.addf %1305, %1393 : vector<1x128xf32>
    %1395 = arith.mulf %1341, %1371 : vector<1x128xf32>
    %1396 = arith.addf %1307, %1395 : vector<1x128xf32>
    %1397 = arith.addf %1308, %1372 : vector<1x128xf32>
    %1398 = arith.mulf %1337, %1372 : vector<1x128xf32>
    %1399 = arith.addf %1310, %1398 : vector<1x128xf32>
    %1400 = arith.mulf %1339, %1372 : vector<1x128xf32>
    %1401 = arith.addf %1312, %1400 : vector<1x128xf32>
    %1402 = arith.mulf %1341, %1372 : vector<1x128xf32>
    %1403 = arith.addf %1314, %1402 : vector<1x128xf32>
    %1404 = arith.addf %1315, %1373 : vector<1x128xf32>
    %1405 = arith.mulf %1337, %1373 : vector<1x128xf32>
    %1406 = arith.addf %1317, %1405 : vector<1x128xf32>
    %1407 = arith.mulf %1339, %1373 : vector<1x128xf32>
    %1408 = arith.addf %1319, %1407 : vector<1x128xf32>
    %1409 = arith.mulf %1341, %1373 : vector<1x128xf32>
    %1410 = arith.addf %1321, %1409 : vector<1x128xf32>
    %1411 = arith.addf %1322, %1374 : vector<1x128xf32>
    %1412 = arith.mulf %1337, %1374 : vector<1x128xf32>
    %1413 = arith.addf %1324, %1412 : vector<1x128xf32>
    %1414 = arith.mulf %1339, %1374 : vector<1x128xf32>
    %1415 = arith.addf %1326, %1414 : vector<1x128xf32>
    %1416 = arith.mulf %1341, %1374 : vector<1x128xf32>
    %1417 = arith.addf %1328, %1416 : vector<1x128xf32>
    %1418 = arith.addf %1329, %1375 : vector<1x128xf32>
    %1419 = arith.mulf %1337, %1375 : vector<1x128xf32>
    %1420 = arith.addf %1331, %1419 : vector<1x128xf32>
    %1421 = arith.mulf %1339, %1375 : vector<1x128xf32>
    %1422 = arith.addf %1333, %1421 : vector<1x128xf32>
    %1423 = arith.mulf %1341, %1375 : vector<1x128xf32>
    %1424 = arith.addf %1335, %1423 : vector<1x128xf32>
    %1425 = arith.mulf %1342, %1342 : vector<1x128xf32>
    %cst_320 = arith.constant 6.250000e-02 : f32
    %1426 = vector.broadcast %cst_320 : f32 to vector<1x128xf32>
    %1427 = arith.mulf %1425, %1426 : vector<1x128xf32>
    %1428 = arith.subf %1346, %1427 : vector<1x128xf32>
    %cst_321 = arith.constant 0.0666666701 : f32
    %1429 = vector.broadcast %cst_321 : f32 to vector<1x128xf32>
    %1430 = arith.mulf %1428, %1429 : vector<1x128xf32>
    %cst_322 = arith.constant 0.000000e+00 : f32
    %1431 = vector.broadcast %cst_322 : f32 to vector<1x128xf32>
    %1432 = arith.maximumf %1430, %1431 : vector<1x128xf32>
    %1433 = math.sqrt %1432 : vector<1x128xf32>
    %c0_323 = arith.constant 0 : index
    %c0_324 = arith.constant 0 : index
    %c0_325 = arith.constant 0 : index
    %1434 = vector.load %arg3[%c0_323, %c0_324, %c0_325] : memref<39x1x128xf32, #tpu.memory_space<vmem>>, vector<1x1x128xf32>
    %1435 = vector.shape_cast %1434 : vector<1x1x128xf32> to vector<1x128xf32>
    %1436 = vector.shape_cast %1433 : vector<1x128xf32> to vector<1x1x128xf32>
    tpu.vector_store %arg3[%c0_323, %c0_324, %c0_325], %1436 {strides = array<i32>} : memref<39x1x128xf32, #tpu.memory_space<vmem>>, vector<1x1x128xf32>,
    %1437 = arith.mulf %1343, %1343 : vector<1x128xf32>
    %cst_326 = arith.constant 6.250000e-02 : f32
    %1438 = vector.broadcast %cst_326 : f32 to vector<1x128xf32>
    %1439 = arith.mulf %1437, %1438 : vector<1x128xf32>
    %1440 = arith.subf %1352, %1439 : vector<1x128xf32>
    %cst_327 = arith.constant 0.0666666701 : f32
    %1441 = vector.broadcast %cst_327 : f32 to vector<1x128xf32>
    %1442 = arith.mulf %1440, %1441 : vector<1x128xf32>
    %cst_328 = arith.constant 0.000000e+00 : f32
    %1443 = vector.broadcast %cst_328 : f32 to vector<1x128xf32>
    %1444 = arith.maximumf %1442, %1443 : vector<1x128xf32>
    %1445 = math.sqrt %1444 : vector<1x128xf32>
    %c1_329 = arith.constant 1 : index
    %c0_330 = arith.constant 0 : index
    %c0_331 = arith.constant 0 : index
    %1446 = vector.load %arg3[%c1_329, %c0_330, %c0_331] : memref<39x1x128xf32, #tpu.memory_space<vmem>>, vector<1x1x128xf32>
    %1447 = vector.shape_cast %1446 : vector<1x1x128xf32> to vector<1x128xf32>
    %1448 = vector.shape_cast %1445 : vector<1x128xf32> to vector<1x1x128xf32>
    tpu.vector_store %arg3[%c1_329, %c0_330, %c0_331], %1448 {strides = array<i32>} : memref<39x1x128xf32, #tpu.memory_space<vmem>>, vector<1x1x128xf32>,
    %1449 = arith.mulf %1344, %1344 : vector<1x128xf32>
    %cst_332 = arith.constant 6.250000e-02 : f32
    %1450 = vector.broadcast %cst_332 : f32 to vector<1x128xf32>
    %1451 = arith.mulf %1449, %1450 : vector<1x128xf32>
    %1452 = arith.subf %1356, %1451 : vector<1x128xf32>
    %cst_333 = arith.constant 0.0666666701 : f32
    %1453 = vector.broadcast %cst_333 : f32 to vector<1x128xf32>
    %1454 = arith.mulf %1452, %1453 : vector<1x128xf32>
    %cst_334 = arith.constant 0.000000e+00 : f32
    %1455 = vector.broadcast %cst_334 : f32 to vector<1x128xf32>
    %1456 = arith.maximumf %1454, %1455 : vector<1x128xf32>
    %1457 = math.sqrt %1456 : vector<1x128xf32>
    %c2_335 = arith.constant 2 : index
    %c0_336 = arith.constant 0 : index
    %c0_337 = arith.constant 0 : index
    %1458 = vector.load %arg3[%c2_335, %c0_336, %c0_337] : memref<39x1x128xf32, #tpu.memory_space<vmem>>, vector<1x1x128xf32>
    %1459 = vector.shape_cast %1458 : vector<1x1x128xf32> to vector<1x128xf32>
    %1460 = vector.shape_cast %1457 : vector<1x128xf32> to vector<1x1x128xf32>
    tpu.vector_store %arg3[%c2_335, %c0_336, %c0_337], %1460 {strides = array<i32>} : memref<39x1x128xf32, #tpu.memory_space<vmem>>, vector<1x1x128xf32>,
    %c0_338 = arith.constant 0 : index
    %c0_339 = arith.constant 0 : index
    %c0_340 = arith.constant 0 : index
    %1461 = vector.load %arg2[%c0_338, %c0_339, %c0_340] : memref<3x1x128xf32, #tpu.memory_space<vmem>>, vector<1x1x128xf32>
    %1462 = vector.shape_cast %1461 : vector<1x1x128xf32> to vector<1x128xf32>
    %c3_341 = arith.constant 3 : index
    %c0_342 = arith.constant 0 : index
    %c0_343 = arith.constant 0 : index
    %1463 = vector.load %arg3[%c3_341, %c0_342, %c0_343] : memref<39x1x128xf32, #tpu.memory_space<vmem>>, vector<1x1x128xf32>
    %1464 = vector.shape_cast %1463 : vector<1x1x128xf32> to vector<1x128xf32>
    %1465 = vector.shape_cast %1462 : vector<1x128xf32> to vector<1x1x128xf32>
    tpu.vector_store %arg3[%c3_341, %c0_342, %c0_343], %1465 {strides = array<i32>} : memref<39x1x128xf32, #tpu.memory_space<vmem>>, vector<1x1x128xf32>,
    %c1_344 = arith.constant 1 : index
    %c0_345 = arith.constant 0 : index
    %c0_346 = arith.constant 0 : index
    %1466 = vector.load %arg2[%c1_344, %c0_345, %c0_346] : memref<3x1x128xf32, #tpu.memory_space<vmem>>, vector<1x1x128xf32>
    %1467 = vector.shape_cast %1466 : vector<1x1x128xf32> to vector<1x128xf32>
    %c4_347 = arith.constant 4 : index
    %c0_348 = arith.constant 0 : index
    %c0_349 = arith.constant 0 : index
    %1468 = vector.load %arg3[%c4_347, %c0_348, %c0_349] : memref<39x1x128xf32, #tpu.memory_space<vmem>>, vector<1x1x128xf32>
    %1469 = vector.shape_cast %1468 : vector<1x1x128xf32> to vector<1x128xf32>
    %1470 = vector.shape_cast %1467 : vector<1x128xf32> to vector<1x1x128xf32>
    tpu.vector_store %arg3[%c4_347, %c0_348, %c0_349], %1470 {strides = array<i32>} : memref<39x1x128xf32, #tpu.memory_space<vmem>>, vector<1x1x128xf32>,
    %c2_350 = arith.constant 2 : index
    %c0_351 = arith.constant 0 : index
    %c0_352 = arith.constant 0 : index
    %1471 = vector.load %arg2[%c2_350, %c0_351, %c0_352] : memref<3x1x128xf32, #tpu.memory_space<vmem>>, vector<1x1x128xf32>
    %1472 = vector.shape_cast %1471 : vector<1x1x128xf32> to vector<1x128xf32>
    %c5_353 = arith.constant 5 : index
    %c0_354 = arith.constant 0 : index
    %c0_355 = arith.constant 0 : index
    %1473 = vector.load %arg3[%c5_353, %c0_354, %c0_355] : memref<39x1x128xf32, #tpu.memory_space<vmem>>, vector<1x1x128xf32>
    %1474 = vector.shape_cast %1473 : vector<1x1x128xf32> to vector<1x128xf32>
    %1475 = vector.shape_cast %1472 : vector<1x128xf32> to vector<1x1x128xf32>
    tpu.vector_store %arg3[%c5_353, %c0_354, %c0_355], %1475 {strides = array<i32>} : memref<39x1x128xf32, #tpu.memory_space<vmem>>, vector<1x1x128xf32>,
    %cst_356 = arith.constant 1.600000e+01 : f32
    %1476 = vector.broadcast %cst_356 : f32 to vector<1x128xf32>
    %1477 = arith.subf %1397, %1418 : vector<1x128xf32>
    %1478 = arith.subf %1404, %1418 : vector<1x128xf32>
    %1479 = arith.subf %1411, %1418 : vector<1x128xf32>
    %1480 = arith.subf %1376, %1397 : vector<1x128xf32>
    %1481 = arith.subf %1480, %1404 : vector<1x128xf32>
    %1482 = arith.addf %1481, %1418 : vector<1x128xf32>
    %1483 = arith.subf %1383, %1397 : vector<1x128xf32>
    %1484 = arith.subf %1483, %1411 : vector<1x128xf32>
    %1485 = arith.addf %1484, %1418 : vector<1x128xf32>
    %1486 = arith.subf %1390, %1404 : vector<1x128xf32>
    %1487 = arith.subf %1486, %1411 : vector<1x128xf32>
    %1488 = arith.addf %1487, %1418 : vector<1x128xf32>
    %1489 = arith.subf %1476, %1376 : vector<1x128xf32>
    %1490 = arith.subf %1489, %1383 : vector<1x128xf32>
    %1491 = arith.subf %1490, %1390 : vector<1x128xf32>
    %1492 = arith.addf %1491, %1397 : vector<1x128xf32>
    %1493 = arith.addf %1492, %1404 : vector<1x128xf32>
    %1494 = arith.addf %1493, %1411 : vector<1x128xf32>
    %1495 = arith.subf %1494, %1418 : vector<1x128xf32>
    %1496 = arith.subf %1399, %1420 : vector<1x128xf32>
    %1497 = arith.subf %1406, %1420 : vector<1x128xf32>
    %1498 = arith.subf %1413, %1420 : vector<1x128xf32>
    %1499 = arith.subf %1378, %1399 : vector<1x128xf32>
    %1500 = arith.subf %1499, %1406 : vector<1x128xf32>
    %1501 = arith.addf %1500, %1420 : vector<1x128xf32>
    %1502 = arith.subf %1385, %1399 : vector<1x128xf32>
    %1503 = arith.subf %1502, %1413 : vector<1x128xf32>
    %1504 = arith.addf %1503, %1420 : vector<1x128xf32>
    %1505 = arith.subf %1392, %1406 : vector<1x128xf32>
    %1506 = arith.subf %1505, %1413 : vector<1x128xf32>
    %1507 = arith.addf %1506, %1420 : vector<1x128xf32>
    %1508 = arith.subf %1342, %1378 : vector<1x128xf32>
    %1509 = arith.subf %1508, %1385 : vector<1x128xf32>
    %1510 = arith.subf %1509, %1392 : vector<1x128xf32>
    %1511 = arith.addf %1510, %1399 : vector<1x128xf32>
    %1512 = arith.addf %1511, %1406 : vector<1x128xf32>
    %1513 = arith.addf %1512, %1413 : vector<1x128xf32>
    %1514 = arith.subf %1513, %1420 : vector<1x128xf32>
    %1515 = arith.subf %1401, %1422 : vector<1x128xf32>
    %1516 = arith.subf %1408, %1422 : vector<1x128xf32>
    %1517 = arith.subf %1415, %1422 : vector<1x128xf32>
    %1518 = arith.subf %1380, %1401 : vector<1x128xf32>
    %1519 = arith.subf %1518, %1408 : vector<1x128xf32>
    %1520 = arith.addf %1519, %1422 : vector<1x128xf32>
    %1521 = arith.subf %1387, %1401 : vector<1x128xf32>
    %1522 = arith.subf %1521, %1415 : vector<1x128xf32>
    %1523 = arith.addf %1522, %1422 : vector<1x128xf32>
    %1524 = arith.subf %1394, %1408 : vector<1x128xf32>
    %1525 = arith.subf %1524, %1415 : vector<1x128xf32>
    %1526 = arith.addf %1525, %1422 : vector<1x128xf32>
    %1527 = arith.subf %1343, %1380 : vector<1x128xf32>
    %1528 = arith.subf %1527, %1387 : vector<1x128xf32>
    %1529 = arith.subf %1528, %1394 : vector<1x128xf32>
    %1530 = arith.addf %1529, %1401 : vector<1x128xf32>
    %1531 = arith.addf %1530, %1408 : vector<1x128xf32>
    %1532 = arith.addf %1531, %1415 : vector<1x128xf32>
    %1533 = arith.subf %1532, %1422 : vector<1x128xf32>
    %1534 = arith.subf %1403, %1424 : vector<1x128xf32>
    %1535 = arith.subf %1410, %1424 : vector<1x128xf32>
    %1536 = arith.subf %1417, %1424 : vector<1x128xf32>
    %1537 = arith.subf %1382, %1403 : vector<1x128xf32>
    %1538 = arith.subf %1537, %1410 : vector<1x128xf32>
    %1539 = arith.addf %1538, %1424 : vector<1x128xf32>
    %1540 = arith.subf %1389, %1403 : vector<1x128xf32>
    %1541 = arith.subf %1540, %1417 : vector<1x128xf32>
    %1542 = arith.addf %1541, %1424 : vector<1x128xf32>
    %1543 = arith.subf %1396, %1410 : vector<1x128xf32>
    %1544 = arith.subf %1543, %1417 : vector<1x128xf32>
    %1545 = arith.addf %1544, %1424 : vector<1x128xf32>
    %1546 = arith.subf %1344, %1382 : vector<1x128xf32>
    %1547 = arith.subf %1546, %1389 : vector<1x128xf32>
    %1548 = arith.subf %1547, %1396 : vector<1x128xf32>
    %1549 = arith.addf %1548, %1403 : vector<1x128xf32>
    %1550 = arith.addf %1549, %1410 : vector<1x128xf32>
    %1551 = arith.addf %1550, %1417 : vector<1x128xf32>
    %1552 = arith.subf %1551, %1424 : vector<1x128xf32>
    %cst_357 = arith.constant 1.000000e+00 : f32
    %1553 = vector.broadcast %cst_357 : f32 to vector<1x128xf32>
    %1554 = arith.maximumf %1495, %1553 : vector<1x128xf32>
    %cst_358 = arith.constant 1.000000e+00 : f32
    %1555 = vector.broadcast %cst_358 : f32 to vector<1x128xf32>
    %1556 = arith.divf %1555, %1554 : vector<1x128xf32>
    %1557 = arith.mulf %1514, %1556 : vector<1x128xf32>
    %c6_359 = arith.constant 6 : index
    %c0_360 = arith.constant 0 : index
    %c0_361 = arith.constant 0 : index
    %1558 = vector.load %arg3[%c6_359, %c0_360, %c0_361] : memref<39x1x128xf32, #tpu.memory_space<vmem>>, vector<1x1x128xf32>
    %1559 = vector.shape_cast %1558 : vector<1x1x128xf32> to vector<1x128xf32>
    %1560 = vector.shape_cast %1557 : vector<1x128xf32> to vector<1x1x128xf32>
    tpu.vector_store %arg3[%c6_359, %c0_360, %c0_361], %1560 {strides = array<i32>} : memref<39x1x128xf32, #tpu.memory_space<vmem>>, vector<1x1x128xf32>,
    %1561 = arith.mulf %1533, %1556 : vector<1x128xf32>
    %c7_362 = arith.constant 7 : index
    %c0_363 = arith.constant 0 : index
    %c0_364 = arith.constant 0 : index
    %1562 = vector.load %arg3[%c7_362, %c0_363, %c0_364] : memref<39x1x128xf32, #tpu.memory_space<vmem>>, vector<1x1x128xf32>
    %1563 = vector.shape_cast %1562 : vector<1x1x128xf32> to vector<1x128xf32>
    %1564 = vector.shape_cast %1561 : vector<1x128xf32> to vector<1x1x128xf32>
    tpu.vector_store %arg3[%c7_362, %c0_363, %c0_364], %1564 {strides = array<i32>} : memref<39x1x128xf32, #tpu.memory_space<vmem>>, vector<1x1x128xf32>,
    %1565 = arith.mulf %1552, %1556 : vector<1x128xf32>
    %c8_365 = arith.constant 8 : index
    %c0_366 = arith.constant 0 : index
    %c0_367 = arith.constant 0 : index
    %1566 = vector.load %arg3[%c8_365, %c0_366, %c0_367] : memref<39x1x128xf32, #tpu.memory_space<vmem>>, vector<1x1x128xf32>
    %1567 = vector.shape_cast %1566 : vector<1x1x128xf32> to vector<1x128xf32>
    %1568 = vector.shape_cast %1565 : vector<1x128xf32> to vector<1x1x128xf32>
    tpu.vector_store %arg3[%c8_365, %c0_366, %c0_367], %1568 {strides = array<i32>} : memref<39x1x128xf32, #tpu.memory_space<vmem>>, vector<1x1x128xf32>,
    %cst_368 = arith.constant 1.000000e+00 : f32
    %1569 = vector.broadcast %cst_368 : f32 to vector<1x128xf32>
    %1570 = arith.maximumf %1488, %1569 : vector<1x128xf32>
    %cst_369 = arith.constant 1.000000e+00 : f32
    %1571 = vector.broadcast %cst_369 : f32 to vector<1x128xf32>
    %1572 = arith.divf %1571, %1570 : vector<1x128xf32>
    %1573 = arith.mulf %1507, %1572 : vector<1x128xf32>
    %c9_370 = arith.constant 9 : index
    %c0_371 = arith.constant 0 : index
    %c0_372 = arith.constant 0 : index
    %1574 = vector.load %arg3[%c9_370, %c0_371, %c0_372] : memref<39x1x128xf32, #tpu.memory_space<vmem>>, vector<1x1x128xf32>
    %1575 = vector.shape_cast %1574 : vector<1x1x128xf32> to vector<1x128xf32>
    %1576 = vector.shape_cast %1573 : vector<1x128xf32> to vector<1x1x128xf32>
    tpu.vector_store %arg3[%c9_370, %c0_371, %c0_372], %1576 {strides = array<i32>} : memref<39x1x128xf32, #tpu.memory_space<vmem>>, vector<1x1x128xf32>,
    %1577 = arith.mulf %1526, %1572 : vector<1x128xf32>
    %c10_373 = arith.constant 10 : index
    %c0_374 = arith.constant 0 : index
    %c0_375 = arith.constant 0 : index
    %1578 = vector.load %arg3[%c10_373, %c0_374, %c0_375] : memref<39x1x128xf32, #tpu.memory_space<vmem>>, vector<1x1x128xf32>
    %1579 = vector.shape_cast %1578 : vector<1x1x128xf32> to vector<1x128xf32>
    %1580 = vector.shape_cast %1577 : vector<1x128xf32> to vector<1x1x128xf32>
    tpu.vector_store %arg3[%c10_373, %c0_374, %c0_375], %1580 {strides = array<i32>} : memref<39x1x128xf32, #tpu.memory_space<vmem>>, vector<1x1x128xf32>,
    %1581 = arith.mulf %1545, %1572 : vector<1x128xf32>
    %c11_376 = arith.constant 11 : index
    %c0_377 = arith.constant 0 : index
    %c0_378 = arith.constant 0 : index
    %1582 = vector.load %arg3[%c11_376, %c0_377, %c0_378] : memref<39x1x128xf32, #tpu.memory_space<vmem>>, vector<1x1x128xf32>
    %1583 = vector.shape_cast %1582 : vector<1x1x128xf32> to vector<1x128xf32>
    %1584 = vector.shape_cast %1581 : vector<1x128xf32> to vector<1x1x128xf32>
    tpu.vector_store %arg3[%c11_376, %c0_377, %c0_378], %1584 {strides = array<i32>} : memref<39x1x128xf32, #tpu.memory_space<vmem>>, vector<1x1x128xf32>,
    %cst_379 = arith.constant 1.000000e+00 : f32
    %1585 = vector.broadcast %cst_379 : f32 to vector<1x128xf32>
    %1586 = arith.maximumf %1485, %1585 : vector<1x128xf32>
    %cst_380 = arith.constant 1.000000e+00 : f32
    %1587 = vector.broadcast %cst_380 : f32 to vector<1x128xf32>
    %1588 = arith.divf %1587, %1586 : vector<1x128xf32>
    %1589 = arith.mulf %1504, %1588 : vector<1x128xf32>
    %c12_381 = arith.constant 12 : index
    %c0_382 = arith.constant 0 : index
    %c0_383 = arith.constant 0 : index
    %1590 = vector.load %arg3[%c12_381, %c0_382, %c0_383] : memref<39x1x128xf32, #tpu.memory_space<vmem>>, vector<1x1x128xf32>
    %1591 = vector.shape_cast %1590 : vector<1x1x128xf32> to vector<1x128xf32>
    %1592 = vector.shape_cast %1589 : vector<1x128xf32> to vector<1x1x128xf32>
    tpu.vector_store %arg3[%c12_381, %c0_382, %c0_383], %1592 {strides = array<i32>} : memref<39x1x128xf32, #tpu.memory_space<vmem>>, vector<1x1x128xf32>,
    %1593 = arith.mulf %1523, %1588 : vector<1x128xf32>
    %c13_384 = arith.constant 13 : index
    %c0_385 = arith.constant 0 : index
    %c0_386 = arith.constant 0 : index
    %1594 = vector.load %arg3[%c13_384, %c0_385, %c0_386] : memref<39x1x128xf32, #tpu.memory_space<vmem>>, vector<1x1x128xf32>
    %1595 = vector.shape_cast %1594 : vector<1x1x128xf32> to vector<1x128xf32>
    %1596 = vector.shape_cast %1593 : vector<1x128xf32> to vector<1x1x128xf32>
    tpu.vector_store %arg3[%c13_384, %c0_385, %c0_386], %1596 {strides = array<i32>} : memref<39x1x128xf32, #tpu.memory_space<vmem>>, vector<1x1x128xf32>,
    %1597 = arith.mulf %1542, %1588 : vector<1x128xf32>
    %c14_387 = arith.constant 14 : index
    %c0_388 = arith.constant 0 : index
    %c0_389 = arith.constant 0 : index
    %1598 = vector.load %arg3[%c14_387, %c0_388, %c0_389] : memref<39x1x128xf32, #tpu.memory_space<vmem>>, vector<1x1x128xf32>
    %1599 = vector.shape_cast %1598 : vector<1x1x128xf32> to vector<1x128xf32>
    %1600 = vector.shape_cast %1597 : vector<1x128xf32> to vector<1x1x128xf32>
    tpu.vector_store %arg3[%c14_387, %c0_388, %c0_389], %1600 {strides = array<i32>} : memref<39x1x128xf32, #tpu.memory_space<vmem>>, vector<1x1x128xf32>,
    %cst_390 = arith.constant 1.000000e+00 : f32
    %1601 = vector.broadcast %cst_390 : f32 to vector<1x128xf32>
    %1602 = arith.maximumf %1479, %1601 : vector<1x128xf32>
    %cst_391 = arith.constant 1.000000e+00 : f32
    %1603 = vector.broadcast %cst_391 : f32 to vector<1x128xf32>
    %1604 = arith.divf %1603, %1602 : vector<1x128xf32>
    %1605 = arith.mulf %1498, %1604 : vector<1x128xf32>
    %c15_392 = arith.constant 15 : index
    %c0_393 = arith.constant 0 : index
    %c0_394 = arith.constant 0 : index
    %1606 = vector.load %arg3[%c15_392, %c0_393, %c0_394] : memref<39x1x128xf32, #tpu.memory_space<vmem>>, vector<1x1x128xf32>
    %1607 = vector.shape_cast %1606 : vector<1x1x128xf32> to vector<1x128xf32>
    %1608 = vector.shape_cast %1605 : vector<1x128xf32> to vector<1x1x128xf32>
    tpu.vector_store %arg3[%c15_392, %c0_393, %c0_394], %1608 {strides = array<i32>} : memref<39x1x128xf32, #tpu.memory_space<vmem>>, vector<1x1x128xf32>,
    %1609 = arith.mulf %1517, %1604 : vector<1x128xf32>
    %c16 = arith.constant 16 : index
    %c0_395 = arith.constant 0 : index
    %c0_396 = arith.constant 0 : index
    %1610 = vector.load %arg3[%c16, %c0_395, %c0_396] : memref<39x1x128xf32, #tpu.memory_space<vmem>>, vector<1x1x128xf32>
    %1611 = vector.shape_cast %1610 : vector<1x1x128xf32> to vector<1x128xf32>
    %1612 = vector.shape_cast %1609 : vector<1x128xf32> to vector<1x1x128xf32>
    tpu.vector_store %arg3[%c16, %c0_395, %c0_396], %1612 {strides = array<i32>} : memref<39x1x128xf32, #tpu.memory_space<vmem>>, vector<1x1x128xf32>,
    %1613 = arith.mulf %1536, %1604 : vector<1x128xf32>
    %c17 = arith.constant 17 : index
    %c0_397 = arith.constant 0 : index
    %c0_398 = arith.constant 0 : index
    %1614 = vector.load %arg3[%c17, %c0_397, %c0_398] : memref<39x1x128xf32, #tpu.memory_space<vmem>>, vector<1x1x128xf32>
    %1615 = vector.shape_cast %1614 : vector<1x1x128xf32> to vector<1x128xf32>
    %1616 = vector.shape_cast %1613 : vector<1x128xf32> to vector<1x1x128xf32>
    tpu.vector_store %arg3[%c17, %c0_397, %c0_398], %1616 {strides = array<i32>} : memref<39x1x128xf32, #tpu.memory_space<vmem>>, vector<1x1x128xf32>,
    %cst_399 = arith.constant 1.000000e+00 : f32
    %1617 = vector.broadcast %cst_399 : f32 to vector<1x128xf32>
    %1618 = arith.maximumf %1482, %1617 : vector<1x128xf32>
    %cst_400 = arith.constant 1.000000e+00 : f32
    %1619 = vector.broadcast %cst_400 : f32 to vector<1x128xf32>
    %1620 = arith.divf %1619, %1618 : vector<1x128xf32>
    %1621 = arith.mulf %1501, %1620 : vector<1x128xf32>
    %c18 = arith.constant 18 : index
    %c0_401 = arith.constant 0 : index
    %c0_402 = arith.constant 0 : index
    %1622 = vector.load %arg3[%c18, %c0_401, %c0_402] : memref<39x1x128xf32, #tpu.memory_space<vmem>>, vector<1x1x128xf32>
    %1623 = vector.shape_cast %1622 : vector<1x1x128xf32> to vector<1x128xf32>
    %1624 = vector.shape_cast %1621 : vector<1x128xf32> to vector<1x1x128xf32>
    tpu.vector_store %arg3[%c18, %c0_401, %c0_402], %1624 {strides = array<i32>} : memref<39x1x128xf32, #tpu.memory_space<vmem>>, vector<1x1x128xf32>,
    %1625 = arith.mulf %1520, %1620 : vector<1x128xf32>
    %c19 = arith.constant 19 : index
    %c0_403 = arith.constant 0 : index
    %c0_404 = arith.constant 0 : index
    %1626 = vector.load %arg3[%c19, %c0_403, %c0_404] : memref<39x1x128xf32, #tpu.memory_space<vmem>>, vector<1x1x128xf32>
    %1627 = vector.shape_cast %1626 : vector<1x1x128xf32> to vector<1x128xf32>
    %1628 = vector.shape_cast %1625 : vector<1x128xf32> to vector<1x1x128xf32>
    tpu.vector_store %arg3[%c19, %c0_403, %c0_404], %1628 {strides = array<i32>} : memref<39x1x128xf32, #tpu.memory_space<vmem>>, vector<1x1x128xf32>,
    %1629 = arith.mulf %1539, %1620 : vector<1x128xf32>
    %c20 = arith.constant 20 : index
    %c0_405 = arith.constant 0 : index
    %c0_406 = arith.constant 0 : index
    %1630 = vector.load %arg3[%c20, %c0_405, %c0_406] : memref<39x1x128xf32, #tpu.memory_space<vmem>>, vector<1x1x128xf32>
    %1631 = vector.shape_cast %1630 : vector<1x1x128xf32> to vector<1x128xf32>
    %1632 = vector.shape_cast %1629 : vector<1x128xf32> to vector<1x1x128xf32>
    tpu.vector_store %arg3[%c20, %c0_405, %c0_406], %1632 {strides = array<i32>} : memref<39x1x128xf32, #tpu.memory_space<vmem>>, vector<1x1x128xf32>,
    %cst_407 = arith.constant 1.000000e+00 : f32
    %1633 = vector.broadcast %cst_407 : f32 to vector<1x128xf32>
    %1634 = arith.maximumf %1478, %1633 : vector<1x128xf32>
    %cst_408 = arith.constant 1.000000e+00 : f32
    %1635 = vector.broadcast %cst_408 : f32 to vector<1x128xf32>
    %1636 = arith.divf %1635, %1634 : vector<1x128xf32>
    %1637 = arith.mulf %1497, %1636 : vector<1x128xf32>
    %c21 = arith.constant 21 : index
    %c0_409 = arith.constant 0 : index
    %c0_410 = arith.constant 0 : index
    %1638 = vector.load %arg3[%c21, %c0_409, %c0_410] : memref<39x1x128xf32, #tpu.memory_space<vmem>>, vector<1x1x128xf32>
    %1639 = vector.shape_cast %1638 : vector<1x1x128xf32> to vector<1x128xf32>
    %1640 = vector.shape_cast %1637 : vector<1x128xf32> to vector<1x1x128xf32>
    tpu.vector_store %arg3[%c21, %c0_409, %c0_410], %1640 {strides = array<i32>} : memref<39x1x128xf32, #tpu.memory_space<vmem>>, vector<1x1x128xf32>,
    %1641 = arith.mulf %1516, %1636 : vector<1x128xf32>
    %c22 = arith.constant 22 : index
    %c0_411 = arith.constant 0 : index
    %c0_412 = arith.constant 0 : index
    %1642 = vector.load %arg3[%c22, %c0_411, %c0_412] : memref<39x1x128xf32, #tpu.memory_space<vmem>>, vector<1x1x128xf32>
    %1643 = vector.shape_cast %1642 : vector<1x1x128xf32> to vector<1x128xf32>
    %1644 = vector.shape_cast %1641 : vector<1x128xf32> to vector<1x1x128xf32>
    tpu.vector_store %arg3[%c22, %c0_411, %c0_412], %1644 {strides = array<i32>} : memref<39x1x128xf32, #tpu.memory_space<vmem>>, vector<1x1x128xf32>,
    %1645 = arith.mulf %1535, %1636 : vector<1x128xf32>
    %c23 = arith.constant 23 : index
    %c0_413 = arith.constant 0 : index
    %c0_414 = arith.constant 0 : index
    %1646 = vector.load %arg3[%c23, %c0_413, %c0_414] : memref<39x1x128xf32, #tpu.memory_space<vmem>>, vector<1x1x128xf32>
    %1647 = vector.shape_cast %1646 : vector<1x1x128xf32> to vector<1x128xf32>
    %1648 = vector.shape_cast %1645 : vector<1x128xf32> to vector<1x1x128xf32>
    tpu.vector_store %arg3[%c23, %c0_413, %c0_414], %1648 {strides = array<i32>} : memref<39x1x128xf32, #tpu.memory_space<vmem>>, vector<1x1x128xf32>,
    %cst_415 = arith.constant 1.000000e+00 : f32
    %1649 = vector.broadcast %cst_415 : f32 to vector<1x128xf32>
    %1650 = arith.maximumf %1477, %1649 : vector<1x128xf32>
    %cst_416 = arith.constant 1.000000e+00 : f32
    %1651 = vector.broadcast %cst_416 : f32 to vector<1x128xf32>
    %1652 = arith.divf %1651, %1650 : vector<1x128xf32>
    %1653 = arith.mulf %1496, %1652 : vector<1x128xf32>
    %c24 = arith.constant 24 : index
    %c0_417 = arith.constant 0 : index
    %c0_418 = arith.constant 0 : index
    %1654 = vector.load %arg3[%c24, %c0_417, %c0_418] : memref<39x1x128xf32, #tpu.memory_space<vmem>>, vector<1x1x128xf32>
    %1655 = vector.shape_cast %1654 : vector<1x1x128xf32> to vector<1x128xf32>
    %1656 = vector.shape_cast %1653 : vector<1x128xf32> to vector<1x1x128xf32>
    tpu.vector_store %arg3[%c24, %c0_417, %c0_418], %1656 {strides = array<i32>} : memref<39x1x128xf32, #tpu.memory_space<vmem>>, vector<1x1x128xf32>,
    %1657 = arith.mulf %1515, %1652 : vector<1x128xf32>
    %c25 = arith.constant 25 : index
    %c0_419 = arith.constant 0 : index
    %c0_420 = arith.constant 0 : index
    %1658 = vector.load %arg3[%c25, %c0_419, %c0_420] : memref<39x1x128xf32, #tpu.memory_space<vmem>>, vector<1x1x128xf32>
    %1659 = vector.shape_cast %1658 : vector<1x1x128xf32> to vector<1x128xf32>
    %1660 = vector.shape_cast %1657 : vector<1x128xf32> to vector<1x1x128xf32>
    tpu.vector_store %arg3[%c25, %c0_419, %c0_420], %1660 {strides = array<i32>} : memref<39x1x128xf32, #tpu.memory_space<vmem>>, vector<1x1x128xf32>,
    %1661 = arith.mulf %1534, %1652 : vector<1x128xf32>
    %c26 = arith.constant 26 : index
    %c0_421 = arith.constant 0 : index
    %c0_422 = arith.constant 0 : index
    %1662 = vector.load %arg3[%c26, %c0_421, %c0_422] : memref<39x1x128xf32, #tpu.memory_space<vmem>>, vector<1x1x128xf32>
    %1663 = vector.shape_cast %1662 : vector<1x1x128xf32> to vector<1x128xf32>
    %1664 = vector.shape_cast %1661 : vector<1x128xf32> to vector<1x1x128xf32>
    tpu.vector_store %arg3[%c26, %c0_421, %c0_422], %1664 {strides = array<i32>} : memref<39x1x128xf32, #tpu.memory_space<vmem>>, vector<1x1x128xf32>,
    %cst_423 = arith.constant 1.000000e+00 : f32
    %1665 = vector.broadcast %cst_423 : f32 to vector<1x128xf32>
    %1666 = arith.maximumf %1418, %1665 : vector<1x128xf32>
    %cst_424 = arith.constant 1.000000e+00 : f32
    %1667 = vector.broadcast %cst_424 : f32 to vector<1x128xf32>
    %1668 = arith.divf %1667, %1666 : vector<1x128xf32>
    %1669 = arith.mulf %1420, %1668 : vector<1x128xf32>
    %c27 = arith.constant 27 : index
    %c0_425 = arith.constant 0 : index
    %c0_426 = arith.constant 0 : index
    %1670 = vector.load %arg3[%c27, %c0_425, %c0_426] : memref<39x1x128xf32, #tpu.memory_space<vmem>>, vector<1x1x128xf32>
    %1671 = vector.shape_cast %1670 : vector<1x1x128xf32> to vector<1x128xf32>
    %1672 = vector.shape_cast %1669 : vector<1x128xf32> to vector<1x1x128xf32>
    tpu.vector_store %arg3[%c27, %c0_425, %c0_426], %1672 {strides = array<i32>} : memref<39x1x128xf32, #tpu.memory_space<vmem>>, vector<1x1x128xf32>,
    %1673 = arith.mulf %1422, %1668 : vector<1x128xf32>
    %c28 = arith.constant 28 : index
    %c0_427 = arith.constant 0 : index
    %c0_428 = arith.constant 0 : index
    %1674 = vector.load %arg3[%c28, %c0_427, %c0_428] : memref<39x1x128xf32, #tpu.memory_space<vmem>>, vector<1x1x128xf32>
    %1675 = vector.shape_cast %1674 : vector<1x1x128xf32> to vector<1x128xf32>
    %1676 = vector.shape_cast %1673 : vector<1x128xf32> to vector<1x1x128xf32>
    tpu.vector_store %arg3[%c28, %c0_427, %c0_428], %1676 {strides = array<i32>} : memref<39x1x128xf32, #tpu.memory_space<vmem>>, vector<1x1x128xf32>,
    %1677 = arith.mulf %1424, %1668 : vector<1x128xf32>
    %c29 = arith.constant 29 : index
    %c0_429 = arith.constant 0 : index
    %c0_430 = arith.constant 0 : index
    %1678 = vector.load %arg3[%c29, %c0_429, %c0_430] : memref<39x1x128xf32, #tpu.memory_space<vmem>>, vector<1x1x128xf32>
    %1679 = vector.shape_cast %1678 : vector<1x1x128xf32> to vector<1x128xf32>
    %1680 = vector.shape_cast %1677 : vector<1x128xf32> to vector<1x1x128xf32>
    tpu.vector_store %arg3[%c29, %c0_429, %c0_430], %1680 {strides = array<i32>} : memref<39x1x128xf32, #tpu.memory_space<vmem>>, vector<1x1x128xf32>,
    %cst_431 = arith.constant 1.000000e+00 : f32
    %1681 = vector.broadcast %cst_431 : f32 to vector<1x128xf32>
    %cst_432 = arith.constant 0.000000e+00 : f32
    %1682 = vector.broadcast %cst_432 : f32 to vector<1x128xf32>
    %1683 = arith.subf %1352, %1346 : vector<1x128xf32>
    %cst_433 = arith.constant 0.000000e+00 : f32
    %1684 = vector.broadcast %cst_433 : f32 to vector<1x128xf32>
    %1685 = arith.cmpf oge, %1683, %1684 : vector<1x128xf32>
    %cst_434 = arith.constant 1.000000e+00 : f32
    %cst_435 = arith.constant -1.000000e+00 : f32
    %1686 = vector.broadcast %cst_434 : f32 to vector<1x128xf32>
    %1687 = vector.broadcast %cst_435 : f32 to vector<1x128xf32>
    %1688 = arith.select %1685, %1686, %1687 : vector<1x128xi1>, vector<1x128xf32>
    %1689 = math.absf %1683 : vector<1x128xf32>
    %1690 = arith.mulf %1683, %1683 : vector<1x128xf32>
    %cst_436 = arith.constant 4.000000e+00 : f32
    %1691 = vector.broadcast %cst_436 : f32 to vector<1x128xf32>
    %1692 = arith.mulf %1691, %1348 : vector<1x128xf32>
    %1693 = arith.mulf %1692, %1348 : vector<1x128xf32>
    %1694 = arith.addf %1690, %1693 : vector<1x128xf32>
    %1695 = math.sqrt %1694 : vector<1x128xf32>
    %1696 = arith.addf %1689, %1695 : vector<1x128xf32>
    %cst_437 = arith.constant 2.000000e+00 : f32
    %1697 = vector.broadcast %cst_437 : f32 to vector<1x128xf32>
    %1698 = arith.mulf %1697, %1348 : vector<1x128xf32>
    %1699 = arith.mulf %1698, %1688 : vector<1x128xf32>
    %cst_438 = arith.constant 1.000000e-30 : f32
    %1700 = vector.broadcast %cst_438 : f32 to vector<1x128xf32>
    %1701 = arith.addf %1696, %1700 : vector<1x128xf32>
    %1702 = arith.divf %1699, %1701 : vector<1x128xf32>
    %1703 = arith.mulf %1702, %1702 : vector<1x128xf32>
    %cst_439 = arith.constant 1.000000e+00 : f32
    %1704 = vector.broadcast %cst_439 : f32 to vector<1x128xf32>
    %1705 = arith.addf %1703, %1704 : vector<1x128xf32>
    %1706 = math.sqrt %1705 : vector<1x128xf32>
    %cst_440 = arith.constant 1.000000e+00 : f32
    %1707 = vector.broadcast %cst_440 : f32 to vector<1x128xf32>
    %1708 = arith.divf %1707, %1706 : vector<1x128xf32>
    %1709 = arith.mulf %1702, %1708 : vector<1x128xf32>
    %1710 = arith.mulf %1702, %1348 : vector<1x128xf32>
    %1711 = arith.mulf %1708, %1350 : vector<1x128xf32>
    %1712 = arith.mulf %1709, %1354 : vector<1x128xf32>
    %1713 = arith.subf %1711, %1712 : vector<1x128xf32>
    %1714 = arith.mulf %1709, %1350 : vector<1x128xf32>
    %1715 = arith.mulf %1708, %1354 : vector<1x128xf32>
    %1716 = arith.addf %1714, %1715 : vector<1x128xf32>
    %1717 = arith.subf %1346, %1710 : vector<1x128xf32>
    %1718 = arith.addf %1352, %1710 : vector<1x128xf32>
    %1719 = arith.mulf %1708, %1681 : vector<1x128xf32>
    %1720 = arith.mulf %1709, %1682 : vector<1x128xf32>
    %1721 = arith.subf %1719, %1720 : vector<1x128xf32>
    %1722 = arith.mulf %1709, %1681 : vector<1x128xf32>
    %1723 = arith.mulf %1708, %1682 : vector<1x128xf32>
    %1724 = arith.addf %1722, %1723 : vector<1x128xf32>
    %1725 = arith.mulf %1708, %1682 : vector<1x128xf32>
    %1726 = arith.mulf %1709, %1681 : vector<1x128xf32>
    %1727 = arith.subf %1725, %1726 : vector<1x128xf32>
    %1728 = arith.mulf %1709, %1682 : vector<1x128xf32>
    %1729 = arith.mulf %1708, %1681 : vector<1x128xf32>
    %1730 = arith.addf %1728, %1729 : vector<1x128xf32>
    %1731 = arith.mulf %1708, %1682 : vector<1x128xf32>
    %1732 = arith.mulf %1709, %1682 : vector<1x128xf32>
    %1733 = arith.subf %1731, %1732 : vector<1x128xf32>
    %1734 = arith.mulf %1709, %1682 : vector<1x128xf32>
    %1735 = arith.mulf %1708, %1682 : vector<1x128xf32>
    %1736 = arith.addf %1734, %1735 : vector<1x128xf32>
    %1737 = arith.subf %1356, %1717 : vector<1x128xf32>
    %cst_441 = arith.constant 0.000000e+00 : f32
    %1738 = vector.broadcast %cst_441 : f32 to vector<1x128xf32>
    %1739 = arith.cmpf oge, %1737, %1738 : vector<1x128xf32>
    %cst_442 = arith.constant 1.000000e+00 : f32
    %cst_443 = arith.constant -1.000000e+00 : f32
    %1740 = vector.broadcast %cst_442 : f32 to vector<1x128xf32>
    %1741 = vector.broadcast %cst_443 : f32 to vector<1x128xf32>
    %1742 = arith.select %1739, %1740, %1741 : vector<1x128xi1>, vector<1x128xf32>
    %1743 = math.absf %1737 : vector<1x128xf32>
    %1744 = arith.mulf %1737, %1737 : vector<1x128xf32>
    %cst_444 = arith.constant 4.000000e+00 : f32
    %1745 = vector.broadcast %cst_444 : f32 to vector<1x128xf32>
    %1746 = arith.mulf %1745, %1713 : vector<1x128xf32>
    %1747 = arith.mulf %1746, %1713 : vector<1x128xf32>
    %1748 = arith.addf %1744, %1747 : vector<1x128xf32>
    %1749 = math.sqrt %1748 : vector<1x128xf32>
    %1750 = arith.addf %1743, %1749 : vector<1x128xf32>
    %cst_445 = arith.constant 2.000000e+00 : f32
    %1751 = vector.broadcast %cst_445 : f32 to vector<1x128xf32>
    %1752 = arith.mulf %1751, %1713 : vector<1x128xf32>
    %1753 = arith.mulf %1752, %1742 : vector<1x128xf32>
    %cst_446 = arith.constant 1.000000e-30 : f32
    %1754 = vector.broadcast %cst_446 : f32 to vector<1x128xf32>
    %1755 = arith.addf %1750, %1754 : vector<1x128xf32>
    %1756 = arith.divf %1753, %1755 : vector<1x128xf32>
    %1757 = arith.mulf %1756, %1756 : vector<1x128xf32>
    %cst_447 = arith.constant 1.000000e+00 : f32
    %1758 = vector.broadcast %cst_447 : f32 to vector<1x128xf32>
    %1759 = arith.addf %1757, %1758 : vector<1x128xf32>
    %1760 = math.sqrt %1759 : vector<1x128xf32>
    %cst_448 = arith.constant 1.000000e+00 : f32
    %1761 = vector.broadcast %cst_448 : f32 to vector<1x128xf32>
    %1762 = arith.divf %1761, %1760 : vector<1x128xf32>
    %1763 = arith.mulf %1756, %1762 : vector<1x128xf32>
    %1764 = arith.mulf %1756, %1713 : vector<1x128xf32>
    %1765 = arith.mulf %1762, %1682 : vector<1x128xf32>
    %1766 = arith.mulf %1763, %1716 : vector<1x128xf32>
    %1767 = arith.subf %1765, %1766 : vector<1x128xf32>
    %1768 = arith.mulf %1763, %1682 : vector<1x128xf32>
    %1769 = arith.mulf %1762, %1716 : vector<1x128xf32>
    %1770 = arith.addf %1768, %1769 : vector<1x128xf32>
    %1771 = arith.subf %1717, %1764 : vector<1x128xf32>
    %1772 = arith.addf %1356, %1764 : vector<1x128xf32>
    %1773 = arith.mulf %1762, %1721 : vector<1x128xf32>
    %1774 = arith.mulf %1763, %1682 : vector<1x128xf32>
    %1775 = arith.subf %1773, %1774 : vector<1x128xf32>
    %1776 = arith.mulf %1763, %1721 : vector<1x128xf32>
    %1777 = arith.mulf %1762, %1682 : vector<1x128xf32>
    %1778 = arith.addf %1776, %1777 : vector<1x128xf32>
    %1779 = arith.mulf %1762, %1727 : vector<1x128xf32>
    %1780 = arith.mulf %1763, %1682 : vector<1x128xf32>
    %1781 = arith.subf %1779, %1780 : vector<1x128xf32>
    %1782 = arith.mulf %1763, %1727 : vector<1x128xf32>
    %1783 = arith.mulf %1762, %1682 : vector<1x128xf32>
    %1784 = arith.addf %1782, %1783 : vector<1x128xf32>
    %1785 = arith.mulf %1762, %1733 : vector<1x128xf32>
    %1786 = arith.mulf %1763, %1681 : vector<1x128xf32>
    %1787 = arith.subf %1785, %1786 : vector<1x128xf32>
    %1788 = arith.mulf %1763, %1733 : vector<1x128xf32>
    %1789 = arith.mulf %1762, %1681 : vector<1x128xf32>
    %1790 = arith.addf %1788, %1789 : vector<1x128xf32>
    %1791 = arith.subf %1772, %1718 : vector<1x128xf32>
    %cst_449 = arith.constant 0.000000e+00 : f32
    %1792 = vector.broadcast %cst_449 : f32 to vector<1x128xf32>
    %1793 = arith.cmpf oge, %1791, %1792 : vector<1x128xf32>
    %cst_450 = arith.constant 1.000000e+00 : f32
    %cst_451 = arith.constant -1.000000e+00 : f32
    %1794 = vector.broadcast %cst_450 : f32 to vector<1x128xf32>
    %1795 = vector.broadcast %cst_451 : f32 to vector<1x128xf32>
    %1796 = arith.select %1793, %1794, %1795 : vector<1x128xi1>, vector<1x128xf32>
    %1797 = math.absf %1791 : vector<1x128xf32>
    %1798 = arith.mulf %1791, %1791 : vector<1x128xf32>
    %cst_452 = arith.constant 4.000000e+00 : f32
    %1799 = vector.broadcast %cst_452 : f32 to vector<1x128xf32>
    %1800 = arith.mulf %1799, %1770 : vector<1x128xf32>
    %1801 = arith.mulf %1800, %1770 : vector<1x128xf32>
    %1802 = arith.addf %1798, %1801 : vector<1x128xf32>
    %1803 = math.sqrt %1802 : vector<1x128xf32>
    %1804 = arith.addf %1797, %1803 : vector<1x128xf32>
    %cst_453 = arith.constant 2.000000e+00 : f32
    %1805 = vector.broadcast %cst_453 : f32 to vector<1x128xf32>
    %1806 = arith.mulf %1805, %1770 : vector<1x128xf32>
    %1807 = arith.mulf %1806, %1796 : vector<1x128xf32>
    %cst_454 = arith.constant 1.000000e-30 : f32
    %1808 = vector.broadcast %cst_454 : f32 to vector<1x128xf32>
    %1809 = arith.addf %1804, %1808 : vector<1x128xf32>
    %1810 = arith.divf %1807, %1809 : vector<1x128xf32>
    %1811 = arith.mulf %1810, %1810 : vector<1x128xf32>
    %cst_455 = arith.constant 1.000000e+00 : f32
    %1812 = vector.broadcast %cst_455 : f32 to vector<1x128xf32>
    %1813 = arith.addf %1811, %1812 : vector<1x128xf32>
    %1814 = math.sqrt %1813 : vector<1x128xf32>
    %cst_456 = arith.constant 1.000000e+00 : f32
    %1815 = vector.broadcast %cst_456 : f32 to vector<1x128xf32>
    %1816 = arith.divf %1815, %1814 : vector<1x128xf32>
    %1817 = arith.mulf %1810, %1816 : vector<1x128xf32>
    %1818 = arith.mulf %1810, %1770 : vector<1x128xf32>
    %1819 = arith.mulf %1816, %1767 : vector<1x128xf32>
    %1820 = arith.mulf %1817, %1682 : vector<1x128xf32>
    %1821 = arith.subf %1819, %1820 : vector<1x128xf32>
    %1822 = arith.mulf %1817, %1767 : vector<1x128xf32>
    %1823 = arith.mulf %1816, %1682 : vector<1x128xf32>
    %1824 = arith.addf %1822, %1823 : vector<1x128xf32>
    %1825 = arith.subf %1718, %1818 : vector<1x128xf32>
    %1826 = arith.addf %1772, %1818 : vector<1x128xf32>
    %1827 = arith.mulf %1816, %1724 : vector<1x128xf32>
    %1828 = arith.mulf %1817, %1778 : vector<1x128xf32>
    %1829 = arith.subf %1827, %1828 : vector<1x128xf32>
    %1830 = arith.mulf %1817, %1724 : vector<1x128xf32>
    %1831 = arith.mulf %1816, %1778 : vector<1x128xf32>
    %1832 = arith.addf %1830, %1831 : vector<1x128xf32>
    %1833 = arith.mulf %1816, %1730 : vector<1x128xf32>
    %1834 = arith.mulf %1817, %1784 : vector<1x128xf32>
    %1835 = arith.subf %1833, %1834 : vector<1x128xf32>
    %1836 = arith.mulf %1817, %1730 : vector<1x128xf32>
    %1837 = arith.mulf %1816, %1784 : vector<1x128xf32>
    %1838 = arith.addf %1836, %1837 : vector<1x128xf32>
    %1839 = arith.mulf %1816, %1736 : vector<1x128xf32>
    %1840 = arith.mulf %1817, %1790 : vector<1x128xf32>
    %1841 = arith.subf %1839, %1840 : vector<1x128xf32>
    %1842 = arith.mulf %1817, %1736 : vector<1x128xf32>
    %1843 = arith.mulf %1816, %1790 : vector<1x128xf32>
    %1844 = arith.addf %1842, %1843 : vector<1x128xf32>
    %1845 = arith.subf %1825, %1771 : vector<1x128xf32>
    %cst_457 = arith.constant 0.000000e+00 : f32
    %1846 = vector.broadcast %cst_457 : f32 to vector<1x128xf32>
    %1847 = arith.cmpf oge, %1845, %1846 : vector<1x128xf32>
    %cst_458 = arith.constant 1.000000e+00 : f32
    %cst_459 = arith.constant -1.000000e+00 : f32
    %1848 = vector.broadcast %cst_458 : f32 to vector<1x128xf32>
    %1849 = vector.broadcast %cst_459 : f32 to vector<1x128xf32>
    %1850 = arith.select %1847, %1848, %1849 : vector<1x128xi1>, vector<1x128xf32>
    %1851 = math.absf %1845 : vector<1x128xf32>
    %1852 = arith.mulf %1845, %1845 : vector<1x128xf32>
    %cst_460 = arith.constant 4.000000e+00 : f32
    %1853 = vector.broadcast %cst_460 : f32 to vector<1x128xf32>
    %1854 = arith.mulf %1853, %1821 : vector<1x128xf32>
    %1855 = arith.mulf %1854, %1821 : vector<1x128xf32>
    %1856 = arith.addf %1852, %1855 : vector<1x128xf32>
    %1857 = math.sqrt %1856 : vector<1x128xf32>
    %1858 = arith.addf %1851, %1857 : vector<1x128xf32>
    %cst_461 = arith.constant 2.000000e+00 : f32
    %1859 = vector.broadcast %cst_461 : f32 to vector<1x128xf32>
    %1860 = arith.mulf %1859, %1821 : vector<1x128xf32>
    %1861 = arith.mulf %1860, %1850 : vector<1x128xf32>
    %cst_462 = arith.constant 1.000000e-30 : f32
    %1862 = vector.broadcast %cst_462 : f32 to vector<1x128xf32>
    %1863 = arith.addf %1858, %1862 : vector<1x128xf32>
    %1864 = arith.divf %1861, %1863 : vector<1x128xf32>
    %1865 = arith.mulf %1864, %1864 : vector<1x128xf32>
    %cst_463 = arith.constant 1.000000e+00 : f32
    %1866 = vector.broadcast %cst_463 : f32 to vector<1x128xf32>
    %1867 = arith.addf %1865, %1866 : vector<1x128xf32>
    %1868 = math.sqrt %1867 : vector<1x128xf32>
    %cst_464 = arith.constant 1.000000e+00 : f32
    %1869 = vector.broadcast %cst_464 : f32 to vector<1x128xf32>
    %1870 = arith.divf %1869, %1868 : vector<1x128xf32>
    %1871 = arith.mulf %1864, %1870 : vector<1x128xf32>
    %1872 = arith.mulf %1864, %1821 : vector<1x128xf32>
    %1873 = arith.mulf %1870, %1824 : vector<1x128xf32>
    %1874 = arith.mulf %1871, %1682 : vector<1x128xf32>
    %1875 = arith.subf %1873, %1874 : vector<1x128xf32>
    %1876 = arith.mulf %1871, %1824 : vector<1x128xf32>
    %1877 = arith.mulf %1870, %1682 : vector<1x128xf32>
    %1878 = arith.addf %1876, %1877 : vector<1x128xf32>
    %1879 = arith.subf %1771, %1872 : vector<1x128xf32>
    %1880 = arith.addf %1825, %1872 : vector<1x128xf32>
    %1881 = arith.mulf %1870, %1775 : vector<1x128xf32>
    %1882 = arith.mulf %1871, %1829 : vector<1x128xf32>
    %1883 = arith.subf %1881, %1882 : vector<1x128xf32>
    %1884 = arith.mulf %1871, %1775 : vector<1x128xf32>
    %1885 = arith.mulf %1870, %1829 : vector<1x128xf32>
    %1886 = arith.addf %1884, %1885 : vector<1x128xf32>
    %1887 = arith.mulf %1870, %1781 : vector<1x128xf32>
    %1888 = arith.mulf %1871, %1835 : vector<1x128xf32>
    %1889 = arith.subf %1887, %1888 : vector<1x128xf32>
    %1890 = arith.mulf %1871, %1781 : vector<1x128xf32>
    %1891 = arith.mulf %1870, %1835 : vector<1x128xf32>
    %1892 = arith.addf %1890, %1891 : vector<1x128xf32>
    %1893 = arith.mulf %1870, %1787 : vector<1x128xf32>
    %1894 = arith.mulf %1871, %1841 : vector<1x128xf32>
    %1895 = arith.subf %1893, %1894 : vector<1x128xf32>
    %1896 = arith.mulf %1871, %1787 : vector<1x128xf32>
    %1897 = arith.mulf %1870, %1841 : vector<1x128xf32>
    %1898 = arith.addf %1896, %1897 : vector<1x128xf32>
    %1899 = arith.subf %1826, %1879 : vector<1x128xf32>
    %cst_465 = arith.constant 0.000000e+00 : f32
    %1900 = vector.broadcast %cst_465 : f32 to vector<1x128xf32>
    %1901 = arith.cmpf oge, %1899, %1900 : vector<1x128xf32>
    %cst_466 = arith.constant 1.000000e+00 : f32
    %cst_467 = arith.constant -1.000000e+00 : f32
    %1902 = vector.broadcast %cst_466 : f32 to vector<1x128xf32>
    %1903 = vector.broadcast %cst_467 : f32 to vector<1x128xf32>
    %1904 = arith.select %1901, %1902, %1903 : vector<1x128xi1>, vector<1x128xf32>
    %1905 = math.absf %1899 : vector<1x128xf32>
    %1906 = arith.mulf %1899, %1899 : vector<1x128xf32>
    %cst_468 = arith.constant 4.000000e+00 : f32
    %1907 = vector.broadcast %cst_468 : f32 to vector<1x128xf32>
    %1908 = arith.mulf %1907, %1875 : vector<1x128xf32>
    %1909 = arith.mulf %1908, %1875 : vector<1x128xf32>
    %1910 = arith.addf %1906, %1909 : vector<1x128xf32>
    %1911 = math.sqrt %1910 : vector<1x128xf32>
    %1912 = arith.addf %1905, %1911 : vector<1x128xf32>
    %cst_469 = arith.constant 2.000000e+00 : f32
    %1913 = vector.broadcast %cst_469 : f32 to vector<1x128xf32>
    %1914 = arith.mulf %1913, %1875 : vector<1x128xf32>
    %1915 = arith.mulf %1914, %1904 : vector<1x128xf32>
    %cst_470 = arith.constant 1.000000e-30 : f32
    %1916 = vector.broadcast %cst_470 : f32 to vector<1x128xf32>
    %1917 = arith.addf %1912, %1916 : vector<1x128xf32>
    %1918 = arith.divf %1915, %1917 : vector<1x128xf32>
    %1919 = arith.mulf %1918, %1918 : vector<1x128xf32>
    %cst_471 = arith.constant 1.000000e+00 : f32
    %1920 = vector.broadcast %cst_471 : f32 to vector<1x128xf32>
    %1921 = arith.addf %1919, %1920 : vector<1x128xf32>
    %1922 = math.sqrt %1921 : vector<1x128xf32>
    %cst_472 = arith.constant 1.000000e+00 : f32
    %1923 = vector.broadcast %cst_472 : f32 to vector<1x128xf32>
    %1924 = arith.divf %1923, %1922 : vector<1x128xf32>
    %1925 = arith.mulf %1918, %1924 : vector<1x128xf32>
    %1926 = arith.mulf %1918, %1875 : vector<1x128xf32>
    %1927 = arith.mulf %1924, %1682 : vector<1x128xf32>
    %1928 = arith.mulf %1925, %1878 : vector<1x128xf32>
    %1929 = arith.subf %1927, %1928 : vector<1x128xf32>
    %1930 = arith.mulf %1925, %1682 : vector<1x128xf32>
    %1931 = arith.mulf %1924, %1878 : vector<1x128xf32>
    %1932 = arith.addf %1930, %1931 : vector<1x128xf32>
    %1933 = arith.subf %1879, %1926 : vector<1x128xf32>
    %1934 = arith.addf %1826, %1926 : vector<1x128xf32>
    %1935 = arith.mulf %1924, %1883 : vector<1x128xf32>
    %1936 = arith.mulf %1925, %1832 : vector<1x128xf32>
    %1937 = arith.subf %1935, %1936 : vector<1x128xf32>
    %1938 = arith.mulf %1925, %1883 : vector<1x128xf32>
    %1939 = arith.mulf %1924, %1832 : vector<1x128xf32>
    %1940 = arith.addf %1938, %1939 : vector<1x128xf32>
    %1941 = arith.mulf %1924, %1889 : vector<1x128xf32>
    %1942 = arith.mulf %1925, %1838 : vector<1x128xf32>
    %1943 = arith.subf %1941, %1942 : vector<1x128xf32>
    %1944 = arith.mulf %1925, %1889 : vector<1x128xf32>
    %1945 = arith.mulf %1924, %1838 : vector<1x128xf32>
    %1946 = arith.addf %1944, %1945 : vector<1x128xf32>
    %1947 = arith.mulf %1924, %1895 : vector<1x128xf32>
    %1948 = arith.mulf %1925, %1844 : vector<1x128xf32>
    %1949 = arith.subf %1947, %1948 : vector<1x128xf32>
    %1950 = arith.mulf %1925, %1895 : vector<1x128xf32>
    %1951 = arith.mulf %1924, %1844 : vector<1x128xf32>
    %1952 = arith.addf %1950, %1951 : vector<1x128xf32>
    %1953 = arith.subf %1934, %1880 : vector<1x128xf32>
    %cst_473 = arith.constant 0.000000e+00 : f32
    %1954 = vector.broadcast %cst_473 : f32 to vector<1x128xf32>
    %1955 = arith.cmpf oge, %1953, %1954 : vector<1x128xf32>
    %cst_474 = arith.constant 1.000000e+00 : f32
    %cst_475 = arith.constant -1.000000e+00 : f32
    %1956 = vector.broadcast %cst_474 : f32 to vector<1x128xf32>
    %1957 = vector.broadcast %cst_475 : f32 to vector<1x128xf32>
    %1958 = arith.select %1955, %1956, %1957 : vector<1x128xi1>, vector<1x128xf32>
    %1959 = math.absf %1953 : vector<1x128xf32>
    %1960 = arith.mulf %1953, %1953 : vector<1x128xf32>
    %cst_476 = arith.constant 4.000000e+00 : f32
    %1961 = vector.broadcast %cst_476 : f32 to vector<1x128xf32>
    %1962 = arith.mulf %1961, %1932 : vector<1x128xf32>
    %1963 = arith.mulf %1962, %1932 : vector<1x128xf32>
    %1964 = arith.addf %1960, %1963 : vector<1x128xf32>
    %1965 = math.sqrt %1964 : vector<1x128xf32>
    %1966 = arith.addf %1959, %1965 : vector<1x128xf32>
    %cst_477 = arith.constant 2.000000e+00 : f32
    %1967 = vector.broadcast %cst_477 : f32 to vector<1x128xf32>
    %1968 = arith.mulf %1967, %1932 : vector<1x128xf32>
    %1969 = arith.mulf %1968, %1958 : vector<1x128xf32>
    %cst_478 = arith.constant 1.000000e-30 : f32
    %1970 = vector.broadcast %cst_478 : f32 to vector<1x128xf32>
    %1971 = arith.addf %1966, %1970 : vector<1x128xf32>
    %1972 = arith.divf %1969, %1971 : vector<1x128xf32>
    %1973 = arith.mulf %1972, %1972 : vector<1x128xf32>
    %cst_479 = arith.constant 1.000000e+00 : f32
    %1974 = vector.broadcast %cst_479 : f32 to vector<1x128xf32>
    %1975 = arith.addf %1973, %1974 : vector<1x128xf32>
    %1976 = math.sqrt %1975 : vector<1x128xf32>
    %cst_480 = arith.constant 1.000000e+00 : f32
    %1977 = vector.broadcast %cst_480 : f32 to vector<1x128xf32>
    %1978 = arith.divf %1977, %1976 : vector<1x128xf32>
    %1979 = arith.mulf %1972, %1978 : vector<1x128xf32>
    %1980 = arith.mulf %1972, %1932 : vector<1x128xf32>
    %1981 = arith.mulf %1978, %1929 : vector<1x128xf32>
    %1982 = arith.mulf %1979, %1682 : vector<1x128xf32>
    %1983 = arith.subf %1981, %1982 : vector<1x128xf32>
    %1984 = arith.mulf %1979, %1929 : vector<1x128xf32>
    %1985 = arith.mulf %1978, %1682 : vector<1x128xf32>
    %1986 = arith.addf %1984, %1985 : vector<1x128xf32>
    %1987 = arith.subf %1880, %1980 : vector<1x128xf32>
    %1988 = arith.addf %1934, %1980 : vector<1x128xf32>
    %1989 = arith.mulf %1978, %1886 : vector<1x128xf32>
    %1990 = arith.mulf %1979, %1940 : vector<1x128xf32>
    %1991 = arith.subf %1989, %1990 : vector<1x128xf32>
    %1992 = arith.mulf %1979, %1886 : vector<1x128xf32>
    %1993 = arith.mulf %1978, %1940 : vector<1x128xf32>
    %1994 = arith.addf %1992, %1993 : vector<1x128xf32>
    %1995 = arith.mulf %1978, %1892 : vector<1x128xf32>
    %1996 = arith.mulf %1979, %1946 : vector<1x128xf32>
    %1997 = arith.subf %1995, %1996 : vector<1x128xf32>
    %1998 = arith.mulf %1979, %1892 : vector<1x128xf32>
    %1999 = arith.mulf %1978, %1946 : vector<1x128xf32>
    %2000 = arith.addf %1998, %1999 : vector<1x128xf32>
    %2001 = arith.mulf %1978, %1898 : vector<1x128xf32>
    %2002 = arith.mulf %1979, %1952 : vector<1x128xf32>
    %2003 = arith.subf %2001, %2002 : vector<1x128xf32>
    %2004 = arith.mulf %1979, %1898 : vector<1x128xf32>
    %2005 = arith.mulf %1978, %1952 : vector<1x128xf32>
    %2006 = arith.addf %2004, %2005 : vector<1x128xf32>
    %2007 = arith.subf %1987, %1933 : vector<1x128xf32>
    %cst_481 = arith.constant 0.000000e+00 : f32
    %2008 = vector.broadcast %cst_481 : f32 to vector<1x128xf32>
    %2009 = arith.cmpf oge, %2007, %2008 : vector<1x128xf32>
    %cst_482 = arith.constant 1.000000e+00 : f32
    %cst_483 = arith.constant -1.000000e+00 : f32
    %2010 = vector.broadcast %cst_482 : f32 to vector<1x128xf32>
    %2011 = vector.broadcast %cst_483 : f32 to vector<1x128xf32>
    %2012 = arith.select %2009, %2010, %2011 : vector<1x128xi1>, vector<1x128xf32>
    %2013 = math.absf %2007 : vector<1x128xf32>
    %2014 = arith.mulf %2007, %2007 : vector<1x128xf32>
    %cst_484 = arith.constant 4.000000e+00 : f32
    %2015 = vector.broadcast %cst_484 : f32 to vector<1x128xf32>
    %2016 = arith.mulf %2015, %1983 : vector<1x128xf32>
    %2017 = arith.mulf %2016, %1983 : vector<1x128xf32>
    %2018 = arith.addf %2014, %2017 : vector<1x128xf32>
    %2019 = math.sqrt %2018 : vector<1x128xf32>
    %2020 = arith.addf %2013, %2019 : vector<1x128xf32>
    %cst_485 = arith.constant 2.000000e+00 : f32
    %2021 = vector.broadcast %cst_485 : f32 to vector<1x128xf32>
    %2022 = arith.mulf %2021, %1983 : vector<1x128xf32>
    %2023 = arith.mulf %2022, %2012 : vector<1x128xf32>
    %cst_486 = arith.constant 1.000000e-30 : f32
    %2024 = vector.broadcast %cst_486 : f32 to vector<1x128xf32>
    %2025 = arith.addf %2020, %2024 : vector<1x128xf32>
    %2026 = arith.divf %2023, %2025 : vector<1x128xf32>
    %2027 = arith.mulf %2026, %2026 : vector<1x128xf32>
    %cst_487 = arith.constant 1.000000e+00 : f32
    %2028 = vector.broadcast %cst_487 : f32 to vector<1x128xf32>
    %2029 = arith.addf %2027, %2028 : vector<1x128xf32>
    %2030 = math.sqrt %2029 : vector<1x128xf32>
    %cst_488 = arith.constant 1.000000e+00 : f32
    %2031 = vector.broadcast %cst_488 : f32 to vector<1x128xf32>
    %2032 = arith.divf %2031, %2030 : vector<1x128xf32>
    %2033 = arith.mulf %2026, %2032 : vector<1x128xf32>
    %2034 = arith.mulf %2026, %1983 : vector<1x128xf32>
    %2035 = arith.mulf %2032, %1986 : vector<1x128xf32>
    %2036 = arith.mulf %2033, %1682 : vector<1x128xf32>
    %2037 = arith.subf %2035, %2036 : vector<1x128xf32>
    %2038 = arith.mulf %2033, %1986 : vector<1x128xf32>
    %2039 = arith.mulf %2032, %1682 : vector<1x128xf32>
    %2040 = arith.addf %2038, %2039 : vector<1x128xf32>
    %2041 = arith.subf %1933, %2034 : vector<1x128xf32>
    %2042 = arith.addf %1987, %2034 : vector<1x128xf32>
    %2043 = arith.mulf %2032, %1937 : vector<1x128xf32>
    %2044 = arith.mulf %2033, %1991 : vector<1x128xf32>
    %2045 = arith.subf %2043, %2044 : vector<1x128xf32>
    %2046 = arith.mulf %2033, %1937 : vector<1x128xf32>
    %2047 = arith.mulf %2032, %1991 : vector<1x128xf32>
    %2048 = arith.addf %2046, %2047 : vector<1x128xf32>
    %2049 = arith.mulf %2032, %1943 : vector<1x128xf32>
    %2050 = arith.mulf %2033, %1997 : vector<1x128xf32>
    %2051 = arith.subf %2049, %2050 : vector<1x128xf32>
    %2052 = arith.mulf %2033, %1943 : vector<1x128xf32>
    %2053 = arith.mulf %2032, %1997 : vector<1x128xf32>
    %2054 = arith.addf %2052, %2053 : vector<1x128xf32>
    %2055 = arith.mulf %2032, %1949 : vector<1x128xf32>
    %2056 = arith.mulf %2033, %2003 : vector<1x128xf32>
    %2057 = arith.subf %2055, %2056 : vector<1x128xf32>
    %2058 = arith.mulf %2033, %1949 : vector<1x128xf32>
    %2059 = arith.mulf %2032, %2003 : vector<1x128xf32>
    %2060 = arith.addf %2058, %2059 : vector<1x128xf32>
    %2061 = arith.subf %1988, %2041 : vector<1x128xf32>
    %cst_489 = arith.constant 0.000000e+00 : f32
    %2062 = vector.broadcast %cst_489 : f32 to vector<1x128xf32>
    %2063 = arith.cmpf oge, %2061, %2062 : vector<1x128xf32>
    %cst_490 = arith.constant 1.000000e+00 : f32
    %cst_491 = arith.constant -1.000000e+00 : f32
    %2064 = vector.broadcast %cst_490 : f32 to vector<1x128xf32>
    %2065 = vector.broadcast %cst_491 : f32 to vector<1x128xf32>
    %2066 = arith.select %2063, %2064, %2065 : vector<1x128xi1>, vector<1x128xf32>
    %2067 = math.absf %2061 : vector<1x128xf32>
    %2068 = arith.mulf %2061, %2061 : vector<1x128xf32>
    %cst_492 = arith.constant 4.000000e+00 : f32
    %2069 = vector.broadcast %cst_492 : f32 to vector<1x128xf32>
    %2070 = arith.mulf %2069, %2037 : vector<1x128xf32>
    %2071 = arith.mulf %2070, %2037 : vector<1x128xf32>
    %2072 = arith.addf %2068, %2071 : vector<1x128xf32>
    %2073 = math.sqrt %2072 : vector<1x128xf32>
    %2074 = arith.addf %2067, %2073 : vector<1x128xf32>
    %cst_493 = arith.constant 2.000000e+00 : f32
    %2075 = vector.broadcast %cst_493 : f32 to vector<1x128xf32>
    %2076 = arith.mulf %2075, %2037 : vector<1x128xf32>
    %2077 = arith.mulf %2076, %2066 : vector<1x128xf32>
    %cst_494 = arith.constant 1.000000e-30 : f32
    %2078 = vector.broadcast %cst_494 : f32 to vector<1x128xf32>
    %2079 = arith.addf %2074, %2078 : vector<1x128xf32>
    %2080 = arith.divf %2077, %2079 : vector<1x128xf32>
    %2081 = arith.mulf %2080, %2080 : vector<1x128xf32>
    %cst_495 = arith.constant 1.000000e+00 : f32
    %2082 = vector.broadcast %cst_495 : f32 to vector<1x128xf32>
    %2083 = arith.addf %2081, %2082 : vector<1x128xf32>
    %2084 = math.sqrt %2083 : vector<1x128xf32>
    %cst_496 = arith.constant 1.000000e+00 : f32
    %2085 = vector.broadcast %cst_496 : f32 to vector<1x128xf32>
    %2086 = arith.divf %2085, %2084 : vector<1x128xf32>
    %2087 = arith.mulf %2080, %2086 : vector<1x128xf32>
    %2088 = arith.mulf %2080, %2037 : vector<1x128xf32>
    %2089 = arith.mulf %2086, %1682 : vector<1x128xf32>
    %2090 = arith.mulf %2087, %2040 : vector<1x128xf32>
    %2091 = arith.subf %2089, %2090 : vector<1x128xf32>
    %2092 = arith.mulf %2087, %1682 : vector<1x128xf32>
    %2093 = arith.mulf %2086, %2040 : vector<1x128xf32>
    %2094 = arith.addf %2092, %2093 : vector<1x128xf32>
    %2095 = arith.subf %2041, %2088 : vector<1x128xf32>
    %2096 = arith.addf %1988, %2088 : vector<1x128xf32>
    %2097 = arith.mulf %2086, %2045 : vector<1x128xf32>
    %2098 = arith.mulf %2087, %1994 : vector<1x128xf32>
    %2099 = arith.subf %2097, %2098 : vector<1x128xf32>
    %2100 = arith.mulf %2087, %2045 : vector<1x128xf32>
    %2101 = arith.mulf %2086, %1994 : vector<1x128xf32>
    %2102 = arith.addf %2100, %2101 : vector<1x128xf32>
    %2103 = arith.mulf %2086, %2051 : vector<1x128xf32>
    %2104 = arith.mulf %2087, %2000 : vector<1x128xf32>
    %2105 = arith.subf %2103, %2104 : vector<1x128xf32>
    %2106 = arith.mulf %2087, %2051 : vector<1x128xf32>
    %2107 = arith.mulf %2086, %2000 : vector<1x128xf32>
    %2108 = arith.addf %2106, %2107 : vector<1x128xf32>
    %2109 = arith.mulf %2086, %2057 : vector<1x128xf32>
    %2110 = arith.mulf %2087, %2006 : vector<1x128xf32>
    %2111 = arith.subf %2109, %2110 : vector<1x128xf32>
    %2112 = arith.mulf %2087, %2057 : vector<1x128xf32>
    %2113 = arith.mulf %2086, %2006 : vector<1x128xf32>
    %2114 = arith.addf %2112, %2113 : vector<1x128xf32>
    %2115 = arith.subf %2096, %2042 : vector<1x128xf32>
    %cst_497 = arith.constant 0.000000e+00 : f32
    %2116 = vector.broadcast %cst_497 : f32 to vector<1x128xf32>
    %2117 = arith.cmpf oge, %2115, %2116 : vector<1x128xf32>
    %cst_498 = arith.constant 1.000000e+00 : f32
    %cst_499 = arith.constant -1.000000e+00 : f32
    %2118 = vector.broadcast %cst_498 : f32 to vector<1x128xf32>
    %2119 = vector.broadcast %cst_499 : f32 to vector<1x128xf32>
    %2120 = arith.select %2117, %2118, %2119 : vector<1x128xi1>, vector<1x128xf32>
    %2121 = math.absf %2115 : vector<1x128xf32>
    %2122 = arith.mulf %2115, %2115 : vector<1x128xf32>
    %cst_500 = arith.constant 4.000000e+00 : f32
    %2123 = vector.broadcast %cst_500 : f32 to vector<1x128xf32>
    %2124 = arith.mulf %2123, %2094 : vector<1x128xf32>
    %2125 = arith.mulf %2124, %2094 : vector<1x128xf32>
    %2126 = arith.addf %2122, %2125 : vector<1x128xf32>
    %2127 = math.sqrt %2126 : vector<1x128xf32>
    %2128 = arith.addf %2121, %2127 : vector<1x128xf32>
    %cst_501 = arith.constant 2.000000e+00 : f32
    %2129 = vector.broadcast %cst_501 : f32 to vector<1x128xf32>
    %2130 = arith.mulf %2129, %2094 : vector<1x128xf32>
    %2131 = arith.mulf %2130, %2120 : vector<1x128xf32>
    %cst_502 = arith.constant 1.000000e-30 : f32
    %2132 = vector.broadcast %cst_502 : f32 to vector<1x128xf32>
    %2133 = arith.addf %2128, %2132 : vector<1x128xf32>
    %2134 = arith.divf %2131, %2133 : vector<1x128xf32>
    %2135 = arith.mulf %2134, %2134 : vector<1x128xf32>
    %cst_503 = arith.constant 1.000000e+00 : f32
    %2136 = vector.broadcast %cst_503 : f32 to vector<1x128xf32>
    %2137 = arith.addf %2135, %2136 : vector<1x128xf32>
    %2138 = math.sqrt %2137 : vector<1x128xf32>
    %cst_504 = arith.constant 1.000000e+00 : f32
    %2139 = vector.broadcast %cst_504 : f32 to vector<1x128xf32>
    %2140 = arith.divf %2139, %2138 : vector<1x128xf32>
    %2141 = arith.mulf %2134, %2140 : vector<1x128xf32>
    %2142 = arith.mulf %2134, %2094 : vector<1x128xf32>
    %2143 = arith.mulf %2140, %2091 : vector<1x128xf32>
    %2144 = arith.mulf %2141, %1682 : vector<1x128xf32>
    %2145 = arith.subf %2143, %2144 : vector<1x128xf32>
    %2146 = arith.mulf %2141, %2091 : vector<1x128xf32>
    %2147 = arith.mulf %2140, %1682 : vector<1x128xf32>
    %2148 = arith.addf %2146, %2147 : vector<1x128xf32>
    %2149 = arith.subf %2042, %2142 : vector<1x128xf32>
    %2150 = arith.addf %2096, %2142 : vector<1x128xf32>
    %2151 = arith.mulf %2140, %2048 : vector<1x128xf32>
    %2152 = arith.mulf %2141, %2102 : vector<1x128xf32>
    %2153 = arith.subf %2151, %2152 : vector<1x128xf32>
    %2154 = arith.mulf %2141, %2048 : vector<1x128xf32>
    %2155 = arith.mulf %2140, %2102 : vector<1x128xf32>
    %2156 = arith.addf %2154, %2155 : vector<1x128xf32>
    %2157 = arith.mulf %2140, %2054 : vector<1x128xf32>
    %2158 = arith.mulf %2141, %2108 : vector<1x128xf32>
    %2159 = arith.subf %2157, %2158 : vector<1x128xf32>
    %2160 = arith.mulf %2141, %2054 : vector<1x128xf32>
    %2161 = arith.mulf %2140, %2108 : vector<1x128xf32>
    %2162 = arith.addf %2160, %2161 : vector<1x128xf32>
    %2163 = arith.mulf %2140, %2060 : vector<1x128xf32>
    %2164 = arith.mulf %2141, %2114 : vector<1x128xf32>
    %2165 = arith.subf %2163, %2164 : vector<1x128xf32>
    %2166 = arith.mulf %2141, %2060 : vector<1x128xf32>
    %2167 = arith.mulf %2140, %2114 : vector<1x128xf32>
    %2168 = arith.addf %2166, %2167 : vector<1x128xf32>
    %2169 = arith.subf %2149, %2095 : vector<1x128xf32>
    %cst_505 = arith.constant 0.000000e+00 : f32
    %2170 = vector.broadcast %cst_505 : f32 to vector<1x128xf32>
    %2171 = arith.cmpf oge, %2169, %2170 : vector<1x128xf32>
    %cst_506 = arith.constant 1.000000e+00 : f32
    %cst_507 = arith.constant -1.000000e+00 : f32
    %2172 = vector.broadcast %cst_506 : f32 to vector<1x128xf32>
    %2173 = vector.broadcast %cst_507 : f32 to vector<1x128xf32>
    %2174 = arith.select %2171, %2172, %2173 : vector<1x128xi1>, vector<1x128xf32>
    %2175 = math.absf %2169 : vector<1x128xf32>
    %2176 = arith.mulf %2169, %2169 : vector<1x128xf32>
    %cst_508 = arith.constant 4.000000e+00 : f32
    %2177 = vector.broadcast %cst_508 : f32 to vector<1x128xf32>
    %2178 = arith.mulf %2177, %2145 : vector<1x128xf32>
    %2179 = arith.mulf %2178, %2145 : vector<1x128xf32>
    %2180 = arith.addf %2176, %2179 : vector<1x128xf32>
    %2181 = math.sqrt %2180 : vector<1x128xf32>
    %2182 = arith.addf %2175, %2181 : vector<1x128xf32>
    %cst_509 = arith.constant 2.000000e+00 : f32
    %2183 = vector.broadcast %cst_509 : f32 to vector<1x128xf32>
    %2184 = arith.mulf %2183, %2145 : vector<1x128xf32>
    %2185 = arith.mulf %2184, %2174 : vector<1x128xf32>
    %cst_510 = arith.constant 1.000000e-30 : f32
    %2186 = vector.broadcast %cst_510 : f32 to vector<1x128xf32>
    %2187 = arith.addf %2182, %2186 : vector<1x128xf32>
    %2188 = arith.divf %2185, %2187 : vector<1x128xf32>
    %2189 = arith.mulf %2188, %2188 : vector<1x128xf32>
    %cst_511 = arith.constant 1.000000e+00 : f32
    %2190 = vector.broadcast %cst_511 : f32 to vector<1x128xf32>
    %2191 = arith.addf %2189, %2190 : vector<1x128xf32>
    %2192 = math.sqrt %2191 : vector<1x128xf32>
    %cst_512 = arith.constant 1.000000e+00 : f32
    %2193 = vector.broadcast %cst_512 : f32 to vector<1x128xf32>
    %2194 = arith.divf %2193, %2192 : vector<1x128xf32>
    %2195 = arith.mulf %2188, %2194 : vector<1x128xf32>
    %2196 = arith.mulf %2188, %2145 : vector<1x128xf32>
    %2197 = arith.mulf %2194, %2148 : vector<1x128xf32>
    %2198 = arith.mulf %2195, %1682 : vector<1x128xf32>
    %2199 = arith.subf %2197, %2198 : vector<1x128xf32>
    %2200 = arith.mulf %2195, %2148 : vector<1x128xf32>
    %2201 = arith.mulf %2194, %1682 : vector<1x128xf32>
    %2202 = arith.addf %2200, %2201 : vector<1x128xf32>
    %2203 = arith.subf %2095, %2196 : vector<1x128xf32>
    %2204 = arith.addf %2149, %2196 : vector<1x128xf32>
    %2205 = arith.mulf %2194, %2099 : vector<1x128xf32>
    %2206 = arith.mulf %2195, %2153 : vector<1x128xf32>
    %2207 = arith.subf %2205, %2206 : vector<1x128xf32>
    %2208 = arith.mulf %2195, %2099 : vector<1x128xf32>
    %2209 = arith.mulf %2194, %2153 : vector<1x128xf32>
    %2210 = arith.addf %2208, %2209 : vector<1x128xf32>
    %2211 = arith.mulf %2194, %2105 : vector<1x128xf32>
    %2212 = arith.mulf %2195, %2159 : vector<1x128xf32>
    %2213 = arith.subf %2211, %2212 : vector<1x128xf32>
    %2214 = arith.mulf %2195, %2105 : vector<1x128xf32>
    %2215 = arith.mulf %2194, %2159 : vector<1x128xf32>
    %2216 = arith.addf %2214, %2215 : vector<1x128xf32>
    %2217 = arith.mulf %2194, %2111 : vector<1x128xf32>
    %2218 = arith.mulf %2195, %2165 : vector<1x128xf32>
    %2219 = arith.subf %2217, %2218 : vector<1x128xf32>
    %2220 = arith.mulf %2195, %2111 : vector<1x128xf32>
    %2221 = arith.mulf %2194, %2165 : vector<1x128xf32>
    %2222 = arith.addf %2220, %2221 : vector<1x128xf32>
    %2223 = arith.subf %2150, %2203 : vector<1x128xf32>
    %cst_513 = arith.constant 0.000000e+00 : f32
    %2224 = vector.broadcast %cst_513 : f32 to vector<1x128xf32>
    %2225 = arith.cmpf oge, %2223, %2224 : vector<1x128xf32>
    %cst_514 = arith.constant 1.000000e+00 : f32
    %cst_515 = arith.constant -1.000000e+00 : f32
    %2226 = vector.broadcast %cst_514 : f32 to vector<1x128xf32>
    %2227 = vector.broadcast %cst_515 : f32 to vector<1x128xf32>
    %2228 = arith.select %2225, %2226, %2227 : vector<1x128xi1>, vector<1x128xf32>
    %2229 = math.absf %2223 : vector<1x128xf32>
    %2230 = arith.mulf %2223, %2223 : vector<1x128xf32>
    %cst_516 = arith.constant 4.000000e+00 : f32
    %2231 = vector.broadcast %cst_516 : f32 to vector<1x128xf32>
    %2232 = arith.mulf %2231, %2199 : vector<1x128xf32>
    %2233 = arith.mulf %2232, %2199 : vector<1x128xf32>
    %2234 = arith.addf %2230, %2233 : vector<1x128xf32>
    %2235 = math.sqrt %2234 : vector<1x128xf32>
    %2236 = arith.addf %2229, %2235 : vector<1x128xf32>
    %cst_517 = arith.constant 2.000000e+00 : f32
    %2237 = vector.broadcast %cst_517 : f32 to vector<1x128xf32>
    %2238 = arith.mulf %2237, %2199 : vector<1x128xf32>
    %2239 = arith.mulf %2238, %2228 : vector<1x128xf32>
    %cst_518 = arith.constant 1.000000e-30 : f32
    %2240 = vector.broadcast %cst_518 : f32 to vector<1x128xf32>
    %2241 = arith.addf %2236, %2240 : vector<1x128xf32>
    %2242 = arith.divf %2239, %2241 : vector<1x128xf32>
    %2243 = arith.mulf %2242, %2242 : vector<1x128xf32>
    %cst_519 = arith.constant 1.000000e+00 : f32
    %2244 = vector.broadcast %cst_519 : f32 to vector<1x128xf32>
    %2245 = arith.addf %2243, %2244 : vector<1x128xf32>
    %2246 = math.sqrt %2245 : vector<1x128xf32>
    %cst_520 = arith.constant 1.000000e+00 : f32
    %2247 = vector.broadcast %cst_520 : f32 to vector<1x128xf32>
    %2248 = arith.divf %2247, %2246 : vector<1x128xf32>
    %2249 = arith.mulf %2242, %2248 : vector<1x128xf32>
    %2250 = arith.mulf %2242, %2199 : vector<1x128xf32>
    %2251 = arith.mulf %2249, %1682 : vector<1x128xf32>
    %2252 = arith.mulf %2248, %2202 : vector<1x128xf32>
    %2253 = arith.addf %2251, %2252 : vector<1x128xf32>
    %2254 = arith.subf %2203, %2250 : vector<1x128xf32>
    %2255 = arith.addf %2150, %2250 : vector<1x128xf32>
    %2256 = arith.mulf %2248, %2207 : vector<1x128xf32>
    %2257 = arith.mulf %2249, %2156 : vector<1x128xf32>
    %2258 = arith.subf %2256, %2257 : vector<1x128xf32>
    %2259 = arith.mulf %2249, %2207 : vector<1x128xf32>
    %2260 = arith.mulf %2248, %2156 : vector<1x128xf32>
    %2261 = arith.addf %2259, %2260 : vector<1x128xf32>
    %2262 = arith.mulf %2248, %2213 : vector<1x128xf32>
    %2263 = arith.mulf %2249, %2162 : vector<1x128xf32>
    %2264 = arith.subf %2262, %2263 : vector<1x128xf32>
    %2265 = arith.mulf %2249, %2213 : vector<1x128xf32>
    %2266 = arith.mulf %2248, %2162 : vector<1x128xf32>
    %2267 = arith.addf %2265, %2266 : vector<1x128xf32>
    %2268 = arith.mulf %2248, %2219 : vector<1x128xf32>
    %2269 = arith.mulf %2249, %2168 : vector<1x128xf32>
    %2270 = arith.subf %2268, %2269 : vector<1x128xf32>
    %2271 = arith.mulf %2249, %2219 : vector<1x128xf32>
    %2272 = arith.mulf %2248, %2168 : vector<1x128xf32>
    %2273 = arith.addf %2271, %2272 : vector<1x128xf32>
    %2274 = arith.subf %2255, %2204 : vector<1x128xf32>
    %cst_521 = arith.constant 0.000000e+00 : f32
    %2275 = vector.broadcast %cst_521 : f32 to vector<1x128xf32>
    %2276 = arith.cmpf oge, %2274, %2275 : vector<1x128xf32>
    %cst_522 = arith.constant 1.000000e+00 : f32
    %cst_523 = arith.constant -1.000000e+00 : f32
    %2277 = vector.broadcast %cst_522 : f32 to vector<1x128xf32>
    %2278 = vector.broadcast %cst_523 : f32 to vector<1x128xf32>
    %2279 = arith.select %2276, %2277, %2278 : vector<1x128xi1>, vector<1x128xf32>
    %2280 = math.absf %2274 : vector<1x128xf32>
    %2281 = arith.mulf %2274, %2274 : vector<1x128xf32>
    %cst_524 = arith.constant 4.000000e+00 : f32
    %2282 = vector.broadcast %cst_524 : f32 to vector<1x128xf32>
    %2283 = arith.mulf %2282, %2253 : vector<1x128xf32>
    %2284 = arith.mulf %2283, %2253 : vector<1x128xf32>
    %2285 = arith.addf %2281, %2284 : vector<1x128xf32>
    %2286 = math.sqrt %2285 : vector<1x128xf32>
    %2287 = arith.addf %2280, %2286 : vector<1x128xf32>
    %cst_525 = arith.constant 2.000000e+00 : f32
    %2288 = vector.broadcast %cst_525 : f32 to vector<1x128xf32>
    %2289 = arith.mulf %2288, %2253 : vector<1x128xf32>
    %2290 = arith.mulf %2289, %2279 : vector<1x128xf32>
    %cst_526 = arith.constant 1.000000e-30 : f32
    %2291 = vector.broadcast %cst_526 : f32 to vector<1x128xf32>
    %2292 = arith.addf %2287, %2291 : vector<1x128xf32>
    %2293 = arith.divf %2290, %2292 : vector<1x128xf32>
    %2294 = arith.mulf %2293, %2293 : vector<1x128xf32>
    %cst_527 = arith.constant 1.000000e+00 : f32
    %2295 = vector.broadcast %cst_527 : f32 to vector<1x128xf32>
    %2296 = arith.addf %2294, %2295 : vector<1x128xf32>
    %2297 = math.sqrt %2296 : vector<1x128xf32>
    %cst_528 = arith.constant 1.000000e+00 : f32
    %2298 = vector.broadcast %cst_528 : f32 to vector<1x128xf32>
    %2299 = arith.divf %2298, %2297 : vector<1x128xf32>
    %2300 = arith.mulf %2293, %2299 : vector<1x128xf32>
    %2301 = arith.mulf %2293, %2253 : vector<1x128xf32>
    %2302 = arith.subf %2204, %2301 : vector<1x128xf32>
    %2303 = arith.addf %2255, %2301 : vector<1x128xf32>
    %2304 = arith.mulf %2299, %2210 : vector<1x128xf32>
    %2305 = arith.mulf %2300, %2261 : vector<1x128xf32>
    %2306 = arith.subf %2304, %2305 : vector<1x128xf32>
    %2307 = arith.mulf %2300, %2210 : vector<1x128xf32>
    %2308 = arith.mulf %2299, %2261 : vector<1x128xf32>
    %2309 = arith.addf %2307, %2308 : vector<1x128xf32>
    %2310 = arith.mulf %2299, %2216 : vector<1x128xf32>
    %2311 = arith.mulf %2300, %2267 : vector<1x128xf32>
    %2312 = arith.subf %2310, %2311 : vector<1x128xf32>
    %2313 = arith.mulf %2300, %2216 : vector<1x128xf32>
    %2314 = arith.mulf %2299, %2267 : vector<1x128xf32>
    %2315 = arith.addf %2313, %2314 : vector<1x128xf32>
    %2316 = arith.mulf %2299, %2222 : vector<1x128xf32>
    %2317 = arith.mulf %2300, %2273 : vector<1x128xf32>
    %2318 = arith.subf %2316, %2317 : vector<1x128xf32>
    %2319 = arith.mulf %2300, %2222 : vector<1x128xf32>
    %2320 = arith.mulf %2299, %2273 : vector<1x128xf32>
    %2321 = arith.addf %2319, %2320 : vector<1x128xf32>
    %2322 = arith.cmpf olt, %2254, %2302 : vector<1x128xf32>
    %2323 = arith.select %2322, %2302, %2254 : vector<1x128xi1>, vector<1x128xf32>
    %2324 = arith.select %2322, %2254, %2302 : vector<1x128xi1>, vector<1x128xf32>
    %2325 = arith.select %2322, %2306, %2258 : vector<1x128xi1>, vector<1x128xf32>
    %2326 = arith.select %2322, %2312, %2264 : vector<1x128xi1>, vector<1x128xf32>
    %2327 = arith.select %2322, %2318, %2270 : vector<1x128xi1>, vector<1x128xf32>
    %2328 = arith.select %2322, %2258, %2306 : vector<1x128xi1>, vector<1x128xf32>
    %2329 = arith.select %2322, %2264, %2312 : vector<1x128xi1>, vector<1x128xf32>
    %2330 = arith.select %2322, %2270, %2318 : vector<1x128xi1>, vector<1x128xf32>
    %2331 = arith.cmpf olt, %2323, %2303 : vector<1x128xf32>
    %2332 = arith.select %2331, %2303, %2323 : vector<1x128xi1>, vector<1x128xf32>
    %2333 = arith.select %2331, %2323, %2303 : vector<1x128xi1>, vector<1x128xf32>
    %2334 = arith.select %2331, %2309, %2325 : vector<1x128xi1>, vector<1x128xf32>
    %2335 = arith.select %2331, %2315, %2326 : vector<1x128xi1>, vector<1x128xf32>
    %2336 = arith.select %2331, %2321, %2327 : vector<1x128xi1>, vector<1x128xf32>
    %2337 = arith.select %2331, %2325, %2309 : vector<1x128xi1>, vector<1x128xf32>
    %2338 = arith.select %2331, %2326, %2315 : vector<1x128xi1>, vector<1x128xf32>
    %2339 = arith.select %2331, %2327, %2321 : vector<1x128xi1>, vector<1x128xf32>
    %2340 = arith.cmpf olt, %2324, %2333 : vector<1x128xf32>
    %2341 = arith.select %2340, %2333, %2324 : vector<1x128xi1>, vector<1x128xf32>
    %2342 = arith.select %2340, %2324, %2333 : vector<1x128xi1>, vector<1x128xf32>
    %2343 = arith.select %2340, %2337, %2328 : vector<1x128xi1>, vector<1x128xf32>
    %2344 = arith.select %2340, %2338, %2329 : vector<1x128xi1>, vector<1x128xf32>
    %2345 = arith.select %2340, %2339, %2330 : vector<1x128xi1>, vector<1x128xf32>
    %2346 = arith.select %2340, %2328, %2337 : vector<1x128xi1>, vector<1x128xf32>
    %2347 = arith.select %2340, %2329, %2338 : vector<1x128xi1>, vector<1x128xf32>
    %2348 = arith.select %2340, %2330, %2339 : vector<1x128xi1>, vector<1x128xf32>
    %cst_529 = arith.constant 0.000000e+00 : f32
    %2349 = vector.broadcast %cst_529 : f32 to vector<1x128xf32>
    %2350 = arith.maximumf %2332, %2349 : vector<1x128xf32>
    %2351 = math.sqrt %2350 : vector<1x128xf32>
    %cst_530 = arith.constant 0.000000e+00 : f32
    %2352 = vector.broadcast %cst_530 : f32 to vector<1x128xf32>
    %2353 = arith.maximumf %2341, %2352 : vector<1x128xf32>
    %2354 = math.sqrt %2353 : vector<1x128xf32>
    %cst_531 = arith.constant 0.000000e+00 : f32
    %2355 = vector.broadcast %cst_531 : f32 to vector<1x128xf32>
    %2356 = arith.maximumf %2342, %2355 : vector<1x128xf32>
    %2357 = math.sqrt %2356 : vector<1x128xf32>
    %cst_532 = arith.constant 1.000000e-10 : f32
    %2358 = vector.broadcast %cst_532 : f32 to vector<1x128xf32>
    %2359 = arith.addf %2351, %2358 : vector<1x128xf32>
    %cst_533 = arith.constant 1.000000e+00 : f32
    %2360 = vector.broadcast %cst_533 : f32 to vector<1x128xf32>
    %2361 = arith.divf %2360, %2359 : vector<1x128xf32>
    %2362 = arith.subf %2351, %2354 : vector<1x128xf32>
    %2363 = arith.mulf %2362, %2361 : vector<1x128xf32>
    %c30 = arith.constant 30 : index
    %c0_534 = arith.constant 0 : index
    %c0_535 = arith.constant 0 : index
    %2364 = vector.load %arg3[%c30, %c0_534, %c0_535] : memref<39x1x128xf32, #tpu.memory_space<vmem>>, vector<1x1x128xf32>
    %2365 = vector.shape_cast %2364 : vector<1x1x128xf32> to vector<1x128xf32>
    %2366 = vector.shape_cast %2363 : vector<1x128xf32> to vector<1x1x128xf32>
    tpu.vector_store %arg3[%c30, %c0_534, %c0_535], %2366 {strides = array<i32>} : memref<39x1x128xf32, #tpu.memory_space<vmem>>, vector<1x1x128xf32>,
    %2367 = arith.subf %2354, %2357 : vector<1x128xf32>
    %2368 = arith.mulf %2367, %2361 : vector<1x128xf32>
    %c31 = arith.constant 31 : index
    %c0_536 = arith.constant 0 : index
    %c0_537 = arith.constant 0 : index
    %2369 = vector.load %arg3[%c31, %c0_536, %c0_537] : memref<39x1x128xf32, #tpu.memory_space<vmem>>, vector<1x1x128xf32>
    %2370 = vector.shape_cast %2369 : vector<1x1x128xf32> to vector<1x128xf32>
    %2371 = vector.shape_cast %2368 : vector<1x128xf32> to vector<1x1x128xf32>
    tpu.vector_store %arg3[%c31, %c0_536, %c0_537], %2371 {strides = array<i32>} : memref<39x1x128xf32, #tpu.memory_space<vmem>>, vector<1x1x128xf32>,
    %2372 = arith.mulf %2357, %2361 : vector<1x128xf32>
    %c32 = arith.constant 32 : index
    %c0_538 = arith.constant 0 : index
    %c0_539 = arith.constant 0 : index
    %2373 = vector.load %arg3[%c32, %c0_538, %c0_539] : memref<39x1x128xf32, #tpu.memory_space<vmem>>, vector<1x1x128xf32>
    %2374 = vector.shape_cast %2373 : vector<1x1x128xf32> to vector<1x128xf32>
    %2375 = vector.shape_cast %2372 : vector<1x128xf32> to vector<1x1x128xf32>
    tpu.vector_store %arg3[%c32, %c0_538, %c0_539], %2375 {strides = array<i32>} : memref<39x1x128xf32, #tpu.memory_space<vmem>>, vector<1x1x128xf32>,
    %2376 = math.absf %2334 : vector<1x128xf32>
    %2377 = arith.mulf %2351, %2376 : vector<1x128xf32>
    %2378 = math.absf %2343 : vector<1x128xf32>
    %2379 = arith.mulf %2354, %2378 : vector<1x128xf32>
    %2380 = arith.addf %2377, %2379 : vector<1x128xf32>
    %2381 = math.absf %2346 : vector<1x128xf32>
    %2382 = arith.mulf %2357, %2381 : vector<1x128xf32>
    %2383 = arith.addf %2380, %2382 : vector<1x128xf32>
    %c33 = arith.constant 33 : index
    %c0_540 = arith.constant 0 : index
    %c0_541 = arith.constant 0 : index
    %2384 = vector.load %arg3[%c33, %c0_540, %c0_541] : memref<39x1x128xf32, #tpu.memory_space<vmem>>, vector<1x1x128xf32>
    %2385 = vector.shape_cast %2384 : vector<1x1x128xf32> to vector<1x128xf32>
    %2386 = vector.shape_cast %2383 : vector<1x128xf32> to vector<1x1x128xf32>
    tpu.vector_store %arg3[%c33, %c0_540, %c0_541], %2386 {strides = array<i32>} : memref<39x1x128xf32, #tpu.memory_space<vmem>>, vector<1x1x128xf32>,
    %2387 = math.absf %2335 : vector<1x128xf32>
    %2388 = arith.mulf %2351, %2387 : vector<1x128xf32>
    %2389 = math.absf %2344 : vector<1x128xf32>
    %2390 = arith.mulf %2354, %2389 : vector<1x128xf32>
    %2391 = arith.addf %2388, %2390 : vector<1x128xf32>
    %2392 = math.absf %2347 : vector<1x128xf32>
    %2393 = arith.mulf %2357, %2392 : vector<1x128xf32>
    %2394 = arith.addf %2391, %2393 : vector<1x128xf32>
    %c34 = arith.constant 34 : index
    %c0_542 = arith.constant 0 : index
    %c0_543 = arith.constant 0 : index
    %2395 = vector.load %arg3[%c34, %c0_542, %c0_543] : memref<39x1x128xf32, #tpu.memory_space<vmem>>, vector<1x1x128xf32>
    %2396 = vector.shape_cast %2395 : vector<1x1x128xf32> to vector<1x128xf32>
    %2397 = vector.shape_cast %2394 : vector<1x128xf32> to vector<1x1x128xf32>
    tpu.vector_store %arg3[%c34, %c0_542, %c0_543], %2397 {strides = array<i32>} : memref<39x1x128xf32, #tpu.memory_space<vmem>>, vector<1x1x128xf32>,
    %2398 = math.absf %2336 : vector<1x128xf32>
    %2399 = arith.mulf %2351, %2398 : vector<1x128xf32>
    %2400 = math.absf %2345 : vector<1x128xf32>
    %2401 = arith.mulf %2354, %2400 : vector<1x128xf32>
    %2402 = arith.addf %2399, %2401 : vector<1x128xf32>
    %2403 = math.absf %2348 : vector<1x128xf32>
    %2404 = arith.mulf %2357, %2403 : vector<1x128xf32>
    %2405 = arith.addf %2402, %2404 : vector<1x128xf32>
    %c35 = arith.constant 35 : index
    %c0_544 = arith.constant 0 : index
    %c0_545 = arith.constant 0 : index
    %2406 = vector.load %arg3[%c35, %c0_544, %c0_545] : memref<39x1x128xf32, #tpu.memory_space<vmem>>, vector<1x1x128xf32>
    %2407 = vector.shape_cast %2406 : vector<1x1x128xf32> to vector<1x128xf32>
    %2408 = vector.shape_cast %2405 : vector<1x128xf32> to vector<1x1x128xf32>
    tpu.vector_store %arg3[%c35, %c0_544, %c0_545], %2408 {strides = array<i32>} : memref<39x1x128xf32, #tpu.memory_space<vmem>>, vector<1x1x128xf32>,
    %c36 = arith.constant 36 : index
    %c0_546 = arith.constant 0 : index
    %c0_547 = arith.constant 0 : index
    %2409 = vector.load %arg3[%c36, %c0_546, %c0_547] : memref<39x1x128xf32, #tpu.memory_space<vmem>>, vector<1x1x128xf32>
    %2410 = vector.shape_cast %2409 : vector<1x1x128xf32> to vector<1x128xf32>
    %2411 = vector.shape_cast %2334 : vector<1x128xf32> to vector<1x1x128xf32>
    tpu.vector_store %arg3[%c36, %c0_546, %c0_547], %2411 {strides = array<i32>} : memref<39x1x128xf32, #tpu.memory_space<vmem>>, vector<1x1x128xf32>,
    %c37 = arith.constant 37 : index
    %c0_548 = arith.constant 0 : index
    %c0_549 = arith.constant 0 : index
    %2412 = vector.load %arg3[%c37, %c0_548, %c0_549] : memref<39x1x128xf32, #tpu.memory_space<vmem>>, vector<1x1x128xf32>
    %2413 = vector.shape_cast %2412 : vector<1x1x128xf32> to vector<1x128xf32>
    %2414 = vector.shape_cast %2343 : vector<1x128xf32> to vector<1x1x128xf32>
    tpu.vector_store %arg3[%c37, %c0_548, %c0_549], %2414 {strides = array<i32>} : memref<39x1x128xf32, #tpu.memory_space<vmem>>, vector<1x1x128xf32>,
    %c38 = arith.constant 38 : index
    %c0_550 = arith.constant 0 : index
    %c0_551 = arith.constant 0 : index
    %2415 = vector.load %arg3[%c38, %c0_550, %c0_551] : memref<39x1x128xf32, #tpu.memory_space<vmem>>, vector<1x1x128xf32>
    %2416 = vector.shape_cast %2415 : vector<1x1x128xf32> to vector<1x128xf32>
    %2417 = vector.shape_cast %2346 : vector<1x128xf32> to vector<1x1x128xf32>
    tpu.vector_store %arg3[%c38, %c0_550, %c0_551], %2417 {strides = array<i32>} : memref<39x1x128xf32, #tpu.memory_space<vmem>>, vector<1x1x128xf32>,
    return
  }
  func.func @transform_0(%arg0: i32) -> (i32, i32, i32, i32) {
    %c0_i32 = arith.constant 0 : i32
    %c0_i32_0 = arith.constant 0 : i32
    %c0_i32_1 = arith.constant 0 : i32
    %c0_i32_2 = arith.constant 0 : i32
    return %c0_i32, %c0_i32_0, %arg0, %c0_i32_1 : i32, i32, i32, i32
  }
  func.func @transform_1(%arg0: i32) -> (i32, i32, i32) {
    %c0_i32 = arith.constant 0 : i32
    %c0_i32_0 = arith.constant 0 : i32
    %c0_i32_1 = arith.constant 0 : i32
    return %c0_i32, %arg0, %c0_i32_0 : i32, i32, i32
  }
  func.func @transform_2(%arg0: i32) -> (i32, i32, i32) {
    %c0_i32 = arith.constant 0 : i32
    %c0_i32_0 = arith.constant 0 : i32
    %c0_i32_1 = arith.constant 0 : i32
    return %c0_i32, %arg0, %c0_i32_0 : i32, i32, i32
  }
}

</mosaic_0001>

<bundles_post_ra>
// kernel: tpu_custom_call.1
= control target key start
LH: loop header
LB: loop body
LE: loop exit
PB: predicated region body
PF: predicated region fallthrough
CT: control target
= control target key end

     0   :  { %7 = vsyncpa [#allocation3], 0  ;;  %s4743_s0 = inlined_call_operand.hbm [shape: f32[3,16,1,128], index: 0, kind: input, shape index: {}]   ;;  %s4744_s1 = inlined_call_operand.vmem [shape: f32[3,1,128], index: 1, kind: input, shape index: {}]   ;;  %s4745_s2 = inlined_call_operand.hbm [shape: f32[39,1,128], index: 2, kind: output, shape index: {}]  }
   0x1   :  { %8 = vsyncpa [#allocation4], 0  ;;  %s2590_s9 = smov [#allocation2]   ;;  %s2542_s13 = scalar_lea.hbm %s4743_s0, 768 }
   0x2   :  { %s14_s10 = sshll.u32 %s2590_s9, 4  ;;  %p2543_p0 = scmp.ne.s32.totalorder %s4743_s0, %s2542_s13  ;;  %s15_s10 = int_to_ptr.vmem [resolvable:$true] %s14_s10 }
   0x3   :  { %p2546_p1 = scmp.lt.u32.totalorder %s2542_s13, %s4743_s0 }
   0x5   :  { %p2548_p2 = pnand %p2546_p1, %p2543_p0 }
   0x7   :  { %2551 = shalt.err (!%p2548_p2)
}
   0x8   :  { %s2552_s18 = scalar_lea.vmem %s15_s10, 768  ;;  %p2557_p4 = scmp.lt.s32.totalorder %s15_s10, %s15_s10 }
   0x9   :  { %p2553_p3 = scmp.ne.s32.totalorder %s15_s10, %s2552_s18  ;;  %p2558_p5 = scmp.lt.s32.totalorder %s2552_s18, %s2552_s18 }
   0xb   :  { %p2559_p6 = por %p2558_p5, %p2557_p4 }
   0xd   :  { %p2560_p7 = pnand %p2559_p6, %p2553_p3 }
   0xf   :  { %2563 = shalt.err (!%p2560_p7)
}
  0x10   :  { %s2591_s19 = smov 16   ;;  %s2592_s20 = smov 1  }
  0x11   :  { %20 = dma.hbm_to_vmem [thread:$0]  %s4743_s0, 768, %s15_s10, [#allocation3], %s2591_s19, %s2591_s19, %s2592_s20  }
  0x12   :  { %2586 = dma.done.wait [#allocation3], 768  }
  0x13   :  { %2587 = vsyncadd [#allocation3], 4294966528  ;;  %v2626_v0 = vld [vmem:[#allocation2] sm:$0x1]  ;;  %v2628_v1 = vld [vmem:[#allocation2 + $0x1] sm:$0x1] }
  0x14   :  { %v2630_v2 = vld [vmem:[#allocation2 + $0x2] sm:$0x1]  ;;  %v34_v3 = vmul.f32 %v2626_v0, %v2626_v0  ;;  %v111_v4 = vadd.f32 %v2628_v1, %v2626_v0  ;;  %v114_v5 = vmul.f32 %v2628_v1, %v2628_v1  ;;  %v2640_v7 = vld [vmem:[#allocation2 + $0x3] sm:$0x1]  ;;  %v2642_v8 = vld [vmem:[#allocation2 + $0x4] sm:$0x1] }
  0x15   :  { %v194_v6 = vmul.f32 %v2630_v2, %v2630_v2  ;;  %v274_v11 = vmul.f32 %v2640_v7, %v2640_v7  ;;  %v2647_v12 = vld [vmem:[#allocation2 + $0x5] sm:$0x1]  ;;  %v2649_v13 = vld [vmem:[#allocation2 + $0x6] sm:$0x1]  ;;  %v354_v16 = vmul.f32 %v2642_v8, %v2642_v8  ;;  %v2654_v17 = vld [vmem:[#allocation2 + $0x10] sm:$0x1] }
  0x16   :  { %v115_v9 = vadd.f32 %v114_v5, %v34_v3  ;;  %v191_v10 = vadd.f32 %v2630_v2, %v111_v4  ;;  %v2656_v18 = vld [vmem:[#allocation2 + $0x11] sm:$0x1]  ;;  %v434_v19 = vmul.f32 %v2647_v12, %v2647_v12  ;;  %v514_v20 = vmul.f32 %v2649_v13, %v2649_v13  ;;  %v2666_v23 = vld [vmem:[#allocation2 + $0x12] sm:$0x1]  ;;  %v2668_v24 = vld [vmem:[#allocation2 + $0x13] sm:$0x1] }
  0x17   :  { %v36_v21 = vmul.f32 %v2654_v17, %v2626_v0  ;;  %v40_v22 = vmul.f32 %v2654_v17, %v2654_v17  ;;  %v2671_v27 = vld [vmem:[#allocation2 + $0x7] sm:$0x1]  ;;  %v112_v28 = vadd.f32 %v2656_v18, %v2654_v17  ;;  %v116_v29 = vmul.f32 %v2656_v18, %v2628_v1  ;;  %v2677_v30 = vld [vmem:[#allocation2 + $0x14] sm:$0x1]  ;;  %v2688_v37 = vld [vmem:[#allocation2 + $0x8] sm:$0x1] }
  0x18   :  { %v195_v14 = vadd.f32 %v194_v6, %v115_v9  ;;  %v271_v15 = vadd.f32 %v2640_v7, %v191_v10  ;;  %v120_v31 = vmul.f32 %v2656_v18, %v2656_v18  ;;  %v196_v32 = vmul.f32 %v2666_v23, %v2630_v2  ;;  %v2691_v40 = vld [vmem:[#allocation2 + $0x15] sm:$0x1]  ;;  %v2700_v47 = vld [vmem:[#allocation2 + $0x9] sm:$0x1]  ;;  %v2703_v50 = vld [vmem:[#allocation2 + $0x16] sm:$0x1] }
  0x19   :  { %v200_v33 = vmul.f32 %v2666_v23, %v2666_v23  ;;  %v276_v34 = vmul.f32 %v2668_v24, %v2640_v7  ;;  %v117_v38 = vadd.f32 %v116_v29, %v36_v21  ;;  %v192_v39 = vadd.f32 %v2666_v23, %v112_v28  ;;  %v2712_v57 = vld [vmem:[#allocation2 + $0xa] sm:$0x1]  ;;  %v2715_v60 = vld [vmem:[#allocation2 + $0x17] sm:$0x1]  ;;  %v2724_v6 = vld [vmem:[#allocation2 + $0xb] sm:$0x1] }
  0x1a   :  { %v275_v25 = vadd.f32 %v274_v11, %v195_v14  ;;  %v351_v26 = vadd.f32 %v2642_v8, %v271_v15  ;;  %v594_v41 = vmul.f32 %v2671_v27, %v2671_v27  ;;  %v121_v42 = vadd.f32 %v120_v31, %v40_v22  ;;  %v2727_v11 = vld [vmem:[#allocation2 + $0x18] sm:$0x1]  ;;  %v2736_v22 = vld [vmem:[#allocation2 + $0xc] sm:$0x1]  ;;  %v2739_v28 = vld [vmem:[#allocation2 + $0x19] sm:$0x1] }
  0x1b   :  { %v280_v43 = vmul.f32 %v2668_v24, %v2668_v24  ;;  %v356_v44 = vmul.f32 %v2677_v30, %v2642_v8  ;;  %v197_v48 = vadd.f32 %v196_v32, %v117_v38  ;;  %v272_v49 = vadd.f32 %v2668_v24, %v192_v39 }
  0x1c   :  { %v355_v35 = vadd.f32 %v354_v16, %v275_v25  ;;  %v431_v36 = vadd.f32 %v2647_v12, %v351_v26  ;;  %v674_v51 = vmul.f32 %v2688_v37, %v2688_v37  ;;  %v201_v52 = vadd.f32 %v200_v33, %v121_v42 }
  0x1d   :  { %v360_v53 = vmul.f32 %v2677_v30, %v2677_v30  ;;  %v436_v54 = vmul.f32 %v2691_v40, %v2647_v12  ;;  %v277_v58 = vadd.f32 %v276_v34, %v197_v48  ;;  %v352_v59 = vadd.f32 %v2677_v30, %v272_v49  ;;  %v2760_v49 = vld [vmem:[#allocation2 + $0xe] sm:$0x1] }
  0x1e   :  { %v435_v45 = vadd.f32 %v434_v19, %v355_v35  ;;  %v511_v46 = vadd.f32 %v2649_v13, %v431_v36  ;;  %v754_v61 = vmul.f32 %v2700_v47, %v2700_v47  ;;  %v281_v62 = vadd.f32 %v280_v43, %v201_v52  ;;  %v2748_v36 = vld [vmem:[#allocation2 + $0xd] sm:$0x1] }
  0x1f   :  { %v440_v63 = vmul.f32 %v2691_v40, %v2691_v40  ;;  %v516_v3 = vmul.f32 %v2703_v50, %v2649_v13  ;;  %v357_v9 = vadd.f32 %v356_v44, %v277_v58  ;;  %v432_v10 = vadd.f32 %v2691_v40, %v352_v59 }
  0x20   :  { %v515_v55 = vadd.f32 %v514_v20, %v435_v45  ;;  %v591_v56 = vadd.f32 %v2671_v27, %v511_v46  ;;  %v834_v14 = vmul.f32 %v2712_v57, %v2712_v57  ;;  %v361_v15 = vadd.f32 %v360_v53, %v281_v62  ;;  %v2763_v53 = vld [vmem:[#allocation2 + $0x1b] sm:$0x1]  ;;  %v2772_v62 = vld [vmem:[#allocation2 + $0xf] sm:$0x1] }
  0x21   :  { %v520_v16 = vmul.f32 %v2703_v50, %v2703_v50  ;;  %v596_v19 = vmul.f32 %v2715_v60, %v2671_v27  ;;  %v437_v25 = vadd.f32 %v436_v54, %v357_v9  ;;  %v512_v26 = vadd.f32 %v2703_v50, %v432_v10 }
  0x22   :  { %v595_v4 = vadd.f32 %v594_v41, %v515_v55  ;;  %v671_v5 = vadd.f32 %v2688_v37, %v591_v56  ;;  %v914_v29 = vmul.f32 %v2724_v6, %v2724_v6  ;;  %v441_v31 = vadd.f32 %v440_v63, %v361_v15  ;;  %v2751_v41 = vld [vmem:[#allocation2 + $0x1a] sm:$0x1] }
  0x23   :  { %v600_v32 = vmul.f32 %v2715_v60, %v2715_v60  ;;  %v676_v33 = vmul.f32 %v2727_v11, %v2688_v37  ;;  %v517_v38 = vadd.f32 %v516_v3, %v437_v25  ;;  %v592_v39 = vadd.f32 %v2715_v60, %v512_v26 }
  0x24   :  { %v675_v20 = vadd.f32 %v674_v51, %v595_v4  ;;  %v751_v21 = vadd.f32 %v2700_v47, %v671_v5  ;;  %v994_v42 = vmul.f32 %v2736_v22, %v2736_v22  ;;  %v521_v43 = vadd.f32 %v520_v16, %v441_v31  ;;  %v2775_v4 = vld [vmem:[#allocation2 + $0x1c] sm:$0x1] }
  0x25   :  { %v680_v44 = vmul.f32 %v2727_v11, %v2727_v11  ;;  %v756_v45 = vmul.f32 %v2739_v28, %v2700_v47  ;;  %v597_v51 = vadd.f32 %v596_v19, %v517_v38  ;;  %v672_v52 = vadd.f32 %v2727_v11, %v592_v39  ;;  %v2795_v38 = vld [vmem:[#allocation2 + $0x20] sm:$0x1]  ;;  %v110_v39 = vld [vmem:[#allocation2 + $0x21] sm:$0x1] }
  0x26   :  { %v755_v34 = vadd.f32 %v754_v61, %v675_v20  ;;  %v831_v35 = vadd.f32 %v2712_v57, %v751_v21  ;;  %v1074_v54 = vmul.f32 %v2748_v36, %v2748_v36  ;;  %v601_v55 = vadd.f32 %v600_v32, %v521_v43  ;;  %v2785_v21 = vld [vmem:[#allocation2 + $0x1d] sm:$0x1] }
  0x27   :  { %v760_v56 = vmul.f32 %v2739_v28, %v2739_v28  ;;  %v836_v58 = vmul.f32 %v2751_v41, %v2712_v57  ;;  %v677_v63 = vadd.f32 %v676_v33, %v597_v51  ;;  %v752_v3 = vadd.f32 %v2739_v28, %v672_v52 }
  0x28   :  { %v835_v46 = vadd.f32 %v834_v14, %v755_v34  ;;  %v911_v48 = vadd.f32 %v2724_v6, %v831_v35  ;;  %v1154_v5 = vmul.f32 %v2760_v49, %v2760_v49  ;;  %v681_v9 = vadd.f32 %v680_v44, %v601_v55  ;;  %v2808_v55 = vld [vmem:[#allocation2 + $0x1f] sm:$0x1] }
  0x29   :  { %v840_v10 = vmul.f32 %v2751_v41, %v2751_v41  ;;  %v916_v14 = vmul.f32 %v2763_v53, %v2724_v6  ;;  %v757_v19 = vadd.f32 %v756_v45, %v677_v63  ;;  %v832_v20 = vadd.f32 %v2751_v41, %v752_v3  ;;  %v2801_v45 = vld [vmem:[#allocation2 + $0x1e] sm:$0x1] }
  0x2a   :  { %v915_v59 = vadd.f32 %v914_v29, %v835_v46  ;;  %v991_v61 = vadd.f32 %v2736_v22, %v911_v48  ;;  %v1234_v25 = vmul.f32 %v2772_v62, %v2772_v62  ;;  %v761_v26 = vadd.f32 %v760_v56, %v681_v9 }
  0x2b   :  { %v920_v29 = vmul.f32 %v2763_v53, %v2763_v53  ;;  %v996_v31 = vmul.f32 %v2775_v4, %v2736_v22  ;;  %v837_v34 = vadd.f32 %v836_v58, %v757_v19  ;;  %v912_v35 = vadd.f32 %v2763_v53, %v832_v20 }
  0x2c   :  { %v995_v15 = vadd.f32 %v994_v42, %v915_v59  ;;  %v1071_v16 = vadd.f32 %v2748_v36, %v991_v61  ;;  %v841_v42 = vadd.f32 %v840_v10, %v761_v26  ;;  %v1000_v43 = vmul.f32 %v2775_v4, %v2775_v4  ;;  %v190_v10 = vld [vmem:[#allocation2 + $0x22] sm:$0x1] }
  0x2d   :  { %v1076_v44 = vmul.f32 %v2785_v21, %v2748_v36  ;;  %v113_v46 = vadd.f32 %v110_v39, %v2795_v38  ;;  %v917_v52 = vadd.f32 %v916_v14, %v837_v34  ;;  %v1080_v58 = vmul.f32 %v2785_v21, %v2785_v21 }
  0x2e   :  { %v1075_v32 = vadd.f32 %v1074_v54, %v995_v15  ;;  %v1151_v33 = vadd.f32 %v2760_v49, %v1071_v16  ;;  %v992_v54 = vadd.f32 %v2775_v4, %v912_v35  ;;  %v921_v56 = vadd.f32 %v920_v29, %v841_v42 }
  0x2f   :  { %v44_v59 = vmul.f32 %v2795_v38, %v2795_v38  ;;  %v124_v61 = vmul.f32 %v110_v39, %v110_v39  ;;  %v997_v3 = vadd.f32 %v996_v31, %v917_v52  ;;  %v1156_v9 = vmul.f32 %v2801_v45, %v2760_v49 }
  0x30   :  { %v1155_v48 = vadd.f32 %v1154_v5, %v1075_v32  ;;  %v2805_v51 = vadd.f32 %v2772_v62, %v1151_v33  ;;  %v1072_v5 = vadd.f32 %v2785_v21, %v992_v54  ;;  %v1001_v14 = vadd.f32 %v1000_v43, %v921_v56  ;;  %v270_v54 = vld [vmem:[#allocation2 + $0x23] sm:$0x1] }
  0x31   :  { %v1160_v15 = vmul.f32 %v2801_v45, %v2801_v45  ;;  %v1236_v16 = vmul.f32 %v2808_v55, %v2772_v62  ;;  %v193_v19 = vadd.f32 %v190_v10, %v113_v46  ;;  %v1077_v29 = vadd.f32 %v1076_v44, %v997_v3 }
  0x32   :  { %v1305_v63 = vmul.f32 %v2805_v51, %v2805_v51  ;;  %v2823_v20 = vadd.f32 %v1234_v25, %v1155_v48  ;;  %v1152_v31 = vadd.f32 %v2801_v45, %v1072_v5  ;;  %v1081_v32 = vadd.f32 %v1080_v58, %v1001_v14 }
  0x33   :  { %v1240_v33 = vmul.f32 %v2808_v55, %v2808_v55  ;;  %v125_v34 = vadd.f32 %v124_v61, %v44_v59  ;;  %v204_v35 = vmul.f32 %v190_v10, %v190_v10  ;;  %v1157_v43 = vadd.f32 %v1156_v9, %v1077_v29 }
  0x34   :  { %v1306_v26 = vmul.f32 0.0625, %v1305_v63  ;;  %v2830_v52 = vadd.f32 %v2808_v55, %v1152_v31  ;;  %v1161_v46 = vadd.f32 %v1160_v15, %v1081_v32  ;;  %v38_v25 = vmul.f32 %v2795_v38, %v2626_v0  ;;  %v2842_v15 = vld [vmem:[#allocation2 + $0x24] sm:$0x1] }
  0x35   :  { %v273_v44 = vadd.f32 %v270_v54, %v193_v19  ;;  %v2834_v56 = vadd.f32 %v1236_v16, %v1157_v43  ;;  %v118_v59 = vmul.f32 %v110_v39, %v2628_v1  ;;  %v205_v63 = vadd.f32 %v204_v35, %v125_v34  ;;  %v2857_v35 = vld [vmem:[#allocation2 + $0x25] sm:$0x1] }
  0x36   :  { %v1307_v42 = vsub.f32 %v2823_v20, %v1306_v26  ;;  %5027 = vst [vmem:[#allocation8_spill] sm:$0xff] %v2830_v52  ;;  %v1318_v58 = vmul.f32 %v2830_v52, %v2830_v52  ;;  %v2839_v61 = vadd.f32 %v1240_v33, %v1161_v46  ;;  %v284_v3 = vmul.f32 %v270_v54, %v270_v54 }
  0x37   :  { %v1534_v14 = vmul.f32 4.0, %v2834_v56  ;;  %v42_v16 = vmul.f32 %v2795_v38, %v2654_v17  ;;  %v122_v19 = vmul.f32 %v110_v39, %v2656_v18  ;;  %v353_v1 = vadd.f32 %v2842_v15, %v273_v44  ;;  %v2866_v44 = vld [vmem:[#allocation2 + $0x26] sm:$0x1] }
  0x38   :  { %v1308_v48 = vmul.f32 0.06666667, %v1307_v42  ;;  %v1319_v9 = vmul.f32 0.0625, %v1318_v58  ;;  %v2846_v0 = vsub.f32 %v2839_v61, %v2823_v20  ;;  %v119_v26 = vadd.f32 %v118_v59, %v38_v25 }
  0x39   :  { %v198_v29 = vmul.f32 %v190_v10, %v2630_v2  ;;  %v285_v33 = vadd.f32 %v284_v3, %v205_v63  ;;  %v1535_v34 = vmul.f32 %v1534_v14, %v2834_v56  ;;  %v123_v17 = vadd.f32 %v122_v19, %v42_v16  ;;  %v2872_v14 = vld [vmem:[#allocation2 + $0x27] sm:$0x1] }
  0x3a   :  { %v1309_v5 = vmax.f32 %v1308_v48, 0.0  ;;  %v1320_v31 = vsub.f32 %v2839_v61, %v1319_v9  ;;  %v1533_v32 = vmul.f32 %v2846_v0, %v2846_v0  ;;  %v364_v18 = vmul.f32 %v2842_v15, %v2842_v15 }
  0x3b   :  { %v433_v39 = vadd.f32 %v2857_v35, %v353_v1  ;;  %v199_v2 = vadd.f32 %v198_v29, %v119_v26  ;;  %v202_v46 = vmul.f32 %v190_v10, %v2666_v23  ;;  %v278_v25 = vmul.f32 %v270_v54, %v2640_v7 }
  0x3c   :  { %2350 = vrsqrt.f32 %v1309_v5  ;;  %v1321_v42 = vmul.f32 0.06666667, %v1320_v31  ;;  %v2862_v43 = vadd.f32 %v1535_v34, %v1533_v32  ;;  %v365_v58 = vadd.f32 %v364_v18, %v285_v33  ;;  %v2882_v31 = vld [vmem:[#allocation2 + $0x28] sm:$0x1]  ;;  %v2887_v34 = vld [vmem:[#allocation2 + $0x29] sm:$0x1] }
  0x3d   :  { %v444_v59 = vmul.f32 %v2857_v35, %v2857_v35  ;;  %v513_v63 = vadd.f32 %v2866_v44, %v433_v39  ;;  %v203_v3 = vadd.f32 %v202_v46, %v123_v17  ;;  %v279_v16 = vadd.f32 %v278_v25, %v199_v2  ;;  %v2893_v25 = vld [vmem:[#allocation2 + $0x2a] sm:$0x1] }
  0x3e   :  { %v1322_v48 = vmax.f32 %v1321_v42, 0.0  ;;  %2352 = vrsqrt.f32 %v2862_v43  ;;  %v282_v23 = vmul.f32 %v270_v54, %v2668_v24  ;;  %v524_v7 = vmul.f32 %v2866_v44, %v2866_v44 }
  0x3f   :  { %v445_v9 = vadd.f32 %v444_v59, %v365_v58  ;;  %v593_v10 = vadd.f32 %v2872_v14, %v513_v63  ;;  %vm1312_vm0 = vcmp.eq.f32.partialorder %v1309_v5, inf  ;;  %v1315_v1 = vand.u32 2147483648, %v1309_v5 }
  0x40   :  { %2354 = vrsqrt.f32 %v1322_v48  ;;  %v358_v26 = vmul.f32 %v2842_v15, %v2642_v8  ;;  %v604_v29 = vmul.f32 %v2872_v14, %v2872_v14  ;;  %vm1314_vm1 = vcmp.eq.f32.partialorder %v1309_v5, 0.0 }
  0x41   :  { %v525_v33 = vadd.f32 %v524_v7, %v445_v9  ;;  %v673_v24 = vadd.f32 %v2882_v31, %v593_v10  ;;  %v684_v54 = vmul.f32 %v2882_v31, %v2882_v31  ;;  %v1532_v39 = vand.u32 2147483647, %v2846_v0 }
  0x42   :  { %v283_v2 = vadd.f32 %v282_v23, %v203_v3  ;;  %v764_v46 = vmul.f32 %v2887_v34, %v2887_v34  ;;  %vm1539_vm2 = vcmp.eq.f32.partialorder %v2862_v43, inf  ;;  %v359_v58 = vadd.f32 %v358_v26, %v279_v16  ;;  %v2901_v23 = vld [vmem:[#allocation2 + $0x2b] sm:$0x1] }
  0x43   :  { %v605_v17 = vadd.f32 %v604_v29, %v525_v33  ;;  %v753_v18 = vadd.f32 %v2887_v34, %v673_v24  ;;  %vm1325_vm3 = vcmp.eq.f32.partialorder %v1322_v48, inf  ;;  %vm1541_vm4 = vcmp.eq.f32.partialorder %v2862_v43, 0.0  ;;  %v2909_v33 = vld [vmem:[#allocation2 + $0x2c] sm:$0x1] }
  0x44   :  { %v1542_v9 = vand.u32 2147483648, %v2862_v43  ;;  %v844_v3 = vmul.f32 %v2893_v25, %v2893_v25  ;;  %v1328_v10 = vand.u32 2147483648, %v1322_v48  ;;  %vm1327_vm5 = vcmp.eq.f32.partialorder %v1322_v48, 0.0 }
  0x45   :  { %v685_v59 = vadd.f32 %v684_v54, %v605_v17  ;;  %v833_v63 = vadd.f32 %v2893_v25, %v753_v18  ;;  %v362_v29 = vmul.f32 %v2842_v15, %v2677_v30  ;;  %v438_v54 = vmul.f32 %v2857_v35, %v2647_v12 }
  0x46   :  { %v2351_v19 = vpop.eup %2350  ;;  %v1004_v12 = vmul.f32 %v2909_v33, %v2909_v33  ;;  %vm1530_vm6 = vcmp.ge.f32.partialorder %v2846_v0, 0.0 }
  0x47   :  { %v1311_v32 = vmul.f32 %v2351_v19, %v1309_v5  ;;  %v913_v16 = vadd.f32 %v2901_v23, %v833_v63  ;;  %v363_v63 = vadd.f32 %v362_v29, %v283_v2  ;;  %v1545_v29 = vmul.f32 2.0, %v2834_v56 }
  0x49   :  { %v1313_v42 = vsel %vm1312_vm0, %v1309_v5, %v1311_v32  ;;  %v2353_v5 = vpop.eup %2352  ;;  %v924_v32 = vmul.f32 %v2901_v23, %v2901_v23  ;;  %v993_v17 = vadd.f32 %v2909_v33, %v913_v16 }
  0x4a   :  { %v1316_v8 = vsel %vm1314_vm1, %v1315_v1, %v1313_v42  ;;  %v2355_v7 = vpop.eup %2354  ;;  %v1538_v19 = vmul.f32 %v2353_v5, %v2862_v43  ;;  %v765_v1 = vadd.f32 %v764_v46, %v685_v59  ;;  %v2920_v59 = vld [vmem:[#allocation2 + $0x2d] sm:$0x1]  ;;  %v442_v5 = vmul.f32 %v2857_v35, %v2691_v40  ;;  %v2937_v35 = vld [vmem:[#allocation2 + $0x2f] sm:$0x1] }
  0x4b   :  { %1317 = vst [vmem:[#allocation5] sm:$0x1] %v1316_v8  ;;  %v1324_v26 = vmul.f32 %v2355_v7, %v1322_v48  ;;  %v1244_v0 = vmul.f32 %v2937_v35, %v2937_v35 }
  0x4c   :  { %v1540_v24 = vsel %vm1539_vm2, %v2862_v43, %v1538_v19  ;;  %v845_v42 = vadd.f32 %v844_v3, %v765_v1  ;;  %v1073_v3 = vadd.f32 %v2920_v59, %v993_v17  ;;  %v518_v43 = vmul.f32 %v2866_v44, %v2649_v13 }
  0x4d   :  { %v1326_v18 = vsel %vm1325_vm3, %v1322_v48, %v1324_v26  ;;  %v1543_v30 = vsel %vm1541_vm4, %v1542_v9, %v1540_v24  ;;  %v439_v48 = vadd.f32 %v438_v54, %v359_v58  ;;  %v2931_v9 = vld [vmem:[#allocation2 + $0x2e] sm:$0x1]  ;;  %v443_v58 = vadd.f32 %v442_v5, %v363_v63 }
  0x4e   :  { %v1329_v15 = vsel %vm1327_vm5, %v1328_v10, %v1326_v18  ;;  %v1544_v8 = vadd.f32 %v1543_v30, %v1532_v39  ;;  %v925_v46 = vadd.f32 %v924_v32, %v845_v42  ;;  %v1084_v39 = vmul.f32 %v2920_v59, %v2920_v59 }
  0x4f   :  { %1331 = vst [vmem:[#allocation5 + $0x1] sm:$0x1] %v1329_v15  ;;  %v1153_v2 = vadd.f32 %v2931_v9, %v1073_v3  ;;  %v1164_v40 = vmul.f32 %v2931_v9, %v2931_v9  ;;  %v522_v13 = vmul.f32 %v2866_v44, %v2703_v50  ;;  %v519_v16 = vadd.f32 %v518_v43, %v439_v48 }
  0x50   :  { %v1547_v7 = vadd.f32 1e-30, %v1544_v8  ;;  %v1005_v10 = vadd.f32 %v1004_v12, %v925_v46  ;;  %v598_v26 = vmul.f32 %v2872_v14, %v2671_v27  ;;  %v4746_v54 = vmov -1.0  }
  0x51   :  { %v2942_v1 = vadd.f32 %v2937_v35, %v1153_v2  ;;  %v1531_v50 = vsel %vm1530_vm6, 1.0, %v4746_v54  ;;  %v523_v44 = vadd.f32 %v522_v13, %v443_v58  ;;  %v602_v42 = vmul.f32 %v2872_v14, %v2715_v60 }
  0x52   :  { %2356 = vrcp.f32 %v1547_v7  ;;  %v1085_v19 = vadd.f32 %v1084_v39, %v1005_v10  ;;  %v599_v27 = vadd.f32 %v598_v26, %v519_v16  ;;  %v678_v30 = vmul.f32 %v2882_v31, %v2688_v37 }
  0x53   :  { %5028 = vst [vmem:[#allocation9_spill] sm:$0xff] %v2942_v1  ;;  %v1332_v24 = vmul.f32 %v2942_v1, %v2942_v1  ;;  %v1546_v15 = vmul.f32 %v1545_v29, %v1531_v50  ;;  %v603_v46 = vadd.f32 %v602_v42, %v523_v44  ;;  %v682_v63 = vmul.f32 %v2882_v31, %v2727_v11 }
  0x54   :  { %v1165_v32 = vadd.f32 %v1164_v40, %v1085_v19  ;;  %v679_v3 = vadd.f32 %v678_v30, %v599_v27  ;;  %v758_v60 = vmul.f32 %v2887_v34, %v2700_v47  ;;  %v762_v48 = vmul.f32 %v2887_v34, %v2739_v28 }
  0x55   :  { %v1333_v18 = vmul.f32 0.0625, %v1332_v24  ;;  %v683_v39 = vadd.f32 %v682_v63, %v603_v46  ;;  %v838_v11 = vmul.f32 %v2893_v25, %v2712_v57  ;;  %v842_v28 = vmul.f32 %v2893_v25, %v2751_v41 }
  0x56   :  { %v2954_v17 = vadd.f32 %v1244_v0, %v1165_v32  ;;  %v759_v10 = vadd.f32 %v758_v60, %v679_v3  ;;  %v922_v57 = vmul.f32 %v2901_v23, %v2763_v53  ;;  %v1002_v41 = vmul.f32 %v2909_v33, %v2775_v4 }
  0x57   :  { %v763_v40 = vadd.f32 %v762_v48, %v683_v39  ;;  %v1078_v53 = vmul.f32 %v2920_v59, %v2748_v36  ;;  %v1082_v24 = vmul.f32 %v2920_v59, %v2785_v21  ;;  %v1158_v4 = vmul.f32 %v2931_v9, %v2760_v49 }
  0x58   :  { %v1334_v8 = vsub.f32 %v2954_v17, %v1333_v18  ;;  %v839_v34 = vadd.f32 %v838_v11, %v759_v10  ;;  %v1162_v18 = vmul.f32 %v2931_v9, %v2801_v45  ;;  %v1238_v27 = vmul.f32 %v2937_v35, %v2772_v62 }
  0x59   :  { %v843_v58 = vadd.f32 %v842_v28, %v763_v40 }
  0x5a   :  { %v1335_v5 = vmul.f32 0.06666667, %v1334_v8 }
  0x5b   :  { %v923_v26 = vadd.f32 %v922_v57, %v843_v58 }
  0x5c   :  { %v2357_v12 = vpop.eup %2356  ;;  %v1336_v7 = vmax.f32 %v1335_v5, 0.0 }
  0x5d   :  { %v1549_v14 = vmul.f32 %v2357_v12, %v1546_v15  ;;  %v1242_v15 = vmul.f32 %v2937_v35, %v2808_v55 }
  0x5e   :  { %2358 = vrsqrt.f32 %v1336_v7  ;;  %vm1339_vm7 = vcmp.eq.f32.partialorder %v1336_v7, inf  ;;  %vm1341_vm8 = vcmp.eq.f32.partialorder %v1336_v7, 0.0 }
  0x5f   :  { %v1550_v43 = vmul.f32 %v1549_v14, %v1549_v14  ;;  %v1562_v37 = vmul.f32 %v1549_v14, %v2834_v56  ;;  %v918_v56 = vmul.f32 %v2901_v23, %v2724_v6 }
  0x61   :  { %v1551_v31 = vadd.f32 1.0, %v1550_v43  ;;  %v2969_v2 = vadd.f32 %v1562_v37, %v2839_v61  ;;  %v2972_v47 = vsub.f32 %v2823_v20, %v1562_v37  ;;  %v919_v13 = vadd.f32 %v918_v56, %v839_v34 }
  0x62   :  { %v998_v61 = vmul.f32 %v2909_v33, %v2736_v22  ;;  %v1342_v20 = vand.u32 2147483648, %v1336_v7  ;;  %v1003_v22 = vadd.f32 %v1002_v41, %v923_v26 }
  0x63   :  { %2360 = vrsqrt.f32 %v1551_v31  ;;  %vm1554_vm9 = vcmp.eq.f32.partialorder %v1551_v31, inf  ;;  %v1557_v29 = vand.u32 2147483648, %v1551_v31  ;;  %vm1556_vm10 = vcmp.eq.f32.partialorder %v1551_v31, 0.0 }
  0x64   :  { %v999_v25 = vadd.f32 %v998_v61, %v919_v13  ;;  %v1083_v33 = vadd.f32 %v1082_v24, %v1003_v22  ;;  %v1579_v62 = vsub.f32 %v2954_v17, %v2972_v47 }
  0x66   :  { %v1079_v42 = vadd.f32 %v1078_v53, %v999_v25  ;;  %v1163_v30 = vadd.f32 %v1162_v18, %v1083_v33  ;;  %v1583_v35 = vmul.f32 %v1579_v62, %v1579_v62  ;;  %v1582_v48 = vand.u32 2147483647, %v1579_v62 }
  0x67   :  { %vm1580_vm13 = vcmp.ge.f32.partialorder %v1579_v62, 0.0 }
  0x68   :  { %v2359_v19 = vpop.eup %2358  ;;  %v1159_v36 = vadd.f32 %v1158_v4, %v1079_v42  ;;  %v1243_v59 = vadd.f32 %v1242_v15, %v1163_v30  ;;  %v1581_v40 = vsel %vm1580_vm13, 1.0, %v4746_v54 }
  0x69   :  { %v1338_v16 = vmul.f32 %v2359_v19, %v1336_v7 }
  0x6a   :  { %v1239_v21 = vadd.f32 %v1238_v27, %v1159_v36 }
  0x6b   :  { %v1340_v0 = vsel %vm1339_vm7, %v1336_v7, %v1338_v16 }
  0x6c   :  { %v1343_v23 = vsel %vm1341_vm8, %v1342_v20, %v1340_v0 }
  0x6d   :  { %v2361_v6 = vpop.eup %2360  ;;  %1345 = vst [vmem:[#allocation5 + $0x2] sm:$0x1] %v1343_v23 }
  0x6e   :  { %v1553_v32 = vmul.f32 %v2361_v6, %v1551_v31 }
  0x70   :  { %v1555_v50 = vsel %vm1554_vm9, %v1551_v31, %v1553_v32 }
  0x71   :  { %v1558_v44 = vsel %vm1556_vm10, %v1557_v29, %v1555_v50 }
  0x72   :  { %2362 = vrcp.f32 %v1558_v44 }
  0x7c   :  { %v2996_v8 = vpop.eup %2362 }
  0x7d   :  { %5029 = vst [vmem:[#allocation10_spill] sm:$0xff] %v2996_v8  ;;  %v2999_v46 = vmul.f32 %v2996_v8, %v1549_v14  ;;  %v1563_v49 = vmul.f32 %v2996_v8, %v1239_v21  ;;  %v1567_v63 = vmul.f32 %v2996_v8, %v1243_v59 }
  0x7f   :  { %5030 = vst [vmem:[#allocation11_spill] sm:$0xff] %v2999_v46  ;;  %v1564_v45 = vmul.f32 %v2999_v46, %v1243_v59  ;;  %v1566_v9 = vmul.f32 %v2999_v46, %v1239_v21 }
  0x81   :  { %v1565_v5 = vsub.f32 %v1563_v49, %v1564_v45  ;;  %v3007_v55 = vadd.f32 %v1567_v63, %v1566_v9 }
  0x83   :  { %v1584_v12 = vmul.f32 4.0, %v1565_v5  ;;  %v1595_v31 = vmul.f32 2.0, %v1565_v5 }
  0x85   :  { %v1585_v3 = vmul.f32 %v1584_v12, %v1565_v5  ;;  %v1596_v28 = vmul.f32 %v1595_v31, %v1581_v40 }
  0x87   :  { %v1586_v60 = vadd.f32 %v1585_v3, %v1583_v35 }
  0x89   :  { %2364 = vrsqrt.f32 %v1586_v60  ;;  %vm1589_vm11 = vcmp.eq.f32.partialorder %v1586_v60, inf  ;;  %v1592_v7 = vand.u32 2147483648, %v1586_v60  ;;  %vm1591_vm12 = vcmp.eq.f32.partialorder %v1586_v60, 0.0 }
  0x93   :  { %v2365_v14 = vpop.eup %2364 }
  0x94   :  { %v1588_v43 = vmul.f32 %v2365_v14, %v1586_v60 }
  0x96   :  { %v1590_v37 = vsel %vm1589_vm11, %v1586_v60, %v1588_v43 }
  0x97   :  { %v1593_v39 = vsel %vm1591_vm12, %v1592_v7, %v1590_v37 }
  0x98   :  { %v1594_v10 = vadd.f32 %v1593_v39, %v1582_v48 }
  0x9a   :  { %v1597_v11 = vadd.f32 1e-30, %v1594_v10 }
  0x9c   :  { %2366 = vrcp.f32 %v1597_v11 }
  0xa6   :  { %v2367_v34 = vpop.eup %2366 }
  0xa7   :  { %v1599_v56 = vmul.f32 %v2367_v34, %v1596_v28 }
  0xa9   :  { %v1600_v58 = vmul.f32 %v1599_v56, %v1599_v56  ;;  %v1612_v26 = vmul.f32 %v1599_v56, %v1565_v5 }
  0xab   :  { %v1601_v57 = vadd.f32 1.0, %v1600_v58  ;;  %v3011_v41 = vadd.f32 %v1612_v26, %v2954_v17  ;;  %v1619_v48 = vsub.f32 %v2972_v47, %v1612_v26 }
  0xad   :  { %2368 = vrsqrt.f32 %v1601_v57  ;;  %vm1604_vm14 = vcmp.eq.f32.partialorder %v1601_v57, inf  ;;  %v1607_v61 = vand.u32 2147483648, %v1601_v57  ;;  %vm1606_vm15 = vcmp.eq.f32.partialorder %v1601_v57, 0.0 }
  0xae   :  { %v1633_v53 = vsub.f32 %v3011_v41, %v2969_v2 }
  0xb0   :  { %v1637_v32 = vmul.f32 %v1633_v53, %v1633_v53  ;;  %v1636_v42 = vand.u32 2147483647, %v1633_v53  ;;  %vm1634_vm2 = vcmp.ge.f32.partialorder %v1633_v53, 0.0 }
  0xb1   :  { %v1635_v15 = vsel %vm1634_vm2, 1.0, %v4746_v54 }
  0xb7   :  { %v2369_v13 = vpop.eup %2368 }
  0xb8   :  { %v1603_v19 = vmul.f32 %v2369_v13, %v1601_v57 }
  0xba   :  { %v1605_v20 = vsel %vm1604_vm14, %v1601_v57, %v1603_v19 }
  0xbb   :  { %v1608_v16 = vsel %vm1606_vm15, %v1607_v61, %v1605_v20 }
  0xbc   :  { %2370 = vrcp.f32 %v1608_v16 }
  0xc6   :  { %v3013_v25 = vpop.eup %2370 }
  0xc7   :  { %5031 = vst [vmem:[#allocation12_spill] sm:$0xff] %v3013_v25  ;;  %v3016_v0 = vmul.f32 %v3013_v25, %v1599_v56  ;;  %v1617_v6 = vmul.f32 %v3013_v25, %v3007_v55  ;;  %v3028_v60 = vmul.f32 0.0, %v3013_v25 }
  0xc9   :  { %5032 = vst [vmem:[#allocation13_spill] sm:$0xff] %v3016_v0  ;;  %v3021_v29 = vmul.f32 0.0, %v3016_v0  ;;  %5034 = vst [vmem:[#allocation15_spill] sm:$0xff] %v3028_v60  ;;  %v1614_v14 = vmul.f32 %v3016_v0, %v3007_v55 }
  0xcb   :  { %5033 = vst [vmem:[#allocation14_spill] sm:$0xff] %v3021_v29  ;;  %v1618_v23 = vadd.f32 %v1617_v6, %v3021_v29  ;;  %v1615_v7 = vsub.f32 %v3028_v60, %v1614_v14 }
  0xcd   :  { %v1638_v22 = vmul.f32 4.0, %v1618_v23  ;;  %v1649_v30 = vmul.f32 2.0, %v1618_v23 }
  0xcf   :  { %v1639_v17 = vmul.f32 %v1638_v22, %v1618_v23  ;;  %v1650_v21 = vmul.f32 %v1649_v30, %v1635_v15 }
  0xd1   :  { %v1640_v24 = vadd.f32 %v1639_v17, %v1637_v32 }
  0xd3   :  { %2372 = vrsqrt.f32 %v1640_v24  ;;  %vm1643_vm0 = vcmp.eq.f32.partialorder %v1640_v24, inf  ;;  %v1646_v44 = vand.u32 2147483648, %v1640_v24  ;;  %vm1645_vm1 = vcmp.eq.f32.partialorder %v1640_v24, 0.0 }
  0xdd   :  { %v2373_v50 = vpop.eup %2372 }
  0xde   :  { %v1642_v4 = vmul.f32 %v2373_v50, %v1640_v24 }
  0xe0   :  { %v1644_v33 = vsel %vm1643_vm0, %v1640_v24, %v1642_v4 }
  0xe1   :  { %v1647_v18 = vsel %vm1645_vm1, %v1646_v44, %v1644_v33 }
  0xe2   :  { %v1648_v36 = vadd.f32 %v1647_v18, %v1636_v42 }
  0xe4   :  { %v1651_v27 = vadd.f32 1e-30, %v1648_v36 }
  0xe6   :  { %2374 = vrcp.f32 %v1651_v27 }
  0xf0   :  { %v2375_v59 = vpop.eup %2374 }
  0xf1   :  { %v1653_v49 = vmul.f32 %v2375_v59, %v1650_v21 }
  0xf3   :  { %v1654_v63 = vmul.f32 %v1653_v49, %v1653_v49  ;;  %v1666_v45 = vmul.f32 %v1653_v49, %v1618_v23 }
  0xf5   :  { %v1655_v9 = vadd.f32 1.0, %v1654_v63  ;;  %v3035_v43 = vsub.f32 %v2969_v2, %v1666_v45  ;;  %v1674_v27 = vadd.f32 %v1666_v45, %v3011_v41 }
  0xf7   :  { %2376 = vrsqrt.f32 %v1655_v9  ;;  %vm1658_vm3 = vcmp.eq.f32.partialorder %v1655_v9, inf  ;;  %v1661_v5 = vand.u32 2147483648, %v1655_v9  ;;  %vm1660_vm4 = vcmp.eq.f32.partialorder %v1655_v9, 0.0 }
  0xf8   :  { %v1693_v31 = vsub.f32 %v3035_v43, %v1619_v48 }
  0xfa   :  { %v1697_v55 = vmul.f32 %v1693_v31, %v1693_v31  ;;  %v1696_v58 = vand.u32 2147483647, %v1693_v31  ;;  %vm1694_vm7 = vcmp.ge.f32.partialorder %v1693_v31, 0.0 }
  0xfb   :  { %v1695_v26 = vsel %vm1694_vm7, 1.0, %v4746_v54 }
 0x101   :  { %v2377_v62 = vpop.eup %2376 }
 0x102   :  { %v1657_v35 = vmul.f32 %v2377_v62, %v1655_v9 }
 0x104   :  { %v1659_v12 = vsel %vm1658_vm3, %v1655_v9, %v1657_v35 }
 0x105   :  { %v1662_v3 = vsel %vm1660_vm4, %v1661_v5, %v1659_v12 }
 0x106   :  { %2378 = vrcp.f32 %v1662_v3 }
 0x110   :  { %v3037_v37 = vpop.eup %2378 }
 0x111   :  { %5035 = vst [vmem:[#allocation16_spill] sm:$0xff] %v3037_v37  ;;  %v3040_v39 = vmul.f32 %v3037_v37, %v1653_v49  ;;  %v1667_v10 = vmul.f32 %v3037_v37, %v1615_v7  ;;  %v1671_v18 = vmul.f32 0.0, %v3037_v37 }
 0x113   :  { %5036 = vst [vmem:[#allocation17_spill] sm:$0xff] %v3040_v39  ;;  %v1668_v11 = vmul.f32 0.0, %v3040_v39  ;;  %v1670_v33 = vmul.f32 %v3040_v39, %v1615_v7 }
 0x115   :  { %v1669_v40 = vsub.f32 %v1667_v10, %v1668_v11  ;;  %v1672_v36 = vadd.f32 %v1671_v18, %v1670_v33 }
 0x117   :  { %v1698_v28 = vmul.f32 4.0, %v1669_v40  ;;  %v1709_v16 = vmul.f32 2.0, %v1669_v40 }
 0x119   :  { %v1699_v34 = vmul.f32 %v1698_v28, %v1669_v40  ;;  %v1710_v6 = vmul.f32 %v1709_v16, %v1695_v26 }
 0x11b   :  { %v1700_v56 = vadd.f32 %v1699_v34, %v1697_v55 }
 0x11d   :  { %2380 = vrsqrt.f32 %v1700_v56  ;;  %vm1703_vm5 = vcmp.eq.f32.partialorder %v1700_v56, inf  ;;  %v1706_v2 = vand.u32 2147483648, %v1700_v56  ;;  %vm1705_vm6 = vcmp.eq.f32.partialorder %v1700_v56, 0.0 }
 0x127   :  { %v2381_v47 = vpop.eup %2380 }
 0x128   :  { %v1702_v57 = vmul.f32 %v2381_v47, %v1700_v56 }
 0x12a   :  { %v1704_v13 = vsel %vm1703_vm5, %v1700_v56, %v1702_v57 }
 0x12b   :  { %v1707_v61 = vsel %vm1705_vm6, %v1706_v2, %v1704_v13 }
 0x12c   :  { %v1708_v19 = vadd.f32 %v1707_v61, %v1696_v58 }
 0x12e   :  { %v1711_v20 = vadd.f32 1e-30, %v1708_v19 }
 0x130   :  { %2382 = vrcp.f32 %v1711_v20 }
 0x13a   :  { %v2383_v53 = vpop.eup %2382 }
 0x13b   :  { %v1713_v23 = vmul.f32 %v2383_v53, %v1710_v6 }
 0x13d   :  { %v1714_v32 = vmul.f32 %v1713_v23, %v1713_v23  ;;  %v1726_v22 = vmul.f32 %v1713_v23, %v1669_v40 }
 0x13f   :  { %v1715_v17 = vadd.f32 1.0, %v1714_v32  ;;  %v3049_v30 = vsub.f32 %v1619_v48, %v1726_v22  ;;  %v1734_v6 = vadd.f32 %v1726_v22, %v3035_v43 }
 0x141   :  { %2384 = vrsqrt.f32 %v1715_v17  ;;  %vm1718_vm8 = vcmp.eq.f32.partialorder %v1715_v17, inf  ;;  %v1721_v50 = vand.u32 2147483648, %v1715_v17  ;;  %vm1720_vm9 = vcmp.eq.f32.partialorder %v1715_v17, 0.0 }
 0x142   :  { %v1753_v63 = vsub.f32 %v1674_v27, %v3049_v30 }
 0x144   :  { %v1757_v62 = vmul.f32 %v1753_v63, %v1753_v63  ;;  %v1756_v3 = vand.u32 2147483647, %v1753_v63  ;;  %vm1754_vm12 = vcmp.ge.f32.partialorder %v1753_v63, 0.0 }
 0x145   :  { %v1755_v40 = vsel %vm1754_vm12, 1.0, %v4746_v54 }
 0x14b   :  { %v2385_v24 = vpop.eup %2384 }
 0x14c   :  { %v1717_v44 = vmul.f32 %v2385_v24, %v1715_v17 }
 0x14e   :  { %v1719_v42 = vsel %vm1718_vm8, %v1715_v17, %v1717_v44 }
 0x14f   :  { %v1722_v4 = vsel %vm1720_vm9, %v1721_v50, %v1719_v42 }
 0x150   :  { %2386 = vrcp.f32 %v1722_v4 }
 0x15a   :  { %v3051_v15 = vpop.eup %2386 }
 0x15b   :  { %5037 = vst [vmem:[#allocation18_spill] sm:$0xff] %v3051_v15  ;;  %v3054_v21 = vmul.f32 %v3051_v15, %v1713_v23  ;;  %v1727_v59 = vmul.f32 %v3051_v15, %v1672_v36  ;;  %v1731_v16 = vmul.f32 0.0, %v3051_v15 }
 0x15d   :  { %5038 = vst [vmem:[#allocation19_spill] sm:$0xff] %v3054_v21  ;;  %v1728_v49 = vmul.f32 0.0, %v3054_v21  ;;  %v1730_v20 = vmul.f32 %v3054_v21, %v1672_v36 }
 0x15f   :  { %v1729_v9 = vsub.f32 %v1727_v59, %v1728_v49  ;;  %v1732_v26 = vadd.f32 %v1731_v16, %v1730_v20 }
 0x161   :  { %v1758_v5 = vmul.f32 4.0, %v1729_v9  ;;  %v1769_v31 = vmul.f32 2.0, %v1729_v9 }
 0x163   :  { %v1759_v35 = vmul.f32 %v1758_v5, %v1729_v9  ;;  %v1770_v55 = vmul.f32 %v1769_v31, %v1755_v40 }
 0x165   :  { %v1760_v12 = vadd.f32 %v1759_v35, %v1757_v62 }
 0x167   :  { %2388 = vrsqrt.f32 %v1760_v12  ;;  %vm1763_vm10 = vcmp.eq.f32.partialorder %v1760_v12, inf  ;;  %v1766_v45 = vand.u32 2147483648, %v1760_v12  ;;  %vm1765_vm11 = vcmp.eq.f32.partialorder %v1760_v12, 0.0 }
 0x171   :  { %v2389_v41 = vpop.eup %2388 }
 0x172   :  { %v1762_v14 = vmul.f32 %v2389_v41, %v1760_v12 }
 0x174   :  { %v1764_v7 = vsel %vm1763_vm10, %v1760_v12, %v1762_v14  ;;  %vm50_vm10 = vcmp.gt.f32.partialorder %v2795_v38, 0.0 }
 0x175   :  { %v1767_v48 = vsel %vm1765_vm11, %v1766_v45, %v1764_v7 }
 0x176   :  { %v1768_v10 = vadd.f32 %v1767_v48, %v1756_v3 }
 0x178   :  { %v1771_v11 = vadd.f32 1e-30, %v1768_v10 }
 0x17a   :  { %2390 = vrcp.f32 %v1771_v11 }
 0x184   :  { %v2391_v28 = vpop.eup %2390 }
 0x185   :  { %v1773_v34 = vmul.f32 %v2391_v28, %v1770_v55 }
 0x187   :  { %v1774_v56 = vmul.f32 %v1773_v34, %v1773_v34  ;;  %v1786_v47 = vmul.f32 %v1773_v34, %v1729_v9 }
 0x189   :  { %v1775_v2 = vadd.f32 1.0, %v1774_v56  ;;  %v3063_v53 = vadd.f32 %v1786_v47, %v1674_v27 }
 0x18b   :  { %2392 = vrsqrt.f32 %v1775_v2  ;;  %vm1778_vm13 = vcmp.eq.f32.partialorder %v1775_v2, inf  ;;  %v1781_v57 = vand.u32 2147483648, %v1775_v2  ;;  %vm1780_vm14 = vcmp.eq.f32.partialorder %v1775_v2, 0.0 }
 0x18c   :  { %v1813_v50 = vsub.f32 %v3063_v53, %v1734_v6 }
 0x18e   :  { %v1817_v42 = vmul.f32 %v1813_v50, %v1813_v50  ;;  %v1816_v36 = vand.u32 2147483647, %v1813_v50  ;;  %vm1814_vm1 = vcmp.ge.f32.partialorder %v1813_v50, 0.0 }
 0x18f   :  { %v1815_v5 = vsel %vm1814_vm1, 1.0, %v4746_v54 }
 0x195   :  { %v2393_v58 = vpop.eup %2392 }
 0x196   :  { %v1777_v13 = vmul.f32 %v2393_v58, %v1775_v2 }
 0x198   :  { %v1779_v61 = vsel %vm1778_vm13, %v1775_v2, %v1777_v13 }
 0x199   :  { %v1782_v19 = vsel %vm1780_vm14, %v1781_v57, %v1779_v61 }
 0x19a   :  { %2394 = vrcp.f32 %v1782_v19 }
 0x1a4   :  { %v3065_v23 = vpop.eup %2394 }
 0x1a5   :  { %5039 = vst [vmem:[#allocation20_spill] sm:$0xff] %v3065_v23  ;;  %v3068_v32 = vmul.f32 %v3065_v23, %v1773_v34  ;;  %v1791_v17 = vmul.f32 %v3065_v23, %v1732_v26  ;;  %v1787_v40 = vmul.f32 0.0, %v3065_v23  ;;  %v1793_v34 = vsub.f32 %v3049_v30, %v1786_v47 }
 0x1a7   :  { %5040 = vst [vmem:[#allocation21_spill] sm:$0xff] %v3068_v32  ;;  %v1790_v24 = vmul.f32 0.0, %v3068_v32  ;;  %v1788_v55 = vmul.f32 %v3068_v32, %v1732_v26 }
 0x1a9   :  { %v1792_v44 = vadd.f32 %v1791_v17, %v1790_v24  ;;  %v1789_v28 = vsub.f32 %v1787_v40, %v1788_v55 }
 0x1ab   :  { %v1818_v4 = vmul.f32 4.0, %v1792_v44  ;;  %v1829_v62 = vmul.f32 2.0, %v1792_v44 }
 0x1ad   :  { %v1819_v33 = vmul.f32 %v1818_v4, %v1792_v44  ;;  %v1830_v35 = vmul.f32 %v1829_v62, %v1815_v5 }
 0x1af   :  { %v1820_v18 = vadd.f32 %v1819_v33, %v1817_v42 }
 0x1b1   :  { %2396 = vrsqrt.f32 %v1820_v18  ;;  %vm1823_vm15 = vcmp.eq.f32.partialorder %v1820_v18, inf  ;;  %v1826_v22 = vand.u32 2147483648, %v1820_v18  ;;  %vm1825_vm0 = vcmp.eq.f32.partialorder %v1820_v18, 0.0 }
 0x1bb   :  { %v2397_v43 = vpop.eup %2396 }
 0x1bc   :  { %v1822_v27 = vmul.f32 %v2397_v43, %v1820_v18 }
 0x1be   :  { %v1824_v59 = vsel %vm1823_vm15, %v1820_v18, %v1822_v27 }
 0x1bf   :  { %v1827_v49 = vsel %vm1825_vm0, %v1826_v22, %v1824_v59 }
 0x1c0   :  { %v1828_v63 = vadd.f32 %v1827_v49, %v1816_v36 }
 0x1c2   :  { %v1831_v9 = vadd.f32 1e-30, %v1828_v63 }
 0x1c4   :  { %2398 = vrcp.f32 %v1831_v9 }
 0x1ce   :  { %v2399_v12 = vpop.eup %2398 }
 0x1cf   :  { %v1833_v41 = vmul.f32 %v2399_v12, %v1830_v35  ;;  %v1346_v12 = vld [vmem:[%s4744_s1] sm:$0x3]  }
 0x1d0   :  { %1348 = vst [vmem:[#allocation5 + $0x3] sm:$0x3] %v1346_v12  }
 0x1d1   :  { %v1834_v45 = vmul.f32 %v1833_v41, %v1833_v41  ;;  %v1846_v3 = vmul.f32 %v1833_v41, %v1792_v44 }
 0x1d3   :  { %v1835_v14 = vadd.f32 1.0, %v1834_v45  ;;  %v1853_v56 = vsub.f32 %v1734_v6, %v1846_v3  ;;  %v3091_v63 = vadd.f32 %v1846_v3, %v3063_v53  ;;  %v2343_v53 = vld [vmem:[%s4744_s1 + $0x2] sm:$0x1]  ;;  %v2477_v45 = vld [vmem:[#allocation2 + $0x10] sm:$0x1]  ;;  %s2595_s1 = smov [#allocation5]  }
 0x1d4   :  { %vm48_vm8 = vcmp.gt.f32.partialorder %v2477_v45, 0.0  ;;  %1356 = vst [vmem:[#allocation5 + $0x5] sm:$0x1] %v2343_v53  ;;  %s2330_s26 = sshll.u32 %s2595_s1, 4  ;;  %s2331_s26 = int_to_ptr.vmem [resolvable:$true] %s2330_s26 }
 0x1d5   :  { %2400 = vrsqrt.f32 %v1835_v14  ;;  %vm1838_vm2 = vcmp.eq.f32.partialorder %v1835_v14, inf  ;;  %v1841_v48 = vand.u32 2147483648, %v1835_v14  ;;  %vm1840_vm3 = vcmp.eq.f32.partialorder %v1835_v14, 0.0  ;;  %s2564_s27 = scalar_lea.vmem %s2331_s26, 624  ;;  %s2568_s28 = scalar_lea.vmem %s2331_s26, 640 }
 0x1d6   :  { %v1873_v61 = vsub.f32 %v1853_v56, %v1793_v34  ;;  %p2565_p8 = scmp.ne.s32.totalorder %s2331_s26, %s2564_s27  ;;  %p2569_p9 = scmp.lt.s32.totalorder %s2331_s26, %s2331_s26 }
 0x1d7   :  { %p2570_p10 = scmp.lt.s32.totalorder %s2568_s28, %s2564_s27 }
 0x1d8   :  { %v1877_v20 = vmul.f32 %v1873_v61, %v1873_v61  ;;  %v1876_v47 = vand.u32 2147483647, %v1873_v61  ;;  %vm1874_vm6 = vcmp.ge.f32.partialorder %v1873_v61, 0.0 }
 0x1d9   :  { %v1875_v18 = vsel %vm1874_vm6, 1.0, %v4746_v54  ;;  %p2571_p11 = por %p2570_p10, %p2569_p9 }
 0x1db   :  { %p2572_p12 = pnand %p2571_p11, %p2565_p8 }
 0x1df   :  { %v2401_v7 = vpop.eup %2400 }
 0x1e0   :  { %v1837_v10 = vmul.f32 %v2401_v7, %v1835_v14 }
 0x1e2   :  { %v1839_v11 = vsel %vm1838_vm2, %v1835_v14, %v1837_v10 }
 0x1e3   :  { %v1842_v31 = vsel %vm1840_vm3, %v1841_v48, %v1839_v11  ;;  %v2478_v48 = vld [vmem:[#allocation2 + $0x1] sm:$0x1] }
 0x1e4   :  { %2402 = vrcp.f32 %v1842_v31  ;;  %vm126_vm13 = vcmp.gt.f32.partialorder %v2478_v48, 0.0  ;;  %v4748_v31 = vmov 0.0  }
 0x1e5   :  { %v3123_v55 = vsel %vm48_vm8, 1.0, %v4748_v31  ;;  %v3144_v61 = vsel %vm126_vm13, 1.0, %v4748_v31 }
 0x1e6   :  { %5045 = vst [vmem:[#allocation26_spill] sm:$0xff] %v3123_v55  ;;  %5048 = vst [vmem:[#allocation29_spill] sm:$0xff] %v3144_v61 }
 0x1ee   :  { %v3077_v2 = vpop.eup %2402 }
 0x1ef   :  { %5041 = vst [vmem:[#allocation22_spill] sm:$0xff] %v3077_v2  ;;  %v3080_v58 = vmul.f32 %v3077_v2, %v1833_v41  ;;  %v1847_v57 = vmul.f32 %v3077_v2, %v1789_v28  ;;  %v1851_v5 = vmul.f32 0.0, %v3077_v2  ;;  %v2476_v41 = vld [vmem:[#allocation2] sm:$0x1]  ;;  %v5054_v2 = vmov 0.0  }
 0x1f0   :  { %vm46_vm7 = vcmp.gt.f32.partialorder %v2476_v41, 0.0 }
 0x1f1   :  { %5042 = vst [vmem:[#allocation23_spill] sm:$0xff] %v3080_v58  ;;  %v1848_v13 = vmul.f32 0.0, %v3080_v58  ;;  %v1850_v62 = vmul.f32 %v3080_v58, %v1789_v28  ;;  %v3120_v40 = vsel %vm46_vm7, 1.0, %v4748_v31  ;;  %v3129_v28 = vsel %vm50_vm10, 1.0, %v4748_v31 }
 0x1f3   :  { %v1849_v19 = vsub.f32 %v1847_v57, %v1848_v13  ;;  %v3107_v3 = vadd.f32 %v1851_v5, %v1850_v62  ;;  %v3137_v57 = vmul.f32 %v3129_v28, %v3120_v40  ;;  %v3141_v13 = vmul.f32 %v3129_v28, %v3123_v55 }
 0x1f5   :  { %v1878_v16 = vmul.f32 4.0, %v1849_v19  ;;  %v1889_v33 = vmul.f32 2.0, %v1849_v19  ;;  %5046 = vst [vmem:[#allocation27_spill] sm:$0xff] %v3137_v57  ;;  %5047 = vst [vmem:[#allocation28_spill] sm:$0xff] %v3141_v13 }
 0x1f7   :  { %v1879_v17 = vmul.f32 %v1878_v16, %v1849_v19  ;;  %v1890_v43 = vmul.f32 %v1889_v33, %v1875_v18  ;;  %v136_v33 = vadd.f32 %v3144_v61, %v3120_v40 }
 0x1f9   :  { %v1880_v24 = vadd.f32 %v1879_v17, %v1877_v20  ;;  %v57_v17 = vmul.f32 %v2476_v41, %v3120_v40 }
 0x1fb   :  { %2404 = vrsqrt.f32 %v1880_v24  ;;  %vm1883_vm4 = vcmp.eq.f32.partialorder %v1880_v24, inf  ;;  %v1886_v30 = vand.u32 2147483648, %v1880_v24  ;;  %vm1885_vm5 = vcmp.eq.f32.partialorder %v1880_v24, 0.0 }
 0x205   :  { %v2405_v26 = vpop.eup %2404 }
 0x206   :  { %v1882_v6 = vmul.f32 %v2405_v26, %v1880_v24  ;;  %v71_v26 = vmul.f32 %v2476_v41, %v3129_v28 }
 0x208   :  { %v1884_v50 = vsel %vm1883_vm4, %v1880_v24, %v1882_v6  ;;  %v64_v24 = vmul.f32 %v2476_v41, %v3123_v55 }
 0x209   :  { %v1887_v44 = vsel %vm1885_vm5, %v1886_v30, %v1884_v50  ;;  %v137_v50 = vmul.f32 %v2478_v48, %v3144_v61 }
 0x20a   :  { %v1888_v42 = vadd.f32 %v1887_v44, %v1876_v47  ;;  %v85_v44 = vmul.f32 %v2476_v41, %v3137_v57 }
 0x20c   :  { %v1891_v4 = vadd.f32 1e-30, %v1888_v42  ;;  %v92_v42 = vmul.f32 %v2476_v41, %v3141_v13 }
 0x20e   :  { %2406 = vrcp.f32 %v1891_v4 }
 0x218   :  { %v2407_v22 = vpop.eup %2406 }
 0x219   :  { %v3085_v36 = vmul.f32 %v2407_v22, %v1890_v43 }
 0x21b   :  { %v1894_v27 = vmul.f32 %v3085_v36, %v3085_v36  ;;  %v1906_v59 = vmul.f32 %v3085_v36, %v1849_v19  ;;  %v2480_v19 = vld [vmem:[#allocation2 + $0x21] sm:$0x1] }
 0x21c   :  { %vm130_vm15 = vcmp.gt.f32.partialorder %v2480_v19, 0.0  ;;  %v2481_v19 = vld [vmem:[#allocation2 + $0x2] sm:$0x1] }
 0x21d   :  { %v1895_v49 = vadd.f32 1.0, %v1894_v27  ;;  %v3093_v9 = vsub.f32 %v1793_v34, %v1906_v59  ;;  %v3109_v14 = vadd.f32 %v1906_v59, %v1853_v56  ;;  %v3133_v34 = vmul.f32 %v3123_v55, %v3120_v40  ;;  %v2479_v56 = vld [vmem:[#allocation2 + $0x11] sm:$0x1] }
 0x21e   :  { %vm128_vm14 = vcmp.gt.f32.partialorder %v2479_v56, 0.0  ;;  %v3161_v4 = vsel %vm130_vm15, 1.0, %v4748_v31  ;;  %vm206_vm0 = vcmp.gt.f32.partialorder %v2481_v19, 0.0 }
 0x21f   :  { %5043 = vst [vmem:[#allocation24_spill] sm:$0xff] %v3093_v9  ;;  %2408 = vrsqrt.f32 %v1895_v49  ;;  %v3099_v35 = vsub.f32 %v3091_v63, %v3093_v9  ;;  %5044 = vst [vmem:[#allocation25_spill] sm:$0xff] %v3109_v14  ;;  %vm1898_vm11 = vcmp.eq.f32.partialorder %v1895_v49, inf  ;;  %vm1900_vm12 = vcmp.eq.f32.partialorder %v1895_v49, 0.0 }
 0x220   :  { %v1901_v7 = vand.u32 2147483648, %v1895_v49  ;;  %v3148_v16 = vmul.f32 %v3133_v34, %v3129_v28  ;;  %v78_v47 = vmul.f32 %v2476_v41, %v3133_v34  ;;  %v3155_v6 = vsel %vm128_vm14, 1.0, %v4748_v31  ;;  %5050 = vst [vmem:[#allocation31_spill] sm:$0xff] %v3161_v4 }
 0x221   :  { %vm1934_vm9 = vcmp.ge.f32.partialorder %v3099_v35, 0.0  ;;  %v3116_v11 = vmul.f32 %v3099_v35, %v3099_v35  ;;  %v3169_v22 = vmul.f32 %v3155_v6, %v3144_v61  ;;  %v3173_v27 = vmul.f32 %v3161_v4, %v3144_v61 }
 0x222   :  { %v3126_v38 = vsel %vm1934_vm9, 1.0, %v4746_v54  ;;  %5049 = vst [vmem:[#allocation30_spill] sm:$0xff] %v3148_v16  ;;  %v99_v43 = vmul.f32 %v2476_v41, %v3148_v16  ;;  %v143_v62 = vadd.f32 %v3155_v6, %v3123_v55  ;;  %v144_v5 = vmul.f32 %v2478_v48, %v3155_v6 }
 0x223   :  { %5051 = vst [vmem:[#allocation32_spill] sm:$0xff] %v3169_v22  ;;  %5052 = vst [vmem:[#allocation33_spill] sm:$0xff] %v3173_v27  ;;  %v151_v12 = vmul.f32 %v2478_v48, %v3161_v4  ;;  %v3182_v53 = vmul.f32 %v3161_v4, %v3155_v6  ;;  %v138_v41 = vadd.f32 %v137_v50, %v57_v17  ;;  %v2482_v17 = vld [vmem:[#allocation2 + $0x12] sm:$0x1]  ;;  %v2483_v50 = vld [vmem:[#allocation2 + $0x22] sm:$0x1] }
 0x224   :  { %v158_v45 = vmul.f32 %v2478_v48, %v3169_v22  ;;  %v3187_v56 = vmul.f32 %v3169_v22, %v3161_v4  ;;  %vm208_vm1 = vcmp.gt.f32.partialorder %v2482_v17, 0.0  ;;  %vm210_vm2 = vcmp.gt.f32.partialorder %v2483_v50, 0.0 }
 0x225   :  { %5053 = vst [vmem:[#allocation34_spill] sm:$0xff] %v3182_v53  ;;  %v172_v54 = vmul.f32 %v2478_v48, %v3182_v53  ;;  %v171_v58 = vadd.f32 %v3182_v53, %v3141_v13  ;;  %v3201_v23 = vsel %vm206_vm0, 1.0, %v5054_v2  ;;  %v3204_v32 = vsel %vm208_vm1, 1.0, %v5054_v2 }
 0x226   :  { %v179_v10 = vmul.f32 %v2478_v48, %v3187_v56  ;;  %v159_v31 = vadd.f32 %v158_v45, %v78_v47  ;;  %v3207_v17 = vsel %vm210_vm2, 1.0, %v5054_v2  ;;  %v223_v39 = vadd.f32 %v3204_v32, %v143_v62 }
 0x227   :  { %v3218_v47 = vmul.f32 %v3207_v17, %v3201_v23  ;;  %v3226_v15 = vmul.f32 %v3207_v17, %v3204_v32 }
 0x228   :  { %v180_v45 = vadd.f32 %v179_v10, %v99_v43 }
 0x229   :  { %v2409_v20 = vpop.eup %2408  ;;  %5056 = vst [vmem:[#allocation36_spill] sm:$0xff] %v3218_v47  ;;  %5057 = vst [vmem:[#allocation37_spill] sm:$0xff] %v3226_v15  ;;  %v245_v10 = vmul.f32 %v2481_v19, %v3218_v47  ;;  %v252_v8 = vmul.f32 %v2481_v19, %v3226_v15 }
 0x22a   :  { %v1897_v30 = vmul.f32 %v2409_v20, %v1895_v49  ;;  %v157_v20 = vadd.f32 %v3169_v22, %v3133_v34 }
 0x22c   :  { %v1899_v18 = vsel %vm1898_vm11, %v1895_v49, %v1897_v30  ;;  %v150_v49 = vadd.f32 %v3161_v4, %v3129_v28  ;;  %v164_v30 = vadd.f32 %v3173_v27, %v3137_v57 }
 0x22d   :  { %v1902_v59 = vsel %vm1900_vm12, %v1901_v7, %v1899_v18  ;;  %v165_v7 = vmul.f32 %v2478_v48, %v3173_v27  ;;  %v145_v18 = vadd.f32 %v144_v5, %v64_v24  ;;  %v3211_v24 = vmul.f32 %v3204_v32, %v3201_v23 }
 0x22e   :  { %2410 = vrcp.f32 %v1902_v59  ;;  %v152_v59 = vadd.f32 %v151_v12, %v71_v26  ;;  %v217_v48 = vmul.f32 %v2481_v19, %v3201_v23  ;;  %v178_v26 = vadd.f32 %v3187_v56, %v3148_v16 }
 0x22f   :  { %v166_v21 = vadd.f32 %v165_v7, %v85_v44  ;;  %5055 = vst [vmem:[#allocation35_spill] sm:$0xff] %v3211_v24  ;;  %v224_v5 = vmul.f32 %v2481_v19, %v3204_v32  ;;  %v231_v44 = vmul.f32 %v2481_v19, %v3207_v17  ;;  %v173_v12 = vadd.f32 %v172_v54, %v92_v42  ;;  %v2484_v42 = vld [vmem:[#allocation2 + $0x3] sm:$0x1] }
 0x230   :  { %v216_v7 = vadd.f32 %v3201_v23, %v136_v33  ;;  %v238_v50 = vmul.f32 %v2481_v19, %v3211_v24  ;;  %v3230_v29 = vmul.f32 %v3211_v24, %v3207_v17  ;;  %v230_v37 = vadd.f32 %v3207_v17, %v150_v49 }
 0x231   :  { %v218_v25 = vadd.f32 %v217_v48, %v138_v41  ;;  %v237_v54 = vadd.f32 %v3211_v24, %v157_v20  ;;  %vm286_vm3 = vcmp.gt.f32.partialorder %v2484_v42, 0.0  ;;  %v225_v43 = vadd.f32 %v224_v5, %v145_v18  ;;  %v3246_v20 = vld [vmem:[#allocation2 + $0x13] sm:$0x1] }
 0x232   :  { %5058 = vst [vmem:[#allocation38_spill] sm:$0xff] %v3230_v29  ;;  %v232_v60 = vadd.f32 %v231_v44, %v152_v59  ;;  %v244_v0 = vadd.f32 %v3218_v47, %v164_v30  ;;  %v239_v49 = vadd.f32 %v238_v50, %v159_v31  ;;  %5061 = vst [vmem:[#allocation41_spill] sm:$0xff] %v3246_v20  ;;  %vm288_vm4 = vcmp.gt.f32.partialorder %v3246_v20, 0.0  ;;  %v2486_v59 = vld [vmem:[#allocation2 + $0x23] sm:$0x1] }
 0x233   :  { %v251_v48 = vadd.f32 %v3226_v15, %v171_v58  ;;  %v259_v18 = vmul.f32 %v2481_v19, %v3230_v29  ;;  %v3252_v30 = vsel %vm286_vm3, 1.0, %v5054_v2  ;;  %vm290_vm5 = vcmp.gt.f32.partialorder %v2486_v59, 0.0 }
 0x234   :  { %5062 = vst [vmem:[#allocation42_spill] sm:$0xff] %v3252_v30  ;;  %v246_v5 = vadd.f32 %v245_v10, %v166_v21  ;;  %v258_v44 = vadd.f32 %v3230_v29, %v178_v26  ;;  %v297_v31 = vmul.f32 %v2484_v42, %v3252_v30  ;;  %v253_v58 = vadd.f32 %v252_v8, %v173_v12 }
 0x235   :  { %v3261_v19 = vsel %vm288_vm4, 1.0, %v5054_v2  ;;  %v3266_v59 = vsel %vm290_vm5, 1.0, %v5054_v2  ;;  %v260_v10 = vadd.f32 %v259_v18, %v180_v45  ;;  %v296_v12 = vadd.f32 %v3252_v30, %v216_v7 }
 0x236   :  { %5063 = vst [vmem:[#allocation43_spill] sm:$0xff] %v3261_v19  ;;  %5064 = vst [vmem:[#allocation44_spill] sm:$0xff] %v3266_v59  ;;  %v3270_v21 = vmul.f32 %v3261_v19, %v3252_v30  ;;  %v304_v26 = vmul.f32 %v2484_v42, %v3261_v19  ;;  %v3279_v8 = vmul.f32 %v3266_v59, %v3261_v19 }
 0x237   :  { %v303_v18 = vadd.f32 %v3261_v19, %v223_v39  ;;  %v310_v1 = vadd.f32 %v3266_v59, %v230_v37 }
 0x238   :  { %v3236_v33 = vpop.eup %2410  ;;  %5065 = vst [vmem:[#allocation45_spill] sm:$0xff] %v3270_v21  ;;  %5067 = vst [vmem:[#allocation47_spill] sm:$0xff] %v3279_v8  ;;  %v318_v52 = vmul.f32 %v2484_v42, %v3270_v21  ;;  %v317_v29 = vadd.f32 %v3270_v21, %v237_v54  ;;  %v331_v54 = vadd.f32 %v3279_v8, %v251_v48 }
 0x239   :  { %5059 = vst [vmem:[#allocation39_spill] sm:$0xff] %v3236_v33  ;;  %v3242_v62 = vmul.f32 %v3236_v33, %v3085_v36  ;;  %v1907_v41 = vmul.f32 %v3236_v33, %v3107_v3  ;;  %v1911_v46 = vmul.f32 0.0, %v3236_v33  ;;  %v311_v33 = vmul.f32 %v2484_v42, %v3266_v59 }
 0x23b   :  { %5060 = vst [vmem:[#allocation40_spill] sm:$0xff] %v3242_v62  ;;  %v1908_v36 = vmul.f32 0.0, %v3242_v62  ;;  %v1910_v50 = vmul.f32 %v3242_v62, %v3107_v3  ;;  %v3275_v3 = vmul.f32 %v3266_v59, %v3252_v30  ;;  %v298_v62 = vadd.f32 %v297_v31, %v218_v25  ;;  %v2487_v31 = vld [vmem:[#allocation2 + $0x4] sm:$0x1] }
 0x23c   :  { %v305_v30 = vadd.f32 %v304_v26, %v225_v43  ;;  %v332_v25 = vmul.f32 %v2484_v42, %v3279_v8  ;;  %vm366_vm6 = vcmp.gt.f32.partialorder %v2487_v31, 0.0  ;;  %v312_v37 = vadd.f32 %v311_v33, %v232_v60  ;;  %v3349_v8 = vld [vmem:[#allocation2 + $0x15] sm:$0x1] }
 0x23d   :  { %v3263_v9 = vsub.f32 %v1907_v41, %v1908_v36  ;;  %5066 = vst [vmem:[#allocation46_spill] sm:$0xff] %v3275_v3  ;;  %v3285_v36 = vmul.f32 %v3270_v21, %v3266_v59  ;;  %v3288_v45 = vadd.f32 %v1911_v46, %v1910_v50  ;;  %v325_v15 = vmul.f32 %v2484_v42, %v3275_v3  ;;  %v2489_v21 = vld [vmem:[#allocation2 + $0x24] sm:$0x1] }
 0x23e   :  { %v324_v50 = vadd.f32 %v3275_v3, %v244_v0  ;;  %v319_v43 = vadd.f32 %v318_v52, %v239_v49  ;;  %v3308_v26 = vsel %vm366_vm6, 1.0, %v5054_v2  ;;  %vm370_vm8 = vcmp.gt.f32.partialorder %v2489_v21, 0.0  ;;  %5078 = vst [vmem:[#allocation58_spill] sm:$0xff] %v3349_v8  ;;  %v2492_v3 = vld [vmem:[#allocation2 + $0x25] sm:$0x1] }
 0x23f   :  { %v1938_v41 = vmul.f32 4.0, %v3263_v9  ;;  %5068 = vst [vmem:[#allocation48_spill] sm:$0xff] %v3285_v36  ;;  %5069 = vst [vmem:[#allocation49_spill] sm:$0xff] %v3288_v45  ;;  %v1949_v7 = vmul.f32 2.0, %v3263_v9  ;;  %v339_v46 = vmul.f32 %v2484_v42, %v3285_v36  ;;  %v338_v60 = vadd.f32 %v3285_v36, %v258_v44  ;;  %v2490_v36 = vld [vmem:[#allocation2 + $0x5] sm:$0x1] }
 0x240   :  { %5071 = vst [vmem:[#allocation51_spill] sm:$0xff] %v3308_v26  ;;  %v377_v0 = vmul.f32 %v2487_v31, %v3308_v26  ;;  %v326_v42 = vadd.f32 %v325_v15, %v246_v5  ;;  %v333_v33 = vadd.f32 %v332_v25, %v253_v58  ;;  %v3321_v49 = vsel %vm370_vm8, 1.0, %v5054_v2 }
 0x241   :  { %v1939_v20 = vmul.f32 %v1938_v41, %v3263_v9  ;;  %v3303_v41 = vld [vmem:[#allocation2 + $0x14] sm:$0x1]  ;;  %5073 = vst [vmem:[#allocation53_spill] sm:$0xff] %v3321_v49  ;;  %v3331_v15 = vmul.f32 %v3321_v49, %v3308_v26  ;;  %vm446_vm11 = vcmp.gt.f32.partialorder %v2490_v36, 0.0  ;;  %vm448_vm12 = vcmp.gt.f32.partialorder %v3349_v8, 0.0 }
 0x242   :  { %5070 = vst [vmem:[#allocation50_spill] sm:$0xff] %v3303_v41  ;;  %vm368_vm7 = vcmp.gt.f32.partialorder %v3303_v41, 0.0  ;;  %vm450_vm13 = vcmp.gt.f32.partialorder %v2492_v3, 0.0  ;;  %v3360_v47 = vsel %vm448_vm12, 1.0, %v5054_v2 }
 0x243   :  { %v3300_v39 = vadd.f32 %v1939_v20, %v3116_v11  ;;  %v3312_v11 = vmul.f32 %v1949_v7, %v3126_v38  ;;  %v340_v20 = vadd.f32 %v339_v46, %v260_v10  ;;  %v3317_v52 = vsel %vm368_vm7, 1.0, %v5054_v2  ;;  %5075 = vst [vmem:[#allocation55_spill] sm:$0xff] %v3331_v15  ;;  %5080 = vst [vmem:[#allocation60_spill] sm:$0xff] %v3360_v47 }
 0x244   :  { %5072 = vst [vmem:[#allocation52_spill] sm:$0xff] %v3317_v52  ;;  %v3325_v48 = vmul.f32 %v3317_v52, %v3308_v26  ;;  %v376_v38 = vadd.f32 %v3308_v26, %v296_v12  ;;  %v3335_v5 = vmul.f32 %v3321_v49, %v3317_v52  ;;  %v384_v44 = vmul.f32 %v2487_v31, %v3317_v52 }
 0x245   :  { %2412 = vrsqrt.f32 %v3300_v39  ;;  %vm1943_vm9 = vcmp.eq.f32.partialorder %v3300_v39, inf  ;;  %vm1945_vm10 = vcmp.eq.f32.partialorder %v3300_v39, 0.0  ;;  %v1946_v58 = vand.u32 2147483648, %v3300_v39 }
 0x246   :  { %5074 = vst [vmem:[#allocation54_spill] sm:$0xff] %v3325_v48  ;;  %5076 = vst [vmem:[#allocation56_spill] sm:$0xff] %v3335_v5  ;;  %v3341_v21 = vmul.f32 %v3325_v48, %v3321_v49  ;;  %v378_v10 = vadd.f32 %v377_v0, %v298_v62  ;;  %v391_v12 = vmul.f32 %v2487_v31, %v3321_v49  ;;  %v3363_v3 = vsel %vm450_vm13, 1.0, %v5054_v2 }
 0x247   :  { %v383_v7 = vadd.f32 %v3317_v52, %v303_v18  ;;  %v398_v25 = vmul.f32 %v2487_v31, %v3325_v48  ;;  %v405_v46 = vmul.f32 %v2487_v31, %v3331_v15  ;;  %v412_v41 = vmul.f32 %v2487_v31, %v3335_v5  ;;  %5081 = vst [vmem:[#allocation61_spill] sm:$0xff] %v3363_v3 }
 0x248   :  { %5077 = vst [vmem:[#allocation57_spill] sm:$0xff] %v3341_v21  ;;  %v419_v26 = vmul.f32 %v2487_v31, %v3341_v21  ;;  %v385_v62 = vadd.f32 %v384_v44, %v305_v30  ;;  %v390_v0 = vadd.f32 %v3321_v49, %v310_v1  ;;  %v397_v18 = vadd.f32 %v3325_v48, %v317_v29 }
 0x249   :  { %v404_v52 = vadd.f32 %v3331_v15, %v324_v50  ;;  %v392_v59 = vadd.f32 %v391_v12, %v312_v37  ;;  %v411_v19 = vadd.f32 %v3335_v5, %v331_v54  ;;  %v3357_v31 = vsel %vm446_vm11, 1.0, %v5054_v2  ;;  %v2493_v15 = vld [vmem:[#allocation2 + $0x6] sm:$0x1] }
 0x24a   :  { %5079 = vst [vmem:[#allocation59_spill] sm:$0xff] %v3357_v31  ;;  %v399_v24 = vadd.f32 %v398_v25, %v319_v43  ;;  %v406_v8 = vadd.f32 %v405_v46, %v326_v42  ;;  %v3367_v1 = vmul.f32 %v3360_v47, %v3357_v31  ;;  %v413_v30 = vadd.f32 %v412_v41, %v333_v33 }
 0x24b   :  { %v418_v37 = vadd.f32 %v3341_v21, %v338_v60  ;;  %v420_v50 = vadd.f32 %v419_v26, %v340_v20  ;;  %v457_v54 = vmul.f32 %v2490_v36, %v3357_v31  ;;  %v3374_v43 = vmul.f32 %v3363_v3, %v3357_v31 }
 0x24c   :  { %5082 = vst [vmem:[#allocation62_spill] sm:$0xff] %v3367_v1  ;;  %v3378_v42 = vmul.f32 %v3363_v3, %v3360_v47  ;;  %v464_v12 = vmul.f32 %v2490_v36, %v3360_v47  ;;  %v3383_v41 = vmul.f32 %v3367_v1, %v3363_v3  ;;  %v456_v26 = vadd.f32 %v3357_v31, %v376_v38  ;;  %v3396_v38 = vld [vmem:[#allocation2 + $0x16] sm:$0x1] }
 0x24d   :  { %5083 = vst [vmem:[#allocation63_spill] sm:$0xff] %v3374_v43  ;;  %v463_v60 = vadd.f32 %v3360_v47, %v383_v7  ;;  %v470_v33 = vadd.f32 %v3363_v3, %v390_v0  ;;  %v471_v25 = vmul.f32 %v2490_v36, %v3363_v3  ;;  %v477_v46 = vadd.f32 %v3367_v1, %v397_v18 }
 0x24e   :  { %5084 = vst [vmem:[#allocation64_spill] sm:$0xff] %v3378_v42  ;;  %5085 = vst [vmem:[#allocation65_spill] sm:$0xff] %v3383_v41  ;;  %v458_v5 = vadd.f32 %v457_v54, %v378_v10  ;;  %vm526_vm14 = vcmp.gt.f32.partialorder %v2493_v15, 0.0  ;;  %vm528_vm15 = vcmp.gt.f32.partialorder %v3396_v38, 0.0  ;;  %v5087_v7 = vand.u32 2147483647, %v3099_v35 }
 0x24f   :  { %v2413_v29 = vpop.eup %2412  ;;  %5086 = vst [vmem:[#allocation66_spill] sm:$0xff] %v3396_v38  ;;  %v484_v3 = vadd.f32 %v3374_v43, %v404_v52  ;;  %v485_v18 = vmul.f32 %v2490_v36, %v3374_v43  ;;  %v2495_v10 = vld [vmem:[#allocation2 + $0x26] sm:$0x1]  ;;  %v3409_v38 = vsel %vm528_vm15, 1.0, %v5054_v2  ;;  %v491_v52 = vadd.f32 %v3378_v42, %v411_v19 }
 0x250   :  { %v1942_v44 = vmul.f32 %v2413_v29, %v3300_v39  ;;  %v478_v29 = vmul.f32 %v2490_v36, %v3367_v1  ;;  %v492_v1 = vmul.f32 %v2490_v36, %v3378_v42  ;;  %vm530_vm0 = vcmp.gt.f32.partialorder %v2495_v10, 0.0  ;;  %5089 = vst [vmem:[#allocation68_spill] sm:$0xff] %v3409_v38 }
 0x252   :  { %v1944_v20 = vsel %vm1943_vm9, %v3300_v39, %v1942_v44  ;;  %v465_v44 = vadd.f32 %v464_v12, %v385_v62  ;;  %v499_v39 = vmul.f32 %v2490_v36, %v3383_v41  ;;  %v498_v62 = vadd.f32 %v3383_v41, %v418_v37 }
 0x253   :  { %v1947_v21 = vsel %vm1945_vm10, %v1946_v58, %v1944_v20  ;;  %v3406_v58 = vsel %vm526_vm14, 1.0, %v5054_v2  ;;  %v472_v20 = vadd.f32 %v471_v25, %v392_v59  ;;  %v544_v12 = vmul.f32 %v2493_v15, %v3409_v38 }
 0x254   :  { %v1948_v0 = vadd.f32 %v1947_v21, %v5087_v7  ;;  %5088 = vst [vmem:[#allocation67_spill] sm:$0xff] %v3406_v58  ;;  %v537_v35 = vmul.f32 %v2493_v15, %v3406_v58  ;;  %v479_v21 = vadd.f32 %v478_v29, %v399_v24  ;;  %v486_v36 = vadd.f32 %v485_v18, %v406_v8 }
 0x255   :  { %v3416_v7 = vsel %vm530_vm0, 1.0, %v5054_v2  ;;  %v3420_v59 = vmul.f32 %v3409_v38, %v3406_v58  ;;  %v493_v25 = vadd.f32 %v492_v1, %v413_v30  ;;  %v536_v19 = vadd.f32 %v3406_v58, %v456_v26 }
 0x256   :  { %v1951_v54 = vadd.f32 1e-30, %v1948_v0  ;;  %5090 = vst [vmem:[#allocation69_spill] sm:$0xff] %v3416_v7  ;;  %v500_v0 = vadd.f32 %v499_v39, %v420_v50  ;;  %v3424_v24 = vmul.f32 %v3416_v7, %v3406_v58  ;;  %v3429_v37 = vmul.f32 %v3416_v7, %v3409_v38  ;;  %v2496_v50 = vld [vmem:[#allocation2 + $0x7] sm:$0x1] }
 0x257   :  { %5091 = vst [vmem:[#allocation70_spill] sm:$0xff] %v3420_v59  ;;  %v538_v8 = vadd.f32 %v537_v35, %v458_v5  ;;  %v543_v29 = vadd.f32 %v3409_v38, %v463_v60  ;;  %v551_v18 = vmul.f32 %v2493_v15, %v3416_v7  ;;  %v3435_v10 = vmul.f32 %v3420_v59, %v3416_v7  ;;  %v3441_v5 = vld [vmem:[#allocation2 + $0x17] sm:$0x1] }
 0x258   :  { %2414 = vrcp.f32 %v1951_v54  ;;  %5092 = vst [vmem:[#allocation71_spill] sm:$0xff] %v3424_v24  ;;  %5093 = vst [vmem:[#allocation72_spill] sm:$0xff] %v3429_v37  ;;  %v545_v1 = vadd.f32 %v544_v12, %v465_v44  ;;  %v550_v30 = vadd.f32 %v3416_v7, %v470_v33  ;;  %vm606_vm1 = vcmp.gt.f32.partialorder %v2496_v50, 0.0  ;;  %v2498_v12 = vld [vmem:[#allocation2 + $0x27] sm:$0x1] }
 0x259   :  { %5094 = vst [vmem:[#allocation73_spill] sm:$0xff] %v3435_v10  ;;  %v557_v26 = vadd.f32 %v3420_v59, %v477_v46  ;;  %v558_v39 = vmul.f32 %v2493_v15, %v3420_v59  ;;  %v565_v54 = vmul.f32 %v2493_v15, %v3424_v24  ;;  %5095 = vst [vmem:[#allocation74_spill] sm:$0xff] %v3441_v5  ;;  %vm608_vm2 = vcmp.gt.f32.partialorder %v3441_v5, 0.0 }
 0x25a   :  { %v564_v60 = vadd.f32 %v3424_v24, %v484_v3  ;;  %v572_v35 = vmul.f32 %v2493_v15, %v3429_v37  ;;  %v579_v44 = vmul.f32 %v2493_v15, %v3435_v10  ;;  %vm610_vm3 = vcmp.gt.f32.partialorder %v2498_v12, 0.0 }
 0x25b   :  { %v552_v33 = vadd.f32 %v551_v18, %v472_v20  ;;  %v571_v7 = vadd.f32 %v3429_v37, %v491_v52  ;;  %v3449_v46 = vsel %vm606_vm1, 1.0, %v5054_v2  ;;  %v3452_v59 = vsel %vm608_vm2, 1.0, %v5054_v2 }
 0x25c   :  { %5096 = vst [vmem:[#allocation75_spill] sm:$0xff] %v3449_v46  ;;  %5097 = vst [vmem:[#allocation76_spill] sm:$0xff] %v3452_v59  ;;  %v3455_v38 = vsel %vm610_vm3, 1.0, %v5054_v2  ;;  %v3459_v3 = vmul.f32 %v3452_v59, %v3449_v46  ;;  %v617_v15 = vmul.f32 %v2496_v50, %v3449_v46  ;;  %v624_v12 = vmul.f32 %v2496_v50, %v3452_v59 }
 0x25d   :  { %5098 = vst [vmem:[#allocation77_spill] sm:$0xff] %v3455_v38  ;;  %v559_v20 = vadd.f32 %v558_v39, %v479_v21  ;;  %v566_v18 = vadd.f32 %v565_v54, %v486_v36  ;;  %v578_v52 = vadd.f32 %v3435_v10, %v498_v62  ;;  %v3466_v5 = vmul.f32 %v3455_v38, %v3449_v46 }
 0x25e   :  { %5099 = vst [vmem:[#allocation78_spill] sm:$0xff] %v3459_v3  ;;  %v573_v37 = vadd.f32 %v572_v35, %v493_v25  ;;  %v580_v24 = vadd.f32 %v579_v44, %v500_v0  ;;  %v616_v58 = vadd.f32 %v3449_v46, %v536_v19  ;;  %v623_v41 = vadd.f32 %v3452_v59, %v543_v29  ;;  %v2499_v44 = vld [vmem:[#allocation2 + $0x8] sm:$0x1] }
 0x25f   :  { %5100 = vst [vmem:[#allocation79_spill] sm:$0xff] %v3466_v5  ;;  %v3472_v43 = vmul.f32 %v3455_v38, %v3452_v59  ;;  %v3476_v21 = vmul.f32 %v3459_v3, %v3455_v38  ;;  %v630_v62 = vadd.f32 %v3455_v38, %v550_v30  ;;  %v631_v36 = vmul.f32 %v2496_v50, %v3455_v38 }
 0x260   :  { %v618_v0 = vadd.f32 %v617_v15, %v538_v8  ;;  %v625_v19 = vadd.f32 %v624_v12, %v545_v1  ;;  %v637_v29 = vadd.f32 %v3459_v3, %v557_v26  ;;  %v638_v39 = vmul.f32 %v2496_v50, %v3459_v3 }
 0x261   :  { %5101 = vst [vmem:[#allocation80_spill] sm:$0xff] %v3472_v43  ;;  %5102 = vst [vmem:[#allocation81_spill] sm:$0xff] %v3476_v21  ;;  %v644_v54 = vadd.f32 %v3466_v5, %v564_v60  ;;  %v645_v35 = vmul.f32 %v2496_v50, %v3466_v5  ;;  %vm686_vm4 = vcmp.gt.f32.partialorder %v2499_v44, 0.0  ;;  %v632_v8 = vadd.f32 %v631_v36, %v552_v33  ;;  %v2501_v60 = vld [vmem:[#allocation2 + $0x28] sm:$0x1] }
 0x262   :  { %v2415_v42 = vpop.eup %2414  ;;  %v659_v1 = vmul.f32 %v2496_v50, %v3476_v21  ;;  %v3499_v26 = vsel %vm686_vm4, 1.0, %v5054_v2  ;;  %vm690_vm6 = vcmp.gt.f32.partialorder %v2501_v60, 0.0  ;;  %v651_v12 = vadd.f32 %v3472_v43, %v571_v7 }
 0x263   :  { %v3481_v25 = vmul.f32 %v2415_v42, %v3312_v11  ;;  %v652_v11 = vmul.f32 %v2496_v50, %v3472_v43  ;;  %v3494_v42 = vld [vmem:[#allocation2 + $0x18] sm:$0x1]  ;;  %5105 = vst [vmem:[#allocation84_spill] sm:$0xff] %v3499_v26  ;;  %v697_v5 = vmul.f32 %v2499_v44, %v3499_v26  ;;  %v639_v33 = vadd.f32 %v638_v39, %v559_v20  ;;  %v3552_v43 = vld [vmem:[#allocation2 + $0x19] sm:$0x1] }
 0x264   :  { %5104 = vst [vmem:[#allocation83_spill] sm:$0xff] %v3494_v42  ;;  %vm688_vm5 = vcmp.gt.f32.partialorder %v3494_v42, 0.0  ;;  %v646_v36 = vadd.f32 %v645_v35, %v566_v18  ;;  %v696_v20 = vadd.f32 %v3499_v26, %v616_v58  ;;  %5114 = vst [vmem:[#allocation93_spill] sm:$0xff] %v3552_v43  ;;  %vm768_vm10 = vcmp.gt.f32.partialorder %v3552_v43, 0.0 }
 0x265   :  { %v1954_v30 = vmul.f32 %v3481_v25, %v3481_v25  ;;  %v3491_v38 = vmul.f32 %v3481_v25, %v3263_v9  ;;  %v658_v9 = vadd.f32 %v3476_v21, %v578_v52  ;;  %v3511_v50 = vsel %vm688_vm5, 1.0, %v5054_v2  ;;  %v2502_v21 = vld [vmem:[#allocation2 + $0x9] sm:$0x1] }
 0x266   :  { %5107 = vst [vmem:[#allocation86_spill] sm:$0xff] %v3511_v50  ;;  %v653_v60 = vadd.f32 %v652_v11, %v573_v37  ;;  %v704_v7 = vmul.f32 %v2499_v44, %v3511_v50  ;;  %v660_v52 = vadd.f32 %v659_v1, %v580_v24  ;;  %v3520_v42 = vmul.f32 %v3511_v50, %v3499_v26 }
 0x267   :  { %5103 = vst [vmem:[#allocation82_spill] sm:$0xff] %v3491_v38  ;;  %v3501_v15 = vadd.f32 1.0, %v1954_v30  ;;  %v3508_v3 = vadd.f32 %v3491_v38, %v3091_v63  ;;  %v3515_v30 = vsel %vm690_vm6, 1.0, %v5054_v2  ;;  %v698_v18 = vadd.f32 %v697_v5, %v618_v0 }
 0x268   :  { %5108 = vst [vmem:[#allocation87_spill] sm:$0xff] %v3515_v30  ;;  %5109 = vst [vmem:[#allocation88_spill] sm:$0xff] %v3520_v42  ;;  %v3524_v63 = vmul.f32 %v3515_v30, %v3499_v26  ;;  %v3530_v37 = vmul.f32 %v3515_v30, %v3511_v50  ;;  %v703_v39 = vadd.f32 %v3511_v50, %v623_v41  ;;  %vm766_vm9 = vcmp.gt.f32.partialorder %v2502_v21, 0.0 }
 0x269   :  { %5106 = vst [vmem:[#allocation85_spill] sm:$0xff] %v3508_v3  ;;  %2416 = vrsqrt.f32 %v3501_v15  ;;  %vm1958_vm7 = vcmp.eq.f32.partialorder %v3501_v15, inf  ;;  %vm1960_vm8 = vcmp.eq.f32.partialorder %v3501_v15, 0.0  ;;  %v1961_v24 = vand.u32 2147483648, %v3501_v15 }
 0x26a   :  { %5110 = vst [vmem:[#allocation89_spill] sm:$0xff] %v3524_v63  ;;  %5111 = vst [vmem:[#allocation90_spill] sm:$0xff] %v3530_v37  ;;  %v3537_v35 = vsub.f32 %v3508_v3, %v3109_v14  ;;  %v711_v11 = vmul.f32 %v2499_v44, %v3515_v30  ;;  %v3542_v58 = vmul.f32 %v3520_v42, %v3515_v30 }
 0x26b   :  { %v705_v1 = vadd.f32 %v704_v7, %v625_v19  ;;  %v710_v38 = vadd.f32 %v3515_v30, %v630_v62  ;;  %v718_v5 = vmul.f32 %v2499_v44, %v3520_v42  ;;  %v717_v0 = vadd.f32 %v3520_v42, %v637_v29  ;;  %v2505_v30 = vld [vmem:[#allocation2 + $0xa] sm:$0x1] }
 0x26c   :  { %5112 = vst [vmem:[#allocation91_spill] sm:$0xff] %v3537_v35  ;;  %5113 = vst [vmem:[#allocation92_spill] sm:$0xff] %v3542_v58  ;;  %v724_v50 = vadd.f32 %v3524_v63, %v644_v54  ;;  %v725_v3 = vmul.f32 %v2499_v44, %v3524_v63  ;;  %v732_v14 = vmul.f32 %v2499_v44, %v3530_v37  ;;  %v3560_v29 = vsel %vm766_vm9, 1.0, %v5054_v2  ;;  %v2504_v54 = vld [vmem:[#allocation2 + $0x29] sm:$0x1] }
 0x26d   :  { %v739_v26 = vmul.f32 %v2499_v44, %v3542_v58  ;;  %v3557_v62 = vmul.f32 %v3537_v35, %v3537_v35  ;;  %v712_v19 = vadd.f32 %v711_v11, %v632_v8  ;;  %5115 = vst [vmem:[#allocation94_spill] sm:$0xff] %v3560_v29  ;;  %vm770_vm11 = vcmp.gt.f32.partialorder %v2504_v54, 0.0 }
 0x26e   :  { %v719_v7 = vadd.f32 %v718_v5, %v639_v33  ;;  %v731_v41 = vadd.f32 %v3530_v37, %v651_v12  ;;  %v3564_v44 = vsel %vm768_vm10, 1.0, %v5054_v2  ;;  %v777_v63 = vmul.f32 %v2502_v21, %v3560_v29 }
 0x26f   :  { %5116 = vst [vmem:[#allocation95_spill] sm:$0xff] %v3564_v44  ;;  %v726_v42 = vadd.f32 %v725_v3, %v646_v36  ;;  %v738_v43 = vadd.f32 %v3542_v58, %v658_v9  ;;  %v784_v35 = vmul.f32 %v2502_v21, %v3564_v44  ;;  %vm846_vm12 = vcmp.gt.f32.partialorder %v2505_v30, 0.0 }
 0x270   :  { %v733_v11 = vadd.f32 %v732_v14, %v653_v60  ;;  %v740_v59 = vadd.f32 %v739_v26, %v660_v52  ;;  %v3570_v54 = vsel %vm770_vm11, 1.0, %v5054_v2  ;;  %v3574_v12 = vmul.f32 %v3564_v44, %v3560_v29 }
 0x271   :  { %5117 = vst [vmem:[#allocation96_spill] sm:$0xff] %v3570_v54  ;;  %v3579_v3 = vmul.f32 %v3570_v54, %v3560_v29  ;;  %v3583_v9 = vmul.f32 %v3570_v54, %v3564_v44  ;;  %v776_v14 = vadd.f32 %v3560_v29, %v696_v20  ;;  %v778_v36 = vadd.f32 %v777_v63, %v698_v18 }
 0x272   :  { %5118 = vst [vmem:[#allocation97_spill] sm:$0xff] %v3574_v12  ;;  %v3588_v26 = vmul.f32 %v3574_v12, %v3570_v54  ;;  %v783_v60 = vadd.f32 %v3564_v44, %v703_v39  ;;  %v791_v52 = vmul.f32 %v2502_v21, %v3570_v54  ;;  %v790_v58 = vadd.f32 %v3570_v54, %v710_v38  ;;  %v3603_v44 = vld [vmem:[#allocation2 + $0x1a] sm:$0x1] }
 0x273   :  { %v2417_v8 = vpop.eup %2416  ;;  %5119 = vst [vmem:[#allocation98_spill] sm:$0xff] %v3579_v3  ;;  %5120 = vst [vmem:[#allocation99_spill] sm:$0xff] %v3583_v9  ;;  %v798_v37 = vmul.f32 %v2502_v21, %v3574_v12  ;;  %v797_v29 = vadd.f32 %v3574_v12, %v717_v0  ;;  %v805_v63 = vmul.f32 %v2502_v21, %v3579_v3  ;;  %vm848_vm13 = vcmp.gt.f32.partialorder %v3603_v44, 0.0  ;;  %v3644_v12 = vld [vmem:[#allocation2 + $0x1b] sm:$0x1] }
 0x274   :  { %v1957_v33 = vmul.f32 %v2417_v8, %v3501_v15  ;;  %5121 = vst [vmem:[#allocation100_spill] sm:$0xff] %v3588_v26  ;;  %v785_v8 = vadd.f32 %v784_v35, %v705_v1  ;;  %v812_v18 = vmul.f32 %v2502_v21, %v3583_v9  ;;  %v819_v39 = vmul.f32 %v2502_v21, %v3588_v26  ;;  %v2507_v35 = vld [vmem:[#allocation2 + $0x2a] sm:$0x1] }
 0x275   :  { %5122 = vst [vmem:[#allocation101_spill] sm:$0xff] %v3603_v44  ;;  %vm850_vm14 = vcmp.gt.f32.partialorder %v2507_v35, 0.0  ;;  %v792_v38 = vadd.f32 %v791_v52, %v712_v19  ;;  %v804_v1 = vadd.f32 %v3579_v3, %v724_v50  ;;  %v799_v0 = vadd.f32 %v798_v37, %v719_v7  ;;  %v2508_v3 = vld [vmem:[#allocation2 + $0xb] sm:$0x1]  ;;  %5130 = vst [vmem:[#allocation109_spill] sm:$0xff] %v3644_v12 }
 0x276   :  { %v1959_v5 = vsel %vm1958_vm7, %v3501_v15, %v1957_v33  ;;  %v811_v15 = vadd.f32 %v3583_v9, %v731_v41  ;;  %v818_v33 = vadd.f32 %v3588_v26, %v738_v43  ;;  %v3614_v21 = vsel %vm848_vm13, 1.0, %v5054_v2 }
 0x277   :  { %v1962_v20 = vsel %vm1960_vm8, %v1961_v24, %v1959_v5  ;;  %v3610_v24 = vsel %vm846_vm12, 1.0, %v5054_v2  ;;  %5124 = vst [vmem:[#allocation103_spill] sm:$0xff] %v3614_v21  ;;  %v3618_v35 = vsel %vm850_vm14, 1.0, %v5054_v2  ;;  %v864_v41 = vmul.f32 %v2505_v30, %v3614_v21 }
 0x278   :  { %2418 = vrcp.f32 %v1962_v20  ;;  %5123 = vst [vmem:[#allocation102_spill] sm:$0xff] %v3610_v24  ;;  %v857_v5 = vmul.f32 %v2505_v30, %v3610_v24  ;;  %v806_v20 = vadd.f32 %v805_v63, %v726_v42  ;;  %5125 = vst [vmem:[#allocation104_spill] sm:$0xff] %v3618_v35  ;;  %v3622_v50 = vmul.f32 %v3614_v21, %v3610_v24 }
 0x279   :  { %v813_v19 = vadd.f32 %v812_v18, %v733_v11  ;;  %v820_v52 = vadd.f32 %v819_v39, %v740_v59  ;;  %v3627_v43 = vmul.f32 %v3618_v35, %v3610_v24  ;;  %v871_v37 = vmul.f32 %v2505_v30, %v3618_v35 }
 0x27a   :  { %5126 = vst [vmem:[#allocation105_spill] sm:$0xff] %v3622_v50  ;;  %v3632_v42 = vmul.f32 %v3618_v35, %v3614_v21  ;;  %v856_v7 = vadd.f32 %v3610_v24, %v776_v14  ;;  %v863_v63 = vadd.f32 %v3614_v21, %v783_v60  ;;  %v878_v44 = vmul.f32 %v2505_v30, %v3622_v50  ;;  %v2510_v24 = vld [vmem:[#allocation2 + $0x2b] sm:$0x1] }
 0x27b   :  { %5127 = vst [vmem:[#allocation106_spill] sm:$0xff] %v3627_v43  ;;  %v3639_v11 = vmul.f32 %v3622_v50, %v3618_v35  ;;  %v858_v59 = vadd.f32 %v857_v5, %v778_v36  ;;  %v870_v18 = vadd.f32 %v3618_v35, %v790_v58  ;;  %v885_v39 = vmul.f32 %v2505_v30, %v3627_v43  ;;  %v3698_v35 = vld [vmem:[#allocation2 + $0x1c] sm:$0x1] }
 0x27c   :  { %5128 = vst [vmem:[#allocation107_spill] sm:$0xff] %v3632_v42  ;;  %v865_v26 = vadd.f32 %v864_v41, %v785_v8  ;;  %v877_v9 = vadd.f32 %v3622_v50, %v797_v29  ;;  %vm926_vm15 = vcmp.gt.f32.partialorder %v2508_v3, 0.0  ;;  %vm928_vm0 = vcmp.gt.f32.partialorder %v3644_v12, 0.0  ;;  %v2511_v50 = vld [vmem:[#allocation2 + $0xc] sm:$0x1]  ;;  %5141 = vst [vmem:[#allocation120_spill] sm:$0xff] %v3698_v35 }
 0x27d   :  { %5129 = vst [vmem:[#allocation108_spill] sm:$0xff] %v3639_v11  ;;  %v872_v14 = vadd.f32 %v871_v37, %v792_v38  ;;  %v892_v60 = vmul.f32 %v2505_v30, %v3632_v42  ;;  %v899_v21 = vmul.f32 %v2505_v30, %v3639_v11  ;;  %vm930_vm1 = vcmp.gt.f32.partialorder %v2510_v24, 0.0 }
 0x27e   :  { %v879_v36 = vadd.f32 %v878_v44, %v799_v0  ;;  %v884_v58 = vadd.f32 %v3627_v43, %v804_v1  ;;  %v891_v8 = vadd.f32 %v3632_v42, %v811_v15  ;;  %v3652_v29 = vsel %vm926_vm15, 1.0, %v5054_v2 }
 0x27f   :  { %5131 = vst [vmem:[#allocation110_spill] sm:$0xff] %v3652_v29  ;;  %v886_v41 = vadd.f32 %v885_v39, %v806_v20  ;;  %v898_v12 = vadd.f32 %v3639_v11, %v818_v33  ;;  %v3658_v38 = vsel %vm928_vm0, 1.0, %v5054_v2  ;;  %v937_v30 = vmul.f32 %v2508_v3, %v3652_v29 }
 0x280   :  { %5133 = vst [vmem:[#allocation112_spill] sm:$0xff] %v3658_v38  ;;  %v3668_v15 = vsel %vm930_vm1, 1.0, %v5054_v2  ;;  %v3672_v24 = vmul.f32 %v3658_v38, %v3652_v29  ;;  %v893_v0 = vadd.f32 %v892_v60, %v813_v19  ;;  %v900_v33 = vadd.f32 %v899_v21, %v820_v52 }
 0x281   :  { %5135 = vst [vmem:[#allocation114_spill] sm:$0xff] %v3668_v15  ;;  %v3676_v20 = vmul.f32 %v3668_v15, %v3652_v29  ;;  %v944_v37 = vmul.f32 %v2508_v3, %v3658_v38  ;;  %v3682_v39 = vmul.f32 %v3668_v15, %v3658_v38  ;;  %v938_v21 = vadd.f32 %v937_v30, %v858_v59 }
 0x282   :  { %v3654_v5 = vpop.eup %2418  ;;  %5136 = vst [vmem:[#allocation115_spill] sm:$0xff] %v3672_v24  ;;  %v3688_v19 = vmul.f32 %v3672_v24, %v3668_v15  ;;  %v943_v52 = vadd.f32 %v3658_v38, %v863_v63  ;;  %v958_v60 = vmul.f32 %v2508_v3, %v3672_v24  ;;  %v957_v42 = vadd.f32 %v3672_v24, %v877_v9 }
 0x283   :  { %5132 = vst [vmem:[#allocation111_spill] sm:$0xff] %v3654_v5  ;;  %v3663_v44 = vmul.f32 %v3654_v5, %v3481_v25  ;;  %v1971_v1 = vmul.f32 %v3654_v5, %v3288_v45  ;;  %5137 = vst [vmem:[#allocation116_spill] sm:$0xff] %v3676_v20  ;;  %v936_v45 = vadd.f32 %v3652_v29, %v856_v7  ;;  %vm1006_vm2 = vcmp.gt.f32.partialorder %v2511_v50, 0.0 }
 0x284   :  { %5138 = vst [vmem:[#allocation117_spill] sm:$0xff] %v3682_v39  ;;  %v951_v5 = vmul.f32 %v2508_v3, %v3668_v15  ;;  %5139 = vst [vmem:[#allocation118_spill] sm:$0xff] %v3688_v19  ;;  %v965_v43 = vmul.f32 %v2508_v3, %v3676_v20  ;;  %v945_v7 = vadd.f32 %v944_v37, %v865_v26  ;;  %vm1008_vm3 = vcmp.gt.f32.partialorder %v3698_v35, 0.0  ;;  %v2513_v37 = vld [vmem:[#allocation2 + $0x2c] sm:$0x1] }
 0x285   :  { %5134 = vst [vmem:[#allocation113_spill] sm:$0xff] %v3663_v44  ;;  %v1970_v25 = vmul.f32 0.0, %v3663_v44  ;;  %v950_v44 = vadd.f32 %v3668_v15, %v870_v18  ;;  %v964_v29 = vadd.f32 %v3676_v20, %v884_v58  ;;  %v971_v30 = vadd.f32 %v3682_v39, %v891_v8  ;;  %v3748_v15 = vld [vmem:[#allocation2 + $0x1d] sm:$0x1] }
 0x286   :  { %v952_v59 = vadd.f32 %v951_v5, %v872_v14  ;;  %v972_v18 = vmul.f32 %v2508_v3, %v3682_v39  ;;  %v978_v9 = vadd.f32 %v3688_v19, %v898_v12  ;;  %v979_v26 = vmul.f32 %v2508_v3, %v3688_v19  ;;  %v2514_v39 = vld [vmem:[#allocation2 + $0xd] sm:$0x1]  ;;  %5150 = vst [vmem:[#allocation129_spill] sm:$0xff] %v3748_v15 }
 0x287   :  { %v3692_v11 = vadd.f32 %v1971_v1, %v1970_v25  ;;  %v959_v1 = vadd.f32 %v958_v60, %v879_v36  ;;  %vm1010_vm4 = vcmp.gt.f32.partialorder %v2513_v37, 0.0  ;;  %v966_v25 = vadd.f32 %v965_v43, %v886_v41 }
 0x288   :  { %v3708_v20 = vsel %vm1006_vm2, 1.0, %v5054_v2  ;;  %v3711_v35 = vsel %vm1008_vm3, 1.0, %v5054_v2  ;;  %v3714_v14 = vsel %vm1010_vm4, 1.0, %v5054_v2  ;;  %v973_v43 = vadd.f32 %v972_v18, %v893_v0 }
 0x289   :  { %5140 = vst [vmem:[#allocation119_spill] sm:$0xff] %v3692_v11  ;;  %v1998_v63 = vmul.f32 4.0, %v3692_v11  ;;  %5142 = vst [vmem:[#allocation121_spill] sm:$0xff] %v3708_v20  ;;  %v3718_v36 = vmul.f32 %v3711_v35, %v3708_v20  ;;  %v1017_v12 = vmul.f32 %v2511_v50, %v3708_v20  ;;  %v1024_v3 = vmul.f32 %v2511_v50, %v3711_v35 }
 0x28a   :  { %5143 = vst [vmem:[#allocation122_spill] sm:$0xff] %v3711_v35  ;;  %5144 = vst [vmem:[#allocation123_spill] sm:$0xff] %v3714_v14  ;;  %v3727_v5 = vmul.f32 %v3714_v14, %v3708_v20  ;;  %v1031_v41 = vmul.f32 %v2511_v50, %v3714_v14  ;;  %v980_v60 = vadd.f32 %v979_v26, %v900_v33  ;;  %vm1086_vm5 = vcmp.gt.f32.partialorder %v2514_v39, 0.0 }
 0x28b   :  { %v1999_v58 = vmul.f32 %v1998_v63, %v3692_v11  ;;  %5145 = vst [vmem:[#allocation124_spill] sm:$0xff] %v3718_v36  ;;  %v1016_v63 = vadd.f32 %v3708_v20, %v936_v45  ;;  %v1023_v37 = vadd.f32 %v3711_v35, %v943_v52  ;;  %v1038_v11 = vmul.f32 %v2511_v50, %v3718_v36 }
 0x28c   :  { %5147 = vst [vmem:[#allocation126_spill] sm:$0xff] %v3727_v5  ;;  %v3740_v0 = vmul.f32 %v3718_v36, %v3714_v14  ;;  %v1045_v18 = vmul.f32 %v2511_v50, %v3727_v5  ;;  %v1025_v33 = vadd.f32 %v1024_v3, %v945_v7  ;;  %v1030_v45 = vadd.f32 %v3714_v14, %v950_v44 }
 0x28d   :  { %v3723_v8 = vadd.f32 %v1999_v58, %v3557_v62  ;;  %v3736_v62 = vmul.f32 %v3714_v14, %v3711_v35  ;;  %v1018_v58 = vadd.f32 %v1017_v12, %v938_v21  ;;  %v1037_v52 = vadd.f32 %v3718_v36, %v957_v42  ;;  %v2516_v21 = vld [vmem:[#allocation2 + $0x2d] sm:$0x1] }
 0x28e   :  { %5149 = vst [vmem:[#allocation128_spill] sm:$0xff] %v3740_v0  ;;  %v1032_v26 = vadd.f32 %v1031_v41, %v952_v59  ;;  %v1044_v20 = vadd.f32 %v3727_v5, %v964_v29  ;;  %v1039_v35 = vadd.f32 %v1038_v11, %v959_v1  ;;  %v1059_v24 = vmul.f32 %v2511_v50, %v3740_v0  ;;  %v2517_v1 = vld [vmem:[#allocation2 + $0xe] sm:$0x1] }
 0x28f   :  { %5146 = vst [vmem:[#allocation125_spill] sm:$0xff] %v3723_v8  ;;  %2420 = vrsqrt.f32 %v3723_v8  ;;  %5148 = vst [vmem:[#allocation127_spill] sm:$0xff] %v3736_v62  ;;  %v1052_v19 = vmul.f32 %v2511_v50, %v3736_v62  ;;  %vm1088_vm6 = vcmp.gt.f32.partialorder %v3748_v15, 0.0  ;;  %vm1090_vm7 = vcmp.gt.f32.partialorder %v2516_v21, 0.0 }
 0x290   :  { %v1046_v7 = vadd.f32 %v1045_v18, %v966_v25  ;;  %v1051_v44 = vadd.f32 %v3736_v62, %v971_v30  ;;  %v3753_v42 = vsel %vm1086_vm5, 1.0, %v5054_v2  ;;  %v3756_v29 = vsel %vm1088_vm6, 1.0, %v5054_v2 }
 0x291   :  { %v1058_v59 = vadd.f32 %v3740_v0, %v978_v9  ;;  %v3760_v11 = vsel %vm1090_vm7, 1.0, %v5054_v2  ;;  %v3764_v50 = vmul.f32 %v3756_v29, %v3753_v42  ;;  %vm1166_vm8 = vcmp.gt.f32.partialorder %v2517_v1, 0.0 }
 0x292   :  { %5151 = vst [vmem:[#allocation130_spill] sm:$0xff] %v3760_v11  ;;  %v1053_v25 = vadd.f32 %v1052_v19, %v973_v43  ;;  %v3768_v30 = vmul.f32 %v3760_v11, %v3753_v42  ;;  %v1097_v12 = vmul.f32 %v2514_v39, %v3753_v42  ;;  %v1104_v3 = vmul.f32 %v2514_v39, %v3756_v29 }
 0x293   :  { %5152 = vst [vmem:[#allocation131_spill] sm:$0xff] %v3764_v50  ;;  %v1060_v41 = vadd.f32 %v1059_v24, %v980_v60  ;;  %v3774_v9 = vmul.f32 %v3760_v11, %v3756_v29  ;;  %v1111_v18 = vmul.f32 %v2514_v39, %v3760_v11  ;;  %v1118_v21 = vmul.f32 %v2514_v39, %v3764_v50 }
 0x294   :  { %5153 = vst [vmem:[#allocation132_spill] sm:$0xff] %v3768_v30  ;;  %v3780_v19 = vmul.f32 %v3764_v50, %v3760_v11  ;;  %v1096_v43 = vadd.f32 %v3753_v42, %v1016_v63  ;;  %v1103_v15 = vadd.f32 %v3756_v29, %v1023_v37  ;;  %v1125_v0 = vmul.f32 %v2514_v39, %v3768_v30  ;;  %v3791_v37 = vld [vmem:[#allocation2 + $0x1e] sm:$0x1] }
 0x295   :  { %5154 = vst [vmem:[#allocation133_spill] sm:$0xff] %v3774_v9  ;;  %v1098_v62 = vadd.f32 %v1097_v12, %v1018_v58  ;;  %v1110_v24 = vadd.f32 %v3760_v11, %v1030_v45  ;;  %v1117_v60 = vadd.f32 %v3764_v50, %v1037_v52  ;;  %v1132_v5 = vmul.f32 %v2514_v39, %v3774_v9  ;;  %v3794_v58 = vld [vmem:[#allocation2 + $0x2e] sm:$0x1] }
 0x296   :  { %5155 = vst [vmem:[#allocation134_spill] sm:$0xff] %v3780_v19  ;;  %v1105_v14 = vadd.f32 %v1104_v3, %v1025_v33  ;;  %v1112_v38 = vadd.f32 %v1111_v18, %v1032_v26  ;;  %v1119_v54 = vadd.f32 %v1118_v21, %v1039_v35  ;;  %v1124_v46 = vadd.f32 %v3768_v30, %v1044_v20 }
 0x297   :  { %v1131_v10 = vadd.f32 %v3774_v9, %v1051_v44  ;;  %v1139_v63 = vmul.f32 %v2514_v39, %v3780_v19  ;;  %5156 = vst [vmem:[#allocation135_spill] sm:$0xff] %v3791_v37  ;;  %vm1168_vm9 = vcmp.gt.f32.partialorder %v3791_v37, 0.0  ;;  %5157 = vst [vmem:[#allocation136_spill] sm:$0xff] %v3794_v58  ;;  %vm1170_vm10 = vcmp.gt.f32.partialorder %v3794_v58, 0.0 }
 0x298   :  { %v1126_v45 = vadd.f32 %v1125_v0, %v1046_v7  ;;  %v1138_v52 = vadd.f32 %v3780_v19, %v1058_v59  ;;  %v3800_v35 = vsel %vm1166_vm8, 1.0, %v5054_v2  ;;  %v3803_v20 = vsel %vm1168_vm9, 1.0, %v5054_v2 }
 0x299   :  { %v2421_v36 = vpop.eup %2420  ;;  %5158 = vst [vmem:[#allocation137_spill] sm:$0xff] %v3800_v35  ;;  %v1133_v33 = vadd.f32 %v1132_v5, %v1053_v25  ;;  %v3809_v26 = vsel %vm1170_vm10, 1.0, %v5054_v2  ;;  %v3813_v44 = vmul.f32 %v3803_v20, %v3800_v35  ;;  %v1177_v59 = vmul.f32 %v2517_v1, %v3800_v35 }
 0x29a   :  { %v3806_v39 = vmul.f32 %v2421_v36, %v3723_v8  ;;  %v3817_v0 = vmul.f32 %v3809_v26, %v3800_v35  ;;  %v3821_v7 = vmul.f32 %v3809_v26, %v3803_v20  ;;  %v1184_v36 = vmul.f32 %v2517_v1, %v3803_v20 }
 0x29b   :  { %5160 = vst [vmem:[#allocation139_spill] sm:$0xff] %v3813_v44  ;;  %v1140_v5 = vadd.f32 %v1139_v63, %v1060_v41  ;;  %v3827_v25 = vmul.f32 %v3813_v44, %v3809_v26  ;;  %v1176_v12 = vadd.f32 %v3800_v35, %v1096_v43  ;;  %v1191_v3 = vmul.f32 %v2517_v1, %v3809_v26 }
 0x29c   :  { %5159 = vst [vmem:[#allocation138_spill] sm:$0xff] %v3806_v39  ;;  %5161 = vst [vmem:[#allocation140_spill] sm:$0xff] %v3817_v0  ;;  %v1178_v18 = vadd.f32 %v1177_v59, %v1098_v62  ;;  %v1183_v21 = vadd.f32 %v3803_v20, %v1103_v15  ;;  %v1190_v58 = vadd.f32 %v3809_v26, %v1110_v24  ;;  %v2520_v59 = vld [vmem:[#allocation2 + $0xf] sm:$0x1] }
 0x29d   :  { %v1198_v39 = vmul.f32 %v2517_v1, %v3813_v44  ;;  %v1185_v8 = vadd.f32 %v1184_v36, %v1105_v14  ;;  %v1192_v37 = vadd.f32 %v1191_v3, %v1112_v38  ;;  %v1197_v19 = vadd.f32 %v3813_v44, %v1117_v60  ;;  %v3844_v60 = vld [vmem:[#allocation2 + $0x1f] sm:$0x1] }
 0x29e   :  { %v1205_v41 = vmul.f32 %v2517_v1, %v3817_v0  ;;  %v1204_v9 = vadd.f32 %v3817_v0, %v1124_v46  ;;  %v1211_v43 = vadd.f32 %v3821_v7, %v1131_v10  ;;  %v1212_v35 = vmul.f32 %v2517_v1, %v3821_v7  ;;  %5163 = vst [vmem:[#allocation142_spill] sm:$0xff] %v3844_v60  ;;  %v3847_v46 = vld [vmem:[#allocation2 + $0x2f] sm:$0x1] }
 0x29f   :  { %v1199_v63 = vadd.f32 %v1198_v39, %v1119_v54  ;;  %v1218_v15 = vadd.f32 %v3827_v25, %v1138_v52  ;;  %v1219_v24 = vmul.f32 %v2517_v1, %v3827_v25  ;;  %vm1246_vm11 = vcmp.gt.f32.partialorder %v2520_v59, 0.0  ;;  %5164 = vst [vmem:[#allocation143_spill] sm:$0xff] %v3847_v46 }
 0x2a0   :  { %v1206_v62 = vadd.f32 %v1205_v41, %v1126_v45  ;;  %v1213_v14 = vadd.f32 %v1212_v35, %v1133_v33  ;;  %v3842_v38 = vsel %vm1246_vm11, 1.0, %v5054_v2  ;;  %vm1248_vm12 = vcmp.gt.f32.partialorder %v3844_v60, 0.0 }
 0x2a1   :  { %5162 = vst [vmem:[#allocation141_spill] sm:$0xff] %v3842_v38  ;;  %vm1250_vm13 = vcmp.gt.f32.partialorder %v3847_v46, 0.0  ;;  %v1220_v10 = vadd.f32 %v1219_v24, %v1140_v5  ;;  %v3851_v54 = vsel %vm1248_vm12, 1.0, %v5054_v2  ;;  %v3857_v45 = vadd.f32 %v3842_v38, %v1176_v12 }
 0x2a2   :  { %5165 = vst [vmem:[#allocation144_spill] sm:$0xff] %v3851_v54  ;;  %v3854_v1 = vsel %vm1250_vm13, 1.0, %v5054_v2  ;;  %v3861_v52 = vmul.f32 %v3851_v54, %v3842_v38  ;;  %v1257_v33 = vmul.f32 %v2520_v59, %v3842_v38  ;;  %v3873_v2 = vadd.f32 %v3851_v54, %v1183_v21 }
 0x2a3   :  { %5166 = vst [vmem:[#allocation145_spill] sm:$0xff] %v3854_v1  ;;  %5167 = vst [vmem:[#allocation146_spill] sm:$0xff] %v3857_v45  ;;  %v3865_v35 = vmul.f32 %v3854_v1, %v3842_v38  ;;  %v3869_v39 = vmul.f32 %v3854_v1, %v3851_v54  ;;  %v1264_v36 = vmul.f32 %v2520_v59, %v3851_v54 }
 0x2a4   :  { %5170 = vst [vmem:[#allocation149_spill] sm:$0xff] %v3873_v2  ;;  %v3877_v5 = vadd.f32 %v3854_v1, %v1190_v58  ;;  %v1271_v12 = vmul.f32 %v2520_v59, %v3854_v1  ;;  %v3882_v3 = vmul.f32 %v3861_v52, %v3854_v1  ;;  %v3884_v41 = vadd.f32 %v1257_v33, %v1178_v18 }
 0x2a5   :  { %5168 = vst [vmem:[#allocation147_spill] sm:$0xff] %v3865_v35  ;;  %5169 = vst [vmem:[#allocation148_spill] sm:$0xff] %v3869_v39  ;;  %v3887_v24 = vadd.f32 %v3861_v52, %v1197_v19  ;;  %v1278_v46 = vmul.f32 %v2520_v59, %v3861_v52  ;;  %v3890_v21 = vadd.f32 %v1264_v36, %v1185_v8 }
 0x2a6   :  { %5171 = vst [vmem:[#allocation150_spill] sm:$0xff] %v3877_v5  ;;  %5172 = vst [vmem:[#allocation151_spill] sm:$0xff] %v3882_v3  ;;  %v3892_v60 = vadd.f32 %v1271_v12, %v1192_v37  ;;  %v3895_v58 = vadd.f32 %v3865_v35, %v1204_v9  ;;  %v1285_v54 = vmul.f32 %v2520_v59, %v3865_v35  ;;  %v1369_v37 = vsub.f32 16.0, %v3857_v45 }
 0x2a7   :  { %5173 = vst [vmem:[#allocation152_spill] sm:$0xff] %v3884_v41  ;;  %5174 = vst [vmem:[#allocation153_spill] sm:$0xff] %v3887_v24  ;;  %v3898_v38 = vadd.f32 %v1278_v46, %v1199_v63  ;;  %v3901_v1 = vadd.f32 %v3869_v39, %v1211_v43  ;;  %v1292_v18 = vmul.f32 %v2520_v59, %v3869_v39  ;;  %v2523_v63 = vld [vmem:[#allocation2 + $0x10] sm:$0x1] }
 0x2a8   :  { %5175 = vst [vmem:[#allocation154_spill] sm:$0xff] %v3890_v21  ;;  %5176 = vst [vmem:[#allocation155_spill] sm:$0xff] %v3892_v60  ;;  %v3905_v19 = vadd.f32 %v3882_v3, %v1218_v15  ;;  %v3907_v33 = vadd.f32 %v1285_v54, %v1206_v62  ;;  %v1299_v8 = vmul.f32 %v2520_v59, %v3882_v3 }
 0x2a9   :  { %5177 = vst [vmem:[#allocation156_spill] sm:$0xff] %v3895_v58  ;;  %5178 = vst [vmem:[#allocation157_spill] sm:$0xff] %v3898_v38  ;;  %v1388_v9 = vsub.f32 %v2805_v51, %v3884_v41  ;;  %v3913_v36 = vadd.f32 %v1292_v18, %v1213_v14  ;;  %v59_v43 = vmul.f32 %v2523_v63, %v3120_v40  ;;  %v2524_v18 = vld [vmem:[#allocation2 + $0x11] sm:$0x1] }
 0x2aa   :  { %5179 = vst [vmem:[#allocation158_spill] sm:$0xff] %v3901_v1  ;;  %5180 = vst [vmem:[#allocation159_spill] sm:$0xff] %v3905_v19  ;;  %v66_v46 = vmul.f32 %v2523_v63, %v3123_v55  ;;  %v73_v12 = vmul.f32 %v2523_v63, %v3129_v28  ;;  %v3918_v15 = vadd.f32 %v1299_v8, %v1220_v10 }
 0x2ab   :  { %5181 = vst [vmem:[#allocation160_spill] sm:$0xff] %v3907_v33  ;;  %5182 = vst [vmem:[#allocation161_spill] sm:$0xff] %v3913_v36  ;;  %v1370_v62 = vsub.f32 %v1369_v37, %v3873_v2  ;;  %v1389_v59 = vsub.f32 %v1388_v9, %v3890_v21  ;;  %v80_v54 = vmul.f32 %v2523_v63, %v3133_v34 }
 0x2ac   :  { %5183 = vst [vmem:[#allocation162_spill] sm:$0xff] %v3918_v15  ;;  %v87_v45 = vmul.f32 %v2523_v63, %v3137_v57  ;;  %v94_v51 = vmul.f32 %v2523_v63, %v3141_v13  ;;  %v101_v14 = vmul.f32 %v2523_v63, %v3148_v16  ;;  %v139_v41 = vmul.f32 %v2524_v18, %v3144_v61 }
 0x2ad   :  { %v1371_v55 = vsub.f32 %v1370_v62, %v3877_v5  ;;  %v1390_v10 = vsub.f32 %v1389_v59, %v3892_v60  ;;  %v146_v8 = vmul.f32 %v2524_v18, %v3155_v6  ;;  %v153_v37 = vmul.f32 %v2524_v18, %v3161_v4 }
 0x2ae   :  { %v140_v9 = vadd.f32 %v139_v41, %v59_v43  ;;  %v160_v21 = vmul.f32 %v2524_v18, %v3169_v22  ;;  %v167_v2 = vmul.f32 %v2524_v18, %v3173_v27  ;;  %v174_v13 = vmul.f32 %v2524_v18, %v3182_v53  ;;  %v2525_v43 = vld [vmem:[#allocation2 + $0x12] sm:$0x1] }
 0x2af   :  { %v1372_v63 = vadd.f32 %v1371_v55, %v3887_v24  ;;  %v1391_v16 = vadd.f32 %v1390_v10, %v3898_v38  ;;  %v147_v61 = vadd.f32 %v146_v8, %v66_v46  ;;  %v154_v57 = vadd.f32 %v153_v37, %v73_v12  ;;  %v5184_v10 = vld [vmem:[#allocation35_spill] sm:$0xff]  ;;  %v5185_v12 = vld [vmem:[#allocation36_spill] sm:$0xff]  ;;  %v5186_v8 = vld [vmem:[#allocation37_spill] sm:$0xff] }
 0x2b0   :  { %v161_v62 = vadd.f32 %v160_v21, %v80_v54  ;;  %v168_v5 = vadd.f32 %v167_v2, %v87_v45  ;;  %v175_v59 = vadd.f32 %v174_v13, %v94_v51  ;;  %v181_v60 = vmul.f32 %v2524_v18, %v3187_v56  ;;  %v5189_v24 = vld [vmem:[#allocation41_spill] sm:$0xff] }
 0x2b1   :  { %v1373_v4 = vadd.f32 %v1372_v63, %v3895_v58  ;;  %v1392_v41 = vadd.f32 %v1391_v16, %v3907_v33  ;;  %v219_v27 = vmul.f32 %v2525_v43, %v3201_v23  ;;  %v226_v53 = vmul.f32 %v2525_v43, %v3204_v32  ;;  %v5187_v63 = vld [vmem:[#allocation38_spill] sm:$0xff] }
 0x2b2   :  { %v182_v22 = vadd.f32 %v181_v60, %v101_v14  ;;  %v233_v55 = vmul.f32 %v2525_v43, %v3207_v17  ;;  %v240_v46 = vmul.f32 %v2525_v43, %v5184_v10  ;;  %v247_v21 = vmul.f32 %v2525_v43, %v5185_v12  ;;  %v5188_v33 = vld [vmem:[#allocation42_spill] sm:$0xff] }
 0x2b3   :  { %v1374_v13 = vadd.f32 %v1373_v4, %v3901_v1  ;;  %v3946_v45 = vadd.f32 %v1392_v41, %v3913_v36  ;;  %v220_v2 = vadd.f32 %v219_v27, %v140_v9  ;;  %v227_v54 = vadd.f32 %v226_v53, %v147_v61  ;;  %v5190_v41 = vld [vmem:[#allocation43_spill] sm:$0xff]  ;;  %v5191_v61 = vld [vmem:[#allocation44_spill] sm:$0xff]  ;;  %v5192_v53 = vld [vmem:[#allocation45_spill] sm:$0xff] }
 0x2b4   :  { %v234_v16 = vadd.f32 %v233_v55, %v154_v57  ;;  %v241_v51 = vadd.f32 %v240_v46, %v161_v62  ;;  %v248_v18 = vadd.f32 %v247_v21, %v168_v5  ;;  %v254_v37 = vmul.f32 %v2525_v43, %v5186_v8  ;;  %v2526_v46 = vld [vmem:[#allocation2 + $0x13] sm:$0x1]  ;;  %v5193_v21 = vld [vmem:[#allocation46_spill] sm:$0xff] }
 0x2b5   :  { %v1375_v60 = vsub.f32 %v1374_v13, %v3905_v19  ;;  %v1394_v14 = vsub.f32 %v3946_v45, %v3918_v15  ;;  %v261_v38 = vmul.f32 %v2525_v43, %v5187_v63  ;;  %v299_v4 = vmul.f32 %v5189_v24, %v5188_v33  ;;  %v5194_v36 = vld [vmem:[#allocation47_spill] sm:$0xff]  ;;  %v5195_v19 = vld [vmem:[#allocation48_spill] sm:$0xff] }
 0x2b6   :  { %v255_v1 = vadd.f32 %v254_v37, %v175_v59  ;;  %v306_v27 = vmul.f32 %v5189_v24, %v5190_v41  ;;  %v313_v57 = vmul.f32 %v5189_v24, %v5191_v61  ;;  %v320_v5 = vmul.f32 %v5189_v24, %v5192_v53  ;;  %v5196_v41 = vld [vmem:[#allocation51_spill] sm:$0xff]  ;;  %v5197_v61 = vld [vmem:[#allocation50_spill] sm:$0xff]  ;;  %v5198_v24 = vld [vmem:[#allocation52_spill] sm:$0xff] }
 0x2b7   :  { %v1433_v9 = vmax.f32 %v1375_v60, 1.0  ;;  %v262_v62 = vadd.f32 %v261_v38, %v182_v22  ;;  %v300_v55 = vadd.f32 %v299_v4, %v220_v2  ;;  %v327_v13 = vmul.f32 %v2526_v46, %v5193_v21  ;;  %v5200_v60 = vld [vmem:[#allocation56_spill] sm:$0xff] }
 0x2b8   :  { %v307_v43 = vadd.f32 %v306_v27, %v227_v54  ;;  %v314_v45 = vadd.f32 %v313_v57, %v234_v16  ;;  %v321_v15 = vadd.f32 %v320_v5, %v241_v51  ;;  %v334_v59 = vmul.f32 %v2526_v46, %v5194_v36  ;;  %v5199_v51 = vld [vmem:[#allocation55_spill] sm:$0xff]  ;;  %v5201_v5 = vld [vmem:[#allocation57_spill] sm:$0xff] }
 0x2b9   :  { %2422 = vrcp.f32 %v1433_v9  ;;  %v328_v37 = vadd.f32 %v327_v13, %v248_v18  ;;  %v341_v58 = vmul.f32 %v2526_v46, %v5195_v19  ;;  %v379_v33 = vmul.f32 %v5197_v61, %v5196_v41 }
 0x2ba   :  { %v335_v63 = vadd.f32 %v334_v59, %v255_v1  ;;  %v386_v22 = vmul.f32 %v5197_v61, %v5198_v24  ;;  %v393_v38 = vmul.f32 %v5197_v61, %v3321_v49  ;;  %v400_v2 = vmul.f32 %v5197_v61, %v3325_v48  ;;  %v5202_v59 = vld [vmem:[#allocation58_spill] sm:$0xff]  ;;  %v5228_v48 = vld [vmem:[#allocation88_spill] sm:$0xff] }
 0x2bb   :  { %v342_v54 = vadd.f32 %v341_v58, %v262_v62  ;;  %v380_v16 = vadd.f32 %v379_v33, %v300_v55  ;;  %v407_v18 = vmul.f32 %v5197_v61, %v5199_v51  ;;  %v414_v4 = vmul.f32 %v5197_v61, %v5200_v60  ;;  %v5203_v62 = vld [vmem:[#allocation61_spill] sm:$0xff]  ;;  %v5204_v51 = vld [vmem:[#allocation62_spill] sm:$0xff] }
 0x2bc   :  { %v387_v27 = vadd.f32 %v386_v22, %v307_v43  ;;  %v394_v57 = vadd.f32 %v393_v38, %v314_v45  ;;  %v401_v1 = vadd.f32 %v400_v2, %v321_v15  ;;  %v421_v9 = vmul.f32 %v5197_v61, %v5201_v5  ;;  %v5205_v45 = vld [vmem:[#allocation63_spill] sm:$0xff]  ;;  %v5207_v38 = vld [vmem:[#allocation65_spill] sm:$0xff] }
 0x2bd   :  { %v408_v46 = vadd.f32 %v407_v18, %v328_v37  ;;  %v415_v13 = vadd.f32 %v414_v4, %v335_v63  ;;  %v459_v49 = vmul.f32 %v5202_v59, %v3357_v31  ;;  %v466_v58 = vmul.f32 %v5202_v59, %v3360_v47  ;;  %v5206_v37 = vld [vmem:[#allocation64_spill] sm:$0xff]  ;;  %v5209_v47 = vld [vmem:[#allocation66_spill] sm:$0xff] }
 0x2be   :  { %v422_v33 = vadd.f32 %v421_v9, %v342_v54  ;;  %v473_v55 = vmul.f32 %v5202_v59, %v5203_v62  ;;  %v480_v43 = vmul.f32 %v5202_v59, %v5204_v51  ;;  %v487_v15 = vmul.f32 %v5202_v59, %v5205_v45  ;;  %v5208_v9 = vld [vmem:[#allocation67_spill] sm:$0xff]  ;;  %v5210_v51 = vld [vmem:[#allocation68_spill] sm:$0xff]  ;;  %v5211_v45 = vld [vmem:[#allocation69_spill] sm:$0xff] }
 0x2bf   :  { %v460_v22 = vadd.f32 %v459_v49, %v380_v16  ;;  %v467_v61 = vadd.f32 %v466_v58, %v387_v27  ;;  %v494_v63 = vmul.f32 %v5202_v59, %v5206_v37  ;;  %v501_v2 = vmul.f32 %v5202_v59, %v5207_v38  ;;  %v5212_v27 = vld [vmem:[#allocation70_spill] sm:$0xff]  ;;  %v5213_v37 = vld [vmem:[#allocation71_spill] sm:$0xff]  ;;  %v5219_v38 = vld [vmem:[#allocation77_spill] sm:$0xff] }
 0x2c0   :  { %v474_v18 = vadd.f32 %v473_v55, %v394_v57  ;;  %v481_v4 = vadd.f32 %v480_v43, %v401_v1  ;;  %v488_v54 = vadd.f32 %v487_v15, %v408_v46  ;;  %v539_v62 = vmul.f32 %v5209_v47, %v5208_v9  ;;  %v5214_v1 = vld [vmem:[#allocation72_spill] sm:$0xff]  ;;  %v5215_v55 = vld [vmem:[#allocation73_spill] sm:$0xff]  ;;  %v5216_v15 = vld [vmem:[#allocation75_spill] sm:$0xff] }
 0x2c1   :  { %v495_v31 = vadd.f32 %v494_v63, %v415_v13  ;;  %v502_v5 = vadd.f32 %v501_v2, %v422_v33  ;;  %v546_v60 = vmul.f32 %v5209_v47, %v5210_v51  ;;  %v553_v49 = vmul.f32 %v5209_v47, %v5211_v45  ;;  %v5217_v63 = vld [vmem:[#allocation74_spill] sm:$0xff]  ;;  %v5218_v9 = vld [vmem:[#allocation76_spill] sm:$0xff] }
 0x2c2   :  { %v540_v16 = vadd.f32 %v539_v62, %v460_v22  ;;  %v560_v58 = vmul.f32 %v5209_v47, %v5212_v27  ;;  %v567_v57 = vmul.f32 %v5209_v47, %v5213_v37  ;;  %v574_v46 = vmul.f32 %v5209_v47, %v5214_v1 }
 0x2c3   :  { %v4004_v59 = vpop.eup %2422  ;;  %v547_v13 = vadd.f32 %v546_v60, %v467_v61  ;;  %v554_v33 = vadd.f32 %v553_v49, %v474_v18  ;;  %v581_v43 = vmul.f32 %v5209_v47, %v5215_v55  ;;  %v619_v2 = vmul.f32 %v5217_v63, %v5216_v15  ;;  %v5220_v61 = vld [vmem:[#allocation78_spill] sm:$0xff]  ;;  %v5221_v18 = vld [vmem:[#allocation79_spill] sm:$0xff]  ;;  %v5222_v15 = vld [vmem:[#allocation80_spill] sm:$0xff] }
 0x2c4   :  { %v1436_v62 = vmul.f32 %v4004_v59, %v1394_v14  ;;  %v561_v22 = vadd.f32 %v560_v58, %v481_v4  ;;  %v568_v27 = vadd.f32 %v567_v57, %v488_v54  ;;  %v575_v45 = vadd.f32 %v574_v46, %v495_v31  ;;  %v5223_v4 = vld [vmem:[#allocation81_spill] sm:$0xff]  ;;  %v5225_v58 = vld [vmem:[#allocation83_spill] sm:$0xff]  ;;  %v5226_v46 = vld [vmem:[#allocation86_spill] sm:$0xff] }
 0x2c5   :  { %v582_v51 = vadd.f32 %v581_v43, %v502_v5  ;;  %v620_v37 = vadd.f32 %v619_v2, %v540_v16  ;;  %v626_v1 = vmul.f32 %v5217_v63, %v5218_v9  ;;  %v633_v60 = vmul.f32 %v5217_v63, %v5219_v38  ;;  %v5224_v16 = vld [vmem:[#allocation84_spill] sm:$0xff]  ;;  %v5227_v55 = vld [vmem:[#allocation87_spill] sm:$0xff] }
 0x2c6   :  { %1438 = vst [vmem:[#allocation5 + $0x6] sm:$0x1] %v1436_v62  ;;  %v640_v47 = vmul.f32 %v5217_v63, %v5220_v61  ;;  %v647_v49 = vmul.f32 %v5217_v63, %v5221_v18  ;;  %v654_v14 = vmul.f32 %v5217_v63, %v5222_v15  ;;  %v661_v31 = vmul.f32 %v5217_v63, %v5223_v4  ;;  %v5250_v4 = vld [vmem:[#allocation112_spill] sm:$0xff] }
 0x2c7   :  { %v627_v5 = vadd.f32 %v626_v1, %v547_v13  ;;  %v634_v54 = vadd.f32 %v633_v60, %v554_v33  ;;  %v699_v57 = vmul.f32 %v5225_v58, %v5224_v16  ;;  %v706_v43 = vmul.f32 %v5225_v58, %v5226_v46  ;;  %v5229_v1 = vld [vmem:[#allocation89_spill] sm:$0xff]  ;;  %v5230_v33 = vld [vmem:[#allocation90_spill] sm:$0xff]  ;;  %v5231_v16 = vld [vmem:[#allocation92_spill] sm:$0xff] }
 0x2c8   :  { %v641_v2 = vadd.f32 %v640_v47, %v561_v22  ;;  %v648_v62 = vadd.f32 %v647_v49, %v568_v27  ;;  %v655_v61 = vadd.f32 %v654_v14, %v575_v45  ;;  %v662_v38 = vadd.f32 %v661_v31, %v582_v51  ;;  %v5232_v27 = vld [vmem:[#allocation94_spill] sm:$0xff]  ;;  %v5233_v45 = vld [vmem:[#allocation93_spill] sm:$0xff]  ;;  %v5234_v49 = vld [vmem:[#allocation95_spill] sm:$0xff] }
 0x2c9   :  { %v700_v9 = vadd.f32 %v699_v57, %v620_v37  ;;  %v707_v18 = vadd.f32 %v706_v43, %v627_v5  ;;  %v713_v15 = vmul.f32 %v5225_v58, %v5227_v55  ;;  %v720_v63 = vmul.f32 %v5225_v58, %v5228_v48  ;;  %v5235_v31 = vld [vmem:[#allocation96_spill] sm:$0xff]  ;;  %v5236_v46 = vld [vmem:[#allocation97_spill] sm:$0xff] }
 0x2ca   :  { %v727_v13 = vmul.f32 %v5225_v58, %v5229_v1  ;;  %v734_v60 = vmul.f32 %v5225_v58, %v5230_v33  ;;  %v741_v22 = vmul.f32 %v5225_v58, %v5231_v16  ;;  %v779_v51 = vmul.f32 %v5233_v45, %v5232_v27  ;;  %v5237_v16 = vld [vmem:[#allocation98_spill] sm:$0xff] }
 0x2cb   :  { %v714_v37 = vadd.f32 %v713_v15, %v634_v54  ;;  %v721_v47 = vadd.f32 %v720_v63, %v641_v2  ;;  %v786_v14 = vmul.f32 %v5233_v45, %v5234_v49  ;;  %v793_v5 = vmul.f32 %v5233_v45, %v5235_v31  ;;  %v5238_v15 = vld [vmem:[#allocation99_spill] sm:$0xff]  ;;  %v5239_v2 = vld [vmem:[#allocation100_spill] sm:$0xff]  ;;  %v5240_v49 = vld [vmem:[#allocation102_spill] sm:$0xff] }
 0x2cc   :  { %v728_v57 = vadd.f32 %v727_v13, %v648_v62  ;;  %v735_v43 = vadd.f32 %v734_v60, %v655_v61  ;;  %v742_v1 = vadd.f32 %v741_v22, %v662_v38  ;;  %v780_v48 = vadd.f32 %v779_v51, %v700_v9  ;;  %v5241_v31 = vld [vmem:[#allocation101_spill] sm:$0xff]  ;;  %v5242_v61 = vld [vmem:[#allocation103_spill] sm:$0xff]  ;;  %v5243_v13 = vld [vmem:[#allocation104_spill] sm:$0xff] }
 0x2cd   :  { %v787_v55 = vadd.f32 %v786_v14, %v707_v18  ;;  %v794_v33 = vadd.f32 %v793_v5, %v714_v37  ;;  %v800_v58 = vmul.f32 %v5233_v45, %v5236_v46  ;;  %v807_v27 = vmul.f32 %v5233_v45, %v5237_v16  ;;  %v5244_v22 = vld [vmem:[#allocation105_spill] sm:$0xff]  ;;  %v5246_v46 = vld [vmem:[#allocation107_spill] sm:$0xff] }
 0x2ce   :  { %v814_v54 = vmul.f32 %v5233_v45, %v5238_v15  ;;  %v821_v63 = vmul.f32 %v5233_v45, %v5239_v2  ;;  %v859_v62 = vmul.f32 %v5241_v31, %v5240_v49  ;;  %v866_v38 = vmul.f32 %v5241_v31, %v5242_v61  ;;  %v5245_v2 = vld [vmem:[#allocation106_spill] sm:$0xff] }
 0x2cf   :  { %v801_v9 = vadd.f32 %v800_v58, %v721_v47  ;;  %v808_v18 = vadd.f32 %v807_v27, %v728_v57  ;;  %v873_v60 = vmul.f32 %v5241_v31, %v5243_v13  ;;  %v880_v51 = vmul.f32 %v5241_v31, %v5244_v22  ;;  %v5247_v47 = vld [vmem:[#allocation108_spill] sm:$0xff]  ;;  %v5248_v57 = vld [vmem:[#allocation110_spill] sm:$0xff]  ;;  %v5249_v58 = vld [vmem:[#allocation109_spill] sm:$0xff] }
 0x2d0   :  { %v815_v37 = vadd.f32 %v814_v54, %v735_v43  ;;  %v822_v14 = vadd.f32 %v821_v63, %v742_v1  ;;  %v860_v5 = vadd.f32 %v859_v62, %v780_v48  ;;  %v867_v15 = vadd.f32 %v866_v38, %v787_v55  ;;  %v5251_v1 = vld [vmem:[#allocation114_spill] sm:$0xff]  ;;  %v5252_v54 = vld [vmem:[#allocation115_spill] sm:$0xff]  ;;  %v5253_v62 = vld [vmem:[#allocation116_spill] sm:$0xff] }
 0x2d1   :  { %v874_v16 = vadd.f32 %v873_v60, %v794_v33  ;;  %v881_v45 = vadd.f32 %v880_v51, %v801_v9  ;;  %v887_v49 = vmul.f32 %v5241_v31, %v5245_v2  ;;  %v894_v61 = vmul.f32 %v5241_v31, %v5246_v46  ;;  %v5254_v46 = vld [vmem:[#allocation117_spill] sm:$0xff]  ;;  %v5255_v2 = vld [vmem:[#allocation118_spill] sm:$0xff]  ;;  %v5259_v22 = vld [vmem:[#allocation123_spill] sm:$0xff] }
 0x2d2   :  { %v901_v27 = vmul.f32 %v5241_v31, %v5247_v47  ;;  %v939_v13 = vmul.f32 %v5249_v58, %v5248_v57  ;;  %v946_v43 = vmul.f32 %v5249_v58, %v5250_v4  ;;  %v953_v48 = vmul.f32 %v5249_v58, %v5251_v1 }
 0x2d3   :  { %v888_v55 = vadd.f32 %v887_v49, %v808_v18  ;;  %v895_v33 = vadd.f32 %v894_v61, %v815_v37  ;;  %v960_v63 = vmul.f32 %v5249_v58, %v5252_v54  ;;  %v967_v38 = vmul.f32 %v5249_v58, %v5253_v62  ;;  %v5256_v49 = vld [vmem:[#allocation121_spill] sm:$0xff]  ;;  %v5257_v61 = vld [vmem:[#allocation120_spill] sm:$0xff]  ;;  %v5258_v37 = vld [vmem:[#allocation122_spill] sm:$0xff] }
 0x2d4   :  { %v902_v9 = vadd.f32 %v901_v27, %v822_v14  ;;  %v940_v60 = vadd.f32 %v939_v13, %v860_v5  ;;  %v947_v31 = vadd.f32 %v946_v43, %v867_v15  ;;  %v954_v51 = vadd.f32 %v953_v48, %v874_v16  ;;  %v5260_v13 = vld [vmem:[#allocation124_spill] sm:$0xff]  ;;  %v5262_v43 = vld [vmem:[#allocation127_spill] sm:$0xff] }
 0x2d5   :  { %v961_v47 = vadd.f32 %v960_v63, %v881_v45  ;;  %v968_v57 = vadd.f32 %v967_v38, %v888_v55  ;;  %v974_v4 = vmul.f32 %v5249_v58, %v5254_v46  ;;  %v981_v1 = vmul.f32 %v5249_v58, %v5255_v2  ;;  %v5261_v45 = vld [vmem:[#allocation126_spill] sm:$0xff]  ;;  %v5263_v2 = vld [vmem:[#allocation128_spill] sm:$0xff]  ;;  %v5264_v46 = vld [vmem:[#allocation129_spill] sm:$0xff] }
 0x2d6   :  { %v1019_v18 = vmul.f32 %v5257_v61, %v5256_v49  ;;  %v1026_v54 = vmul.f32 %v5257_v61, %v5258_v37  ;;  %v1033_v14 = vmul.f32 %v5257_v61, %v5259_v22  ;;  %v1040_v16 = vmul.f32 %v5257_v61, %v5260_v13 }
 0x2d7   :  { %v975_v15 = vadd.f32 %v974_v4, %v895_v33  ;;  %v982_v5 = vadd.f32 %v981_v1, %v902_v9  ;;  %v1047_v27 = vmul.f32 %v5257_v61, %v5261_v45  ;;  %v1054_v58 = vmul.f32 %v5257_v61, %v5262_v43  ;;  %v5265_v9 = vld [vmem:[#allocation133_spill] sm:$0xff] }
 0x2d8   :  { %v1020_v48 = vadd.f32 %v1019_v18, %v940_v60  ;;  %v1027_v55 = vadd.f32 %v1026_v54, %v947_v31  ;;  %v1034_v63 = vadd.f32 %v1033_v14, %v954_v51  ;;  %v1041_v38 = vadd.f32 %v1040_v16, %v961_v47  ;;  %v5266_v31 = vld [vmem:[#allocation134_spill] sm:$0xff] }
 0x2d9   :  { %v1048_v49 = vadd.f32 %v1047_v27, %v968_v57  ;;  %v1055_v37 = vadd.f32 %v1054_v58, %v975_v15  ;;  %v1061_v22 = vmul.f32 %v5257_v61, %v5263_v2  ;;  %v1099_v13 = vmul.f32 %v5264_v46, %v3753_v42  ;;  %v5267_v58 = vld [vmem:[#allocation137_spill] sm:$0xff] }
 0x2da   :  { %v1106_v4 = vmul.f32 %v5264_v46, %v3756_v29  ;;  %v1113_v1 = vmul.f32 %v5264_v46, %v3760_v11  ;;  %v1120_v33 = vmul.f32 %v5264_v46, %v3764_v50  ;;  %v1127_v47 = vmul.f32 %v5264_v46, %v3768_v30  ;;  %v5268_v11 = vld [vmem:[#allocation135_spill] sm:$0xff] }
 0x2db   :  { %v1062_v57 = vadd.f32 %v1061_v22, %v982_v5  ;;  %v1100_v54 = vadd.f32 %v1099_v13, %v1020_v48  ;;  %v1134_v60 = vmul.f32 %v5264_v46, %v5265_v9  ;;  %v1141_v51 = vmul.f32 %v5264_v46, %v5266_v31 }
 0x2dc   :  { %v1107_v61 = vadd.f32 %v1106_v4, %v1027_v55  ;;  %v1114_v18 = vadd.f32 %v1113_v1, %v1034_v63  ;;  %v1121_v14 = vadd.f32 %v1120_v33, %v1041_v38  ;;  %v1128_v16 = vadd.f32 %v1127_v47, %v1048_v49  ;;  %v5269_v55 = vld [vmem:[#allocation141_spill] sm:$0xff]  ;;  %v5270_v63 = vld [vmem:[#allocation142_spill] sm:$0xff] }
 0x2dd   :  { %v1135_v15 = vadd.f32 %v1134_v60, %v1055_v37  ;;  %v1142_v27 = vadd.f32 %v1141_v51, %v1062_v57  ;;  %v1179_v50 = vmul.f32 %v5268_v11, %v5267_v58  ;;  %v1186_v30 = vmul.f32 %v5268_v11, %v3803_v20  ;;  %v5272_v51 = vld [vmem:[#allocation144_spill] sm:$0xff] }
 0x2de   :  { %v1193_v22 = vmul.f32 %v5268_v11, %v3809_v26  ;;  %v1200_v13 = vmul.f32 %v5268_v11, %v3813_v44  ;;  %v1207_v46 = vmul.f32 %v5268_v11, %v3817_v0  ;;  %v1214_v49 = vmul.f32 %v5268_v11, %v3821_v7  ;;  %v5273_v44 = vld [vmem:[#allocation145_spill] sm:$0xff] }
 0x2df   :  { %v1180_v37 = vadd.f32 %v1179_v50, %v1100_v54  ;;  %v1187_v5 = vadd.f32 %v1186_v30, %v1107_v61  ;;  %v1221_v48 = vmul.f32 %v5268_v11, %v3827_v25  ;;  %v1259_v38 = vmul.f32 %v5270_v63, %v5269_v55 }
 0x2e0   :  { %v1194_v4 = vadd.f32 %v1193_v22, %v1114_v18  ;;  %v1201_v1 = vadd.f32 %v1200_v13, %v1121_v14  ;;  %v1208_v33 = vadd.f32 %v1207_v46, %v1128_v16  ;;  %v1215_v47 = vadd.f32 %v1214_v49, %v1135_v15  ;;  %v5276_v16 = vld [vmem:[#allocation8_spill] sm:$0xff] }
 0x2e1   :  { %v1222_v57 = vadd.f32 %v1221_v48, %v1142_v27  ;;  %v4123_v60 = vadd.f32 %v1259_v38, %v1180_v37  ;;  %v1266_v0 = vmul.f32 %v5270_v63, %v5272_v51  ;;  %v1273_v50 = vmul.f32 %v5270_v63, %v5273_v44  ;;  %v2527_v27 = vld [vmem:[#allocation2 + $0x20] sm:$0x1] }
 0x2e2   :  { %v1280_v30 = vmul.f32 %v5270_v63, %v3861_v52  ;;  %v1287_v11 = vmul.f32 %v5270_v63, %v3865_v35  ;;  %v1294_v54 = vmul.f32 %v5270_v63, %v3869_v39  ;;  %v1301_v61 = vmul.f32 %v5270_v63, %v3882_v3  ;;  %v5285_v3 = vld [vmem:[#allocation34_spill] sm:$0xff] }
 0x2e3   :  { %5271 = vst [vmem:[#allocation35_spill] sm:$0xff] %v4123_v60  ;;  %v4137_v18 = vadd.f32 %v1266_v0, %v1187_v5  ;;  %v4139_v14 = vadd.f32 %v1273_v50, %v1194_v4  ;;  %v1407_v15 = vsub.f32 %v5276_v16, %v4123_v60  ;;  %v61_v22 = vmul.f32 %v2527_v27, %v3120_v40  ;;  %v5277_v0 = vld [vmem:[#allocation26_spill] sm:$0xff]  ;;  %v5278_v4 = vld [vmem:[#allocation27_spill] sm:$0xff]  ;;  %v5279_v16 = vld [vmem:[#allocation28_spill] sm:$0xff] }
 0x2e4   :  { %v4144_v13 = vadd.f32 %v1280_v30, %v1201_v1  ;;  %v4146_v46 = vadd.f32 %v1287_v11, %v1208_v33  ;;  %v4148_v49 = vadd.f32 %v1294_v54, %v1215_v47  ;;  %v4150_v37 = vadd.f32 %v1301_v61, %v1222_v57  ;;  %v5280_v1 = vld [vmem:[#allocation30_spill] sm:$0xff]  ;;  %v2528_v33 = vld [vmem:[#allocation2 + $0x21] sm:$0x1]  ;;  %v5282_v61 = vld [vmem:[#allocation31_spill] sm:$0xff] }
 0x2e5   :  { %5274 = vst [vmem:[#allocation36_spill] sm:$0xff] %v4137_v18  ;;  %5275 = vst [vmem:[#allocation37_spill] sm:$0xff] %v4139_v14  ;;  %v1408_v48 = vsub.f32 %v1407_v15, %v4137_v18  ;;  %v68_v5 = vmul.f32 %v2527_v27, %v5277_v0  ;;  %v75_v63 = vmul.f32 %v2527_v27, %v3129_v28  ;;  %v5281_v11 = vld [vmem:[#allocation29_spill] sm:$0xff]  ;;  %v5283_v0 = vld [vmem:[#allocation32_spill] sm:$0xff] }
 0x2e6   :  { %v82_v38 = vmul.f32 %v2527_v27, %v3133_v34  ;;  %v89_v50 = vmul.f32 %v2527_v27, %v5278_v4  ;;  %v96_v40 = vmul.f32 %v2527_v27, %v5279_v16  ;;  %v103_v30 = vmul.f32 %v2527_v27, %v5280_v1  ;;  %v5284_v18 = vld [vmem:[#allocation33_spill] sm:$0xff] }
 0x2e7   :  { %v141_v47 = vmul.f32 %v2528_v33, %v5281_v11  ;;  %v1409_v57 = vsub.f32 %v1408_v48, %v4139_v14  ;;  %v148_v54 = vmul.f32 %v2528_v33, %v3155_v6  ;;  %v155_v15 = vmul.f32 %v2528_v33, %v5282_v61  ;;  %v2529_v6 = vld [vmem:[#allocation2 + $0x22] sm:$0x1] }
 0x2e8   :  { %v162_v60 = vmul.f32 %v2528_v33, %v5283_v0  ;;  %v169_v34 = vmul.f32 %v2528_v33, %v5284_v18  ;;  %v176_v4 = vmul.f32 %v2528_v33, %v5285_v3  ;;  %v183_v16 = vmul.f32 %v2528_v33, %v3187_v56 }
 0x2e9   :  { %v142_v28 = vadd.f32 %v141_v47, %v61_v22  ;;  %v1410_v27 = vadd.f32 %v1409_v57, %v4144_v13  ;;  %v149_v1 = vadd.f32 %v148_v54, %v68_v5  ;;  %v156_v39 = vadd.f32 %v155_v15, %v75_v63  ;;  %v5287_v54 = vld [vmem:[#allocation42_spill] sm:$0xff]  ;;  %v5288_v15 = vld [vmem:[#allocation43_spill] sm:$0xff] }
 0x2ea   :  { %v163_v11 = vadd.f32 %v162_v60, %v82_v38  ;;  %v170_v35 = vadd.f32 %v169_v34, %v89_v50  ;;  %v177_v48 = vadd.f32 %v176_v4, %v96_v40  ;;  %v184_v14 = vadd.f32 %v183_v16, %v103_v30  ;;  %v5286_v60 = vld [vmem:[#allocation38_spill] sm:$0xff] }
 0x2eb   :  { %v221_v61 = vmul.f32 %v2529_v6, %v3201_v23  ;;  %v1411_v0 = vadd.f32 %v1410_v27, %v4146_v46  ;;  %v228_v22 = vmul.f32 %v2529_v6, %v3204_v32  ;;  %v235_v18 = vmul.f32 %v2529_v6, %v3207_v17  ;;  %v2530_v32 = vld [vmem:[#allocation2 + $0x23] sm:$0x1] }
 0x2ec   :  { %v242_v3 = vmul.f32 %v2529_v6, %v5184_v10  ;;  %v249_v33 = vmul.f32 %v2529_v6, %v5185_v12  ;;  %v256_v5 = vmul.f32 %v2529_v6, %v5186_v8  ;;  %v263_v63 = vmul.f32 %v2529_v6, %v5286_v60  ;;  %v5289_v12 = vld [vmem:[#allocation44_spill] sm:$0xff] }
 0x2ed   :  { %v222_v56 = vadd.f32 %v221_v61, %v142_v28  ;;  %v1412_v38 = vadd.f32 %v1411_v0, %v4148_v49  ;;  %v229_v50 = vadd.f32 %v228_v22, %v149_v1  ;;  %v236_v40 = vadd.f32 %v235_v18, %v156_v39  ;;  %v2531_v0 = vld [vmem:[#allocation2 + $0x24] sm:$0x1] }
 0x2ee   :  { %v243_v23 = vadd.f32 %v242_v3, %v163_v11  ;;  %v250_v30 = vadd.f32 %v249_v33, %v170_v35  ;;  %v257_v47 = vadd.f32 %v256_v5, %v177_v48  ;;  %v264_v57 = vadd.f32 %v263_v63, %v184_v14  ;;  %v5290_v18 = vld [vmem:[#allocation53_spill] sm:$0xff]  ;;  %v5291_v3 = vld [vmem:[#allocation54_spill] sm:$0xff]  ;;  %v5293_v5 = vld [vmem:[#allocation56_spill] sm:$0xff] }
 0x2ef   :  { %v301_v17 = vmul.f32 %v2530_v32, %v5287_v54  ;;  %v1413_v10 = vsub.f32 %v1412_v38, %v4150_v37  ;;  %v308_v28 = vmul.f32 %v2530_v32, %v5288_v15  ;;  %v315_v34 = vmul.f32 %v2530_v32, %v5289_v12  ;;  %v5294_v63 = vld [vmem:[#allocation57_spill] sm:$0xff]  ;;  %v5298_v12 = vld [vmem:[#allocation62_spill] sm:$0xff] }
 0x2f0   :  { %v322_v8 = vmul.f32 %v2530_v32, %v5192_v53  ;;  %v329_v16 = vmul.f32 %v2530_v32, %v5193_v21  ;;  %v336_v39 = vmul.f32 %v2530_v32, %v5194_v36  ;;  %v343_v35 = vmul.f32 %v2530_v32, %v5195_v19  ;;  %v5297_v15 = vld [vmem:[#allocation61_spill] sm:$0xff] }
 0x2f1   :  { %v302_v4 = vadd.f32 %v301_v17, %v222_v56  ;;  %v1439_v14 = vmul.f32 %v4004_v59, %v1413_v10  ;;  %v309_v27 = vadd.f32 %v308_v28, %v229_v50  ;;  %v316_v1 = vadd.f32 %v315_v34, %v236_v40  ;;  %v5292_v56 = vld [vmem:[#allocation55_spill] sm:$0xff]  ;;  %v2532_v50 = vld [vmem:[#allocation2 + $0x25] sm:$0x1]  ;;  %v5296_v17 = vld [vmem:[#allocation60_spill] sm:$0xff] }
 0x2f2   :  { %v323_v11 = vadd.f32 %v322_v8, %v243_v23  ;;  %v330_v48 = vadd.f32 %v329_v16, %v250_v30  ;;  %v337_v6 = vadd.f32 %v336_v39, %v257_v47  ;;  %v344_v61 = vadd.f32 %v343_v35, %v264_v57  ;;  %v5295_v40 = vld [vmem:[#allocation59_spill] sm:$0xff]  ;;  %v5300_v16 = vld [vmem:[#allocation64_spill] sm:$0xff] }
 0x2f3   :  { %v381_v22 = vmul.f32 %v2531_v0, %v5196_v41  ;;  %1441 = vst [vmem:[#allocation5 + $0x7] sm:$0x1] %v1439_v14  ;;  %v388_v53 = vmul.f32 %v2531_v0, %v5198_v24  ;;  %v395_v21 = vmul.f32 %v2531_v0, %v5290_v18  ;;  %v402_v36 = vmul.f32 %v2531_v0, %v5291_v3  ;;  %v5299_v8 = vld [vmem:[#allocation63_spill] sm:$0xff]  ;;  %v5301_v14 = vld [vmem:[#allocation65_spill] sm:$0xff] }
 0x2f4   :  { %v409_v19 = vmul.f32 %v2531_v0, %v5292_v56  ;;  %v416_v60 = vmul.f32 %v2531_v0, %v5293_v5  ;;  %v423_v38 = vmul.f32 %v2531_v0, %v5294_v63  ;;  %v461_v23 = vmul.f32 %v2532_v50, %v5295_v40  ;;  %v5304_v56 = vld [vmem:[#allocation69_spill] sm:$0xff] }
 0x2f5   :  { %v382_v33 = vadd.f32 %v381_v22, %v302_v4  ;;  %v389_v30 = vadd.f32 %v388_v53, %v309_v27  ;;  %v396_v47 = vadd.f32 %v395_v21, %v316_v1  ;;  %v403_v41 = vadd.f32 %v402_v36, %v323_v11  ;;  %v2533_v27 = vld [vmem:[#allocation2 + $0x26] sm:$0x1]  ;;  %v5302_v1 = vld [vmem:[#allocation67_spill] sm:$0xff] }
 0x2f6   :  { %v410_v57 = vadd.f32 %v409_v19, %v330_v48  ;;  %v417_v32 = vadd.f32 %v416_v60, %v337_v6  ;;  %v424_v24 = vadd.f32 %v423_v38, %v344_v61  ;;  %v468_v10 = vmul.f32 %v2532_v50, %v5296_v17  ;;  %v5303_v48 = vld [vmem:[#allocation68_spill] sm:$0xff]  ;;  %v5306_v60 = vld [vmem:[#allocation71_spill] sm:$0xff]  ;;  %v5308_v40 = vld [vmem:[#allocation73_spill] sm:$0xff] }
 0x2f7   :  { %v462_v54 = vadd.f32 %v461_v23, %v382_v33  ;;  %v475_v28 = vmul.f32 %v2532_v50, %v5297_v15  ;;  %v482_v34 = vmul.f32 %v2532_v50, %v5298_v12  ;;  %v489_v4 = vmul.f32 %v2532_v50, %v5299_v8  ;;  %v5305_v33 = vld [vmem:[#allocation70_spill] sm:$0xff]  ;;  %v5307_v38 = vld [vmem:[#allocation72_spill] sm:$0xff]  ;;  %v2534_v17 = vld [vmem:[#allocation2 + $0x27] sm:$0x1] }
 0x2f8   :  { %v496_v39 = vmul.f32 %v2532_v50, %v5300_v16  ;;  %v469_v35 = vadd.f32 %v468_v10, %v389_v30  ;;  %v503_v0 = vmul.f32 %v2532_v50, %v5301_v14  ;;  %v541_v11 = vmul.f32 %v2533_v27, %v5302_v1  ;;  %v5309_v10 = vld [vmem:[#allocation75_spill] sm:$0xff]  ;;  %v5312_v16 = vld [vmem:[#allocation78_spill] sm:$0xff]  ;;  %v5315_v1 = vld [vmem:[#allocation81_spill] sm:$0xff] }
 0x2f9   :  { %v548_v6 = vmul.f32 %v2533_v27, %v5303_v48  ;;  %v476_v61 = vadd.f32 %v475_v28, %v396_v47  ;;  %v483_v22 = vadd.f32 %v482_v34, %v403_v41  ;;  %v490_v53 = vadd.f32 %v489_v4, %v410_v57  ;;  %v5310_v41 = vld [vmem:[#allocation76_spill] sm:$0xff]  ;;  %v2535_v48 = vld [vmem:[#allocation2 + $0x28] sm:$0x1] }
 0x2fa   :  { %v497_v18 = vadd.f32 %v496_v39, %v417_v32  ;;  %v504_v21 = vadd.f32 %v503_v0, %v424_v24  ;;  %v542_v3 = vadd.f32 %v541_v11, %v462_v54  ;;  %v555_v19 = vmul.f32 %v2533_v27, %v5304_v56  ;;  %v5311_v32 = vld [vmem:[#allocation77_spill] sm:$0xff]  ;;  %v5314_v0 = vld [vmem:[#allocation80_spill] sm:$0xff] }
 0x2fb   :  { %v549_v36 = vadd.f32 %v548_v6, %v469_v35  ;;  %v562_v5 = vmul.f32 %v2533_v27, %v5305_v33  ;;  %v569_v63 = vmul.f32 %v2533_v27, %v5306_v60  ;;  %v576_v50 = vmul.f32 %v2533_v27, %v5307_v38  ;;  %v5313_v35 = vld [vmem:[#allocation79_spill] sm:$0xff]  ;;  %v5316_v6 = vld [vmem:[#allocation84_spill] sm:$0xff] }
 0x2fc   :  { %v583_v23 = vmul.f32 %v2533_v27, %v5308_v40  ;;  %v556_v30 = vadd.f32 %v555_v19, %v476_v61  ;;  %v621_v47 = vmul.f32 %v2534_v17, %v5309_v10  ;;  %v628_v57 = vmul.f32 %v2534_v17, %v5310_v41  ;;  %v5317_v19 = vld [vmem:[#allocation86_spill] sm:$0xff] }
 0x2fd   :  { %v635_v24 = vmul.f32 %v2534_v17, %v5311_v32  ;;  %v563_v54 = vadd.f32 %v562_v5, %v483_v22  ;;  %v570_v15 = vadd.f32 %v569_v63, %v490_v53  ;;  %v577_v28 = vadd.f32 %v576_v50, %v497_v18  ;;  %v5318_v53 = vld [vmem:[#allocation87_spill] sm:$0xff]  ;;  %v5324_v32 = vld [vmem:[#allocation94_spill] sm:$0xff] }
 0x2fe   :  { %v584_v12 = vadd.f32 %v583_v23, %v504_v21  ;;  %v622_v34 = vadd.f32 %v621_v47, %v542_v3  ;;  %v629_v8 = vadd.f32 %v628_v57, %v549_v36  ;;  %v642_v39 = vmul.f32 %v2534_v17, %v5312_v16  ;;  %v5319_v21 = vld [vmem:[#allocation88_spill] sm:$0xff]  ;;  %v5320_v36 = vld [vmem:[#allocation125_spill] sm:$0xff]  ;;  %v2536_v57 = vld [vmem:[#allocation2 + $0x29] sm:$0x1] }
 0x2ff   :  { %v636_v4 = vadd.f32 %v635_v24, %v556_v30  ;;  %v649_v14 = vmul.f32 %v2534_v17, %v5313_v35  ;;  %v656_v27 = vmul.f32 %v2534_v17, %v5314_v0  ;;  %v663_v11 = vmul.f32 %v2534_v17, %v5315_v1  ;;  %v5321_v23 = vld [vmem:[#allocation89_spill] sm:$0xff]  ;;  %v5322_v17 = vld [vmem:[#allocation90_spill] sm:$0xff]  ;;  %v5323_v47 = vld [vmem:[#allocation92_spill] sm:$0xff] }
 0x300   :  { %v701_v61 = vmul.f32 %v2535_v48, %v5316_v6  ;;  %v643_v56 = vadd.f32 %v642_v39, %v563_v54  ;;  %v708_v22 = vmul.f32 %v2535_v48, %v5317_v19  ;;  %v715_v18 = vmul.f32 %v2535_v48, %v5318_v53  ;;  %v5325_v54 = vld [vmem:[#allocation95_spill] sm:$0xff]  ;;  %v5326_v35 = vld [vmem:[#allocation96_spill] sm:$0xff]  ;;  %v5331_v53 = vld [vmem:[#allocation102_spill] sm:$0xff] }
 0x301   :  { %v722_v3 = vmul.f32 %v2535_v48, %v5319_v21  ;;  %vm2003_vm14 = vcmp.eq.f32.partialorder %v5320_v36, inf  ;;  %v650_v33 = vadd.f32 %v649_v14, %v570_v15  ;;  %v657_v5 = vadd.f32 %v656_v27, %v577_v28  ;;  %v5327_v28 = vld [vmem:[#allocation97_spill] sm:$0xff]  ;;  %v5329_v6 = vld [vmem:[#allocation99_spill] sm:$0xff] }
 0x302   :  { %v664_v60 = vadd.f32 %v663_v11, %v584_v12  ;;  %v702_v63 = vadd.f32 %v701_v61, %v622_v34  ;;  %v709_v38 = vadd.f32 %v708_v22, %v629_v8  ;;  %v716_v50 = vadd.f32 %v715_v18, %v636_v4  ;;  %v5328_v34 = vld [vmem:[#allocation98_spill] sm:$0xff]  ;;  %v5332_v21 = vld [vmem:[#allocation103_spill] sm:$0xff] }
 0x303   :  { %v723_v40 = vadd.f32 %v722_v3, %v643_v56  ;;  %v729_v30 = vmul.f32 %v2535_v48, %v5321_v23  ;;  %v736_v10 = vmul.f32 %v2535_v48, %v5322_v17  ;;  %v743_v41 = vmul.f32 %v2535_v48, %v5323_v47  ;;  %v5330_v56 = vld [vmem:[#allocation100_spill] sm:$0xff]  ;;  %v2537_v22 = vld [vmem:[#allocation2 + $0x2a] sm:$0x1]  ;;  %v5334_v17 = vld [vmem:[#allocation105_spill] sm:$0xff] }
 0x304   :  { %v781_v24 = vmul.f32 %v2536_v57, %v5324_v32  ;;  %v788_v16 = vmul.f32 %v2536_v57, %v5325_v54  ;;  %v795_v15 = vmul.f32 %v2536_v57, %v5326_v35  ;;  %v802_v12 = vmul.f32 %v2536_v57, %v5327_v28  ;;  %v5337_v54 = vld [vmem:[#allocation108_spill] sm:$0xff]  ;;  %v5338_v35 = vld [vmem:[#allocation110_spill] sm:$0xff] }
 0x305   :  { %v730_v39 = vadd.f32 %v729_v30, %v650_v33  ;;  %v809_v8 = vmul.f32 %v2536_v57, %v5328_v34  ;;  %vm2005_vm15 = vcmp.eq.f32.partialorder %v5320_v36, 0.0  ;;  %v737_v4 = vadd.f32 %v736_v10, %v657_v5  ;;  %v5333_v33 = vld [vmem:[#allocation104_spill] sm:$0xff]  ;;  %v5340_v34 = vld [vmem:[#allocation114_spill] sm:$0xff] }
 0x306   :  { %v744_v14 = vadd.f32 %v743_v41, %v664_v60  ;;  %v782_v0 = vadd.f32 %v781_v24, %v702_v63  ;;  %v789_v27 = vadd.f32 %v788_v16, %v709_v38  ;;  %v796_v1 = vadd.f32 %v795_v15, %v716_v50  ;;  %v5335_v60 = vld [vmem:[#allocation106_spill] sm:$0xff]  ;;  %v5336_v38 = vld [vmem:[#allocation107_spill] sm:$0xff]  ;;  %v5339_v28 = vld [vmem:[#allocation112_spill] sm:$0xff] }
 0x307   :  { %v803_v11 = vadd.f32 %v802_v12, %v723_v40  ;;  %v810_v48 = vadd.f32 %v809_v8, %v730_v39  ;;  %v816_v61 = vmul.f32 %v2536_v57, %v5329_v6  ;;  %v823_v19 = vmul.f32 %v2536_v57, %v5330_v56  ;;  %v2538_v39 = vld [vmem:[#allocation2 + $0x2b] sm:$0x1] }
 0x308   :  { %v861_v18 = vmul.f32 %v2537_v22, %v5331_v53  ;;  %v868_v3 = vmul.f32 %v2537_v22, %v5332_v21  ;;  %v875_v23 = vmul.f32 %v2537_v22, %v5333_v33  ;;  %v882_v5 = vmul.f32 %v2537_v22, %v5334_v17  ;;  %v5344_v21 = vld [vmem:[#allocation118_spill] sm:$0xff] }
 0x309   :  { %v817_v30 = vadd.f32 %v816_v61, %v737_v4  ;;  %v889_v63 = vmul.f32 %v2537_v22, %v5335_v60  ;;  %v896_v50 = vmul.f32 %v2537_v22, %v5336_v38  ;;  %v824_v40 = vadd.f32 %v823_v19, %v744_v14  ;;  %v5341_v4 = vld [vmem:[#allocation115_spill] sm:$0xff]  ;;  %v5342_v61 = vld [vmem:[#allocation138_spill] sm:$0xff] }
 0x30a   :  { %v862_v10 = vadd.f32 %v861_v18, %v782_v0  ;;  %v869_v47 = vadd.f32 %v868_v3, %v789_v27  ;;  %v876_v41 = vadd.f32 %v875_v23, %v796_v1  ;;  %v2006_v57 = vand.u32 2147483648, %v5320_v36  ;;  %v5343_v1 = vld [vmem:[#allocation117_spill] sm:$0xff]  ;;  %v2539_v33 = vld [vmem:[#allocation2 + $0x2c] sm:$0x1] }
 0x30b   :  { %v883_v32 = vadd.f32 %v882_v5, %v803_v11  ;;  %v890_v24 = vadd.f32 %v889_v63, %v810_v48  ;;  %v903_v16 = vmul.f32 %v2537_v22, %v5337_v54  ;;  %v941_v15 = vmul.f32 %v2538_v39, %v5338_v35  ;;  %v5345_v23 = vld [vmem:[#allocation121_spill] sm:$0xff]  ;;  %v5346_v5 = vld [vmem:[#allocation122_spill] sm:$0xff]  ;;  %v5347_v63 = vld [vmem:[#allocation123_spill] sm:$0xff] }
 0x30c   :  { %v948_v12 = vmul.f32 %v2538_v39, %v5339_v28  ;;  %v955_v8 = vmul.f32 %v2538_v39, %v5340_v34  ;;  %v962_v6 = vmul.f32 %v2538_v39, %v5341_v4  ;;  %v2004_v14 = vsel %vm2003_vm14, %v5320_v36, %v5342_v61  ;;  %v5349_v34 = vld [vmem:[#allocation130_spill] sm:$0xff]  ;;  %v5351_v4 = vld [vmem:[#allocation132_spill] sm:$0xff]  ;;  %v5352_v61 = vld [vmem:[#allocation91_spill] sm:$0xff] }
 0x30d   :  { %v897_v0 = vadd.f32 %v896_v50, %v817_v30  ;;  %v969_v27 = vmul.f32 %v2538_v39, %v5253_v62  ;;  %v976_v11 = vmul.f32 %v2538_v39, %v5343_v1  ;;  %v904_v48 = vadd.f32 %v903_v16, %v824_v40  ;;  %v5348_v30 = vld [vmem:[#allocation124_spill] sm:$0xff] }
 0x30e   :  { %v942_v56 = vadd.f32 %v941_v15, %v862_v10  ;;  %v949_v19 = vadd.f32 %v948_v12, %v869_v47  ;;  %v956_v22 = vadd.f32 %v955_v8, %v876_v41  ;;  %v963_v53 = vadd.f32 %v962_v6, %v883_v32  ;;  %v2540_v41 = vld [vmem:[#allocation2 + $0x2d] sm:$0x1] }
 0x30f   :  { %v970_v18 = vadd.f32 %v969_v27, %v890_v24  ;;  %v983_v3 = vmul.f32 %v2538_v39, %v5344_v21  ;;  %v1021_v17 = vmul.f32 %v2539_v33, %v5345_v23  ;;  %v1028_v60 = vmul.f32 %v2539_v33, %v5346_v5  ;;  %v5354_v27 = vld [vmem:[#allocation136_spill] sm:$0xff] }
 0x310   :  { %v1035_v38 = vmul.f32 %v2539_v33, %v5347_v63  ;;  %v1042_v50 = vmul.f32 %v2539_v33, %v5348_v30  ;;  %v1049_v62 = vmul.f32 %v2539_v33, %v5261_v45  ;;  %v2007_v40 = vsel %vm2005_vm15, %v2006_v57, %v2004_v14  ;;  %v5350_v57 = vld [vmem:[#allocation131_spill] sm:$0xff] }
 0x311   :  { %v977_v10 = vadd.f32 %v976_v11, %v897_v0  ;;  %v1022_v47 = vadd.f32 %v1021_v17, %v942_v56  ;;  %v1101_v32 = vmul.f32 %v2540_v41, %v3753_v42  ;;  %v1029_v24 = vadd.f32 %v1028_v60, %v949_v19  ;;  %v5357_v17 = vld [vmem:[#allocation143_spill] sm:$0xff] }
 0x312   :  { %v1036_v54 = vadd.f32 %v1035_v38, %v956_v22  ;;  %v1050_v16 = vadd.f32 %v1049_v62, %v970_v18  ;;  %v1056_v39 = vmul.f32 %v2539_v33, %v5262_v43  ;;  %v984_v35 = vadd.f32 %v983_v3, %v904_v48  ;;  %v5355_v3 = vld [vmem:[#allocation139_spill] sm:$0xff] }
 0x313   :  { %v1043_v15 = vadd.f32 %v1042_v50, %v963_v53  ;;  %v1102_v28 = vadd.f32 %v1101_v32, %v1022_v47  ;;  %v1108_v12 = vmul.f32 %v2540_v41, %v3756_v29  ;;  %v1063_v45 = vmul.f32 %v2539_v33, %v5263_v2  ;;  %v5356_v33 = vld [vmem:[#allocation140_spill] sm:$0xff]  ;;  %v5360_v32 = vld [vmem:[#allocation150_spill] sm:$0xff] }
 0x314   :  { %v1115_v36 = vmul.f32 %v2540_v41, %v5349_v34  ;;  %v1122_v8 = vmul.f32 %v2540_v41, %v5350_v57  ;;  %v1129_v6 = vmul.f32 %v2540_v41, %v5351_v4  ;;  %v5353_v42 = vand.u32 2147483647, %v5352_v61  ;;  %v5364_v34 = vld [vmem:[#allocation153_spill] sm:$0xff]  ;;  %v5366_v4 = vld [vmem:[#allocation151_spill] sm:$0xff] }
 0x315   :  { %v1109_v0 = vadd.f32 %v1108_v12, %v1029_v24  ;;  %v1181_v43 = vmul.f32 %v5354_v27, %v5267_v58  ;;  %v1188_v1 = vmul.f32 %v5354_v27, %v3803_v20  ;;  %v1057_v11 = vadd.f32 %v1056_v39, %v977_v10 }
 0x316   :  { %v2008_v14 = vadd.f32 %v2007_v40, %v5353_v42  ;;  %v1116_v29 = vadd.f32 %v1115_v36, %v1036_v54  ;;  %v1130_v48 = vadd.f32 %v1129_v6, %v1050_v16  ;;  %v1136_v2 = vmul.f32 %v2540_v41, %v5265_v9  ;;  %v5361_v16 = vld [vmem:[#allocation9_spill] sm:$0xff]  ;;  %v5367_v42 = vld [vmem:[#allocation159_spill] sm:$0xff] }
 0x317   :  { %v1123_v56 = vadd.f32 %v1122_v8, %v1043_v15  ;;  %v1182_v19 = vadd.f32 %v1181_v43, %v1102_v28  ;;  %v1189_v22 = vadd.f32 %v1188_v1, %v1109_v0  ;;  %v1195_v53 = vmul.f32 %v5354_v27, %v3809_v26  ;;  %v5362_v15 = vld [vmem:[#allocation148_spill] sm:$0xff]  ;;  %v5365_v36 = vld [vmem:[#allocation149_spill] sm:$0xff] }
 0x318   :  { %v1064_v18 = vadd.f32 %v1063_v45, %v984_v35  ;;  %v1143_v21 = vmul.f32 %v2540_v41, %v5266_v31  ;;  %v1202_v58 = vmul.f32 %v5354_v27, %v5355_v3  ;;  %v1209_v20 = vmul.f32 %v5354_v27, %v5356_v33  ;;  %v2541_v31 = vld [vmem:[#allocation2 + $0x2e] sm:$0x1]  ;;  %v5368_v0 = vld [vmem:[#allocation36_spill] sm:$0xff] }
 0x319   :  { %v1196_v23 = vadd.f32 %v1195_v53, %v1116_v29  ;;  %v1261_v5 = vmul.f32 %v5357_v17, %v5269_v55  ;;  %v1268_v9 = vmul.f32 %v5357_v17, %v5272_v51  ;;  %v1275_v60 = vmul.f32 %v5357_v17, %v5273_v44  ;;  %v5358_v51 = vld [vmem:[#allocation147_spill] sm:$0xff]  ;;  %v5359_v44 = vld [vmem:[#allocation156_spill] sm:$0xff]  ;;  %v5373_v33 = vld [vmem:[#allocation154_spill] sm:$0xff] }
 0x31a   :  { %v2011_v26 = vadd.f32 1e-30, %v2008_v14  ;;  %v1137_v63 = vadd.f32 %v1136_v2, %v1057_v11  ;;  %v1210_v38 = vadd.f32 %v1209_v20, %v1130_v48  ;;  %v1216_v30 = vmul.f32 %v2541_v31, %v3821_v7  ;;  %v5369_v1 = vld [vmem:[#allocation160_spill] sm:$0xff]  ;;  %v5370_v11 = vld [vmem:[#allocation155_spill] sm:$0xff]  ;;  %v5371_v48 = vld [vmem:[#allocation37_spill] sm:$0xff] }
 0x31b   :  { %v1203_v50 = vadd.f32 %v1202_v58, %v1123_v56  ;;  %v4284_v62 = vadd.f32 %v1261_v5, %v1182_v19  ;;  %v1269_v40 = vadd.f32 %v1268_v9, %v1189_v22  ;;  %v1282_v10 = vmul.f32 %v5357_v17, %v3861_v52  ;;  %v5363_v52 = vld [vmem:[#allocation158_spill] sm:$0xff]  ;;  %v5372_v58 = vld [vmem:[#allocation157_spill] sm:$0xff] }
 0x31c   :  { %v1144_v55 = vadd.f32 %v1143_v21, %v1064_v18  ;;  %v1223_v47 = vmul.f32 %v2541_v31, %v3827_v25  ;;  %v1289_v41 = vmul.f32 %v5357_v17, %v5358_v51  ;;  %v1366_v24 = vsub.f32 %v5360_v32, %v5359_v44  ;;  %v5374_v9 = vld [vmem:[#allocation161_spill] sm:$0xff] }
 0x31d   :  { %v1276_v54 = vadd.f32 %v1275_v60, %v1196_v23  ;;  %v1426_v7 = vsub.f32 %v5361_v16, %v4284_v62  ;;  %v1217_v39 = vadd.f32 %v1216_v30, %v1137_v63  ;;  %v1296_v28 = vmul.f32 %v5357_v17, %v5362_v15 }
 0x31e   :  { %v4295_v35 = vadd.f32 %v1289_v41, %v1210_v38  ;;  %v1367_v12 = vsub.f32 %v1366_v24, %v5363_v52  ;;  %2424 = vrcp.f32 %v2011_v26  ;;  %v4300_v25 = vadd.f32 %v1282_v10, %v1203_v50  ;;  %v5375_v50 = vld [vmem:[#allocation146_spill] sm:$0xff] }
 0x31f   :  { %v1427_v45 = vsub.f32 %v1426_v7, %v1269_v40  ;;  %v1363_v57 = vsub.f32 %v5365_v36, %v5364_v34  ;;  %v1224_v8 = vadd.f32 %v1223_v47, %v1144_v55  ;;  %v1303_v6 = vmul.f32 %v5357_v17, %v5366_v4 }
 0x320   :  { %v1368_v14 = vadd.f32 %v1367_v12, %v5367_v42  ;;  %v1401_v27 = vsub.f32 %v5368_v0, %v4144_v13  ;;  %v1385_v29 = vsub.f32 %v5370_v11, %v5369_v1  ;;  %v1404_v2 = vsub.f32 %v5371_v48, %v4146_v46 }
 0x321   :  { %v1428_v43 = vsub.f32 %v1427_v45, %v1276_v54  ;;  %v1364_v56 = vsub.f32 %v1363_v57, %v5363_v52  ;;  %v4314_v19 = vadd.f32 %v1296_v28, %v1217_v39  ;;  %v1423_v53 = vsub.f32 %v1276_v54, %v4295_v35 }
 0x322   :  { %v1445_v22 = vmax.f32 %v1368_v14, 1.0  ;;  %v1402_v18 = vsub.f32 %v1401_v27, %v4148_v49  ;;  %v1382_v20 = vsub.f32 %v5373_v33, %v5372_v58  ;;  %v1359_v23 = vsub.f32 %v5363_v52, %v5367_v42 }
 0x323   :  { %v1429_v21 = vadd.f32 %v1428_v43, %v4300_v25  ;;  %v1365_v3 = vadd.f32 %v1364_v56, %v5367_v42  ;;  %vm1994_vm0 = vcmp.ge.f32.partialorder %v5352_v61, 0.0  ;;  %v4325_v17 = vadd.f32 %v1303_v6, %v1224_v8  ;;  %v5378_v6 = vld [vmem:[#allocation152_spill] sm:$0xff] }
 0x324   :  { %2426 = vrcp.f32 %v1445_v22  ;;  %v1386_v60 = vsub.f32 %v1385_v29, %v5374_v9  ;;  %v1405_v26 = vsub.f32 %v1404_v2, %v4148_v49  ;;  %v1424_v38 = vsub.f32 %v1423_v53, %v4314_v19  ;;  %v5380_v22 = vld [vmem:[#allocation119_spill] sm:$0xff] }
 0x325   :  { %v1430_v5 = vadd.f32 %v1429_v21, %v4295_v35  ;;  %v1457_v63 = vmax.f32 %v1365_v3, 1.0  ;;  %v1420_v31 = vsub.f32 %v1269_v40, %v4300_v25  ;;  %v1469_v30 = vmax.f32 %v1359_v23, 1.0  ;;  %v5377_v40 = vld [vmem:[#allocation162_spill] sm:$0xff] }
 0x326   :  { %v1360_v10 = vsub.f32 %v5375_v50, %v5364_v34  ;;  %v1383_v47 = vsub.f32 %v1382_v20, %v5374_v9  ;;  %v5376_v32 = vmov -1.0   ;;  %v1387_v16 = vadd.f32 %v1386_v60, %v5377_v40 }
 0x327   :  { %v1431_v55 = vadd.f32 %v1430_v5, %v4314_v19  ;;  %2428 = vrcp.f32 %v1457_v63  ;;  %v1995_v24 = vsel %vm1994_vm0, 1.0, %v5376_v32  ;;  %v1358_v7 = vsub.f32 %v5359_v44, %v5367_v42 }
 0x328   :  { %2430 = vrcp.f32 %v1469_v30  ;;  %v1361_v51 = vsub.f32 %v1360_v10, %v5359_v44  ;;  %v2425_v41 = vpop.eup %2424  ;;  %v1406_v39 = vadd.f32 %v1405_v26, %v4150_v37  ;;  %v1425_v15 = vadd.f32 %v1424_v38, %v4325_v17 }
 0x329   :  { %v1432_v54 = vsub.f32 %v1431_v55, %v4325_v17  ;;  %v1421_v28 = vsub.f32 %v1420_v31, %v4314_v19  ;;  %v1384_v61 = vadd.f32 %v1383_v47, %v5377_v40  ;;  %v1403_v45 = vadd.f32 %v1402_v18, %v4150_v37 }
 0x32a   :  { %v1362_v52 = vadd.f32 %v1361_v51, %v5367_v42  ;;  %v1493_v36 = vmax.f32 %v1358_v7, 1.0  ;;  %v1378_v57 = vsub.f32 %v5374_v9, %v5377_v40  ;;  %v1397_v44 = vsub.f32 %v4148_v49, %v4150_v37 }
 0x32b   :  { %v1442_v12 = vmul.f32 %v4004_v59, %v1432_v54  ;;  %v1357_v4 = vsub.f32 %v5364_v34, %v5367_v42  ;;  %v1379_v14 = vsub.f32 %v5378_v6, %v5372_v58  ;;  %v5379_v59 = vld [vmem:[#allocation35_spill] sm:$0xff]  ;;  %v1417_v27 = vsub.f32 %v4284_v62, %v4300_v25 }
 0x32c   :  { %v1481_v8 = vmax.f32 %v1362_v52, 1.0  ;;  %v1398_v0 = vsub.f32 %v5379_v59, %v4144_v13  ;;  %2432 = vrcp.f32 %v1493_v36  ;;  %v1422_v11 = vadd.f32 %v1421_v28, %v4325_v17  ;;  %v5381_v6 = vld [vmem:[#allocation111_spill] sm:$0xff] }
 0x32d   :  { %1444 = vst [vmem:[#allocation5 + $0x8] sm:$0x1] %v1442_v12  ;;  %v1505_v49 = vmax.f32 %v1357_v4, 1.0  ;;  %v1517_v29 = vmax.f32 %v5367_v42, 1.0  ;;  %v1416_v56 = vsub.f32 %v4314_v19, %v4325_v17  ;;  %v2009_v53 = vmul.f32 2.0, %v5380_v22 }
 0x32e   :  { %v2427_v43 = vpop.eup %2426  ;;  %2434 = vrcp.f32 %v1481_v8  ;;  %v1380_v62 = vsub.f32 %v1379_v14, %v5369_v1  ;;  %v1399_v21 = vsub.f32 %v1398_v0, %v4146_v46  ;;  %v1418_v3 = vsub.f32 %v1417_v27, %v4295_v35  ;;  %v5382_v14 = vld [vmem:[#allocation49_spill] sm:$0xff]  ;;  %v5384_v27 = vld [vmem:[#allocation82_spill] sm:$0xff] }
 0x32f   :  { %v1448_v48 = vmul.f32 %v2427_v43, %v1387_v16  ;;  %v1451_v34 = vmul.f32 %v2427_v43, %v1406_v39  ;;  %v1454_v2 = vmul.f32 %v2427_v43, %v1425_v15  ;;  %2436 = vrcp.f32 %v1505_v49  ;;  %v5385_v43 = vld [vmem:[#allocation24_spill] sm:$0xff]  ;;  %v5386_v49 = vld [vmem:[#allocation25_spill] sm:$0xff] }
 0x330   :  { %2438 = vrcp.f32 %v1517_v29  ;;  %v2010_v5 = vmul.f32 %v2009_v53, %v1995_v24  ;;  %v1377_v26 = vsub.f32 %v5369_v1, %v5377_v40  ;;  %v1396_v63 = vsub.f32 %v4146_v46, %v4150_v37 }
 0x331   :  { %v2429_v18 = vpop.eup %2428  ;;  %1450 = vst [vmem:[#allocation5 + $0x9] sm:$0x1] %v1448_v48  ;;  %1453 = vst [vmem:[#allocation5 + $0xa] sm:$0x1] %v1451_v34  ;;  %v1415_v38 = vsub.f32 %v4295_v35, %v4325_v17  ;;  %v1381_v30 = vadd.f32 %v1380_v62, %v5377_v40  ;;  %v1400_v50 = vadd.f32 %v1399_v21, %v4150_v37 }
 0x332   :  { %1456 = vst [vmem:[#allocation5 + $0xb] sm:$0x1] %v1454_v2  ;;  %v2431_v42 = vpop.eup %2430  ;;  %v1460_v33 = vmul.f32 %v2429_v18, %v1384_v61  ;;  %v1463_v20 = vmul.f32 %v2429_v18, %v1403_v45  ;;  %v1466_v23 = vmul.f32 %v2429_v18, %v1422_v11  ;;  %v2013_v31 = vmul.f32 %v2425_v41, %v2010_v5 }
 0x333   :  { %v1472_v19 = vmul.f32 %v2431_v42, %v1378_v57  ;;  %v1475_v9 = vmul.f32 %v2431_v42, %v1397_v44  ;;  %v1478_v60 = vmul.f32 %v2431_v42, %v1416_v56  ;;  %v1419_v10 = vadd.f32 %v1418_v3, %v4325_v17 }
 0x334   :  { %1462 = vst [vmem:[#allocation5 + $0xc] sm:$0x1] %v1460_v33  ;;  %1465 = vst [vmem:[#allocation5 + $0xd] sm:$0x1] %v1463_v20  ;;  %v2014_v55 = vmul.f32 %v2013_v31, %v2013_v31  ;;  %v1376_v1 = vsub.f32 %v5372_v58, %v5377_v40  ;;  %v1395_v46 = vsub.f32 %v4144_v13, %v4150_v37 }
 0x335   :  { %1468 = vst [vmem:[#allocation5 + $0xe] sm:$0x1] %v1466_v23  ;;  %1474 = vst [vmem:[#allocation5 + $0xf] sm:$0x1] %v1472_v19  ;;  %v1414_v35 = vsub.f32 %v4300_v25, %v4325_v17  ;;  %v1973_v11 = vsub.f32 %v5385_v43, %v5384_v27 }
 0x336   :  { %1477 = vst [vmem:[#allocation5 + $0x10] sm:$0x1] %v1475_v9  ;;  %1480 = vst [vmem:[#allocation5 + $0x11] sm:$0x1] %v1478_v60  ;;  %v2433_v47 = vpop.eup %2432  ;;  %v2015_v16 = vadd.f32 1.0, %v2014_v55  ;;  %v5387_v55 = vld [vmem:[#allocation11_spill] sm:$0xff] }
 0x337   :  { %v1496_v41 = vmul.f32 %v2433_v47, %v1377_v26  ;;  %v1499_v24 = vmul.f32 %v2433_v47, %v1396_v63  ;;  %v1502_v54 = vmul.f32 %v2433_v47, %v1415_v38  ;;  %v1571_v47 = vmul.f32 0.0, %v5387_v55 }
 0x338   :  { %v2435_v51 = vpop.eup %2434  ;;  %2440 = vrsqrt.f32 %v2015_v16  ;;  %vm2018_vm1 = vcmp.eq.f32.partialorder %v2015_v16, inf  ;;  %v2021_v57 = vand.u32 2147483648, %v2015_v16  ;;  %vm2020_vm2 = vcmp.eq.f32.partialorder %v2015_v16, 0.0 }
 0x339   :  { %v1484_v7 = vmul.f32 %v2435_v51, %v1381_v30  ;;  %v1487_v39 = vmul.f32 %v2435_v51, %v1400_v50  ;;  %v1490_v15 = vmul.f32 %v2435_v51, %v1419_v10  ;;  %v2437_v28 = vpop.eup %2436  ;;  %1498 = vst [vmem:[#allocation5 + $0x15] sm:$0x1] %v1496_v41  ;;  %1501 = vst [vmem:[#allocation5 + $0x16] sm:$0x1] %v1499_v24  ;;  %v5389_v41 = vld [vmem:[#allocation85_spill] sm:$0xff] }
 0x33a   :  { %1504 = vst [vmem:[#allocation5 + $0x17] sm:$0x1] %v1502_v54  ;;  %v2439_v58 = vpop.eup %2438  ;;  %v1508_v13 = vmul.f32 %v2437_v28, %v1376_v1  ;;  %v1511_v52 = vmul.f32 %v2437_v28, %v1395_v46  ;;  %v1514_v25 = vmul.f32 %v2437_v28, %v1414_v35  ;;  %v5388_v1 = vld [vmem:[#allocation10_spill] sm:$0xff]  ;;  %v5390_v54 = vld [vmem:[#allocation13_spill] sm:$0xff] }
 0x33b   :  { %1486 = vst [vmem:[#allocation5 + $0x12] sm:$0x1] %v1484_v7  ;;  %1489 = vst [vmem:[#allocation5 + $0x13] sm:$0x1] %v1487_v39  ;;  %v1520_v12 = vmul.f32 %v2439_v58, %v5377_v40  ;;  %v1523_v61 = vmul.f32 %v2439_v58, %v4150_v37  ;;  %v1526_v45 = vmul.f32 %v2439_v58, %v4325_v17  ;;  %v1967_v40 = vmul.f32 0.0, %v5381_v6  ;;  %v5383_v37 = vld [vmem:[#allocation113_spill] sm:$0xff] }
 0x33c   :  { %1492 = vst [vmem:[#allocation5 + $0x14] sm:$0x1] %v1490_v15  ;;  %1510 = vst [vmem:[#allocation5 + $0x18] sm:$0x1] %v1508_v13  ;;  %v1968_v59 = vmul.f32 %v5383_v37, %v5382_v14  ;;  %v2026_v17 = vmul.f32 %v2013_v31, %v5380_v22  ;;  %v1573_v46 = vmul.f32 0.0, %v5388_v1  ;;  %v1572_v35 = vsub.f32 %v5388_v1, %v1571_v47  ;;  %v5394_v14 = vld [vmem:[#allocation17_spill] sm:$0xff] }
 0x33d   :  { %1513 = vst [vmem:[#allocation5 + $0x19] sm:$0x1] %v1511_v52  ;;  %1516 = vst [vmem:[#allocation5 + $0x1a] sm:$0x1] %v1514_v25  ;;  %v5391_v52 = vld [vmem:[#allocation15_spill] sm:$0xff] }
 0x33e   :  { %1522 = vst [vmem:[#allocation5 + $0x1b] sm:$0x1] %v1520_v12  ;;  %1525 = vst [vmem:[#allocation5 + $0x1c] sm:$0x1] %v1523_v61  ;;  %v1969_v0 = vsub.f32 %v1967_v40, %v1968_v59  ;;  %v4396_v29 = vsub.f32 %v5386_v49, %v2026_v17  ;;  %v1575_v51 = vsub.f32 %v1573_v46, %v5387_v55 }
 0x33f   :  { %1528 = vst [vmem:[#allocation5 + $0x1d] sm:$0x1] %v1526_v45  ;;  %v4416_v24 = vadd.f32 %v2026_v17, %v5389_v41  ;;  %v1574_v13 = vadd.f32 %v1573_v46, %v5387_v55  ;;  %v1576_v12 = vadd.f32 %v5388_v1, %v1571_v47  ;;  %v1578_v1 = vadd.f32 %v1573_v46, %v1571_v47 }
 0x340   :  { %v2053_v53 = vsub.f32 %v4396_v29, %v1973_v11  ;;  %v1627_v7 = vmul.f32 %v5390_v54, %v1575_v51 }
 0x342   :  { %v2441_v36 = vpop.eup %2440  ;;  %v2057_v22 = vmul.f32 %v2053_v53, %v2053_v53  ;;  %v2056_v20 = vand.u32 2147483647, %v2053_v53  ;;  %vm2054_vm5 = vcmp.ge.f32.partialorder %v2053_v53, 0.0  ;;  %v1628_v61 = vadd.f32 %v1627_v7, %v5391_v52 }
 0x343   :  { %v2017_v44 = vmul.f32 %v2441_v36, %v2015_v16  ;;  %v2055_v63 = vsel %vm2054_vm5, 1.0, %v5376_v32 }
 0x345   :  { %v2019_v8 = vsel %vm2018_vm1, %v2015_v16, %v2017_v44  ;;  %v1623_v16 = vmul.f32 %v5390_v54, %v1572_v35  ;;  %v5392_v44 = vld [vmem:[#allocation12_spill] sm:$0xff] }
 0x346   :  { %v2022_v4 = vsel %vm2020_vm2, %v2021_v57, %v2019_v8  ;;  %v1577_v57 = vsub.f32 %v1573_v46, %v1571_v47  ;;  %v1621_v8 = vmul.f32 %v5392_v44, %v1572_v35  ;;  %v1625_v17 = vmul.f32 %v5392_v44, %v1575_v51 }
 0x347   :  { %2442 = vrcp.f32 %v2022_v4  ;;  %v1624_v25 = vadd.f32 %v1623_v16, %v5391_v52  ;;  %v5393_v4 = vld [vmem:[#allocation16_spill] sm:$0xff]  ;;  %v5398_v16 = vld [vmem:[#allocation21_spill] sm:$0xff] }
 0x348   :  { %v1675_v40 = vmul.f32 %v5393_v4, %v1574_v13  ;;  %v1681_v49 = vmul.f32 %v5393_v4, %v1576_v12 }
 0x349   :  { %v1676_v59 = vmul.f32 %v5394_v14, %v1624_v25 }
 0x351   :  { %v4398_v48 = vpop.eup %2442 }
 0x352   :  { %v4401_v34 = vmul.f32 %v4398_v48, %v2013_v31  ;;  %v2027_v2 = vmul.f32 %v4398_v48, %v1969_v0  ;;  %v2031_v39 = vmul.f32 0.0, %v4398_v48 }
 0x354   :  { %v2028_v56 = vmul.f32 0.0, %v4401_v34  ;;  %v2030_v45 = vmul.f32 %v4401_v34, %v1969_v0  ;;  %v1682_v0 = vmul.f32 %v5394_v14, %v1628_v61 }
 0x356   :  { %v2029_v18 = vsub.f32 %v2027_v2, %v2028_v56  ;;  %v5395_v56 = vld [vmem:[#allocation14_spill] sm:$0xff] }
 0x357   :  { %v1622_v53 = vsub.f32 %v1621_v8, %v5395_v56 }
 0x358   :  { %v2058_v62 = vmul.f32 4.0, %v2029_v18  ;;  %v2069_v26 = vmul.f32 2.0, %v2029_v18 }
 0x35a   :  { %v2059_v21 = vmul.f32 %v2058_v62, %v2029_v18  ;;  %v2070_v38 = vmul.f32 %v2069_v26, %v2055_v63  ;;  %v2032_v62 = vadd.f32 %v2031_v39, %v2030_v45  ;;  %v5399_v39 = vld [vmem:[#allocation20_spill] sm:$0xff] }
 0x35c   :  { %v2060_v3 = vadd.f32 %v2059_v21, %v2057_v22  ;;  %v1626_v22 = vsub.f32 %v1625_v17, %v5395_v56  ;;  %v1683_v21 = vsub.f32 %v1681_v49, %v1682_v0 }
 0x35e   :  { %2444 = vrsqrt.f32 %v2060_v3  ;;  %vm2063_vm3 = vcmp.eq.f32.partialorder %v2060_v3, inf  ;;  %v2066_v33 = vand.u32 2147483648, %v2060_v3  ;;  %vm2065_vm4 = vcmp.eq.f32.partialorder %v2060_v3, 0.0 }
 0x368   :  { %v2445_v42 = vpop.eup %2444 }
 0x369   :  { %v2062_v23 = vmul.f32 %v2445_v42, %v2060_v3  ;;  %v1678_v42 = vmul.f32 %v5394_v14, %v1574_v13 }
 0x36b   :  { %v2064_v5 = vsel %vm2063_vm3, %v2060_v3, %v2062_v23  ;;  %v1631_v3 = vmul.f32 %v5390_v54, %v1577_v57  ;;  %v5397_v23 = vld [vmem:[#allocation19_spill] sm:$0xff] }
 0x36c   :  { %v2067_v19 = vsel %vm2065_vm4, %v2066_v33, %v2064_v5  ;;  %v5396_v33 = vld [vmem:[#allocation18_spill] sm:$0xff]  ;;  %v1742_v26 = vmul.f32 %v5397_v23, %v1683_v21  ;;  %v1738_v51 = vmul.f32 %v5397_v23, %v1622_v53 }
 0x36d   :  { %v2068_v9 = vadd.f32 %v2067_v19, %v2056_v20  ;;  %v1735_v20 = vmul.f32 %v5396_v33, %v1622_v53  ;;  %v1684_v19 = vmul.f32 %v5394_v14, %v1576_v12  ;;  %v1632_v35 = vadd.f32 %v5392_v44, %v1631_v3 }
 0x36e   :  { %v1745_v13 = vmul.f32 %v5396_v33, %v1683_v21 }
 0x36f   :  { %v2071_v60 = vadd.f32 1e-30, %v2068_v9  ;;  %v1685_v9 = vmul.f32 %v5393_v4, %v1628_v61 }
 0x371   :  { %2446 = vrcp.f32 %v2071_v60  ;;  %v1741_v60 = vmul.f32 %v5396_v33, %v1626_v22 }
 0x373   :  { %v1743_v55 = vsub.f32 %v1741_v60, %v1742_v26 }
 0x375   :  { %v1804_v52 = vmul.f32 %v5398_v16, %v1743_v55 }
 0x37b   :  { %v2447_v31 = vpop.eup %2446 }
 0x37c   :  { %v4407_v30 = vmul.f32 %v2447_v31, %v2070_v38 }
 0x37e   :  { %v2074_v50 = vmul.f32 %v4407_v30, %v4407_v30  ;;  %v4422_v28 = vmul.f32 %v4407_v30, %v2029_v18  ;;  %v1677_v18 = vsub.f32 %v1675_v40, %v1676_v59  ;;  %v5400_v59 = vld [vmem:[#allocation22_spill] sm:$0xff] }
 0x380   :  { %v2075_v10 = vadd.f32 1.0, %v2074_v50  ;;  %v4435_v43 = vsub.f32 %v1973_v11, %v4422_v28  ;;  %v1679_v11 = vmul.f32 %v5393_v4, %v1624_v25  ;;  %v1736_v5 = vmul.f32 %v5397_v23, %v1677_v18 }
 0x381   :  { %v1629_v50 = vmul.f32 %v5392_v44, %v1577_v57  ;;  %v1739_v41 = vmul.f32 %v5396_v33, %v1677_v18  ;;  %v1687_v57 = vmul.f32 %v5393_v4, %v1578_v1  ;;  %v1688_v44 = vmul.f32 %v5394_v14, %v1632_v35 }
 0x382   :  { %2448 = vrsqrt.f32 %v2075_v10  ;;  %vm2078_vm6 = vcmp.eq.f32.partialorder %v2075_v10, inf  ;;  %v2081_v15 = vand.u32 2147483648, %v2075_v10  ;;  %vm2080_vm7 = vcmp.eq.f32.partialorder %v2075_v10, 0.0 }
 0x383   :  { %v4452_v63 = vsub.f32 %v4416_v24, %v4435_v43  ;;  %v1680_v38 = vadd.f32 %v1679_v11, %v1678_v42  ;;  %v1737_v31 = vsub.f32 %v1735_v20, %v1736_v5  ;;  %v1740_v46 = vadd.f32 %v1739_v41, %v1738_v51 }
 0x384   :  { %v4467_v61 = vsub.f32 %v1629_v50, %v5390_v54  ;;  %v1690_v5 = vmul.f32 %v5394_v14, %v1578_v1 }
 0x385   :  { %v1798_v7 = vmul.f32 %v5398_v16, %v1737_v31  ;;  %v2117_v47 = vmul.f32 %v4452_v63, %v4452_v63  ;;  %v1795_v8 = vmul.f32 %v5399_v39, %v1737_v31  ;;  %v1796_v40 = vmul.f32 %v5398_v16, %v1680_v38  ;;  %v5403_v31 = vld [vmem:[#allocation40_spill] sm:$0xff] }
 0x386   :  { %v1855_v17 = vmul.f32 %v5400_v59, %v1740_v46  ;;  %vm2114_vm10 = vcmp.ge.f32.partialorder %v4452_v63, 0.0 }
 0x387   :  { %v1797_v3 = vsub.f32 %v1795_v8, %v1796_v40 }
 0x38c   :  { %v2449_v58 = vpop.eup %2448 }
 0x38d   :  { %v2077_v36 = vmul.f32 %v2449_v58, %v2075_v10  ;;  %v1744_v58 = vmul.f32 %v5397_v23, %v1626_v22 }
 0x38f   :  { %v2079_v27 = vsel %vm2078_vm6, %v2075_v10, %v2077_v36  ;;  %v1686_v10 = vadd.f32 %v1685_v9, %v1684_v19  ;;  %v1746_v45 = vadd.f32 %v1745_v13, %v1744_v58  ;;  %v1689_v58 = vsub.f32 %v1687_v57, %v1688_v44 }
 0x390   :  { %v2082_v2 = vsel %vm2080_vm7, %v2081_v15, %v2079_v27  ;;  %v1799_v15 = vmul.f32 %v5399_v39, %v1680_v38  ;;  %v5401_v27 = vld [vmem:[#allocation23_spill] sm:$0xff]  ;;  %v1747_v44 = vmul.f32 %v5396_v33, %v4467_v61 }
 0x391   :  { %2450 = vrcp.f32 %v2082_v2  ;;  %v1805_v25 = vmul.f32 %v5399_v39, %v1686_v10  ;;  %v1801_v2 = vmul.f32 %v5399_v39, %v1743_v55  ;;  %v1802_v54 = vmul.f32 %v5398_v16, %v1686_v10 }
 0x392   :  { %v1800_v12 = vadd.f32 %v1799_v15, %v1798_v7  ;;  %v1861_v56 = vmul.f32 %v5400_v59, %v1746_v45  ;;  %v1858_v60 = vmul.f32 %v5401_v27, %v1740_v46  ;;  %v1864_v10 = vmul.f32 %v5401_v27, %v1746_v45 }
 0x393   :  { %v1806_v36 = vadd.f32 %v1805_v25, %v1804_v52  ;;  %v1803_v11 = vsub.f32 %v1801_v2, %v1802_v54  ;;  %v1918_v52 = vmul.f32 %v5403_v31, %v1797_v3  ;;  %v1691_v46 = vmul.f32 %v5393_v4, %v1632_v35 }
 0x394   :  { %v1856_v49 = vmul.f32 %v5401_v27, %v1800_v12  ;;  %v1859_v26 = vmul.f32 %v5400_v59, %v1800_v12  ;;  %v1748_v2 = vmul.f32 %v5397_v23, %v1689_v58 }
 0x395   :  { %v1862_v53 = vmul.f32 %v5401_v27, %v1806_v36  ;;  %v1865_v55 = vmul.f32 %v5400_v59, %v1806_v36  ;;  %v1924_v8 = vmul.f32 %v5403_v31, %v1803_v11 }
 0x396   :  { %v1857_v42 = vsub.f32 %v1855_v17, %v1856_v49  ;;  %v1860_v14 = vadd.f32 %v1859_v26, %v1858_v60  ;;  %v1692_v26 = vadd.f32 %v1691_v46, %v1690_v5 }
 0x397   :  { %v1863_v20 = vsub.f32 %v1861_v56, %v1862_v53  ;;  %v1866_v7 = vadd.f32 %v1865_v55, %v1864_v10 }
 0x398   :  { %v1916_v50 = vmul.f32 %v5403_v31, %v1857_v42  ;;  %v1979_v45 = vmul.f32 %v5381_v6, %v1860_v14  ;;  %v1976_v53 = vmul.f32 %v5383_v37, %v1860_v14  ;;  %v1749_v14 = vsub.f32 %v1747_v44, %v1748_v2 }
 0x399   :  { %v1922_v15 = vmul.f32 %v5403_v31, %v1863_v20  ;;  %v1985_v35 = vmul.f32 %v5381_v6, %v1866_v7 }
 0x39a   :  { %v1807_v5 = vmul.f32 %v5399_v39, %v1749_v14 }
 0x39b   :  { %v4475_v0 = vpop.eup %2450 }
 0x39c   :  { %v4483_v18 = vmul.f32 %v4475_v0, %v4407_v30  ;;  %v2087_v22 = vmul.f32 %v4475_v0, %v2032_v62  ;;  %v2091_v21 = vmul.f32 0.0, %v4475_v0  ;;  %v5402_v30 = vld [vmem:[#allocation39_spill] sm:$0xff] }
 0x39d   :  { %v1915_v38 = vmul.f32 %v5402_v30, %v1797_v3  ;;  %v1921_v1 = vmul.f32 %v5402_v30, %v1803_v11  ;;  %v1919_v25 = vmul.f32 %v5402_v30, %v1857_v42  ;;  %v1925_v57 = vmul.f32 %v5402_v30, %v1863_v20 }
 0x39e   :  { %v2088_v19 = vmul.f32 0.0, %v4483_v18  ;;  %v2090_v9 = vmul.f32 %v4483_v18, %v2032_v62  ;;  %v1982_v11 = vmul.f32 %v5383_v37, %v1866_v7 }
 0x39f   :  { %v1917_v62 = vsub.f32 %v1915_v38, %v1916_v50  ;;  %v1923_v36 = vsub.f32 %v1921_v1, %v1922_v15  ;;  %v4510_v17 = vadd.f32 %v1919_v25, %v1918_v52  ;;  %v4526_v3 = vadd.f32 %v1925_v57, %v1924_v8 }
 0x3a0   :  { %v4496_v51 = vsub.f32 %v2087_v22, %v2088_v19  ;;  %v4498_v41 = vadd.f32 %v2091_v21, %v2090_v9  ;;  %v1750_v38 = vmul.f32 %v5397_v23, %v4467_v61 }
 0x3a1   :  { %v1978_v12 = vmul.f32 %v5383_v37, %v1917_v62  ;;  %v1984_v4 = vmul.f32 %v5383_v37, %v1923_v36  ;;  %v1975_v56 = vmul.f32 %v5381_v6, %v1917_v62  ;;  %v2035_v22 = vmul.f32 %v4398_v48, %v4510_v17 }
 0x3a2   :  { %v2118_v13 = vmul.f32 4.0, %v4496_v51  ;;  %v1981_v42 = vmul.f32 %v5381_v6, %v1923_v36  ;;  %v2041_v60 = vmul.f32 %v4398_v48, %v4526_v3  ;;  %v1751_v62 = vmul.f32 %v5396_v33, %v1689_v58 }
 0x3a3   :  { %v4515_v49 = vadd.f32 %v1979_v45, %v1978_v12  ;;  %v1977_v20 = vsub.f32 %v1975_v56, %v1976_v53  ;;  %v4530_v9 = vadd.f32 %v1985_v35, %v1984_v4  ;;  %v1810_v33 = vmul.f32 %v5398_v16, %v1749_v14 }
 0x3a4   :  { %v2119_v40 = vmul.f32 %v2118_v13, %v4496_v51  ;;  %v1808_v13 = vmul.f32 %v5398_v16, %v1692_v26  ;;  %v1752_v25 = vadd.f32 %v1751_v62, %v1750_v38  ;;  %v1811_v45 = vmul.f32 %v5399_v39, %v1692_v26 }
 0x3a5   :  { %v2036_v21 = vmul.f32 %v4401_v34, %v4515_v49  ;;  %v2095_v50 = vmul.f32 %v4475_v0, %v1977_v20  ;;  %v2042_v55 = vmul.f32 %v4401_v34, %v4530_v9  ;;  %v2098_v23 = vmul.f32 %v4483_v18, %v1977_v20 }
 0x3a6   :  { %v2120_v54 = vadd.f32 %v2119_v40, %v2117_v47  ;;  %v1983_v47 = vsub.f32 %v1981_v42, %v1982_v11  ;;  %v1809_v40 = vsub.f32 %v1807_v5, %v1808_v13  ;;  %v1812_v4 = vadd.f32 %v1811_v45, %v1810_v33 }
 0x3a7   :  { %v2037_v19 = vsub.f32 %v2035_v22, %v2036_v21  ;;  %v2043_v15 = vsub.f32 %v2041_v60, %v2042_v55  ;;  %v1867_v35 = vmul.f32 %v5400_v59, %v1752_v25  ;;  %v1870_v2 = vmul.f32 %v5401_v27, %v1752_v25 }
 0x3a8   :  { %2452 = vrsqrt.f32 %v2120_v54  ;;  %v2101_v1 = vmul.f32 %v4475_v0, %v1983_v47  ;;  %v2104_v52 = vmul.f32 %v4483_v18, %v1983_v47  ;;  %vm2123_vm8 = vcmp.eq.f32.partialorder %v2120_v54, inf }
 0x3a9   :  { %v2096_v10 = vmul.f32 %v4483_v18, %v2037_v19  ;;  %v2099_v61 = vmul.f32 %v4475_v0, %v2037_v19  ;;  %v2102_v46 = vmul.f32 %v4483_v18, %v2043_v15  ;;  %v2105_v12 = vmul.f32 %v4475_v0, %v2043_v15 }
 0x3aa   :  { %v2126_v44 = vand.u32 2147483648, %v2120_v54  ;;  %v2116_v56 = vand.u32 2147483647, %v4452_v63  ;;  %vm2125_vm9 = vcmp.eq.f32.partialorder %v2120_v54, 0.0  ;;  %v1868_v53 = vmul.f32 %v5401_v27, %v1812_v4 }
 0x3ab   :  { %v4542_v7 = vsub.f32 %v2095_v50, %v2096_v10  ;;  %v4552_v58 = vadd.f32 %v2099_v61, %v2098_v23  ;;  %v4555_v36 = vsub.f32 %v2101_v1, %v2102_v46  ;;  %v4557_v8 = vadd.f32 %v2105_v12, %v2104_v52 }
 0x3ac   :  { %v1871_v39 = vmul.f32 %v5400_v59, %v1812_v4  ;;  %v1927_v21 = vmul.f32 %v5402_v30, %v1809_v40  ;;  %v1869_v11 = vsub.f32 %v1867_v35, %v1868_v53  ;;  %v1930_v19 = vmul.f32 %v5403_v31, %v1809_v40 }
 0x3ad   :  { %v2129_v14 = vmul.f32 2.0, %v4496_v51  ;;  %v2115_v62 = vsel %vm2114_vm10, 1.0, %v5376_v32  ;;  %v4588_v45 = vadd.f32 %v4422_v28, %v4396_v29  ;;  %v2038_v29 = vmul.f32 %v4401_v34, %v4510_v17 }
 0x3ae   :  { %v1872_v20 = vadd.f32 %v1871_v39, %v1870_v2  ;;  %v1928_v60 = vmul.f32 %v5403_v31, %v1869_v11  ;;  %v1931_v26 = vmul.f32 %v5402_v30, %v1869_v11  ;;  %v2039_v28 = vmul.f32 %v4398_v48, %v4515_v49 }
 0x3af   :  { %v2130_v5 = vmul.f32 %v2129_v14, %v2115_v62  ;;  %v2045_v2 = vmul.f32 %v4398_v48, %v4530_v9 }
 0x3b0   :  { %v1929_v50 = vsub.f32 %v1927_v21, %v1928_v60  ;;  %v1932_v10 = vadd.f32 %v1931_v26, %v1930_v19  ;;  %v1988_v27 = vmul.f32 %v5383_v37, %v1872_v20  ;;  %v1991_v59 = vmul.f32 %v5381_v6, %v1872_v20 }
 0x3b1   :  { %v2040_v53 = vadd.f32 %v2039_v28, %v2038_v29 }
 0x3b2   :  { %v2453_v57 = vpop.eup %2452  ;;  %v1990_v55 = vmul.f32 %v5383_v37, %v1929_v50  ;;  %v2047_v30 = vmul.f32 %v4398_v48, %v1932_v10 }
 0x3b3   :  { %v2122_v16 = vmul.f32 %v2453_v57, %v2120_v54 }
 0x3b4   :  { %v1992_v31 = vadd.f32 %v1991_v59, %v1990_v55 }
 0x3b5   :  { %v2124_v22 = vsel %vm2123_vm8, %v2120_v54, %v2122_v16  ;;  %v1987_v54 = vmul.f32 %v5381_v6, %v1929_v50 }
 0x3b6   :  { %v2127_v42 = vsel %vm2125_vm9, %v2126_v44, %v2124_v22  ;;  %v2048_v15 = vmul.f32 %v4401_v34, %v1992_v31  ;;  %v2051_v16 = vmul.f32 %v4398_v48, %v1992_v31 }
 0x3b7   :  { %v2128_v47 = vadd.f32 %v2127_v42, %v2116_v56  ;;  %v1989_v1 = vsub.f32 %v1987_v54, %v1988_v27  ;;  %v2050_v56 = vmul.f32 %v4401_v34, %v1932_v10 }
 0x3b8   :  { %v2049_v13 = vsub.f32 %v2047_v30, %v2048_v15 }
 0x3b9   :  { %v2131_v38 = vadd.f32 1e-30, %v2128_v47  ;;  %v2107_v23 = vmul.f32 %v4475_v0, %v1989_v1  ;;  %v2110_v63 = vmul.f32 %v4483_v18, %v1989_v1  ;;  %v2052_v22 = vadd.f32 %v2051_v16, %v2050_v56 }
 0x3ba   :  { %v2108_v6 = vmul.f32 %v4483_v18, %v2049_v13  ;;  %v2111_v37 = vmul.f32 %v4475_v0, %v2049_v13 }
 0x3bb   :  { %2454 = vrcp.f32 %v2131_v38 }
 0x3bc   :  { %v2109_v25 = vsub.f32 %v2107_v23, %v2108_v6  ;;  %v4581_v46 = vadd.f32 %v2111_v37, %v2110_v63 }
 0x3c5   :  { %v2455_v61 = vpop.eup %2454 }
 0x3c6   :  { %v2133_v52 = vmul.f32 %v2455_v61, %v2130_v5 }
 0x3c8   :  { %v2134_v12 = vmul.f32 %v2133_v52, %v2133_v52  ;;  %v4584_v33 = vmul.f32 %v2133_v52, %v4496_v51 }
 0x3ca   :  { %v2135_v40 = vadd.f32 1.0, %v2134_v12  ;;  %v4592_v57 = vadd.f32 %v4584_v33, %v4416_v24  ;;  %v2044_v24 = vmul.f32 %v4401_v34, %v4526_v3 }
 0x3cc   :  { %2456 = vrsqrt.f32 %v2135_v40  ;;  %v2170_v0 = vsub.f32 %v4592_v57, %v4588_v45  ;;  %vm2138_vm11 = vcmp.eq.f32.partialorder %v2135_v40, inf  ;;  %v2141_v44 = vand.u32 2147483648, %v2135_v40 }
 0x3cd   :  { %vm2140_vm12 = vcmp.eq.f32.partialorder %v2135_v40, 0.0  ;;  %v2046_v39 = vadd.f32 %v2045_v2, %v2044_v24 }
 0x3ce   :  { %vm2171_vm13 = vcmp.ge.f32.partialorder %v2170_v0, 0.0  ;;  %v2174_v1 = vmul.f32 %v2170_v0, %v2170_v0  ;;  %v2173_v23 = vand.u32 2147483647, %v2170_v0 }
 0x3cf   :  { %v2172_v54 = vsel %vm2171_vm13, 1.0, %v5376_v32 }
 0x3d6   :  { %v2457_v18 = vpop.eup %2456 }
 0x3d7   :  { %v2137_v4 = vmul.f32 %v2457_v18, %v2135_v40  ;;  %v2150_v18 = vsub.f32 %v4435_v43, %v4584_v33 }
 0x3d9   :  { %v2139_v51 = vsel %vm2138_vm11, %v2135_v40, %v2137_v4 }
 0x3da   :  { %v2142_v35 = vsel %vm2140_vm12, %v2141_v44, %v2139_v51 }
 0x3db   :  { %2458 = vrcp.f32 %v2142_v35 }
 0x3e5   :  { %v2459_v21 = vpop.eup %2458 }
 0x3e6   :  { %v2145_v42 = vmul.f32 %v2459_v21, %v2133_v52  ;;  %v2148_v17 = vmul.f32 %v2459_v21, %v4498_v41  ;;  %v2152_v49 = vmul.f32 %v2459_v21, %v4542_v7  ;;  %v2156_v11 = vmul.f32 %v2459_v21, %v2040_v53 }
 0x3e7   :  { %v2158_v3 = vmul.f32 %v2459_v21, %v4555_v36  ;;  %v2162_v20 = vmul.f32 %v2459_v21, %v2046_v39  ;;  %v2164_v19 = vmul.f32 %v2459_v21, %v2109_v25  ;;  %v2168_v9 = vmul.f32 %v2459_v21, %v2052_v22 }
 0x3e8   :  { %v2147_v47 = vmul.f32 0.0, %v2145_v42  ;;  %v2153_v34 = vmul.f32 %v2145_v42, %v2040_v53  ;;  %v2155_v48 = vmul.f32 %v2145_v42, %v4542_v7  ;;  %v2159_v60 = vmul.f32 %v2145_v42, %v2046_v39 }
 0x3e9   :  { %v2161_v26 = vmul.f32 %v2145_v42, %v4555_v36  ;;  %v2165_v38 = vmul.f32 %v2145_v42, %v2052_v22  ;;  %v2167_v50 = vmul.f32 %v2145_v42, %v2109_v25 }
 0x3ea   :  { %v2149_v10 = vadd.f32 %v2148_v17, %v2147_v47  ;;  %v4611_v27 = vsub.f32 %v2152_v49, %v2153_v34  ;;  %v4613_v41 = vadd.f32 %v2156_v11, %v2155_v48  ;;  %v4615_v59 = vsub.f32 %v2158_v3, %v2159_v60 }
 0x3eb   :  { %v4619_v55 = vadd.f32 %v2162_v20, %v2161_v26  ;;  %v4621_v14 = vsub.f32 %v2164_v19, %v2165_v38  ;;  %v4623_v7 = vadd.f32 %v2168_v9, %v2167_v50 }
 0x3ec   :  { %v2175_v36 = vmul.f32 4.0, %v2149_v10  ;;  %v2186_v31 = vmul.f32 2.0, %v2149_v10 }
 0x3ee   :  { %v2176_v30 = vmul.f32 %v2175_v36, %v2149_v10  ;;  %v2187_v62 = vmul.f32 %v2186_v31, %v2172_v54 }
 0x3f0   :  { %v2177_v15 = vadd.f32 %v2176_v30, %v2174_v1 }
 0x3f2   :  { %2460 = vrsqrt.f32 %v2177_v15  ;;  %vm2180_vm14 = vcmp.eq.f32.partialorder %v2177_v15, inf  ;;  %v2183_v13 = vand.u32 2147483648, %v2177_v15  ;;  %vm2182_vm15 = vcmp.eq.f32.partialorder %v2177_v15, 0.0 }
 0x3fc   :  { %v2461_v5 = vpop.eup %2460 }
 0x3fd   :  { %v2179_v63 = vmul.f32 %v2461_v5, %v2177_v15 }
 0x3ff   :  { %v2181_v32 = vsel %vm2180_vm14, %v2177_v15, %v2179_v63 }
 0x400   :  { %v2184_v6 = vsel %vm2182_vm15, %v2183_v13, %v2181_v32 }
 0x401   :  { %v2185_v37 = vadd.f32 %v2184_v6, %v2173_v23 }
 0x403   :  { %v2188_v61 = vadd.f32 1e-30, %v2185_v37 }
 0x405   :  { %2462 = vrcp.f32 %v2188_v61 }
 0x40f   :  { %v2463_v52 = vpop.eup %2462 }
 0x410   :  { %v2190_v25 = vmul.f32 %v2463_v52, %v2187_v62 }
 0x412   :  { %v2191_v12 = vmul.f32 %v2190_v25, %v2190_v25  ;;  %v2203_v40 = vmul.f32 %v2190_v25, %v2149_v10 }
 0x414   :  { %v2192_v44 = vadd.f32 1.0, %v2191_v12  ;;  %v2204_v4 = vsub.f32 %v4588_v45, %v2203_v40  ;;  %v2205_v51 = vadd.f32 %v2203_v40, %v4592_v57 }
 0x416   :  { %2464 = vrsqrt.f32 %v2192_v44  ;;  %vm4629_vm0 = vcmp.lt.f32.partialorder %v2150_v18, %v2204_v4  ;;  %vm2195_vm3 = vcmp.eq.f32.partialorder %v2192_v44, inf  ;;  %v2198_v39 = vand.u32 2147483648, %v2192_v44 }
 0x417   :  { %v2225_v35 = vsel %vm4629_vm0, %v2204_v4, %v2150_v18  ;;  %v2226_v29 = vsel %vm4629_vm0, %v2150_v18, %v2204_v4  ;;  %vm2197_vm4 = vcmp.eq.f32.partialorder %v2192_v44, 0.0 }
 0x418   :  { %vm4637_vm1 = vcmp.lt.f32.partialorder %v2225_v35, %v2205_v51 }
 0x419   :  { %v2234_v43 = vsel %vm4637_vm1, %v2205_v51, %v2225_v35  ;;  %v2235_v33 = vsel %vm4637_vm1, %v2225_v35, %v2205_v51 }
 0x41a   :  { %vm4645_vm2 = vcmp.lt.f32.partialorder %v2226_v29, %v2235_v33  ;;  %v2251_v57 = vmax.f32 %v2234_v43, 0.0 }
 0x41b   :  { %v2243_v24 = vsel %vm4645_vm2, %v2235_v33, %v2226_v29  ;;  %v2244_v2 = vsel %vm4645_vm2, %v2226_v29, %v2235_v33 }
 0x41c   :  { %2466 = vrsqrt.f32 %v2251_v57  ;;  %v2259_v56 = vmax.f32 %v2243_v24, 0.0  ;;  %v2267_v16 = vmax.f32 %v2244_v2, 0.0  ;;  %vm2254_vm5 = vcmp.eq.f32.partialorder %v2251_v57, inf }
 0x41d   :  { %v2257_v49 = vand.u32 2147483648, %v2251_v57  ;;  %vm2256_vm6 = vcmp.eq.f32.partialorder %v2251_v57, 0.0 }
 0x41e   :  { %2468 = vrsqrt.f32 %v2259_v56  ;;  %vm2262_vm7 = vcmp.eq.f32.partialorder %v2259_v56, inf  ;;  %vm2264_vm8 = vcmp.eq.f32.partialorder %v2259_v56, 0.0  ;;  %v2265_v19 = vand.u32 2147483648, %v2259_v56 }
 0x41f   :  { %2470 = vrsqrt.f32 %v2267_v16  ;;  %vm2270_vm9 = vcmp.eq.f32.partialorder %v2267_v16, inf  ;;  %v2273_v48 = vand.u32 2147483648, %v2267_v16  ;;  %vm2272_vm10 = vcmp.eq.f32.partialorder %v2267_v16, 0.0 }
 0x420   :  { %v2465_v53 = vpop.eup %2464 }
 0x421   :  { %v2194_v22 = vmul.f32 %v2465_v53, %v2192_v44 }
 0x423   :  { %v2196_v21 = vsel %vm2195_vm3, %v2192_v44, %v2194_v22 }
 0x424   :  { %v2199_v42 = vsel %vm2197_vm4, %v2198_v39, %v2196_v21 }
 0x425   :  { %2472 = vrcp.f32 %v2199_v42 }
 0x426   :  { %v2467_v17 = vpop.eup %2466 }
 0x427   :  { %v2253_v11 = vmul.f32 %v2467_v17, %v2251_v57 }
 0x428   :  { %v2469_v3 = vpop.eup %2468 }
 0x429   :  { %v2255_v20 = vsel %vm2254_vm5, %v2251_v57, %v2253_v11  ;;  %v2471_v9 = vpop.eup %2470  ;;  %v2261_v34 = vmul.f32 %v2469_v3, %v2259_v56 }
 0x42a   :  { %v4653_v47 = vsel %vm2256_vm6, %v2257_v49, %v2255_v20  ;;  %v2269_v26 = vmul.f32 %v2471_v9, %v2267_v16 }
 0x42b   :  { %v2275_v60 = vadd.f32 1e-10, %v4653_v47  ;;  %v2263_v38 = vsel %vm2262_vm7, %v2259_v56, %v2261_v34 }
 0x42c   :  { %v4656_v50 = vsel %vm2264_vm8, %v2265_v19, %v2263_v38  ;;  %v2271_v10 = vsel %vm2270_vm9, %v2267_v16, %v2269_v26 }
 0x42d   :  { %2474 = vrcp.f32 %v2275_v60  ;;  %v2278_v1 = vsub.f32 %v4653_v47, %v4656_v50  ;;  %v4660_v36 = vsel %vm2272_vm10, %v2273_v48, %v2271_v10 }
 0x42e   :  { %v2282_v31 = vsub.f32 %v4656_v50, %v4660_v36 }
 0x42f   :  { %v2473_v54 = vpop.eup %2472 }
 0x430   :  { %v2202_v30 = vmul.f32 %v2473_v54, %v2190_v25  ;;  %v2206_v62 = vmul.f32 %v2473_v54, %v4552_v58  ;;  %v2210_v15 = vmul.f32 %v2473_v54, %v4613_v41  ;;  %v2212_v5 = vmul.f32 %v2473_v54, %v4557_v8 }
 0x431   :  { %v2216_v13 = vmul.f32 %v2473_v54, %v4619_v55  ;;  %v2218_v23 = vmul.f32 %v2473_v54, %v4581_v46  ;;  %v2222_v63 = vmul.f32 %v2473_v54, %v4623_v7 }
 0x432   :  { %v2207_v32 = vmul.f32 %v2202_v30, %v4613_v41  ;;  %v2209_v6 = vmul.f32 %v2202_v30, %v4552_v58  ;;  %v2213_v37 = vmul.f32 %v2202_v30, %v4619_v55  ;;  %v2215_v61 = vmul.f32 %v2202_v30, %v4557_v8 }
 0x433   :  { %v2219_v52 = vmul.f32 %v2202_v30, %v4623_v7  ;;  %v2221_v25 = vmul.f32 %v2202_v30, %v4581_v46 }
 0x434   :  { %v2208_v12 = vsub.f32 %v2206_v62, %v2207_v32  ;;  %v2211_v40 = vadd.f32 %v2210_v15, %v2209_v6  ;;  %v2214_v18 = vsub.f32 %v2212_v5, %v2213_v37  ;;  %v2217_v44 = vadd.f32 %v2216_v13, %v2215_v61 }
 0x435   :  { %v2220_v4 = vsub.f32 %v2218_v23, %v2219_v52  ;;  %v2223_v51 = vadd.f32 %v2222_v63, %v2221_v25 }
 0x436   :  { %v2227_v41 = vsel %vm4629_vm0, %v2208_v12, %v4611_v27  ;;  %v2230_v58 = vsel %vm4629_vm0, %v4611_v27, %v2208_v12  ;;  %v2228_v8 = vsel %vm4629_vm0, %v2214_v18, %v4615_v59  ;;  %v2231_v46 = vsel %vm4629_vm0, %v4615_v59, %v2214_v18 }
 0x437   :  { %v2236_v55 = vsel %vm4637_vm1, %v2211_v40, %v2227_v41  ;;  %v2239_v7 = vsel %vm4637_vm1, %v2227_v41, %v2211_v40  ;;  %v2237_v35 = vsel %vm4637_vm1, %v2217_v44, %v2228_v8  ;;  %v2240_v27 = vsel %vm4637_vm1, %v2228_v8, %v2217_v44  ;;  %v2475_v29 = vpop.eup %2474 }
 0x438   :  { %v2245_v43 = vsel %vm4645_vm2, %v2239_v7, %v2230_v58  ;;  %v2248_v33 = vsel %vm4645_vm2, %v2230_v58, %v2239_v7  ;;  %v2289_v59 = vand.u32 2147483647, %v2236_v55  ;;  %2320 = vst [vmem:[#allocation5 + $0x24] sm:$0x1] %v2236_v55  ;;  %v2246_v57 = vsel %vm4645_vm2, %v2240_v27, %v2231_v46 }
 0x439   :  { %v2279_v24 = vmul.f32 %v2475_v29, %v2278_v1  ;;  %v2283_v2 = vmul.f32 %v2475_v29, %v2282_v31  ;;  %v2286_v56 = vmul.f32 %v2475_v29, %v4660_v36  ;;  %v2291_v16 = vand.u32 2147483647, %v2245_v43  ;;  %2322 = vst [vmem:[#allocation5 + $0x25] sm:$0x1] %v2245_v43  ;;  %2324 = vst [vmem:[#allocation5 + $0x26] sm:$0x1] %v2248_v33 }
 0x43a   :  { %v2290_v53 = vmul.f32 %v2289_v59, %v4653_v47  ;;  %v2294_v39 = vand.u32 2147483647, %v2248_v33  ;;  %v2249_v22 = vsel %vm4645_vm2, %v2231_v46, %v2240_v27  ;;  %v2299_v21 = vand.u32 2147483647, %v2237_v35 }
 0x43b   :  { %2281 = vst [vmem:[#allocation5 + $0x1e] sm:$0x1] %v2279_v24  ;;  %2285 = vst [vmem:[#allocation5 + $0x1f] sm:$0x1] %v2283_v2  ;;  %v2292_v42 = vmul.f32 %v2291_v16, %v4656_v50  ;;  %v2301_v17 = vand.u32 2147483647, %v2246_v57  ;;  %v2229_v11 = vsel %vm4629_vm0, %v2220_v4, %v4621_v14  ;;  %v2232_v19 = vsel %vm4629_vm0, %v4621_v14, %v2220_v4 }
 0x43c   :  { %2288 = vst [vmem:[#allocation5 + $0x20] sm:$0x1] %v2286_v56  ;;  %v2304_v49 = vand.u32 2147483647, %v2249_v22  ;;  %v2295_v3 = vmul.f32 %v2294_v39, %v4660_v36  ;;  %v2300_v20 = vmul.f32 %v2299_v21, %v4653_v47  ;;  %v2238_v9 = vsel %vm4637_vm1, %v2223_v51, %v2229_v11 }
 0x43d   :  { %v2293_v34 = vadd.f32 %v2292_v42, %v2290_v53  ;;  %v2302_v48 = vmul.f32 %v2301_v17, %v4656_v50  ;;  %v2241_v26 = vsel %vm4637_vm1, %v2229_v11, %v2223_v51  ;;  %v2309_v54 = vand.u32 2147483647, %v2238_v9 }
 0x43e   :  { %v2305_v60 = vmul.f32 %v2304_v49, %v4660_v36  ;;  %v2247_v38 = vsel %vm4645_vm2, %v2241_v26, %v2232_v19  ;;  %v2250_v10 = vsel %vm4645_vm2, %v2232_v19, %v2241_v26 }
 0x43f   :  { %v2296_v0 = vadd.f32 %v2295_v3, %v2293_v34  ;;  %v2303_v14 = vadd.f32 %v2302_v48, %v2300_v20  ;;  %v2311_v1 = vand.u32 2147483647, %v2247_v38  ;;  %v2314_v31 = vand.u32 2147483647, %v2250_v10 }
 0x440   :  { %v2310_v30 = vmul.f32 %v2309_v54, %v4653_v47 }
 0x441   :  { %2298 = vst [vmem:[#allocation5 + $0x21] sm:$0x1] %v2296_v0  ;;  %v2306_v62 = vadd.f32 %v2305_v60, %v2303_v14  ;;  %v2312_v15 = vmul.f32 %v2311_v1, %v4656_v50  ;;  %v2315_v28 = vmul.f32 %v2314_v31, %v4660_v36 }
 0x443   :  { %2308 = vst [vmem:[#allocation5 + $0x22] sm:$0x1] %v2306_v62  ;;  %v2313_v5 = vadd.f32 %v2312_v15, %v2310_v30 }
 0x445   :  { %v2316_v13 = vadd.f32 %v2315_v28, %v2313_v5 }
 0x447   :  { %2318 = vst [vmem:[#allocation5 + $0x23] sm:$0x1] %v2316_v13 }
 0x448   :  { %2575 = shalt.err (!%p2572_p12)
}
 0x449   :  { %s2576_s3 = scalar_lea.hbm %s4745_s2, 624 }
 0x44a   :  { %p2577_p13 = scmp.ne.s32.totalorder %s4745_s2, %s2576_s3  ;;  %p2580_p0 = scmp.lt.u32.totalorder %s2576_s3, %s4745_s2 }
 0x44c   :  { %p2582_p1 = pnand %p2580_p0, %p2577_p13 }
 0x44e   :  { %2585 = shalt.err (!%p2582_p1)
}
 0x44f   :  { %2336 = dma.vmem_to_hbm [thread:$0]  %s2331_s26, 624, %s4745_s2, [#allocation4], %s2591_s19, %s2591_s19, %s2592_s20  }
 0x450   :  { %2588 = dma.done.wait [#allocation4], 624  }
 0x451   :  { %2589 = vsyncadd [#allocation4], 4294966672 }
 0x452   :  { %2340 = vsyncpa [#allocation3], 1 }
 0x453   :  { %2341 = vsyncpa [#allocation4], 1 }

</bundles_post_ra>
